<compile_context>
chip_gen: v6e
topology: v6e:2x2x1
jax: 0.10.0
libtpu: 0.0.40
codegen_flags: <defaults>
</compile_context>

<pallas_src>
import jax
import jax.numpy as jnp
from jax.experimental import pallas as pl
from jax.experimental.pallas import tpu as pltpu

_LANES = 128


def _round_up(x: int, m: int) -> int:
    return (x + m - 1) // m * m


def _fused_double_conv_kernel(x_ref, w1_ref, w2_ref, o_ref, buf_ref):
    """Fused [conv3x3(pad=1, no bias) -> InstanceNorm2d -> ReLU] x 2 for one image.

    x_ref  : (1, H, W, C)   bf16, channel-padded concat([x, upsample(x_up)])
    w1_ref : (9, C, C)      bf16, tap-major conv1 weights (padded channels are zero)
    w2_ref : (9, C, C)      bf16, tap-major conv2 weights
    o_ref  : (1, H, W, C)   f32 output (padded channels come out exactly zero)
    buf_ref: (H+2, W+2, C)  bf16 VMEM scratch with zero halo, reused by both layers
    """
    H = o_ref.shape[1]
    W = o_ref.shape[2]
    C = o_ref.shape[3]
    inv_hw = 1.0 / float(H * W)

    # Zero the halo once; the interior is overwritten with the layer-1 input now and with the
    # layer-1 output between the two layers (the halo stays zero, matching padding=1 zeros).
    buf_ref[...] = jnp.zeros_like(buf_ref)
    buf_ref[1:H + 1, 1:W + 1, :] = x_ref[0]

    def conv3x3_instnorm_relu(w_ref):
        # 3x3 conv as 9 lane-dense MXU matmuls: (H*W, C) @ (C, C) with f32 accumulation.
        acc = jnp.zeros((H * W, C), jnp.float32)
        for dh in range(3):
            for dw in range(3):
                patch = buf_ref[dh:dh + H, dw:dw + W, :]          # (H, W, C) bf16, read from ref
                acc += jnp.dot(patch.reshape(H * W, C), w_ref[dh * 3 + dw],
                               preferred_element_type=jnp.float32)
        # InstanceNorm2d (eps=1e-5, biased variance, no affine) in a single pass over acc.
        s = jnp.sum(acc, axis=0, keepdims=True)                   # (1, C)
        ss = jnp.sum(acc * acc, axis=0, keepdims=True)            # (1, C)
        mean = s * inv_hw
        var = jnp.maximum(ss * inv_hw - mean * mean, 0.0)
        y = (acc - mean) * jax.lax.rsqrt(var + 1e-5)
        return jnp.maximum(y, 0.0)                                # (H*W, C) f32

    y1 = conv3x3_instnorm_relu(w1_ref)
    # Layer-1 output back into the zero-halo scratch (interior only) for the second conv.
    buf_ref[1:H + 1, 1:W + 1, :] = y1.reshape(H, W, C).astype(buf_ref.dtype)
    y2 = conv3x3_instnorm_relu(w2_ref)

    o_ref[0] = y2.reshape(H, W, C).astype(o_ref.dtype)


def _pad_weights_tap_major(w_hwio, c_pad):
    """(3, 3, Cin, Cout) f32 -> (9, c_pad, c_pad) bf16 with zero-padded channels."""
    kh, kw, cin, cout = w_hwio.shape
    w = jnp.zeros((kh * kw, c_pad, c_pad), jnp.bfloat16)
    return w.at[:, :cin, :cout].set(w_hwio.reshape(kh * kw, cin, cout).astype(jnp.bfloat16))


def fused_double_conv(y_nhwc, w1_hwio, w2_hwio):
    """Two fused conv3x3+InstanceNorm+ReLU layers. y_nhwc: (N,H,W,Cin) f32 -> (N,H,W,Cout) f32."""
    N, H, W, cin = y_nhwc.shape
    cout = w1_hwio.shape[-1]
    c_pad = _round_up(max(cin, cout), _LANES)

    # Lane-dense, bf16, channel-padded input that feeds the MXU directly (no f32 HBM pad copy).
    x = jnp.zeros((N, H, W, c_pad), jnp.bfloat16)
    x = x.at[..., :cin].set(y_nhwc.astype(jnp.bfloat16))

    w1 = _pad_weights_tap_major(w1_hwio, c_pad)
    w2 = _pad_weights_tap_major(w2_hwio, c_pad)

    out = pl.pallas_call(
        _fused_double_conv_kernel,
        out_shape=jax.ShapeDtypeStruct((N, H, W, c_pad), jnp.float32),
        grid=(N,),
        in_specs=[
            pl.BlockSpec((1, H, W, c_pad), lambda n: (n, 0, 0, 0)),
            pl.BlockSpec((9, c_pad, c_pad), lambda n: (0, 0, 0)),
            pl.BlockSpec((9, c_pad, c_pad), lambda n: (0, 0, 0)),
        ],
        out_specs=pl.BlockSpec((1, H, W, c_pad), lambda n: (n, 0, 0, 0)),
        scratch_shapes=[pltpu.VMEM((H + 2, W + 2, c_pad), jnp.bfloat16)],
        compiler_params=pltpu.CompilerParams(
            dimension_semantics=("parallel",),
            vmem_limit_bytes=32 * 1024 * 1024,
        ),
    )(x, w1, w2)

    return out[..., :cout]


def bilinear_upsample_2x_nhwc(x):
    """PyTorch nn.Upsample(scale_factor=2, mode='bilinear', align_corners=False)."""
    N, H, W, C = x.shape

    def idx_w(out_size, in_size):
        # src = (dst + 0.5) / 2 - 0.5, clamped like PyTorch.
        coords = (jnp.arange(out_size, dtype=jnp.float32) + 0.5) / 2.0 - 0.5
        coords = jnp.clip(coords, 0.0, float(in_size - 1))
        lo = jnp.floor(coords).astype(jnp.int32)
        hi = jnp.minimum(lo + 1, in_size - 1)
        frac = coords - lo.astype(jnp.float32)
        return lo, hi, frac

    lo_h, hi_h, fh = idx_w(2 * H, H)
    lo_w, hi_w, fw = idx_w(2 * W, W)

    xh = (x[:, lo_h] * (1.0 - fh)[None, :, None, None]
          + x[:, hi_h] * fh[None, :, None, None])                 # (N, 2H, W, C)
    out = (xh[:, :, lo_w] * (1.0 - fw)[None, None, :, None]
           + xh[:, :, hi_w] * fw[None, None, :, None])            # (N, 2H, 2W, C)
    return out


class UpsamplingConcatPallas:
    """Pallas/JAX equivalent of torchdrive UpsamplingConcat (scale_factor=2)."""

    def __init__(self, in_channels: int, out_channels: int, key):
        k1, k2 = jax.random.split(key)
        fan_in1 = in_channels * 9
        fan_in2 = out_channels * 9
        # Deterministic synthetic init (Conv2d bias=False in the reference).
        self.w1 = jax.random.uniform(
            k1, (3, 3, in_channels, out_channels), jnp.float32,
            minval=-1.0, maxval=1.0) / jnp.sqrt(fan_in1)
        self.w2 = jax.random.uniform(
            k2, (3, 3, out_channels, out_channels), jnp.float32,
            minval=-1.0, maxval=1.0) / jnp.sqrt(fan_in2)

    def __call__(self, x_to_upsample_nchw, x_nchw):
        # NCHW -> NHWC (channels on the lane axis).
        x_up = jnp.transpose(x_to_upsample_nchw.astype(jnp.float32), (0, 2, 3, 1))
        x = jnp.transpose(x_nchw.astype(jnp.float32), (0, 2, 3, 1))

        x_up = bilinear_upsample_2x_nhwc(x_up)
        # torch.cat([x, x_to_upsample], dim=1) -> channel concat in NHWC; XLA fuses this with the
        # bf16 cast + channel-pad producing the kernel input, so no separate concat tensor persists.
        y = jnp.concatenate([x, x_up], axis=-1)

        y = fused_double_conv(y, self.w1, self.w2)

        # NHWC -> NCHW to match the PyTorch module's output convention.
        return jnp.transpose(y, (0, 3, 1, 2))


if __name__ == "__main__":
    key = jax.random.PRNGKey(0)
    k_in1, k_in2, k_params = jax.random.split(key, 3)

    # x_to_upsample at half resolution (upsampled 2x to match x), then concat.
    x_to_upsample = jax.random.normal(k_in1, (2, 4, 8, 8), jnp.float32)   # NCHW
    x = jax.random.normal(k_in2, (2, 4, 16, 16), jnp.float32)             # NCHW

    in_channels = x.shape[1] + x_to_upsample.shape[1]   # 8
    out_channels = 8

    module = UpsamplingConcatPallas(in_channels, out_channels, k_params)
    out = module(x_to_upsample, x)
    out = jax.block_until_ready(out)

    assert out.shape == (2, out_channels, 16, 16), out.shape
    assert out.dtype == jnp.float32
    assert bool(jnp.all(jnp.isfinite(out)))
    print("KERNEL_OK")
</pallas_src>

<mosaic_0001>
module attributes {stable_mosaic.version = 11 : i64} {
  func.func @_fused_double_conv_kernel(%arg0: i32, %arg1: memref<1x16x16x128xbf16, #tpu.memory_space<vmem>>, %arg2: memref<9x128x128xbf16, #tpu.memory_space<vmem>>, %arg3: memref<9x128x128xbf16, #tpu.memory_space<vmem>>, %arg4: memref<1x16x16x128xf32, #tpu.memory_space<vmem>>, %arg5: memref<18x18x128xbf16, #tpu.memory_space<vmem>>) attributes {dimension_semantics = [#tpu.dimension_semantics<parallel>], iteration_bounds = array<i64: 2>, scalar_prefetch = 0 : i64, scratch_operands = 1 : i64, tpu.core_type = #tpu.core_type<tc>, window_params = [{transform_indices = @transform_0, window_bounds = array<i64: 1, 16, 16, 128>}, {pipeline_mode = #tpu.pipeline_mode<synchronous>, transform_indices = @transform_1, window_bounds = array<i64: 9, 128, 128>}, {pipeline_mode = #tpu.pipeline_mode<synchronous>, transform_indices = @transform_2, window_bounds = array<i64: 9, 128, 128>}, {transform_indices = @transform_3, window_bounds = array<i64: 1, 16, 16, 128>}]} {
    %cst = arith.constant 0.000000e+00 : bf16
    %0 = vector.broadcast %cst : bf16 to vector<18x18x128xbf16>
    %c0 = arith.constant 0 : index
    %c0_0 = arith.constant 0 : index
    %c0_1 = arith.constant 0 : index
    %1 = vector.load %arg5[%c0, %c0_0, %c0_1] : memref<18x18x128xbf16, #tpu.memory_space<vmem>>, vector<18x18x128xbf16>
    tpu.vector_store %arg5[%c0, %c0_0, %c0_1], %0 {strides = array<i32>} : memref<18x18x128xbf16, #tpu.memory_space<vmem>>, vector<18x18x128xbf16>,
    %c0_2 = arith.constant 0 : index
    %c0_3 = arith.constant 0 : index
    %c0_4 = arith.constant 0 : index
    %c0_5 = arith.constant 0 : index
    %2 = vector.load %arg1[%c0_2, %c0_3, %c0_4, %c0_5] : memref<1x16x16x128xbf16, #tpu.memory_space<vmem>>, vector<1x16x16x128xbf16>
    %3 = vector.shape_cast %2 : vector<1x16x16x128xbf16> to vector<16x16x128xbf16>
    %c1 = arith.constant 1 : index
    %c1_6 = arith.constant 1 : index
    %c0_7 = arith.constant 0 : index
    %4 = vector.load %arg5[%c1, %c1_6, %c0_7] : memref<18x18x128xbf16, #tpu.memory_space<vmem>>, vector<16x16x128xbf16>
    tpu.vector_store %arg5[%c1, %c1_6, %c0_7], %3 {strides = array<i32>} : memref<18x18x128xbf16, #tpu.memory_space<vmem>>, vector<16x16x128xbf16>,
    %cst_8 = arith.constant 0.000000e+00 : f32
    %5 = vector.broadcast %cst_8 : f32 to vector<256x128xf32>
    %c0_9 = arith.constant 0 : index
    %c0_10 = arith.constant 0 : index
    %c0_11 = arith.constant 0 : index
    %6 = vector.load %arg5[%c0_9, %c0_10, %c0_11] : memref<18x18x128xbf16, #tpu.memory_space<vmem>>, vector<16x16x128xbf16>
    %7 = vector.shape_cast %6 : vector<16x16x128xbf16> to vector<256x128xbf16>
    %c0_12 = arith.constant 0 : index
    %c0_13 = arith.constant 0 : index
    %c0_14 = arith.constant 0 : index
    %8 = vector.load %arg2[%c0_12, %c0_13, %c0_14] : memref<9x128x128xbf16, #tpu.memory_space<vmem>>, vector<1x128x128xbf16>
    %9 = vector.shape_cast %8 : vector<1x128x128xbf16> to vector<128x128xbf16>
    %cst_15 = arith.constant dense<0.000000e+00> : vector<256x128xf32>
    %10 = tpu.matmul %7, %9, %cst_15 {dimension_numbers = #tpu.dot_dimension_numbers<[1], [0], [0], [1], [0, 0, 1, 1], [], []>} : vector<256x128xbf16>, vector<128x128xbf16>, vector<256x128xf32> -> vector<256x128xf32>
    %11 = arith.addf %5, %10 : vector<256x128xf32>
    %c0_16 = arith.constant 0 : index
    %c1_17 = arith.constant 1 : index
    %c0_18 = arith.constant 0 : index
    %12 = vector.load %arg5[%c0_16, %c1_17, %c0_18] : memref<18x18x128xbf16, #tpu.memory_space<vmem>>, vector<16x16x128xbf16>
    %13 = vector.shape_cast %12 : vector<16x16x128xbf16> to vector<256x128xbf16>
    %c1_19 = arith.constant 1 : index
    %c0_20 = arith.constant 0 : index
    %c0_21 = arith.constant 0 : index
    %14 = vector.load %arg2[%c1_19, %c0_20, %c0_21] : memref<9x128x128xbf16, #tpu.memory_space<vmem>>, vector<1x128x128xbf16>
    %15 = vector.shape_cast %14 : vector<1x128x128xbf16> to vector<128x128xbf16>
    %cst_22 = arith.constant dense<0.000000e+00> : vector<256x128xf32>
    %16 = tpu.matmul %13, %15, %cst_22 {dimension_numbers = #tpu.dot_dimension_numbers<[1], [0], [0], [1], [0, 0, 1, 1], [], []>} : vector<256x128xbf16>, vector<128x128xbf16>, vector<256x128xf32> -> vector<256x128xf32>
    %17 = arith.addf %11, %16 : vector<256x128xf32>
    %c0_23 = arith.constant 0 : index
    %c2 = arith.constant 2 : index
    %c0_24 = arith.constant 0 : index
    %18 = vector.load %arg5[%c0_23, %c2, %c0_24] : memref<18x18x128xbf16, #tpu.memory_space<vmem>>, vector<16x16x128xbf16>
    %19 = vector.shape_cast %18 : vector<16x16x128xbf16> to vector<256x128xbf16>
    %c2_25 = arith.constant 2 : index
    %c0_26 = arith.constant 0 : index
    %c0_27 = arith.constant 0 : index
    %20 = vector.load %arg2[%c2_25, %c0_26, %c0_27] : memref<9x128x128xbf16, #tpu.memory_space<vmem>>, vector<1x128x128xbf16>
    %21 = vector.shape_cast %20 : vector<1x128x128xbf16> to vector<128x128xbf16>
    %cst_28 = arith.constant dense<0.000000e+00> : vector<256x128xf32>
    %22 = tpu.matmul %19, %21, %cst_28 {dimension_numbers = #tpu.dot_dimension_numbers<[1], [0], [0], [1], [0, 0, 1, 1], [], []>} : vector<256x128xbf16>, vector<128x128xbf16>, vector<256x128xf32> -> vector<256x128xf32>
    %23 = arith.addf %17, %22 : vector<256x128xf32>
    %c1_29 = arith.constant 1 : index
    %c0_30 = arith.constant 0 : index
    %c0_31 = arith.constant 0 : index
    %24 = vector.load %arg5[%c1_29, %c0_30, %c0_31] : memref<18x18x128xbf16, #tpu.memory_space<vmem>>, vector<16x16x128xbf16>
    %25 = vector.shape_cast %24 : vector<16x16x128xbf16> to vector<256x128xbf16>
    %c3 = arith.constant 3 : index
    %c0_32 = arith.constant 0 : index
    %c0_33 = arith.constant 0 : index
    %26 = vector.load %arg2[%c3, %c0_32, %c0_33] : memref<9x128x128xbf16, #tpu.memory_space<vmem>>, vector<1x128x128xbf16>
    %27 = vector.shape_cast %26 : vector<1x128x128xbf16> to vector<128x128xbf16>
    %cst_34 = arith.constant dense<0.000000e+00> : vector<256x128xf32>
    %28 = tpu.matmul %25, %27, %cst_34 {dimension_numbers = #tpu.dot_dimension_numbers<[1], [0], [0], [1], [0, 0, 1, 1], [], []>} : vector<256x128xbf16>, vector<128x128xbf16>, vector<256x128xf32> -> vector<256x128xf32>
    %29 = arith.addf %23, %28 : vector<256x128xf32>
    %c1_35 = arith.constant 1 : index
    %c1_36 = arith.constant 1 : index
    %c0_37 = arith.constant 0 : index
    %30 = vector.load %arg5[%c1_35, %c1_36, %c0_37] : memref<18x18x128xbf16, #tpu.memory_space<vmem>>, vector<16x16x128xbf16>
    %31 = vector.shape_cast %30 : vector<16x16x128xbf16> to vector<256x128xbf16>
    %c4 = arith.constant 4 : index
    %c0_38 = arith.constant 0 : index
    %c0_39 = arith.constant 0 : index
    %32 = vector.load %arg2[%c4, %c0_38, %c0_39] : memref<9x128x128xbf16, #tpu.memory_space<vmem>>, vector<1x128x128xbf16>
    %33 = vector.shape_cast %32 : vector<1x128x128xbf16> to vector<128x128xbf16>
    %cst_40 = arith.constant dense<0.000000e+00> : vector<256x128xf32>
    %34 = tpu.matmul %31, %33, %cst_40 {dimension_numbers = #tpu.dot_dimension_numbers<[1], [0], [0], [1], [0, 0, 1, 1], [], []>} : vector<256x128xbf16>, vector<128x128xbf16>, vector<256x128xf32> -> vector<256x128xf32>
    %35 = arith.addf %29, %34 : vector<256x128xf32>
    %c1_41 = arith.constant 1 : index
    %c2_42 = arith.constant 2 : index
    %c0_43 = arith.constant 0 : index
    %36 = vector.load %arg5[%c1_41, %c2_42, %c0_43] : memref<18x18x128xbf16, #tpu.memory_space<vmem>>, vector<16x16x128xbf16>
    %37 = vector.shape_cast %36 : vector<16x16x128xbf16> to vector<256x128xbf16>
    %c5 = arith.constant 5 : index
    %c0_44 = arith.constant 0 : index
    %c0_45 = arith.constant 0 : index
    %38 = vector.load %arg2[%c5, %c0_44, %c0_45] : memref<9x128x128xbf16, #tpu.memory_space<vmem>>, vector<1x128x128xbf16>
    %39 = vector.shape_cast %38 : vector<1x128x128xbf16> to vector<128x128xbf16>
    %cst_46 = arith.constant dense<0.000000e+00> : vector<256x128xf32>
    %40 = tpu.matmul %37, %39, %cst_46 {dimension_numbers = #tpu.dot_dimension_numbers<[1], [0], [0], [1], [0, 0, 1, 1], [], []>} : vector<256x128xbf16>, vector<128x128xbf16>, vector<256x128xf32> -> vector<256x128xf32>
    %41 = arith.addf %35, %40 : vector<256x128xf32>
    %c2_47 = arith.constant 2 : index
    %c0_48 = arith.constant 0 : index
    %c0_49 = arith.constant 0 : index
    %42 = vector.load %arg5[%c2_47, %c0_48, %c0_49] : memref<18x18x128xbf16, #tpu.memory_space<vmem>>, vector<16x16x128xbf16>
    %43 = vector.shape_cast %42 : vector<16x16x128xbf16> to vector<256x128xbf16>
    %c6 = arith.constant 6 : index
    %c0_50 = arith.constant 0 : index
    %c0_51 = arith.constant 0 : index
    %44 = vector.load %arg2[%c6, %c0_50, %c0_51] : memref<9x128x128xbf16, #tpu.memory_space<vmem>>, vector<1x128x128xbf16>
    %45 = vector.shape_cast %44 : vector<1x128x128xbf16> to vector<128x128xbf16>
    %cst_52 = arith.constant dense<0.000000e+00> : vector<256x128xf32>
    %46 = tpu.matmul %43, %45, %cst_52 {dimension_numbers = #tpu.dot_dimension_numbers<[1], [0], [0], [1], [0, 0, 1, 1], [], []>} : vector<256x128xbf16>, vector<128x128xbf16>, vector<256x128xf32> -> vector<256x128xf32>
    %47 = arith.addf %41, %46 : vector<256x128xf32>
    %c2_53 = arith.constant 2 : index
    %c1_54 = arith.constant 1 : index
    %c0_55 = arith.constant 0 : index
    %48 = vector.load %arg5[%c2_53, %c1_54, %c0_55] : memref<18x18x128xbf16, #tpu.memory_space<vmem>>, vector<16x16x128xbf16>
    %49 = vector.shape_cast %48 : vector<16x16x128xbf16> to vector<256x128xbf16>
    %c7 = arith.constant 7 : index
    %c0_56 = arith.constant 0 : index
    %c0_57 = arith.constant 0 : index
    %50 = vector.load %arg2[%c7, %c0_56, %c0_57] : memref<9x128x128xbf16, #tpu.memory_space<vmem>>, vector<1x128x128xbf16>
    %51 = vector.shape_cast %50 : vector<1x128x128xbf16> to vector<128x128xbf16>
    %cst_58 = arith.constant dense<0.000000e+00> : vector<256x128xf32>
    %52 = tpu.matmul %49, %51, %cst_58 {dimension_numbers = #tpu.dot_dimension_numbers<[1], [0], [0], [1], [0, 0, 1, 1], [], []>} : vector<256x128xbf16>, vector<128x128xbf16>, vector<256x128xf32> -> vector<256x128xf32>
    %53 = arith.addf %47, %52 : vector<256x128xf32>
    %c2_59 = arith.constant 2 : index
    %c2_60 = arith.constant 2 : index
    %c0_61 = arith.constant 0 : index
    %54 = vector.load %arg5[%c2_59, %c2_60, %c0_61] : memref<18x18x128xbf16, #tpu.memory_space<vmem>>, vector<16x16x128xbf16>
    %55 = vector.shape_cast %54 : vector<16x16x128xbf16> to vector<256x128xbf16>
    %c8 = arith.constant 8 : index
    %c0_62 = arith.constant 0 : index
    %c0_63 = arith.constant 0 : index
    %56 = vector.load %arg2[%c8, %c0_62, %c0_63] : memref<9x128x128xbf16, #tpu.memory_space<vmem>>, vector<1x128x128xbf16>
    %57 = vector.shape_cast %56 : vector<1x128x128xbf16> to vector<128x128xbf16>
    %cst_64 = arith.constant dense<0.000000e+00> : vector<256x128xf32>
    %58 = tpu.matmul %55, %57, %cst_64 {dimension_numbers = #tpu.dot_dimension_numbers<[1], [0], [0], [1], [0, 0, 1, 1], [], []>} : vector<256x128xbf16>, vector<128x128xbf16>, vector<256x128xf32> -> vector<256x128xf32>
    %59 = arith.addf %53, %58 : vector<256x128xf32>
    %cst_65 = arith.constant dense<0.000000e+00> : vector<128xf32>
    %60 = vector.multi_reduction <add>, %59, %cst_65 [0] : vector<256x128xf32> to vector<128xf32>
    %61 = vector.shape_cast %60 : vector<128xf32> to vector<1x128xf32>
    %62 = arith.mulf %59, %59 : vector<256x128xf32>
    %cst_66 = arith.constant dense<0.000000e+00> : vector<128xf32>
    %63 = vector.multi_reduction <add>, %62, %cst_66 [0] : vector<256x128xf32> to vector<128xf32>
    %64 = vector.shape_cast %63 : vector<128xf32> to vector<1x128xf32>
    %cst_67 = arith.constant 3.906250e-03 : f32
    %65 = vector.broadcast %cst_67 : f32 to vector<1x128xf32>
    %66 = arith.mulf %61, %65 : vector<1x128xf32>
    %cst_68 = arith.constant 3.906250e-03 : f32
    %67 = vector.broadcast %cst_68 : f32 to vector<1x128xf32>
    %68 = arith.mulf %64, %67 : vector<1x128xf32>
    %69 = arith.mulf %66, %66 : vector<1x128xf32>
    %70 = arith.subf %68, %69 : vector<1x128xf32>
    %cst_69 = arith.constant 0.000000e+00 : f32
    %71 = vector.broadcast %cst_69 : f32 to vector<1x128xf32>
    %72 = arith.maximumf %70, %71 : vector<1x128xf32>
    %73 = vector.broadcast %66 : vector<1x128xf32> to vector<256x128xf32>
    %74 = arith.subf %59, %73 : vector<256x128xf32>
    %cst_70 = arith.constant 9.99999974E-6 : f32
    %75 = vector.broadcast %cst_70 : f32 to vector<1x128xf32>
    %76 = arith.addf %72, %75 : vector<1x128xf32>
    %77 = math.rsqrt %76 : vector<1x128xf32>
    %78 = vector.broadcast %77 : vector<1x128xf32> to vector<256x128xf32>
    %79 = arith.mulf %74, %78 : vector<256x128xf32>
    %cst_71 = arith.constant 0.000000e+00 : f32
    %80 = vector.broadcast %cst_71 : f32 to vector<256x128xf32>
    %81 = arith.maximumf %79, %80 : vector<256x128xf32>
    %82 = vector.shape_cast %81 : vector<256x128xf32> to vector<16x16x128xf32>
    %83 = arith.truncf %82 : vector<16x16x128xf32> to vector<16x16x128xbf16>
    %c1_72 = arith.constant 1 : index
    %c1_73 = arith.constant 1 : index
    %c0_74 = arith.constant 0 : index
    %84 = vector.load %arg5[%c1_72, %c1_73, %c0_74] : memref<18x18x128xbf16, #tpu.memory_space<vmem>>, vector<16x16x128xbf16>
    tpu.vector_store %arg5[%c1_72, %c1_73, %c0_74], %83 {strides = array<i32>} : memref<18x18x128xbf16, #tpu.memory_space<vmem>>, vector<16x16x128xbf16>,
    %cst_75 = arith.constant 0.000000e+00 : f32
    %85 = vector.broadcast %cst_75 : f32 to vector<256x128xf32>
    %c0_76 = arith.constant 0 : index
    %c0_77 = arith.constant 0 : index
    %c0_78 = arith.constant 0 : index
    %86 = vector.load %arg5[%c0_76, %c0_77, %c0_78] : memref<18x18x128xbf16, #tpu.memory_space<vmem>>, vector<16x16x128xbf16>
    %87 = vector.shape_cast %86 : vector<16x16x128xbf16> to vector<256x128xbf16>
    %c0_79 = arith.constant 0 : index
    %c0_80 = arith.constant 0 : index
    %c0_81 = arith.constant 0 : index
    %88 = vector.load %arg3[%c0_79, %c0_80, %c0_81] : memref<9x128x128xbf16, #tpu.memory_space<vmem>>, vector<1x128x128xbf16>
    %89 = vector.shape_cast %88 : vector<1x128x128xbf16> to vector<128x128xbf16>
    %cst_82 = arith.constant dense<0.000000e+00> : vector<256x128xf32>
    %90 = tpu.matmul %87, %89, %cst_82 {dimension_numbers = #tpu.dot_dimension_numbers<[1], [0], [0], [1], [0, 0, 1, 1], [], []>} : vector<256x128xbf16>, vector<128x128xbf16>, vector<256x128xf32> -> vector<256x128xf32>
    %91 = arith.addf %85, %90 : vector<256x128xf32>
    %c0_83 = arith.constant 0 : index
    %c1_84 = arith.constant 1 : index
    %c0_85 = arith.constant 0 : index
    %92 = vector.load %arg5[%c0_83, %c1_84, %c0_85] : memref<18x18x128xbf16, #tpu.memory_space<vmem>>, vector<16x16x128xbf16>
    %93 = vector.shape_cast %92 : vector<16x16x128xbf16> to vector<256x128xbf16>
    %c1_86 = arith.constant 1 : index
    %c0_87 = arith.constant 0 : index
    %c0_88 = arith.constant 0 : index
    %94 = vector.load %arg3[%c1_86, %c0_87, %c0_88] : memref<9x128x128xbf16, #tpu.memory_space<vmem>>, vector<1x128x128xbf16>
    %95 = vector.shape_cast %94 : vector<1x128x128xbf16> to vector<128x128xbf16>
    %cst_89 = arith.constant dense<0.000000e+00> : vector<256x128xf32>
    %96 = tpu.matmul %93, %95, %cst_89 {dimension_numbers = #tpu.dot_dimension_numbers<[1], [0], [0], [1], [0, 0, 1, 1], [], []>} : vector<256x128xbf16>, vector<128x128xbf16>, vector<256x128xf32> -> vector<256x128xf32>
    %97 = arith.addf %91, %96 : vector<256x128xf32>
    %c0_90 = arith.constant 0 : index
    %c2_91 = arith.constant 2 : index
    %c0_92 = arith.constant 0 : index
    %98 = vector.load %arg5[%c0_90, %c2_91, %c0_92] : memref<18x18x128xbf16, #tpu.memory_space<vmem>>, vector<16x16x128xbf16>
    %99 = vector.shape_cast %98 : vector<16x16x128xbf16> to vector<256x128xbf16>
    %c2_93 = arith.constant 2 : index
    %c0_94 = arith.constant 0 : index
    %c0_95 = arith.constant 0 : index
    %100 = vector.load %arg3[%c2_93, %c0_94, %c0_95] : memref<9x128x128xbf16, #tpu.memory_space<vmem>>, vector<1x128x128xbf16>
    %101 = vector.shape_cast %100 : vector<1x128x128xbf16> to vector<128x128xbf16>
    %cst_96 = arith.constant dense<0.000000e+00> : vector<256x128xf32>
    %102 = tpu.matmul %99, %101, %cst_96 {dimension_numbers = #tpu.dot_dimension_numbers<[1], [0], [0], [1], [0, 0, 1, 1], [], []>} : vector<256x128xbf16>, vector<128x128xbf16>, vector<256x128xf32> -> vector<256x128xf32>
    %103 = arith.addf %97, %102 : vector<256x128xf32>
    %c1_97 = arith.constant 1 : index
    %c0_98 = arith.constant 0 : index
    %c0_99 = arith.constant 0 : index
    %104 = vector.load %arg5[%c1_97, %c0_98, %c0_99] : memref<18x18x128xbf16, #tpu.memory_space<vmem>>, vector<16x16x128xbf16>
    %105 = vector.shape_cast %104 : vector<16x16x128xbf16> to vector<256x128xbf16>
    %c3_100 = arith.constant 3 : index
    %c0_101 = arith.constant 0 : index
    %c0_102 = arith.constant 0 : index
    %106 = vector.load %arg3[%c3_100, %c0_101, %c0_102] : memref<9x128x128xbf16, #tpu.memory_space<vmem>>, vector<1x128x128xbf16>
    %107 = vector.shape_cast %106 : vector<1x128x128xbf16> to vector<128x128xbf16>
    %cst_103 = arith.constant dense<0.000000e+00> : vector<256x128xf32>
    %108 = tpu.matmul %105, %107, %cst_103 {dimension_numbers = #tpu.dot_dimension_numbers<[1], [0], [0], [1], [0, 0, 1, 1], [], []>} : vector<256x128xbf16>, vector<128x128xbf16>, vector<256x128xf32> -> vector<256x128xf32>
    %109 = arith.addf %103, %108 : vector<256x128xf32>
    %c1_104 = arith.constant 1 : index
    %c1_105 = arith.constant 1 : index
    %c0_106 = arith.constant 0 : index
    %110 = vector.load %arg5[%c1_104, %c1_105, %c0_106] : memref<18x18x128xbf16, #tpu.memory_space<vmem>>, vector<16x16x128xbf16>
    %111 = vector.shape_cast %110 : vector<16x16x128xbf16> to vector<256x128xbf16>
    %c4_107 = arith.constant 4 : index
    %c0_108 = arith.constant 0 : index
    %c0_109 = arith.constant 0 : index
    %112 = vector.load %arg3[%c4_107, %c0_108, %c0_109] : memref<9x128x128xbf16, #tpu.memory_space<vmem>>, vector<1x128x128xbf16>
    %113 = vector.shape_cast %112 : vector<1x128x128xbf16> to vector<128x128xbf16>
    %cst_110 = arith.constant dense<0.000000e+00> : vector<256x128xf32>
    %114 = tpu.matmul %111, %113, %cst_110 {dimension_numbers = #tpu.dot_dimension_numbers<[1], [0], [0], [1], [0, 0, 1, 1], [], []>} : vector<256x128xbf16>, vector<128x128xbf16>, vector<256x128xf32> -> vector<256x128xf32>
    %115 = arith.addf %109, %114 : vector<256x128xf32>
    %c1_111 = arith.constant 1 : index
    %c2_112 = arith.constant 2 : index
    %c0_113 = arith.constant 0 : index
    %116 = vector.load %arg5[%c1_111, %c2_112, %c0_113] : memref<18x18x128xbf16, #tpu.memory_space<vmem>>, vector<16x16x128xbf16>
    %117 = vector.shape_cast %116 : vector<16x16x128xbf16> to vector<256x128xbf16>
    %c5_114 = arith.constant 5 : index
    %c0_115 = arith.constant 0 : index
    %c0_116 = arith.constant 0 : index
    %118 = vector.load %arg3[%c5_114, %c0_115, %c0_116] : memref<9x128x128xbf16, #tpu.memory_space<vmem>>, vector<1x128x128xbf16>
    %119 = vector.shape_cast %118 : vector<1x128x128xbf16> to vector<128x128xbf16>
    %cst_117 = arith.constant dense<0.000000e+00> : vector<256x128xf32>
    %120 = tpu.matmul %117, %119, %cst_117 {dimension_numbers = #tpu.dot_dimension_numbers<[1], [0], [0], [1], [0, 0, 1, 1], [], []>} : vector<256x128xbf16>, vector<128x128xbf16>, vector<256x128xf32> -> vector<256x128xf32>
    %121 = arith.addf %115, %120 : vector<256x128xf32>
    %c2_118 = arith.constant 2 : index
    %c0_119 = arith.constant 0 : index
    %c0_120 = arith.constant 0 : index
    %122 = vector.load %arg5[%c2_118, %c0_119, %c0_120] : memref<18x18x128xbf16, #tpu.memory_space<vmem>>, vector<16x16x128xbf16>
    %123 = vector.shape_cast %122 : vector<16x16x128xbf16> to vector<256x128xbf16>
    %c6_121 = arith.constant 6 : index
    %c0_122 = arith.constant 0 : index
    %c0_123 = arith.constant 0 : index
    %124 = vector.load %arg3[%c6_121, %c0_122, %c0_123] : memref<9x128x128xbf16, #tpu.memory_space<vmem>>, vector<1x128x128xbf16>
    %125 = vector.shape_cast %124 : vector<1x128x128xbf16> to vector<128x128xbf16>
    %cst_124 = arith.constant dense<0.000000e+00> : vector<256x128xf32>
    %126 = tpu.matmul %123, %125, %cst_124 {dimension_numbers = #tpu.dot_dimension_numbers<[1], [0], [0], [1], [0, 0, 1, 1], [], []>} : vector<256x128xbf16>, vector<128x128xbf16>, vector<256x128xf32> -> vector<256x128xf32>
    %127 = arith.addf %121, %126 : vector<256x128xf32>
    %c2_125 = arith.constant 2 : index
    %c1_126 = arith.constant 1 : index
    %c0_127 = arith.constant 0 : index
    %128 = vector.load %arg5[%c2_125, %c1_126, %c0_127] : memref<18x18x128xbf16, #tpu.memory_space<vmem>>, vector<16x16x128xbf16>
    %129 = vector.shape_cast %128 : vector<16x16x128xbf16> to vector<256x128xbf16>
    %c7_128 = arith.constant 7 : index
    %c0_129 = arith.constant 0 : index
    %c0_130 = arith.constant 0 : index
    %130 = vector.load %arg3[%c7_128, %c0_129, %c0_130] : memref<9x128x128xbf16, #tpu.memory_space<vmem>>, vector<1x128x128xbf16>
    %131 = vector.shape_cast %130 : vector<1x128x128xbf16> to vector<128x128xbf16>
    %cst_131 = arith.constant dense<0.000000e+00> : vector<256x128xf32>
    %132 = tpu.matmul %129, %131, %cst_131 {dimension_numbers = #tpu.dot_dimension_numbers<[1], [0], [0], [1], [0, 0, 1, 1], [], []>} : vector<256x128xbf16>, vector<128x128xbf16>, vector<256x128xf32> -> vector<256x128xf32>
    %133 = arith.addf %127, %132 : vector<256x128xf32>
    %c2_132 = arith.constant 2 : index
    %c2_133 = arith.constant 2 : index
    %c0_134 = arith.constant 0 : index
    %134 = vector.load %arg5[%c2_132, %c2_133, %c0_134] : memref<18x18x128xbf16, #tpu.memory_space<vmem>>, vector<16x16x128xbf16>
    %135 = vector.shape_cast %134 : vector<16x16x128xbf16> to vector<256x128xbf16>
    %c8_135 = arith.constant 8 : index
    %c0_136 = arith.constant 0 : index
    %c0_137 = arith.constant 0 : index
    %136 = vector.load %arg3[%c8_135, %c0_136, %c0_137] : memref<9x128x128xbf16, #tpu.memory_space<vmem>>, vector<1x128x128xbf16>
    %137 = vector.shape_cast %136 : vector<1x128x128xbf16> to vector<128x128xbf16>
    %cst_138 = arith.constant dense<0.000000e+00> : vector<256x128xf32>
    %138 = tpu.matmul %135, %137, %cst_138 {dimension_numbers = #tpu.dot_dimension_numbers<[1], [0], [0], [1], [0, 0, 1, 1], [], []>} : vector<256x128xbf16>, vector<128x128xbf16>, vector<256x128xf32> -> vector<256x128xf32>
    %139 = arith.addf %133, %138 : vector<256x128xf32>
    %cst_139 = arith.constant dense<0.000000e+00> : vector<128xf32>
    %140 = vector.multi_reduction <add>, %139, %cst_139 [0] : vector<256x128xf32> to vector<128xf32>
    %141 = vector.shape_cast %140 : vector<128xf32> to vector<1x128xf32>
    %142 = arith.mulf %139, %139 : vector<256x128xf32>
    %cst_140 = arith.constant dense<0.000000e+00> : vector<128xf32>
    %143 = vector.multi_reduction <add>, %142, %cst_140 [0] : vector<256x128xf32> to vector<128xf32>
    %144 = vector.shape_cast %143 : vector<128xf32> to vector<1x128xf32>
    %cst_141 = arith.constant 3.906250e-03 : f32
    %145 = vector.broadcast %cst_141 : f32 to vector<1x128xf32>
    %146 = arith.mulf %141, %145 : vector<1x128xf32>
    %cst_142 = arith.constant 3.906250e-03 : f32
    %147 = vector.broadcast %cst_142 : f32 to vector<1x128xf32>
    %148 = arith.mulf %144, %147 : vector<1x128xf32>
    %149 = arith.mulf %146, %146 : vector<1x128xf32>
    %150 = arith.subf %148, %149 : vector<1x128xf32>
    %cst_143 = arith.constant 0.000000e+00 : f32
    %151 = vector.broadcast %cst_143 : f32 to vector<1x128xf32>
    %152 = arith.maximumf %150, %151 : vector<1x128xf32>
    %153 = vector.broadcast %146 : vector<1x128xf32> to vector<256x128xf32>
    %154 = arith.subf %139, %153 : vector<256x128xf32>
    %cst_144 = arith.constant 9.99999974E-6 : f32
    %155 = vector.broadcast %cst_144 : f32 to vector<1x128xf32>
    %156 = arith.addf %152, %155 : vector<1x128xf32>
    %157 = math.rsqrt %156 : vector<1x128xf32>
    %158 = vector.broadcast %157 : vector<1x128xf32> to vector<256x128xf32>
    %159 = arith.mulf %154, %158 : vector<256x128xf32>
    %cst_145 = arith.constant 0.000000e+00 : f32
    %160 = vector.broadcast %cst_145 : f32 to vector<256x128xf32>
    %161 = arith.maximumf %159, %160 : vector<256x128xf32>
    %162 = vector.shape_cast %161 : vector<256x128xf32> to vector<16x16x128xf32>
    %c0_146 = arith.constant 0 : index
    %c0_147 = arith.constant 0 : index
    %c0_148 = arith.constant 0 : index
    %c0_149 = arith.constant 0 : index
    %163 = vector.load %arg4[%c0_146, %c0_147, %c0_148, %c0_149] : memref<1x16x16x128xf32, #tpu.memory_space<vmem>>, vector<1x16x16x128xf32>
    %164 = vector.shape_cast %163 : vector<1x16x16x128xf32> to vector<16x16x128xf32>
    %165 = vector.shape_cast %162 : vector<16x16x128xf32> to vector<1x16x16x128xf32>
    tpu.vector_store %arg4[%c0_146, %c0_147, %c0_148, %c0_149], %165 {strides = array<i32>} : memref<1x16x16x128xf32, #tpu.memory_space<vmem>>, vector<1x16x16x128xf32>,
    return
  }
  func.func @transform_0(%arg0: i32) -> (i32, i32, i32, i32) {
    %c0_i32 = arith.constant 0 : i32
    %c0_i32_0 = arith.constant 0 : i32
    %c0_i32_1 = arith.constant 0 : i32
    %c0_i32_2 = arith.constant 0 : i32
    return %arg0, %c0_i32, %c0_i32_0, %c0_i32_1 : i32, i32, i32, i32
  }
  func.func @transform_1(%arg0: i32) -> (i32, i32, i32) {
    %c0_i32 = arith.constant 0 : i32
    %c0_i32_0 = arith.constant 0 : i32
    %c0_i32_1 = arith.constant 0 : i32
    %c0_i32_2 = arith.constant 0 : i32
    return %c0_i32, %c0_i32_0, %c0_i32_1 : i32, i32, i32
  }
  func.func @transform_2(%arg0: i32) -> (i32, i32, i32) {
    %c0_i32 = arith.constant 0 : i32
    %c0_i32_0 = arith.constant 0 : i32
    %c0_i32_1 = arith.constant 0 : i32
    %c0_i32_2 = arith.constant 0 : i32
    return %c0_i32, %c0_i32_0, %c0_i32_1 : i32, i32, i32
  }
  func.func @transform_3(%arg0: i32) -> (i32, i32, i32, i32) {
    %c0_i32 = arith.constant 0 : i32
    %c0_i32_0 = arith.constant 0 : i32
    %c0_i32_1 = arith.constant 0 : i32
    %c0_i32_2 = arith.constant 0 : i32
    return %arg0, %c0_i32, %c0_i32_0, %c0_i32_1 : i32, i32, i32, i32
  }
}

</mosaic_0001>

<bundles_post_ra>
// kernel: tpu_custom_call.1
= control target key start
LH: loop header
LB: loop body
LE: loop exit
PB: predicated region body
PF: predicated region fallthrough
CT: control target
= control target key end

     0   :  { %8 = vsyncpa [#allocation4], 0  ;;  %s18924_s0 = inlined_call_operand.hbm [shape: bf16[2,16,16,128], index: 0, kind: input, shape index: {}]   ;;  %s18925_s1 = inlined_call_operand.hbm [shape: bf16[9,128,128], index: 1, kind: input, shape index: {}]   ;;  %s18926_s2 = inlined_call_operand.hbm [shape: bf16[9,128,128], index: 2, kind: input, shape index: {}]   ;;  %s18927_s3 = inlined_call_operand.hbm [shape: f32[2,16,16,128], index: 3, kind: output, shape index: {}]  }
   0x1   :  { %10 = vsyncpa [#allocation4 + $0x1], 0 }
   0x2   :  { %11 = vsyncpa [#allocation7], 0 }
   0x3   :  { %12 = vsyncpa [#allocation5], 0 }
   0x4   :  { %14 = vsyncpa [#allocation5 + $0x1], 0  ;;  %s13860_s12 = smov 0   ;;  %s13862_s13 = smov 0  }
   0x5   :  { %s13864_s14 = smov 0   ;;  %s13866_s15 = smov 0  }
   0x6 LB: > { %s13881_s16 = sadd.s32 4294967295, %s13829_s15   ;;  %s11438_s17 = sadd.s32 4294967294, %s13829_s15   ;;  %s13829_s15 = sphi %s13866_s15, %s19288_s15   ;;  %s13825_s14 = sphi %s13864_s14, %s19287_s14   ;;  %s13821_s13 = sphi %s13862_s13, %s19286_s13   ;;  %s13817_s12 = sphi %s13860_s12, %s19285_s12  }
   0x7   : > { %p40_p0 = scmp.ne.s32.totalorder %s13821_s13, %s13817_s12  ;;  %p18928_p1 = scmp.eq.s32.totalorder %s13881_s16, 0 }
   0x8   : > { %p106_p2 = scmp.eq.s32.totalorder %s13881_s16, 1  ;;  %p112_p3 = scmp.eq.s32.totalorder %s11438_s17, 1 }
   0x9   : > { %p13890_p4 = por %p18928_p1, %p40_p0  ;;  %p11439_p5 = scmp.ge.s32.totalorder %s13829_s15, 1 }
   0xa   : > { %p13895_p6 = por %p112_p3, %p40_p0  ;;  %p119_p7 = scmp.lt.s32.totalorder %s13829_s15, 3 }
   0xb   : > { %s18959_s18 = scalar_select %p13890_p4, 1, 0 }
   0xc   : > { %s18960_s19 = scalar_select %p13895_p6, 1, 0 }
   0xd   : > { %p13900_p8 = pnand %p11439_p5, %p119_p7  ;;  %s13831_s21 = smov [#allocation6]  }
   0xe   : > { %s131_s22 = sshll.u32 %s13831_s21, 4  ;;  %s13832_s24 = smov [#allocation8]   ;;  %s132_s22 = int_to_ptr.vmem [resolvable:$true] %s131_s22 }
   0xf   : > { %s18961_s20 = scalar_select %p13900_p8, 1, 0 }
  0x10   : > { %p13358_p9 = pneg %p13900_p8  ;;  %s144_s25 = sshll.u32 %s13832_s24, 4  ;;  %s145_s25 = int_to_ptr.vmem [resolvable:$true] %s144_s25 }
  0x11   : > { %s13692_s26 = scalar_lea.vmem %s132_s22, 9216  ;;  %p13700_p5 = scmp.lt.s32.totalorder %s132_s22, %s132_s22 }
  0x12   : > { %p13909_p11 = pnand %p13358_p9, %p18928_p1  ;;  %p13693_p13 = scmp.ne.s32.totalorder %s132_s22, %s13692_s26 }
  0x13   : > { %p13701_p7 = scmp.lt.s32.totalorder %s13692_s26, %s13692_s26 }
  0x14   : > { %p13683_p12 = pneg %p13909_p11 }
  0x15   : > { %p13702_p10 = por %p13701_p7, %p13700_p5 }
  0x16   : > { %p13695_p0 = pnand %p13693_p13, %p13683_p12 }
  0x18   : > { %p13696_p3 = pneg %p13695_p0 }
  0x1a   : > { %p13703_p9 = pnand %p13702_p10, %p13696_p3 }
  0x1c   : > { %13706 = shalt.err (!%p13703_p9)
}
  0x1d   : > { %s13833_s27 = smov 64   ;;  %s13834_s28 = smov 4  }
  0x1e   : > { %13361 = dma.hbm_to_vmem [thread:$0]  (!%p13909_p11), %s18925_s1, 9216, %s132_s22, [#allocation7], %s13833_s27, %s13833_s27, %s13834_s28  }
  0x1f   : > { %s13718_s4 = scalar_lea.vmem %s145_s25, 9216  ;;  %p13726_p10 = scmp.lt.s32.totalorder %s145_s25, %s145_s25 }
  0x20   : > { %p13719_p13 = scmp.ne.s32.totalorder %s145_s25, %s13718_s4  ;;  %p13727_p3 = scmp.lt.s32.totalorder %s13718_s4, %s13718_s4 }
  0x22   : > { %p13721_p0 = pnand %p13719_p13, %p13683_p12  ;;  %p13728_p7 = por %p13727_p3, %p13726_p10 }
  0x24   : > { %p13722_p5 = pneg %p13721_p0 }
  0x26   : > { %p13729_p9 = pnand %p13728_p7, %p13722_p5 }
  0x28   : > { %13732 = shalt.err (!%p13729_p9)
}
  0x29   : > { %13364 = dma.hbm_to_vmem [thread:$0]  (!%p13909_p11), %s18926_s2, 9216, %s145_s25, [#allocation7], %s13833_s27, %s13833_s27, %s13834_s28  }
  0x2a   : > { %s13938_s7 = sadd.s32 1, %s13829_s15   ;;  %s27_s8 = sadd.s32 1, %s13825_s14 }
  0x2b   : > { %s24_s9 = ssub.s32 %s13829_s15, %s13938_s7  ;;  %p34_p12 = scmp.ne.s32.totalorder %s13825_s14, %s13821_s13 }
  0x2c   : > { %p25_p13 = scmp.eq.s32.totalorder %s24_s9, 0  ;;  %p35_p0 = scmp.eq.s32.totalorder %s13829_s15, 0 }
  0x2d   : > { %p13948_p5 = por %p106_p2, %p34_p12  ;;  %p13375_p10 = scmp.lt.s32.totalorder %s13829_s15, 2 }
  0x2e   : > { %s13954_s11 = scalar_select %p25_p13, %s13825_s14, %s27_s8  }
  0x2f   : > { %s18963_s10 = scalar_select %p13948_p5, 1, 0 }
  0x30   : > { %p36_p3 = por %p35_p0, %p34_p12  ;;  %s158_s17 = sand.u32 1, %s13825_s14  }
  0x31   : > { %s11443_s21 = sshll.u32 %s158_s17, 7  ;;  %s12016_s22 = sshll.u32 %s13829_s15, 11 }
  0x32   : > { %s13961_s25 = scalar_lea.hbm %s18924_s0, %s12016_s22  ;;  %s162_s26 = scalar_lea.vmem [#allocation3], %s11443_s21 }
  0x33   : > { %s169_s29 = sshll.u32 %s162_s26, 4  ;;  %p13965_p2 = pnand %p13375_p10, %p36_p3  ;;  %s13963_s29 = int_to_ptr.vmem [resolvable:$true] %s169_s29 }
  0x34   : > { %s13969_s4 = scalar_lea.sflag [#allocation4], %s158_s17  ;;  %s13733_s5 = scalar_lea.hbm %s13961_s25, 2048 }
  0x35   : > { %p13734_p11 = scmp.ne.s32.totalorder %s13961_s25, %s13733_s5  ;;  %p13735_p7 = pneg %p13965_p2 }
  0x36   : > { %s13738_s9 = scalar_lea.hbm %s18924_s0, 4096  ;;  %p13739_p13 = scmp.lt.s32.totalorder %s13961_s25, %s18924_s0 }
  0x37   : > { %p13736_p9 = pnand %p13735_p7, %p13734_p11  ;;  %p13740_p0 = scmp.lt.s32.totalorder %s13738_s9, %s13733_s5 }
  0x39   : > { %p13737_p12 = pneg %p13736_p9  ;;  %p13741_p10 = por %p13740_p0, %p13739_p13 }
  0x3b   : > { %p13742_p3 = pnand %p13741_p10, %p13737_p12 }
  0x3d   : > { %13745 = shalt.err (!%p13742_p3)
}
  0x3e   : > { %s13746_s17 = scalar_lea.vmem %s13963_s29, 2048  ;;  %s13835_s23 = smov [#allocation3]  }
  0x3f   : > { %p13747_p1 = scmp.ne.s32.totalorder %s13963_s29, %s13746_s17  ;;  %s13751_s24 = sshll.u32 %s13835_s23, 4  ;;  %s13752_s24 = int_to_ptr.vmem [resolvable:$false] %s13751_s24 }
  0x40   : > { %s13753_s26 = scalar_lea.vmem %s13752_s24, 4096  ;;  %p13754_p9 = scmp.lt.s32.totalorder %s13963_s29, %s13752_s24 }
  0x41   : > { %p13749_p6 = pnand %p13747_p1, %p13735_p7  ;;  %p13755_p5 = scmp.lt.s32.totalorder %s13753_s26, %s13746_s17 }
  0x43   : > { %p13750_p11 = pneg %p13749_p6  ;;  %p13756_p4 = por %p13755_p5, %p13754_p9 }
  0x45   : > { %p13757_p8 = pnand %p13756_p4, %p13750_p11 }
  0x47   : > { %13760 = shalt.err (!%p13757_p8)
}
  0x48   : > { %13368 = dma.hbm_to_vmem [thread:$0]  (!%p13965_p2), %s13961_s25, 2048, %s13963_s29, %s13969_s4, %s13833_s27, %s13833_s27, %s13834_s28  }
  0x49   : > { %p18965_p1 = scmp.ne.s32.totalorder %s18961_s20, 0 }
  0x4b   : > { %181 = sbr.rel (%p18965_p1) target bundleno = 1449 (0x5a9), region = 32 }
  0x50   : > { %s13996_s5 = sand.u32 1, %s13821_s13   ;;  %p18966_p4 = scmp.ne.s32.totalorder %s18959_s18, 0 }
  0x51   : > { %s11447_s6 = sshll.u32 %s13996_s5, 7  ;;  %s184_s8 = scalar_lea.sflag [#allocation4], %s13996_s5 }
  0x52   : > { %s14000_s9 = scalar_lea.vmem [#allocation3], %s11447_s6 }
  0x53   : > { %13804 = dma.done.wait (%p18966_p4), %s184_s8, 2048  }
  0x54   : > { %13806 = vsyncadd (%p18966_p4), %s184_s8, 4294965248  ;;  %p18967_p6 = scmp.eq.s32.totalorder %s13881_s16, 0 }
  0x56   : > { %13808 = dma.done.wait (%p18967_p6), [#allocation7], 18432   ;;  %p18968_p8 = pmov %p18967_p6 }
  0x57   : > { %v13836_v0 = vmov 0   ;;  %v13418_v1 = vld [vmem:[#allocation6 + $0x78] sm:$0xff]   ;;  %v13420_v3 = vld [vmem:[#allocation6 + $0x70] sm:$0xff]   ;;  %v13422_v5 = vld [vmem:[#allocation6 + $0x68] sm:$0xff]   ;;  %vm810_vm0 = vsmask.f32 3328 }
  0x58   : > { %13810 = vsyncadd (%p18968_p8), [#allocation7], 4294948864  ;;  %219 = vst [vmem:[#allocation2] sm:$0xf] %v13836_v0  ;;  %v13419_v2 = vld [vmem:[#allocation6 + $0x38] sm:$0xff]   ;;  %12482 = vmatprep.subr.bf16.mxu0 %v13418_v1  ;;  %v13421_v4 = vld [vmem:[#allocation6 + $0x30] sm:$0xff]  }
  0x59   : > { %220 = vst [vmem:[#allocation2 + $0x4] sm:$0xf] %v13836_v0  ;;  %221 = vst [vmem:[#allocation2 + $0x8] sm:$0x1] %v13836_v0  ;;  %12530 = vmatprep.subr.bf16.mxu1 %v13419_v2  ;;  %12483 = vmatpush3.bf16.msra.mxu0 %v13418_v1  ;;  %v13423_v6 = vld [vmem:[#allocation6 + $0x28] sm:$0xff]   ;;  %v13424_v7 = vld [vmem:[#allocation6 + $0x60] sm:$0xff]  }
  0x5a   : > { %222 = vst [vmem:[#allocation2 + $0xc] sm:$0xf] %v13836_v0  ;;  %223 = vst [vmem:[#allocation2 + $0x10] sm:$0xf] %v13836_v0  ;;  %12531 = vmatpush3.bf16.msra.mxu1 %v13419_v2  ;;  %12484 = vmatprep.subr.bf16.mxu0 %v13420_v3  ;;  %v13425_v8 = vld [vmem:[#allocation6 + $0x20] sm:$0xff]   ;;  %v13426_v9 = vld [vmem:[#allocation6 + $0x58] sm:$0xff]  }
  0x5b   : > { %224 = vst [vmem:[#allocation2 + $0x14] sm:$0x1] %v13836_v0  ;;  %225 = vst [vmem:[#allocation2 + $0x18] sm:$0xf] %v13836_v0  ;;  %12532 = vmatprep.subr.bf16.mxu1 %v13421_v4  ;;  %vm811_vm1 = vsmask.f32 7440 }
  0x5c   : > { %226 = vst [vmem:[#allocation2 + $0x1c] sm:$0xf] %v13836_v0  ;;  %227 = vst [vmem:[#allocation2 + $0x20] sm:$0x1] %v13836_v0  ;;  %vm305_vm2 = vsmask.f32 256 }
  0x5d   : > { %228 = vst [vmem:[#allocation2 + $0x24] sm:$0xf] %v13836_v0  ;;  %229 = vst [vmem:[#allocation2 + $0x28] sm:$0xf] %v13836_v0  ;;  %12485 = vmatpush3.bf16.msra.mxu0 %v13420_v3  ;;  %vm306_vm3 = vsmask.f32 4368 }
  0x5e   : > { %230 = vst [vmem:[#allocation2 + $0x2c] sm:$0x1] %v13836_v0  ;;  %231 = vst [vmem:[#allocation2 + $0x30] sm:$0xf] %v13836_v0  ;;  %12533 = vmatpush3.bf16.msra.mxu1 %v13421_v4  ;;  %12486 = vmatprep.subr.bf16.mxu0 %v13422_v5  ;;  %vm630_vm4 = vsmask.f32 7938 }
  0x5f   : > { %232 = vst [vmem:[#allocation2 + $0x34] sm:$0xf] %v13836_v0  ;;  %233 = vst [vmem:[#allocation2 + $0x38] sm:$0x1] %v13836_v0  ;;  %12534 = vmatprep.subr.bf16.mxu1 %v13423_v6  ;;  %v13427_v10 = vld [vmem:[#allocation6 + $0x18] sm:$0xff]   ;;  %v13428_v11 = vld [vmem:[#allocation6 + $0x50] sm:$0xff]  }
  0x60   : > { %234 = vst [vmem:[#allocation2 + $0x3c] sm:$0xf] %v13836_v0  ;;  %235 = vst [vmem:[#allocation2 + $0x40] sm:$0xf] %v13836_v0  ;;  %v13429_v12 = vld [vmem:[#allocation6 + $0x10] sm:$0xff]   ;;  %vm629_vm5 = vcmask 1043456  }
  0x61   : > { %236 = vst [vmem:[#allocation2 + $0x44] sm:$0x1] %v13836_v0  ;;  %237 = vst [vmem:[#allocation2 + $0x48] sm:$0xf] %v13836_v0  ;;  %12487 = vmatpush3.bf16.msra.mxu0 %v13422_v5  ;;  %v746_v13 = vld [vmem:[#allocation2] sm:$0xf] }
  0x62   : > { %238 = vst [vmem:[#allocation2 + $0x4c] sm:$0xf] %v13836_v0  ;;  %239 = vst [vmem:[#allocation2 + $0x50] sm:$0x1] %v13836_v0  ;;  %12535 = vmatpush3.bf16.msra.mxu1 %v13423_v6  ;;  %12488 = vmatprep.subr.bf16.mxu0 %v13424_v7  ;;  %v747_v14 = vld [vmem:[#allocation2 + $0x4] sm:$0xf] }
  0x63   : > { %240 = vst [vmem:[#allocation2 + $0x54] sm:$0xf] %v13836_v0  ;;  %241 = vst [vmem:[#allocation2 + $0x58] sm:$0xf] %v13836_v0  ;;  %12536 = vmatprep.subr.bf16.mxu1 %v13425_v8  ;;  %v14010_v15 = vld [vmem:[#allocation2 + $0x8] sm:$0x1]  ;;  %v11475_v22 = vcombine.low %v746_v13, %v747_v14 }
  0x64   : > { %242 = vst [vmem:[#allocation2 + $0x5c] sm:$0x1] %v13836_v0  ;;  %243 = vst [vmem:[#allocation2 + $0x60] sm:$0xf] %v13836_v0  ;;  %v814_v16 = vshrl.u32 %v746_v13, 16  ;;  %v817_v17 = vshll.u32 %v746_v13, 16 }
  0x65   : > { %244 = vst [vmem:[#allocation2 + $0x64] sm:$0xf] %v13836_v0  ;;  %245 = vst [vmem:[#allocation2 + $0x68] sm:$0x1] %v13836_v0  ;;  %12489 = vmatpush3.bf16.msra.mxu0 %v13424_v7  ;;  %v823_v18 = vshll.u32 %v747_v14, 16  ;;  %v827_v19 = vshrl.u32 %v747_v14, 16  ;;  %12546 = vmatprep.mubr.bf16.mxu1 %v11475_v22 }
  0x66   : > { %246 = vst [vmem:[#allocation2 + $0x6c] sm:$0xf] %v13836_v0  ;;  %247 = vst [vmem:[#allocation2 + $0x70] sm:$0xf] %v13836_v0  ;;  %12537 = vmatpush3.bf16.msra.mxu1 %v13425_v8  ;;  %12490 = vmatprep.subr.bf16.mxu0 %v13426_v9  ;;  %v273_v20 = vld [vmem:[%s14000_s9] sm:$0xf] }
  0x67   : > { %248 = vst [vmem:[#allocation2 + $0x74] sm:$0x1] %v13836_v0  ;;  %249 = vst [vmem:[#allocation2 + $0x78] sm:$0xf] %v13836_v0  ;;  %12538 = vmatprep.subr.bf16.mxu1 %v13427_v10  ;;  %v833_v21 = vshll.u32 %v14010_v15, 16  ;;  %v309_v24 = vshrl.u32 %v273_v20, 16 }
  0x68   : > { %250 = vst [vmem:[#allocation2 + $0x7c] sm:$0xf] %v13836_v0  ;;  %251 = vst [vmem:[#allocation2 + $0x80] sm:$0x1] %v13836_v0  ;;  %v274_v23 = vld [vmem:[%s14000_s9 + $0x4] sm:$0xf] }
  0x69   : > { %252 = vst [vmem:[#allocation2 + $0x84] sm:$0xf] %v13836_v0  ;;  %253 = vst [vmem:[#allocation2 + $0x88] sm:$0xf] %v13836_v0  ;;  %vm636_vm6 = vcmask 1040384   ;;  %12491 = vmatpush3.bf16.msra.mxu0 %v13426_v9  ;;  %v13430_v25 = vld [vmem:[#allocation6 + $0x48] sm:$0xff]  }
  0x6a   : > { %254 = vst [vmem:[#allocation2 + $0x8c] sm:$0x1] %v13836_v0  ;;  %255 = vst [vmem:[#allocation2 + $0x90] sm:$0xf] %v13836_v0  ;;  %v816_v26 = vrot.slane %v814_v16, 4  ;;  %v819_v27 = vrot.slane %v817_v17, 5  ;;  %12539 = vmatpush3.bf16.msra.mxu1 %v13427_v10  ;;  %12492 = vmatprep.subr.bf16.mxu0 %v13428_v11 }
  0x6b   : > { %256 = vst [vmem:[#allocation2 + $0x94] sm:$0xf] %v13836_v0  ;;  %257 = vst [vmem:[#allocation2 + $0x98] sm:$0x1] %v13836_v0  ;;  %v825_v28 = vrot.slane %v823_v18, 5  ;;  %v829_v29 = vrot.slane %v827_v19, 4  ;;  %12540 = vmatprep.subr.bf16.mxu1 %v13429_v12 }
  0x6c   : > { %258 = vst [vmem:[#allocation2 + $0x9c] sm:$0xf] %v13836_v0  ;;  %259 = vst [vmem:[#allocation2 + $0xa0] sm:$0xf] %v13836_v0  ;;  %v13431_v30 = vld [vmem:[#allocation6 + $0x8] sm:$0xff]   ;;  %v18969_v31 = vmov 0  ;;  %v820_v36 = vor.u32 %v819_v27, %v816_v26 }
  0x6d   : > { %260 = vst [vmem:[#allocation2 + $0xa4] sm:$0x1] %v13836_v0  ;;  %261 = vst [vmem:[#allocation2 + $0xa8] sm:$0xf] %v13836_v0  ;;  %v311_v32 = vrot.slane %v309_v24, 7  ;;  %v312_v33 = vshll.u32 %v273_v20, 16  ;;  %v830_v37 = vor.u32 %v829_v29, %v825_v28  ;;  %12493 = vmatpush3.bf16.msra.mxu0 %v13428_v11 }
  0x6e   : > { %262 = vst [vmem:[#allocation2 + $0xac] sm:$0xf] %v13836_v0  ;;  %263 = vst [vmem:[#allocation2 + $0xb0] sm:$0x1] %v13836_v0  ;;  %v317_v34 = vshrl.u32 %v274_v23, 16  ;;  %v835_v38 = vrot.slane %v833_v21, 5  ;;  %12541 = vmatpush3.bf16.msra.mxu1 %v13429_v12  ;;  %12494 = vmatprep.subr.bf16.mxu0 %v13430_v25 }
  0x6f   : > { %264 = vst [vmem:[#allocation2 + $0xb4] sm:$0xf] %v13836_v0  ;;  %265 = vst [vmem:[#allocation2 + $0xb8] sm:$0xf] %v13836_v0  ;;  %v632_v35 = vld [vmem:[#allocation2 + $0xc] sm:$0xf]  ;;  %v314_v42 = vor.u32 %v312_v33, %v311_v32  ;;  %12542 = vmatprep.subr.bf16.mxu1 %v13431_v30 }
  0x70   : > { %266 = vst [vmem:[#allocation2 + $0xbc] sm:$0x1] %v13836_v0  ;;  %267 = vst [vmem:[#allocation2 + $0xc0] sm:$0xf] %v13836_v0  ;;  %v320_v39 = vshll.u32 %v274_v23, 16  ;;  %v18972_v40 = vmov 0 }
  0x71   : > { %268 = vst [vmem:[#allocation2 + $0xc4] sm:$0xf] %v13836_v0  ;;  %269 = vst [vmem:[#allocation2 + $0xc8] sm:$0x1] %v13836_v0  ;;  %v18975_v41 = vmov 0  ;;  %v315_v43 = vrot.slane %v311_v32, 4  ;;  %12495 = vmatpush3.bf16.msra.mxu0 %v13430_v25 }
  0x72   : > { %270 = vst [vmem:[#allocation2 + $0xcc] sm:$0xf] %v13836_v0  ;;  %271 = vst [vmem:[#allocation2 + $0xd0] sm:$0xf] %v13836_v0  ;;  %v319_v44 = vrot.slane %v317_v34, 7  ;;  %v821_v47 = vrot.slane %v820_v36, 4  ;;  %12543 = vmatpush3.bf16.msra.mxu1 %v13431_v30 }
  0x73   : > { %272 = vst [vmem:[#allocation2 + $0xd4] sm:$0x1] %v13836_v0  ;;  %vm14017_vm7 = vmor %vm810_vm0, %vm811_vm1  ;;  %v275_v45 = vld [vmem:[%s14000_s9 + $0x8] sm:$0xf]  ;;  %v276_v46 = vld [vmem:[%s14000_s9 + $0xc] sm:$0xf] }
  0x74   : > { %v18970_v31 = vsel %vm14017_vm7, 4294967295, %v18969_v31  ;;  %vm14023_vm8 = vmand %vm629_vm5, %vm630_vm4  ;;  %v831_v48 = vrot.slane %v830_v37, 4  ;;  %v18978_v49 = vmov 0  ;;  %v638_v50 = vld [vmem:[#allocation2 + $0x14] sm:$0x1]  ;;  %v326_v51 = vshrl.u32 %v275_v45, 16 }
  0x75   : > { %18971 = vst [vmem:[#allocation13_spill] sm:$0xff] %v18970_v31  ;;  %v18973_v40 = vsel %vm14023_vm8, 4294967295, %v18972_v40  ;;  %vm14029_vm9 = vmor %vm305_vm2, %vm306_vm3  ;;  %v329_v52 = vshll.u32 %v275_v45, 16  ;;  %v13432_v53 = vld [vmem:[#allocation6 + $0x40] sm:$0xff]   ;;  %v322_v55 = vor.u32 %v320_v39, %v319_v44  ;;  %v324_v56 = vrot.slane %v319_v44, 4  ;;  %v14053_v11 = vld [vmem:[#allocation6 + $0xb8] sm:$0xff]  }
  0x76   : > { %18974 = vst [vmem:[#allocation14_spill] sm:$0xff] %v18973_v40  ;;  %v18976_v41 = vsel %vm14029_vm9, 4294967295, %v18975_v41  ;;  %vm14037_vm10 = vmand %vm636_vm6, %vm305_vm2  ;;  %v13433_v54 = vld [vmem:[#allocation6] sm:$0xff]   ;;  %v633_v57 = vsel %vm14023_vm8, %v314_v42, %v632_v35  ;;  %v334_v58 = vshrl.u32 %v276_v46, 16  ;;  %v277_v59 = vld [vmem:[%s14000_s9 + $0x10] sm:$0xf]  ;;  %v826_v60 = vsel %vm14017_vm7, %v821_v47, %v825_v28  ;;  %12496 = vmatprep.subr.bf16.mxu0 %v13432_v53 }
  0x77   : > { %18977 = vst [vmem:[#allocation15_spill] sm:$0xff] %v18976_v41  ;;  %v18979_v49 = vsel %vm14037_vm10, 4294967295, %v18978_v49  ;;  %v836_v61 = vsel %vm14017_vm7, %v831_v48, %v835_v38  ;;  %634 = vst [vmem:[#allocation2 + $0xc] sm:$0xf] %v633_v57  ;;  %v328_v62 = vrot.slane %v326_v51, 7  ;;  %v337_v63 = vshll.u32 %v276_v46, 16  ;;  %12544 = vmatprep.subr.bf16.mxu1 %v13433_v54  ;;  %12497 = vmatpush3.bf16.msra.mxu0 %v13432_v53 }
  0x78   : > { %18980 = vst [vmem:[#allocation16_spill] sm:$0xff] %v18979_v49  ;;  %v641_v0 = vld [vmem:[#allocation2 + $0x18] sm:$0xf]  ;;  %v278_v1 = vld [vmem:[%s14000_s9 + $0x14] sm:$0xf]  ;;  %v11451_v2 = vcombine.low %v826_v60, %v836_v61  ;;  %v323_v3 = vsel %vm14029_vm9, %v315_v43, %v322_v55  ;;  %v639_v4 = vsel %vm14037_vm10, %v324_v56, %v638_v50  ;;  %v336_v5 = vrot.slane %v334_v58, 7  ;;  %12545 = vmatpush3.bf16.msra.mxu1 %v13433_v54 }
  0x79   : > { %v645_v6 = vld [vmem:[#allocation2 + $0x20] sm:$0x1]  ;;  %635 = vst [vmem:[#allocation2 + $0x10] sm:$0xf] %v323_v3  ;;  %640 = vst [vmem:[#allocation2 + $0x14] sm:$0x1] %v639_v4  ;;  %v331_v7 = vor.u32 %v329_v52, %v328_v62  ;;  %12578 = vmatprep.subr.bf16.mxu0 %v14053_v11 }
  0x7a   : > { %v332_v8 = vrot.slane %v328_v62, 4  ;;  %v343_v9 = vshrl.u32 %v277_v59, 16  ;;  %v346_v10 = vshll.u32 %v277_v59, 16  ;;  %v339_v12 = vor.u32 %v337_v63, %v336_v5  ;;  %v279_v17 = vld [vmem:[%s14000_s9 + $0x18] sm:$0xf]  ;;  %12498 = vmatprep.mubr.bf16.mxu0 %v11451_v2  ;;  %v13450_v61 = vld [vmem:[#allocation6 + $0xf0] sm:$0xff]  }
  0x7b   : > { %v341_v13 = vrot.slane %v336_v5, 4  ;;  %v351_v14 = vshrl.u32 %v278_v1, 16  ;;  %v354_v16 = vshll.u32 %v278_v1, 16  ;;  %v642_v18 = vsel %vm14023_vm8, %v331_v7, %v641_v0  ;;  %v280_v20 = vld [vmem:[%s14000_s9 + $0x1c] sm:$0xf]  ;;  %s11450_s18 = sshll.u32 %s13996_s5, 8 }
  0x7c   : > { %v345_v19 = vrot.slane %v343_v9, 7  ;;  %v360_v21 = vshrl.u32 %v279_v17, 16  ;;  %v363_v22 = vshll.u32 %v279_v17, 16  ;;  %v13449_v23 = vld [vmem:[#allocation6 + $0xf8] sm:$0xff]   ;;  %v340_v24 = vsel %vm14029_vm9, %v332_v8, %v339_v12  ;;  %643 = vst [vmem:[#allocation2 + $0x18] sm:$0xf] %v642_v18 }
  0x7d   : > { %v646_v25 = vsel %vm14037_vm10, %v341_v13, %v645_v6  ;;  %v353_v26 = vrot.slane %v351_v14, 7  ;;  %v648_v27 = vld [vmem:[#allocation2 + $0x24] sm:$0xf]  ;;  %v368_v28 = vshrl.u32 %v280_v20, 16  ;;  %644 = vst [vmem:[#allocation2 + $0x1c] sm:$0xf] %v340_v24  ;;  %12626 = vmatprep.subr.bf16.mxu1 %v13449_v23 }
  0x7e   : > { %647 = vst [vmem:[#allocation2 + $0x20] sm:$0x1] %v646_v25  ;;  %v348_v29 = vor.u32 %v346_v10, %v345_v19  ;;  %v349_v30 = vrot.slane %v345_v19, 4  ;;  %v652_v32 = vld [vmem:[#allocation2 + $0x2c] sm:$0x1]  ;;  %v362_v33 = vrot.slane %v360_v21, 7 }
  0x7f   : > { %v371_v34 = vshll.u32 %v280_v20, 16  ;;  %v748_v35 = vld [vmem:[#allocation2 + $0xc] sm:$0xf]  ;;  %v356_v36 = vor.u32 %v354_v16, %v353_v26  ;;  %v358_v37 = vrot.slane %v353_v26, 4  ;;  %v370_v38 = vrot.slane %v368_v28, 7  ;;  %v13454_v19 = vld [vmem:[#allocation6 + $0xe8] sm:$0xff]  }
  0x80   : > { %v838_v39 = vshrl.u32 %v748_v35, 16  ;;  %v841_v42 = vshll.u32 %v748_v35, 16  ;;  %v649_v43 = vsel %vm14023_vm8, %v348_v29, %v648_v27  ;;  %v365_v44 = vor.u32 %v363_v22, %v362_v33  ;;  %v655_v45 = vld [vmem:[#allocation2 + $0x30] sm:$0xf]  ;;  %v14066_v47 = vld [vmem:[#allocation2 + $0x14] sm:$0x1] }
  0x81   : > { %v749_v46 = vld [vmem:[#allocation2 + $0x10] sm:$0xf]  ;;  %v357_v48 = vsel %vm14029_vm9, %v349_v30, %v356_v36  ;;  %650 = vst [vmem:[#allocation2 + $0x24] sm:$0xf] %v649_v43  ;;  %v653_v50 = vsel %vm14037_vm10, %v358_v37, %v652_v32  ;;  %v366_v51 = vrot.slane %v362_v33, 4  ;;  %v373_v52 = vor.u32 %v371_v34, %v370_v38  ;;  %s18804_s20 = scalar_lea.vmem [#allocation9], %s11450_s18 }
  0x82   : > { %v840_v53 = vrot.slane %v838_v39, 4  ;;  %v843_v54 = vrot.slane %v841_v42, 5  ;;  %v847_v55 = vshll.u32 %v749_v46, 16  ;;  %v851_v56 = vshrl.u32 %v749_v46, 16  ;;  %651 = vst [vmem:[#allocation2 + $0x28] sm:$0xf] %v357_v48 }
  0x83   : > { %654 = vst [vmem:[#allocation2 + $0x2c] sm:$0x1] %v653_v50  ;;  %v1848_v57 = vrot.slane %v14010_v15, 5  ;;  %v857_v58 = vshll.u32 %v14066_v47, 16  ;;  %v11476_v59 = vcombine.low %v748_v35, %v749_v46  ;;  %v374_v60 = vsel %vm14029_vm9, %v366_v51, %v373_v52  ;;  %v750_v1 = vld [vmem:[#allocation2 + $0x18] sm:$0xf] }
  0x84   : > { %v844_v62 = vor.u32 %v843_v54, %v840_v53  ;;  %v849_v63 = vrot.slane %v847_v55, 5  ;;  %v853_v0 = vrot.slane %v851_v56, 4  ;;  %v375_v2 = vrot.slane %v370_v38, 4  ;;  %658 = vst [vmem:[#allocation2 + $0x34] sm:$0xf] %v374_v60  ;;  %v13439_v39 = vld [vmem:[#allocation6 + $0xb0] sm:$0xff]  }
  0x85   : > { %v859_v3 = vrot.slane %v857_v58, 5  ;;  %12547 = vmatmul.mubr.bf16.vlgmr.msra.gmra.mxu1 %v11476_v59  ;;  %v751_v4 = vld [vmem:[#allocation2 + $0x1c] sm:$0xf]  ;;  %v796_v5 = vld [vmem:[#allocation2 + $0x20] sm:$0x1]  ;;  %v862_v6 = vshrl.u32 %v750_v1, 16  ;;  %v656_v7 = vsel %vm14023_vm8, %v365_v44, %v655_v45 }
  0x86   : > { %v845_v8 = vrot.slane %v844_v62, 4  ;;  %v854_v9 = vor.u32 %v853_v0, %v849_v63  ;;  %v865_v10 = vshll.u32 %v750_v1, 16  ;;  %v871_v12 = vshll.u32 %v751_v4, 16  ;;  %657 = vst [vmem:[#allocation2 + $0x30] sm:$0xf] %v656_v7  ;;  %12627 = vmatpush3.bf16.msra.mxu1 %v13449_v23  ;;  %v13455_v42 = vld [vmem:[#allocation6 + $0xe0] sm:$0xff]  }
  0x87   : > { %v659_v13 = vld [vmem:[#allocation2 + $0x38] sm:$0x1]  ;;  %v864_v14 = vrot.slane %v862_v6, 4  ;;  %v875_v16 = vshrl.u32 %v751_v4, 16  ;;  %v881_v17 = vshll.u32 %v796_v5, 16  ;;  %v11477_v18 = vcombine.low %v750_v1, %v751_v4  ;;  %12628 = vmatprep.subr.bf16.mxu1 %v13450_v61  ;;  %v13442_v60 = vld [vmem:[#allocation6 + $0xa8] sm:$0xff]  }
  0x88   : > { %v850_v20 = vsel %vm14017_vm7, %v845_v8, %v849_v63  ;;  %v855_v21 = vrot.slane %v854_v9, 4  ;;  %v867_v22 = vrot.slane %v865_v10, 5  ;;  %v873_v24 = vrot.slane %v871_v12, 5  ;;  %v752_v25 = vld [vmem:[#allocation2 + $0x24] sm:$0xf]  ;;  %v13459_v12 = vld [vmem:[#allocation6 + $0xd8] sm:$0xff]  }
  0x89   : > { %v877_v26 = vrot.slane %v875_v16, 4  ;;  %v883_v27 = vrot.slane %v881_v17, 5  ;;  %12550 = vmatprep.mubr.bf16.mxu1 %v11477_v18  ;;  %v753_v28 = vld [vmem:[#allocation2 + $0x28] sm:$0xf]  ;;  %v660_v23 = vsel %vm14037_vm10, %v375_v2, %v659_v13  ;;  %v886_v33 = vshrl.u32 %v752_v25, 16  ;;  %s12049_s27 = sshll.u32 %s13881_s16, 12 }
  0x8a   : > { %v797_v29 = vld [vmem:[#allocation2 + $0x2c] sm:$0x1]  ;;  %v860_v30 = vsel %vm14017_vm7, %v855_v21, %v859_v3  ;;  %v868_v32 = vor.u32 %v867_v22, %v864_v14  ;;  %v889_v34 = vshll.u32 %v752_v25, 16  ;;  %661 = vst [vmem:[#allocation2 + $0x38] sm:$0x1] %v660_v23  ;;  %12629 = vmatpush3.bf16.msra.mxu1 %v13450_v61  ;;  %v895_v37 = vshll.u32 %v753_v28, 16  ;;  %s18863_s29 = scalar_lea.hbm %s18927_s3, %s12049_s27 }
  0x8b   : > { %v11452_v35 = vcombine.low %v850_v20, %v860_v30  ;;  %v878_v36 = vor.u32 %v877_v26, %v873_v24  ;;  %v899_v38 = vshrl.u32 %v753_v28, 16  ;;  %12630 = vmatprep.subr.bf16.mxu1 %v13454_v19  ;;  %v888_v44 = vrot.slane %v886_v33, 4  ;;  %v755_v48 = vld [vmem:[#allocation2 + $0x34] sm:$0xf]  ;;  %v281_v1 = vld [vmem:[%s14000_s9 + $0x20] sm:$0xf] }
  0x8c   : > { %v869_v43 = vrot.slane %v868_v32, 4  ;;  %v891_v45 = vrot.slane %v889_v34, 5  ;;  %v905_v46 = vshll.u32 %v797_v29, 16  ;;  %v897_v51 = vrot.slane %v895_v37, 5  ;;  %v282_v5 = vld [vmem:[%s14000_s9 + $0x24] sm:$0xf] }
  0x8d   : > { %12499 = vmatmul.mubr.bf16.vlgmr.msra.gmra.mxu0 %v11452_v35  ;;  %v879_v50 = vrot.slane %v878_v36, 4  ;;  %v901_v52 = vrot.slane %v899_v38, 4  ;;  %v11478_v53 = vcombine.low %v752_v25, %v753_v28  ;;  %v754_v54 = vld [vmem:[#allocation2 + $0x30] sm:$0xf]  ;;  %v919_v0 = vshll.u32 %v755_v48, 16  ;;  %v13445_v25 = vld [vmem:[#allocation6 + $0xa0] sm:$0xff]  }
  0x8e   : > { %12579 = vmatpush3.bf16.msra.mxu0 %v14053_v11  ;;  %v874_v55 = vsel %vm14017_vm7, %v869_v43, %v873_v24  ;;  %v892_v56 = vor.u32 %v891_v45, %v888_v44  ;;  %v907_v58 = vrot.slane %v905_v46, 5  ;;  %v910_v59 = vshrl.u32 %v754_v54, 16  ;;  %12631 = vmatpush3.bf16.msra.mxu1 %v13454_v19  ;;  %v283_v18 = vld [vmem:[%s14000_s9 + $0x28] sm:$0xf]  ;;  %v662_v24 = vld [vmem:[#allocation2 + $0x3c] sm:$0xf] }
  0x8f   : > { %v884_v61 = vsel %vm14017_vm7, %v879_v50, %v883_v27  ;;  %v902_v62 = vor.u32 %v901_v52, %v897_v51  ;;  %12551 = vmatmul.mubr.bf16.gmra.mxu1 %v11478_v53  ;;  %12580 = vmatprep.subr.bf16.mxu0 %v13439_v39  ;;  %v913_v63 = vshll.u32 %v754_v54, 16  ;;  %v923_v4 = vshrl.u32 %v755_v48, 16  ;;  %v666_v23 = vld [vmem:[#allocation2 + $0x44] sm:$0x1]  ;;  %v14098_v36 = vld [vmem:[%s14000_s9 + $0x30] sm:$0xf] }
  0x90   : > { %v11453_v2 = vcombine.low %v874_v55, %v884_v61  ;;  %v893_v11 = vrot.slane %v892_v56, 4  ;;  %v912_v3 = vrot.slane %v910_v59, 4  ;;  %12632 = vmatprep.subr.bf16.mxu1 %v13455_v42  ;;  %v921_v9 = vrot.slane %v919_v0, 5  ;;  %v284_v30 = vld [vmem:[%s14000_s9 + $0x2c] sm:$0xf]  ;;  %v13460_v37 = vld [vmem:[#allocation6 + $0xd0] sm:$0xff]  }
  0x91   : > { %v903_v6 = vrot.slane %v902_v62, 4  ;;  %v798_v7 = vld [vmem:[#allocation2 + $0x38] sm:$0x1]  ;;  %v915_v8 = vrot.slane %v913_v63, 5  ;;  %v11479_v10 = vcombine.low %v754_v54, %v755_v48  ;;  %v925_v14 = vrot.slane %v923_v4, 4  ;;  %v13448_v50 = vld [vmem:[#allocation6 + $0x98] sm:$0xff]  }
  0x92   : > { %12502 = vmatprep.mubr.bf16.mxu0 %v11453_v2  ;;  %v898_v13 = vsel %vm14017_vm7, %v893_v11, %v897_v51  ;;  %12581 = vmatpush3.bf16.msra.mxu0 %v13439_v39  ;;  %v929_v16 = vshll.u32 %v798_v7, 16  ;;  %v377_v17 = vshrl.u32 %v281_v1, 16  ;;  %v380_v21 = vshll.u32 %v281_v1, 16  ;;  %v669_v45 = vld [vmem:[#allocation2 + $0x48] sm:$0xf]  ;;  %v13464_v63 = vld [vmem:[#allocation6 + $0xc8] sm:$0xff]  }
  0x93   : > { %v908_v19 = vsel %vm14017_vm7, %v903_v6, %v907_v58  ;;  %v916_v20 = vor.u32 %v915_v8, %v912_v3  ;;  %12554 = vmatprep.mubr.bf16.mxu1 %v11479_v10  ;;  %v385_v22 = vshrl.u32 %v282_v5, 16  ;;  %12582 = vmatprep.subr.bf16.mxu0 %v13442_v60  ;;  %v926_v27 = vor.u32 %v925_v14, %v921_v9  ;;  %v286_v46 = vld [vmem:[%s14000_s9 + $0x34] sm:$0xf]  ;;  %v287_v48 = vld [vmem:[%s14000_s9 + $0x38] sm:$0xf]  ;;  %s11346_s28 = sshll.u32 %s18804_s20, 4  ;;  %s18865_s28 = int_to_ptr.vmem [resolvable:$true] %s11346_s28 }
  0x94   : > { %v11454_v26 = vcombine.low %v898_v13, %v908_v19  ;;  %v931_v28 = vrot.slane %v929_v16, 5  ;;  %v379_v29 = vrot.slane %v377_v17, 7  ;;  %12633 = vmatpush3.bf16.msra.mxu1 %v13455_v42  ;;  %v388_v34 = vshll.u32 %v282_v5, 16  ;;  %v14115_v3 = vld [vmem:[%s14000_s9 + $0x3c] sm:$0xf]  ;;  %v13465_v17 = vld [vmem:[#allocation6 + $0xc0] sm:$0xff]  }
  0x95   : > { %v917_v32 = vrot.slane %v916_v20, 4  ;;  %v387_v33 = vrot.slane %v385_v22, 7  ;;  %v394_v35 = vshrl.u32 %v283_v18, 16  ;;  %12634 = vmatprep.subr.bf16.mxu1 %v13459_v12  ;;  %v927_v38 = vrot.slane %v926_v27, 4  ;;  %v673_v5 = vld [vmem:[#allocation2 + $0x50] sm:$0x1] }
  0x96   : > { %12503 = vmatmul.mubr.bf16.gmra.mxu0 %v11454_v26  ;;  %v382_v39 = vor.u32 %v380_v21, %v379_v29  ;;  %v383_v43 = vrot.slane %v379_v29, 4  ;;  %v397_v44 = vshll.u32 %v283_v18, 16  ;;  %v402_v56 = vshrl.u32 %v284_v30, 16  ;;  %v676_v14 = vld [vmem:[#allocation2 + $0x54] sm:$0xf]  ;;  %s11333_s30 = scalar_lea.sflag [#allocation5], %s13996_s5 }
  0x97   : > { %v922_v42 = vsel %vm14017_vm7, %v917_v32, %v921_v9  ;;  %v390_v51 = vor.u32 %v388_v34, %v387_v33  ;;  %v392_v52 = vrot.slane %v387_v33, 4  ;;  %12583 = vmatpush3.bf16.msra.mxu0 %v13442_v60  ;;  %v396_v53 = vrot.slane %v394_v35, 7  ;;  %v13453_v9 = vld [vmem:[#allocation6 + $0x90] sm:$0xff]   ;;  %v14122_v22 = vld [vmem:[%s14000_s9 + $0x40] sm:$0xf]  ;;  %s13761_s4 = scalar_lea.vmem %s18865_s28, 4096 }
  0x98   : > { %v932_v54 = vsel %vm14017_vm7, %v927_v38, %v931_v28  ;;  %v663_v55 = vsel %vm14023_vm8, %v382_v39, %v662_v24  ;;  %v405_v58 = vshll.u32 %v284_v30, 16  ;;  %12584 = vmatprep.subr.bf16.mxu0 %v13445_v25  ;;  %12635 = vmatpush3.bf16.msra.mxu1 %v13459_v12  ;;  %v404_v1 = vrot.slane %v402_v56, 7  ;;  %v680_v28 = vld [vmem:[#allocation2 + $0x5c] sm:$0x1]  ;;  %v13458_v39 = vld [vmem:[#allocation6 + $0x88] sm:$0xff]   ;;  %p13762_p5 = scmp.ne.s32.totalorder %s18865_s28, %s13761_s4  ;;  %p19282_p2 = scmp.ne.s32.totalorder %s18963_s10, 0 }
  0x99   : > { %v11455_v59 = vcombine.low %v922_v42, %v932_v54  ;;  %v391_v61 = vsel %vm14029_vm9, %v383_v43, %v390_v51  ;;  %664 = vst [vmem:[#allocation2 + $0x3c] sm:$0xf] %v663_v55  ;;  %v667_v60 = vsel %vm14037_vm10, %v392_v52, %v666_v23  ;;  %v399_v62 = vor.u32 %v397_v44, %v396_v53  ;;  %v687_v42 = vld [vmem:[#allocation2 + $0x68] sm:$0x1]  ;;  %s13837_s21 = smov [#allocation9]  }
  0x9a   : > { %12636 = vmatprep.subr.bf16.mxu1 %v13460_v37  ;;  %665 = vst [vmem:[#allocation2 + $0x40] sm:$0xf] %v391_v61  ;;  %668 = vst [vmem:[#allocation2 + $0x44] sm:$0x1] %v667_v60  ;;  %v400_v0 = vrot.slane %v396_v53, 4  ;;  %v411_v2 = vshrl.u32 %v14098_v36, 16  ;;  %v407_v10 = vor.u32 %v405_v58, %v404_v1  ;;  %p13763_p7 = pnand %p13762_p5, %p19282_p2 }
  0x9b   : > { %v414_v11 = vshll.u32 %v14098_v36, 16  ;;  %12506 = vmatprep.mubr.bf16.mxu0 %v11455_v59  ;;  %v670_v4 = vsel %vm14023_vm8, %v399_v62, %v669_v45  ;;  %v419_v6 = vshrl.u32 %v286_v46, 16  ;;  %v422_v7 = vshll.u32 %v286_v46, 16  ;;  %12585 = vmatpush3.bf16.msra.mxu0 %v13445_v25  ;;  %v683_v36 = vld [vmem:[#allocation2 + $0x60] sm:$0xf]  ;;  %v13463_v60 = vld [vmem:[#allocation6 + $0x80] sm:$0xff]  }
  0x9c   : > { %v428_v8 = vshrl.u32 %v287_v48, 16  ;;  %v409_v12 = vrot.slane %v404_v1, 4  ;;  %671 = vst [vmem:[#allocation2 + $0x48] sm:$0xf] %v670_v4  ;;  %v413_v13 = vrot.slane %v411_v2, 7  ;;  %v431_v16 = vshll.u32 %v287_v48, 16  ;;  %12586 = vmatprep.subr.bf16.mxu0 %v13448_v50  ;;  %12637 = vmatpush3.bf16.msra.mxu1 %v13460_v37  ;;  %p13764_p12 = pneg %p13763_p7 }
  0x9d   : > { %v421_v18 = vrot.slane %v419_v6, 7  ;;  %v436_v20 = vshrl.u32 %v14115_v3, 16  ;;  %v439_v21 = vshll.u32 %v14115_v3, 16  ;;  %12638 = vmatprep.subr.bf16.mxu1 %v13464_v63  ;;  %v408_v24 = vsel %vm14029_vm9, %v400_v0, %v407_v10  ;;  %s13765_s22 = sshll.u32 %s13837_s21, 4  ;;  %s13766_s22 = int_to_ptr.vmem [resolvable:$false] %s13765_s22 }
  0x9e   : > { %v430_v19 = vrot.slane %v428_v8, 7  ;;  %v674_v25 = vsel %vm14037_vm10, %v409_v12, %v673_v5  ;;  %v416_v26 = vor.u32 %v414_v11, %v413_v13  ;;  %v417_v27 = vrot.slane %v413_v13, 4  ;;  %672 = vst [vmem:[#allocation2 + $0x4c] sm:$0xf] %v408_v24  ;;  %s13767_s17 = scalar_lea.vmem %s13766_s22, 8192  ;;  %p13768_p13 = scmp.lt.s32.totalorder %s18865_s28, %s13766_s22 }
  0x9f   : > { %675 = vst [vmem:[#allocation2 + $0x50] sm:$0x1] %v674_v25  ;;  %v424_v29 = vor.u32 %v422_v7, %v421_v18  ;;  %v426_v23 = vrot.slane %v421_v18, 4  ;;  %12587 = vmatpush3.bf16.msra.mxu0 %v13448_v50  ;;  %v438_v35 = vrot.slane %v436_v20, 7  ;;  %v445_v37 = vshrl.u32 %v14122_v22, 16  ;;  %p13769_p0 = scmp.lt.s32.totalorder %s13767_s17, %s13761_s4 }
  0xa0   : > { %v433_v30 = vor.u32 %v431_v16, %v430_v19  ;;  %v434_v32 = vrot.slane %v430_v19, 4  ;;  %v756_v33 = vld [vmem:[#allocation2 + $0x3c] sm:$0xf]  ;;  %v677_v34 = vsel %vm14023_vm8, %v416_v26, %v676_v14  ;;  %v448_v38 = vshll.u32 %v14122_v22, 16  ;;  %12588 = vmatprep.subr.bf16.mxu0 %v13453_v9  ;;  %12639 = vmatpush3.bf16.msra.mxu1 %v13464_v63  ;;  %v13466_v22 = vld [vmem:[#allocation6 + $0x138] sm:$0xff]  }
  0xa1   : > { %v757_v43 = vld [vmem:[#allocation2 + $0x40] sm:$0xf]  ;;  %v799_v44 = vld [vmem:[#allocation2 + $0x44] sm:$0x1]  ;;  %v934_v45 = vshrl.u32 %v756_v33, 16  ;;  %v937_v46 = vshll.u32 %v756_v33, 16  ;;  %v425_v48 = vsel %vm14029_vm9, %v417_v27, %v424_v29  ;;  %v681_v50 = vsel %vm14037_vm10, %v426_v23, %v680_v28  ;;  %12640 = vmatprep.subr.bf16.mxu1 %v13465_v17  ;;  %p13770_p10 = por %p13769_p0, %p13768_p13 }
  0xa2   : > { %678 = vst [vmem:[#allocation2 + $0x54] sm:$0xf] %v677_v34  ;;  %v943_v51 = vshll.u32 %v757_v43, 16  ;;  %v947_v52 = vshrl.u32 %v757_v43, 16  ;;  %v953_v53 = vshll.u32 %v799_v44, 16  ;;  %v11480_v54 = vcombine.low %v756_v33, %v757_v43 }
  0xa3   : > { %679 = vst [vmem:[#allocation2 + $0x58] sm:$0xf] %v425_v48  ;;  %682 = vst [vmem:[#allocation2 + $0x5c] sm:$0x1] %v681_v50  ;;  %v936_v55 = vrot.slane %v934_v45, 4  ;;  %v939_v56 = vrot.slane %v937_v46, 5  ;;  %v441_v59 = vor.u32 %v439_v21, %v438_v35  ;;  %12589 = vmatpush3.bf16.msra.mxu0 %v13453_v9  ;;  %v684_v4 = vsel %vm14023_vm8, %v433_v30, %v683_v36  ;;  %p13771_p3 = pnand %p13770_p10, %p13764_p12 }
  0xa4   : > { %v758_v58 = vld [vmem:[#allocation2 + $0x48] sm:$0xf]  ;;  %v443_v61 = vrot.slane %v438_v35, 4  ;;  %v945_v62 = vrot.slane %v943_v51, 5  ;;  %v949_v63 = vrot.slane %v947_v52, 4  ;;  %v955_v0 = vrot.slane %v953_v53, 5  ;;  %12555 = vmatmul.mubr.bf16.gmra.mxu1 %v11480_v54  ;;  %12590 = vmatprep.subr.bf16.mxu0 %v13458_v39 }
  0xa5   : > { %v958_v1 = vshrl.u32 %v758_v58, 16  ;;  %v940_v2 = vor.u32 %v939_v56, %v936_v55  ;;  %v961_v11 = vshll.u32 %v758_v58, 16  ;;  %v442_v3 = vsel %vm14029_vm9, %v434_v32, %v441_v59  ;;  %12641 = vmatpush3.bf16.msra.mxu1 %v13465_v17  ;;  %v14140_v6 = vld [vmem:[#allocation2 + $0x4c] sm:$0xf]  ;;  %685 = vst [vmem:[#allocation2 + $0x60] sm:$0xf] %v684_v4 }
  0xa6   : > { %v950_v5 = vor.u32 %v949_v63, %v945_v62  ;;  %v14142_v7 = vld [vmem:[#allocation2 + $0x50] sm:$0x1]  ;;  %686 = vst [vmem:[#allocation2 + $0x64] sm:$0xf] %v442_v3  ;;  %v688_v9 = vsel %vm14037_vm10, %v443_v61, %v687_v42  ;;  %v14146_v10 = vrot.slane %v445_v37, 7  ;;  %v967_v14 = vshll.u32 %v14140_v6, 16 }
  0xa7   : > { %v960_v8 = vrot.slane %v958_v1, 4  ;;  %v941_v12 = vrot.slane %v940_v2, 4  ;;  %v963_v13 = vrot.slane %v961_v11, 5  ;;  %v971_v16 = vshrl.u32 %v14140_v6, 16  ;;  %689 = vst [vmem:[#allocation2 + $0x68] sm:$0x1] %v688_v9  ;;  %12591 = vmatpush3.bf16.msra.mxu0 %v13458_v39 }
  0xa8   : > { %v951_v17 = vrot.slane %v950_v5, 4  ;;  %v977_v18 = vshll.u32 %v14142_v7, 16  ;;  %v11481_v19 = vcombine.low %v758_v58, %v14140_v6  ;;  %v14153_v21 = vor.u32 %v448_v38, %v14146_v10  ;;  %12592 = vmatprep.subr.bf16.mxu0 %v13463_v60  ;;  %v290_v58 = vld [vmem:[%s14000_s9 + $0x44] sm:$0xf]  ;;  %v690_v63 = vld [vmem:[#allocation2 + $0x6c] sm:$0xf] }
  0xa9   : > { %v760_v20 = vld [vmem:[#allocation2 + $0x54] sm:$0xf]  ;;  %v946_v24 = vsel %vm14017_vm7, %v941_v12, %v945_v62  ;;  %v964_v25 = vor.u32 %v963_v13, %v960_v8  ;;  %v969_v26 = vrot.slane %v967_v14, 5  ;;  %v973_v27 = vrot.slane %v971_v16, 4  ;;  %v291_v3 = vld [vmem:[%s14000_s9 + $0x48] sm:$0xf] }
  0xaa   : > { %v14157_v28 = vld [vmem:[#allocation2 + $0x58] sm:$0xf]  ;;  %v14159_v29 = vld [vmem:[#allocation2 + $0x5c] sm:$0x1]  ;;  %v956_v23 = vsel %vm14017_vm7, %v951_v17, %v955_v0  ;;  %v979_v30 = vrot.slane %v977_v18, 5  ;;  %12558 = vmatprep.mubr.bf16.mxu1 %v11481_v19  ;;  %v982_v32 = vshrl.u32 %v760_v20, 16 }
  0xab   : > { %v985_v33 = vshll.u32 %v760_v20, 16  ;;  %v11456_v34 = vcombine.low %v946_v24, %v956_v23  ;;  %v965_v35 = vrot.slane %v964_v25, 4  ;;  %v974_v36 = vor.u32 %v973_v27, %v969_v26  ;;  %12593 = vmatpush3.bf16.msra.mxu0 %v13463_v60  ;;  %v292_v12 = vld [vmem:[%s14000_s9 + $0x4c] sm:$0xf]  ;;  %v694_v27 = vld [vmem:[#allocation2 + $0x74] sm:$0x1] }
  0xac   : > { %v991_v37 = vshll.u32 %v14157_v28, 16  ;;  %v984_v38 = vrot.slane %v982_v32, 4  ;;  %v995_v43 = vshrl.u32 %v14157_v28, 16  ;;  %v1001_v44 = vshll.u32 %v14159_v29, 16  ;;  %12674 = vmatprep.subr.bf16.mxu0 %v13466_v22  ;;  %v762_v42 = vld [vmem:[#allocation2 + $0x60] sm:$0xf] }
  0xad   : > { %v987_v39 = vrot.slane %v985_v33, 5  ;;  %12507 = vmatmul.mubr.bf16.gmra.mxu0 %v11456_v34  ;;  %v970_v45 = vsel %vm14017_vm7, %v965_v35, %v969_v26  ;;  %v975_v46 = vrot.slane %v974_v36, 4  ;;  %v11482_v50 = vcombine.low %v760_v20, %v14157_v28  ;;  %v14169_v51 = vld [vmem:[#allocation2 + $0x64] sm:$0xf]  ;;  %v697_v34 = vld [vmem:[#allocation2 + $0x78] sm:$0xf] }
  0xae   : > { %v993_v48 = vrot.slane %v991_v37, 5  ;;  %v997_v53 = vrot.slane %v995_v43, 4  ;;  %v1003_v54 = vrot.slane %v1001_v44, 5  ;;  %v14171_v55 = vld [vmem:[#allocation2 + $0x68] sm:$0x1]  ;;  %v1006_v56 = vshrl.u32 %v762_v42, 16 }
  0xaf   : > { %v988_v52 = vor.u32 %v987_v39, %v984_v38  ;;  %v980_v59 = vsel %vm14017_vm7, %v975_v46, %v979_v30  ;;  %12559 = vmatmul.mubr.bf16.gmra.mxu1 %v11482_v50  ;;  %v1009_v61 = vshll.u32 %v762_v42, 16  ;;  %v1015_v60 = vshll.u32 %v14169_v51, 16  ;;  %v293_v39 = vld [vmem:[%s14000_s9 + $0x50] sm:$0xf]  ;;  %v701_v46 = vld [vmem:[#allocation2 + $0x80] sm:$0x1] }
  0xb0   : > { %v1019_v62 = vshrl.u32 %v14169_v51, 16  ;;  %v11457_v0 = vcombine.low %v970_v45, %v980_v59  ;;  %v998_v2 = vor.u32 %v997_v53, %v993_v48  ;;  %v1008_v11 = vrot.slane %v1006_v56, 4  ;;  %v296_v56 = vld [vmem:[%s14000_s9 + $0x5c] sm:$0xf] }
  0xb1   : > { %v989_v1 = vrot.slane %v988_v52, 4  ;;  %v1011_v4 = vrot.slane %v1009_v61, 5  ;;  %v1017_v5 = vrot.slane %v1015_v60, 5  ;;  %v1025_v9 = vshll.u32 %v14171_v55, 16 }
  0xb2   : > { %v1021_v8 = vrot.slane %v1019_v62, 4  ;;  %12510 = vmatprep.mubr.bf16.mxu0 %v11457_v0  ;;  %v999_v14 = vrot.slane %v998_v2, 4  ;;  %v11483_v16 = vcombine.low %v762_v42, %v14169_v51  ;;  %v451_v17 = vrot.slane %v14146_v10, 4  ;;  %v704_v2 = vld [vmem:[#allocation2 + $0x84] sm:$0xf] }
  0xb3   : > { %v994_v13 = vsel %vm14017_vm7, %v989_v1, %v993_v48  ;;  %v1012_v18 = vor.u32 %v1011_v4, %v1008_v11  ;;  %v1027_v20 = vrot.slane %v1025_v9, 5  ;;  %v453_v22 = vshrl.u32 %v290_v58, 16  ;;  %v294_v48 = vld [vmem:[%s14000_s9 + $0x54] sm:$0xf] }
  0xb4   : > { %v1022_v19 = vor.u32 %v1021_v8, %v1017_v5  ;;  %v1004_v24 = vsel %vm14017_vm7, %v999_v14, %v1003_v54  ;;  %12562 = vmatprep.mubr.bf16.mxu1 %v11483_v16  ;;  %v456_v25 = vshll.u32 %v290_v58, 16  ;;  %v691_v26 = vsel %vm14023_vm8, %v14153_v21, %v690_v63  ;;  %v295_v54 = vld [vmem:[%s14000_s9 + $0x58] sm:$0xf] }
  0xb5   : > { %v462_v23 = vshrl.u32 %v291_v3, 16  ;;  %v11458_v30 = vcombine.low %v994_v13, %v1004_v24  ;;  %v1013_v32 = vrot.slane %v1012_v18, 4  ;;  %v455_v33 = vrot.slane %v453_v22, 7  ;;  %692 = vst [vmem:[#allocation2 + $0x6c] sm:$0xf] %v691_v26  ;;  %v14208_v22 = vld [vmem:[#allocation6 + $0x178] sm:$0xff]  }
  0xb6   : > { %v1023_v10 = vrot.slane %v1022_v19, 4  ;;  %v465_v36 = vshll.u32 %v291_v3, 16  ;;  %v470_v37 = vshrl.u32 %v292_v12, 16  ;;  %v473_v38 = vshll.u32 %v292_v12, 16  ;;  %12722 = vmatprep.subr.bf16.mxu1 %v14208_v22 }
  0xb7   : > { %v464_v35 = vrot.slane %v462_v23, 7  ;;  %12511 = vmatmul.mubr.bf16.gmra.mxu0 %v11458_v30  ;;  %v1018_v21 = vsel %vm14017_vm7, %v1013_v32, %v1017_v5  ;;  %v458_v44 = vor.u32 %v456_v25, %v455_v33  ;;  %v460_v45 = vrot.slane %v455_v33, 4  ;;  %v14211_v23 = vld [vmem:[%s14000_s9 + $0x60] sm:$0xf] }
  0xb8   : > { %v1028_v43 = vsel %vm14017_vm7, %v1023_v10, %v1027_v20  ;;  %v472_v53 = vrot.slane %v470_v37, 7  ;;  %v479_v61 = vshrl.u32 %v293_v39, 16  ;;  %v482_v60 = vshll.u32 %v293_v39, 16  ;;  %v708_v20 = vld [vmem:[#allocation2 + $0x8c] sm:$0x1] }
  0xb9   : > { %v11459_v50 = vcombine.low %v1018_v21, %v1028_v43  ;;  %v467_v42 = vor.u32 %v465_v36, %v464_v35  ;;  %v468_v52 = vrot.slane %v464_v35, 4  ;;  %v459_v58 = vsel %vm14029_vm9, %v451_v17, %v458_v44 }
  0xba   : > { %v695_v59 = vsel %vm14037_vm10, %v460_v45, %v694_v27  ;;  %693 = vst [vmem:[#allocation2 + $0x70] sm:$0xf] %v459_v58  ;;  %v475_v62 = vor.u32 %v473_v38, %v472_v53  ;;  %v477_v63 = vrot.slane %v472_v53, 4  ;;  %v487_v1 = vshrl.u32 %v294_v48, 16 }
  0xbb   : > { %12514 = vmatprep.mubr.bf16.mxu0 %v11459_v50  ;;  %696 = vst [vmem:[#allocation2 + $0x74] sm:$0x1] %v695_v59  ;;  %v698_v0 = vsel %vm14023_vm8, %v467_v42, %v697_v34  ;;  %v481_v11 = vrot.slane %v479_v61, 7  ;;  %v490_v3 = vshll.u32 %v294_v48, 16  ;;  %v496_v4 = vshrl.u32 %v295_v54, 16 }
  0xbc   : > { %699 = vst [vmem:[#allocation2 + $0x78] sm:$0xf] %v698_v0  ;;  %v499_v5 = vshll.u32 %v295_v54, 16  ;;  %v764_v8 = vld [vmem:[#allocation2 + $0x6c] sm:$0xf]  ;;  %v476_v9 = vsel %vm14029_vm9, %v468_v52, %v475_v62  ;;  %v702_v12 = vsel %vm14037_vm10, %v477_v63, %v701_v46  ;;  %v489_v13 = vrot.slane %v487_v1, 7 }
  0xbd   : > { %v504_v14 = vshrl.u32 %v296_v56, 16  ;;  %v1030_v16 = vshrl.u32 %v764_v8, 16  ;;  %v1033_v17 = vshll.u32 %v764_v8, 16  ;;  %700 = vst [vmem:[#allocation2 + $0x7c] sm:$0xf] %v476_v9  ;;  %v484_v18 = vor.u32 %v482_v60, %v481_v11 }
  0xbe   : > { %703 = vst [vmem:[#allocation2 + $0x80] sm:$0x1] %v702_v12  ;;  %v485_v19 = vrot.slane %v481_v11, 4  ;;  %v492_v24 = vor.u32 %v490_v3, %v489_v13  ;;  %v494_v25 = vrot.slane %v489_v13, 4  ;;  %v498_v26 = vrot.slane %v496_v4, 7 }
  0xbf   : > { %v506_v27 = vrot.slane %v504_v14, 7  ;;  %v1032_v30 = vrot.slane %v1030_v16, 4  ;;  %v1035_v32 = vrot.slane %v1033_v17, 5  ;;  %v705_v10 = vsel %vm14023_vm8, %v484_v18, %v704_v2  ;;  %v711_v34 = vld [vmem:[#allocation2 + $0x90] sm:$0xf] }
  0xc0   : > { %v507_v33 = vshll.u32 %v296_v56, 16  ;;  %v493_v35 = vsel %vm14029_vm9, %v485_v19, %v492_v24  ;;  %706 = vst [vmem:[#allocation2 + $0x84] sm:$0xf] %v705_v10  ;;  %v709_v36 = vsel %vm14037_vm10, %v494_v25, %v708_v20  ;;  %v501_v37 = vor.u32 %v499_v5, %v498_v26  ;;  %v715_v54 = vld [vmem:[#allocation2 + $0x98] sm:$0x1] }
  0xc1   : > { %v502_v38 = vrot.slane %v498_v26, 4  ;;  %v1855_v39 = vrot.slane %v14066_v47, 5  ;;  %v14221_v21 = vld [vmem:[#allocation2 + $0x70] sm:$0xf]  ;;  %v1036_v44 = vor.u32 %v1035_v32, %v1032_v30  ;;  %707 = vst [vmem:[#allocation2 + $0x88] sm:$0xf] %v493_v35 }
  0xc2   : > { %v14223_v43 = vld [vmem:[#allocation2 + $0x74] sm:$0x1]  ;;  %710 = vst [vmem:[#allocation2 + $0x8c] sm:$0x1] %v709_v36  ;;  %v509_v45 = vor.u32 %v507_v33, %v506_v27  ;;  %v511_v46 = vrot.slane %v506_v27, 4  ;;  %v1039_v48 = vshll.u32 %v14221_v21, 16  ;;  %v11484_v52 = vcombine.low %v764_v8, %v14221_v21 }
  0xc3   : > { %v1043_v50 = vshrl.u32 %v14221_v21, 16  ;;  %v1049_v42 = vshll.u32 %v14223_v43, 16  ;;  %v766_v53 = vld [vmem:[#allocation2 + $0x78] sm:$0xf]  ;;  %v513_v61 = vshrl.u32 %v14211_v23, 16  ;;  %v1037_v60 = vrot.slane %v1036_v44, 4 }
  0xc4   : > { %v1054_v56 = vshrl.u32 %v766_v53, 16  ;;  %v1057_v58 = vshll.u32 %v766_v53, 16  ;;  %v510_v59 = vsel %vm14029_vm9, %v502_v38, %v509_v45  ;;  %v1041_v62 = vrot.slane %v1039_v48, 5  ;;  %12563 = vmatmul.mubr.bf16.gmra.mxu1 %v11484_v52  ;;  %v14232_v0 = vld [vmem:[#allocation2 + $0x7c] sm:$0xf] }
  0xc5   : > { %v1045_v63 = vrot.slane %v1043_v50, 4  ;;  %v712_v1 = vsel %vm14023_vm8, %v501_v37, %v711_v34  ;;  %714 = vst [vmem:[#allocation2 + $0x94] sm:$0xf] %v510_v59  ;;  %v14236_v2 = vld [vmem:[#allocation2 + $0x80] sm:$0x1]  ;;  %v1063_v4 = vshll.u32 %v14232_v0, 16  ;;  %v11485_v13 = vcombine.low %v766_v53, %v14232_v0 }
  0xc6   : > { %v1056_v11 = vrot.slane %v1054_v56, 4  ;;  %v1059_v3 = vrot.slane %v1057_v58, 5  ;;  %v1067_v5 = vshrl.u32 %v14232_v0, 16  ;;  %713 = vst [vmem:[#allocation2 + $0x90] sm:$0xf] %v712_v1  ;;  %v1051_v9 = vrot.slane %v1049_v42, 5 }
  0xc7   : > { %v1046_v8 = vor.u32 %v1045_v63, %v1041_v62  ;;  %v1073_v12 = vshll.u32 %v14236_v2, 16  ;;  %v1065_v16 = vrot.slane %v1063_v4, 5  ;;  %v768_v18 = vld [vmem:[#allocation2 + $0x84] sm:$0xf]  ;;  %v716_v19 = vsel %vm14037_vm10, %v511_v46, %v715_v54  ;;  %12566 = vmatprep.mubr.bf16.mxu1 %v11485_v13 }
  0xc8   : > { %v1060_v14 = vor.u32 %v1059_v3, %v1056_v11  ;;  %v1069_v17 = vrot.slane %v1067_v5, 4  ;;  %v1042_v20 = vsel %vm14017_vm7, %v1037_v60, %v1041_v62  ;;  %v14246_v26 = vld [vmem:[#allocation2 + $0x88] sm:$0xf]  ;;  %717 = vst [vmem:[#allocation2 + $0x98] sm:$0x1] %v716_v19  ;;  %v1078_v10 = vshrl.u32 %v768_v18, 16 }
  0xc9   : > { %v1047_v24 = vrot.slane %v1046_v8, 4  ;;  %v1075_v25 = vrot.slane %v1073_v12, 5  ;;  %v14248_v27 = vld [vmem:[#allocation2 + $0x8c] sm:$0x1]  ;;  %v1081_v33 = vshll.u32 %v768_v18, 16  ;;  %v1087_v35 = vshll.u32 %v14246_v26, 16 }
  0xca   : > { %v1061_v30 = vrot.slane %v1060_v14, 4  ;;  %v1070_v32 = vor.u32 %v1069_v17, %v1065_v16  ;;  %v1091_v36 = vshrl.u32 %v14246_v26, 16  ;;  %v1097_v37 = vshll.u32 %v14248_v27, 16  ;;  %v298_v62 = vld [vmem:[%s14000_s9 + $0x64] sm:$0xf] }
  0xcb   : > { %v1052_v34 = vsel %vm14017_vm7, %v1047_v24, %v1051_v9  ;;  %v1080_v46 = vrot.slane %v1078_v10, 4  ;;  %v1083_v50 = vrot.slane %v1081_v33, 5  ;;  %v1089_v42 = vrot.slane %v1087_v35, 5  ;;  %v299_v19 = vld [vmem:[%s14000_s9 + $0x68] sm:$0xf] }
  0xcc   : > { %v11460_v38 = vcombine.low %v1042_v20, %v1052_v34  ;;  %v1066_v44 = vsel %vm14017_vm7, %v1061_v30, %v1065_v16  ;;  %v1071_v45 = vrot.slane %v1070_v32, 4  ;;  %v14257_v48 = vld [vmem:[#allocation2 + $0x94] sm:$0xf]  ;;  %v1093_v52 = vrot.slane %v1091_v36, 4  ;;  %v300_v32 = vld [vmem:[%s14000_s9 + $0x6c] sm:$0xf] }
  0xcd   : > { %v1099_v53 = vrot.slane %v1097_v37, 5  ;;  %v770_v54 = vld [vmem:[#allocation2 + $0x90] sm:$0xf]  ;;  %v11486_v58 = vcombine.low %v768_v18, %v14246_v26  ;;  %v1084_v1 = vor.u32 %v1083_v50, %v1080_v46  ;;  %v1111_v3 = vshll.u32 %v14257_v48, 16  ;;  %v718_v18 = vld [vmem:[#allocation2 + $0x9c] sm:$0xf] }
  0xce   : > { %12515 = vmatmul.mubr.bf16.gmra.mxu0 %v11460_v38  ;;  %v1076_v56 = vsel %vm14017_vm7, %v1071_v45, %v1075_v25  ;;  %v1102_v59 = vshrl.u32 %v770_v54, 16  ;;  %v1105_v60 = vshll.u32 %v770_v54, 16  ;;  %v1094_v11 = vor.u32 %v1093_v52, %v1089_v42  ;;  %v301_v36 = vld [vmem:[%s14000_s9 + $0x70] sm:$0xf]  ;;  %v722_v46 = vld [vmem:[#allocation2 + $0xa4] sm:$0x1] }
  0xcf   : > { %v11461_v63 = vcombine.low %v1066_v44, %v1076_v56  ;;  %12567 = vmatmul.mubr.bf16.gmra.mxu1 %v11486_v58  ;;  %v14264_v4 = vld [vmem:[#allocation2 + $0x98] sm:$0x1]  ;;  %v1115_v9 = vshrl.u32 %v14257_v48, 16  ;;  %v11487_v12 = vcombine.low %v770_v54, %v14257_v48  ;;  %v1085_v13 = vrot.slane %v1084_v1, 4  ;;  %v725_v58 = vld [vmem:[#allocation2 + $0xa8] sm:$0xf] }
  0xd0   : > { %v1104_v5 = vrot.slane %v1102_v59, 4  ;;  %v1107_v8 = vrot.slane %v1105_v60, 5  ;;  %v1095_v14 = vrot.slane %v1094_v11, 4  ;;  %v1113_v16 = vrot.slane %v1111_v3, 5  ;;  %v302_v11 = vld [vmem:[%s14000_s9 + $0x74] sm:$0xf] }
  0xd1   : > { %12518 = vmatprep.mubr.bf16.mxu0 %v11461_v63  ;;  %v1121_v17 = vshll.u32 %v14264_v4, 16  ;;  %v1117_v24 = vrot.slane %v1115_v9, 4  ;;  %12570 = vmatprep.mubr.bf16.mxu1 %v11487_v12  ;;  %v515_v25 = vrot.slane %v513_v61, 7  ;;  %v516_v30 = vshll.u32 %v14211_v23, 16  ;;  %v14286_v9 = vld [vmem:[#allocation2] sm:$0xe] }
  0xd2   : > { %v1108_v20 = vor.u32 %v1107_v8, %v1104_v5  ;;  %v1090_v10 = vsel %vm14017_vm7, %v1085_v13, %v1089_v42  ;;  %v1100_v33 = vsel %vm14017_vm7, %v1095_v14, %v1099_v53  ;;  %v521_v35 = vshrl.u32 %v298_v62, 16  ;;  %v14288_v12 = vld [vmem:[#allocation2 + $0xc] sm:$0xe] }
  0xd3   : > { %v1123_v34 = vrot.slane %v1121_v17, 5  ;;  %v11462_v37 = vcombine.low %v1090_v10, %v1100_v33  ;;  %v1118_v44 = vor.u32 %v1117_v24, %v1113_v16  ;;  %v518_v45 = vor.u32 %v516_v30, %v515_v25 }
  0xd4   : > { %v1109_v38 = vrot.slane %v1108_v20, 4  ;;  %v519_v50 = vrot.slane %v515_v25, 4  ;;  %v523_v61 = vrot.slane %v521_v35, 7  ;;  %v524_v52 = vshll.u32 %v298_v62, 16 }
  0xd5   : > { %v530_v23 = vshrl.u32 %v299_v19, 16  ;;  %v1119_v54 = vrot.slane %v1118_v44, 4  ;;  %v719_v53 = vsel %vm14023_vm8, %v518_v45, %v718_v18  ;;  %v533_v56 = vshll.u32 %v299_v19, 16  ;;  %v729_v18 = vld [vmem:[#allocation2 + $0xb0] sm:$0x1] }
  0xd6   : > { %12519 = vmatmul.mubr.bf16.gmra.mxu0 %v11462_v37  ;;  %v1114_v42 = vsel %vm14017_vm7, %v1109_v38, %v1113_v16  ;;  %v526_v59 = vor.u32 %v524_v52, %v523_v61  ;;  %v528_v60 = vrot.slane %v523_v61, 4  ;;  %720 = vst [vmem:[#allocation2 + $0x9c] sm:$0xf] %v719_v53  ;;  %v538_v1 = vshrl.u32 %v300_v32, 16  ;;  %v732_v19 = vld [vmem:[#allocation2 + $0xb4] sm:$0xf] }
  0xd7   : > { %v532_v63 = vrot.slane %v530_v23, 7  ;;  %v1124_v62 = vsel %vm14017_vm7, %v1119_v54, %v1123_v34  ;;  %v541_v3 = vshll.u32 %v300_v32, 16  ;;  %v547_v5 = vshrl.u32 %v301_v36, 16  ;;  %v736_v37 = vld [vmem:[#allocation2 + $0xbc] sm:$0x1] }
  0xd8   : > { %v550_v8 = vshll.u32 %v301_v36, 16  ;;  %v11463_v13 = vcombine.low %v1114_v42, %v1124_v62  ;;  %v527_v14 = vsel %vm14029_vm9, %v519_v50, %v526_v59  ;;  %v723_v16 = vsel %vm14037_vm10, %v528_v60, %v722_v46  ;;  %v13662_v45 = vld [vmem:[#allocation2 + $0x4] sm:$0xf]  ;;  %v13663_v54 = vld [vmem:[#allocation2 + $0x10] sm:$0xf] }
  0xd9   : > { %v535_v17 = vor.u32 %v533_v56, %v532_v63  ;;  %721 = vst [vmem:[#allocation2 + $0xa0] sm:$0xf] %v527_v14  ;;  %724 = vst [vmem:[#allocation2 + $0xa4] sm:$0x1] %v723_v16  ;;  %v536_v20 = vrot.slane %v532_v63, 4  ;;  %v540_v24 = vrot.slane %v538_v1, 7 }
  0xda   : > { %v549_v25 = vrot.slane %v547_v5, 7  ;;  %v555_v30 = vshrl.u32 %v302_v11, 16  ;;  %12522 = vmatprep.mubr.bf16.mxu0 %v11463_v13  ;;  %v558_v10 = vshll.u32 %v302_v11, 16  ;;  %vm1840_vm11 = vcmask 1042432   ;;  %v1794_v56 = vld [vmem:[#allocation2 + $0x18] sm:$0xe] }
  0xdb   : > { %v726_v32 = vsel %vm14023_vm8, %v535_v17, %v725_v58  ;;  %vm1841_vm12 = vcmask 1046532   ;;  %v543_v33 = vor.u32 %v541_v3, %v540_v24  ;;  %v545_v34 = vrot.slane %v540_v24, 4 }
  0xdc   : > { %727 = vst [vmem:[#allocation2 + $0xa8] sm:$0xf] %v726_v32  ;;  %v552_v35 = vor.u32 %v550_v8, %v549_v25  ;;  %v553_v36 = vrot.slane %v549_v25, 4  ;;  %v557_v38 = vrot.slane %v555_v30, 7  ;;  %v11499_v44 = vrot.slane %v14286_v9, 9  ;;  %vm14306_vm13 = vmor %vm1840_vm11, %vm1841_vm12 }
  0xdd   : > { %v1845_v46 = vrot.slane %v13662_v45, 5  ;;  %v11500_v50 = vrot.slane %v14288_v12, 9  ;;  %v772_v61 = vld [vmem:[#allocation2 + $0x9c] sm:$0xf]  ;;  %v544_v52 = vsel %vm14029_vm9, %v536_v20, %v543_v33  ;;  %v730_v23 = vsel %vm14037_vm10, %v545_v34, %v729_v18 }
  0xde   : > { %v733_v42 = vsel %vm14023_vm8, %v552_v35, %v732_v19  ;;  %v1852_v53 = vrot.slane %v13663_v54, 5  ;;  %v1126_v58 = vshrl.u32 %v772_v61, 16  ;;  %v1129_v59 = vshll.u32 %v772_v61, 16  ;;  %728 = vst [vmem:[#allocation2 + $0xac] sm:$0xf] %v544_v52 }
  0xdf   : > { %731 = vst [vmem:[#allocation2 + $0xb0] sm:$0x1] %v730_v23  ;;  %v560_v60 = vor.u32 %v558_v10, %v557_v38  ;;  %v562_v63 = vrot.slane %v557_v38, 4  ;;  %734 = vst [vmem:[#allocation2 + $0xb4] sm:$0xf] %v733_v42  ;;  %v18981_v1 = vmov 0  ;;  %v14324_v24 = vsel %vm14306_vm13, %v11499_v44, %v1845_v46 }
  0xe0   : > { %v18982_v1 = vsel %vm14306_vm13, 4294967295, %v18981_v1  ;;  %v1847_v11 = vrot.slane %v1845_v46, 4  ;;  %v1854_v62 = vrot.slane %v1852_v53, 4  ;;  %v14310_v3 = vld [vmem:[#allocation2 + $0xa0] sm:$0xf]  ;;  %v1128_v8 = vrot.slane %v1126_v58, 4 }
  0xe1   : > { %18983 = vst [vmem:[#allocation17_spill] sm:$0xff] %v18982_v1  ;;  %v14312_v5 = vld [vmem:[#allocation2 + $0xa4] sm:$0x1]  ;;  %v1131_v9 = vrot.slane %v1129_v59, 5  ;;  %v561_v12 = vsel %vm14029_vm9, %v553_v36, %v560_v60  ;;  %v737_v13 = vsel %vm14037_vm10, %v562_v63, %v736_v37  ;;  %v1135_v14 = vshll.u32 %v14310_v3, 16 }
  0xe2   : > { %v1139_v16 = vshrl.u32 %v14310_v3, 16  ;;  %v1145_v17 = vshll.u32 %v14312_v5, 16  ;;  %v11488_v18 = vcombine.low %v772_v61, %v14310_v3  ;;  %735 = vst [vmem:[#allocation2 + $0xb8] sm:$0xf] %v561_v12  ;;  %738 = vst [vmem:[#allocation2 + $0xbc] sm:$0x1] %v737_v13  ;;  %v14330_v25 = vsel %vm14306_vm13, %v1847_v11, %v1848_v57 }
  0xe3   : > { %v1132_v19 = vor.u32 %v1131_v9, %v1128_v8  ;;  %v774_v20 = vld [vmem:[#allocation2 + $0xa8] sm:$0xf]  ;;  %v11501_v30 = vrot.slane %v1794_v56, 9  ;;  %v1137_v32 = vrot.slane %v1135_v14, 5  ;;  %v14334_v37 = vsel %vm14306_vm13, %v11500_v50, %v1852_v53  ;;  %v13664_v61 = vld [vmem:[#allocation2 + $0x1c] sm:$0xf] }
  0xe4   : > { %v1141_v10 = vrot.slane %v1139_v16, 4  ;;  %v1147_v33 = vrot.slane %v1145_v17, 5  ;;  %12571 = vmatmul.mubr.bf16.gmra.mxu1 %v11488_v18  ;;  %v1150_v34 = vshrl.u32 %v774_v20, 16  ;;  %v1153_v36 = vshll.u32 %v774_v20, 16  ;;  %v13467_v16 = vld [vmem:[#allocation2 + $0xc] sm:$0xff]  }
  0xe5   : > { %v1133_v35 = vrot.slane %v1132_v19, 4  ;;  %v14340_v15 = vsel %vm14306_vm13, %v1854_v62, %v1855_v39  ;;  %v14342_v38 = vld [vmem:[#allocation2 + $0xac] sm:$0xf]  ;;  %v11515_v46 = vcombine.low %v14324_v24, %v14330_v25  ;;  %v1859_v52 = vrot.slane %v13664_v61, 5  ;;  %v1795_v17 = vld [vmem:[#allocation2 + $0x24] sm:$0xe] }
  0xe6   : > { %v1142_v57 = vor.u32 %v1141_v10, %v1137_v32  ;;  %v14344_v44 = vld [vmem:[#allocation2 + $0xb0] sm:$0x1]  ;;  %v1152_v45 = vrot.slane %v1150_v34, 4  ;;  %v1155_v23 = vrot.slane %v1153_v36, 5  ;;  %v1159_v47 = vshll.u32 %v14342_v38, 16 }
  0xe7   : > { %v1138_v50 = vsel %vm14017_vm7, %v1133_v35, %v1137_v32  ;;  %v1163_v39 = vshrl.u32 %v14342_v38, 16  ;;  %v776_v42 = vld [vmem:[#allocation2 + $0xb4] sm:$0xf]  ;;  %v1169_v53 = vshll.u32 %v14344_v44, 16  ;;  %v11489_v56 = vcombine.low %v774_v20, %v14342_v38  ;;  %v1796_v36 = vld [vmem:[#allocation2 + $0x30] sm:$0xe] }
  0xe8   : > { %v1143_v54 = vrot.slane %v1142_v57, 4  ;;  %v1174_v58 = vshrl.u32 %v776_v42, 16  ;;  %v1156_v59 = vor.u32 %v1155_v23, %v1152_v45  ;;  %v1161_v60 = vrot.slane %v1159_v47, 5 }
  0xe9   : > { %v1165_v63 = vrot.slane %v1163_v39, 4  ;;  %v14354_v11 = vld [vmem:[#allocation2 + $0xb8] sm:$0xf]  ;;  %v14356_v62 = vld [vmem:[#allocation2 + $0xbc] sm:$0x1]  ;;  %v14360_v8 = vsel %vm14306_vm13, %v11501_v30, %v1859_v52  ;;  %v1171_v12 = vrot.slane %v1169_v53, 5  ;;  %12574 = vmatprep.mubr.bf16.mxu1 %v11489_v56 }
  0xea   : > { %v1148_v9 = vsel %vm14017_vm7, %v1143_v54, %v1147_v33  ;;  %v1176_v13 = vrot.slane %v1174_v58, 4  ;;  %v1177_v14 = vshll.u32 %v776_v42, 16  ;;  %v1157_v19 = vrot.slane %v1156_v59, 4  ;;  %v13665_v39 = vld [vmem:[#allocation2 + $0x20] sm:$0x1] }
  0xeb   : > { %v11464_v18 = vcombine.low %v1138_v50, %v1148_v9  ;;  %v1166_v20 = vor.u32 %v1165_v63, %v1161_v60  ;;  %v1183_v32 = vshll.u32 %v14354_v11, 16  ;;  %v1187_v34 = vshrl.u32 %v14354_v11, 16  ;;  %v1797_v53 = vld [vmem:[#allocation2 + $0x3c] sm:$0xe]  ;;  %v13666_v58 = vld [vmem:[#allocation2 + $0x28] sm:$0xf] }
  0xec   : > { %v1179_v10 = vrot.slane %v1177_v14, 5  ;;  %v1193_v30 = vshll.u32 %v14356_v62, 16  ;;  %v11490_v35 = vcombine.low %v776_v42, %v14354_v11  ;;  %v1162_v33 = vsel %vm14017_vm7, %v1157_v19, %v1161_v60  ;;  %v13667_v63 = vld [vmem:[#allocation2 + $0x2c] sm:$0x1] }
  0xed   : > { %12523 = vmatmul.mubr.bf16.gmra.mxu0 %v11464_v18  ;;  %v1167_v57 = vrot.slane %v1166_v20, 4  ;;  %v1185_v45 = vrot.slane %v1183_v32, 5  ;;  %v1861_v61 = vrot.slane %v1859_v52, 4  ;;  %v1189_v23 = vrot.slane %v1187_v34, 4  ;;  %v13468_v52 = vld [vmem:[#allocation2 + $0x18] sm:$0xff]  }
  0xee   : > { %v1180_v50 = vor.u32 %v1179_v10, %v1176_v13  ;;  %v1195_v47 = vrot.slane %v1193_v30, 5  ;;  %12575 = vmatmul.mubr.bf16.gmra.mxu1 %v11490_v35  ;;  %v1862_v54 = vrot.slane %v13665_v39, 5  ;;  %v11502_v42 = vrot.slane %v1795_v17, 9  ;;  %v13470_v10 = vld [vmem:[#allocation2 + $0x24] sm:$0xff]   ;;  %v13668_v34 = vld [vmem:[#allocation2 + $0x34] sm:$0xf] }
  0xef   : > { %v1172_v56 = vsel %vm14017_vm7, %v1167_v57, %v1171_v12  ;;  %12642 = vmatprep.mubr.bf16.mxu1 %v13467_v16  ;;  %v1866_v59 = vrot.slane %v13666_v58, 5  ;;  %v1869_v9 = vrot.slane %v13667_v63, 5  ;;  %v1190_v18 = vor.u32 %v1189_v23, %v1185_v45  ;;  %v13669_v35 = vld [vmem:[#allocation2 + $0x38] sm:$0x1]  ;;  %v1798_v57 = vld [vmem:[#allocation2 + $0x48] sm:$0xe] }
  0xf0   : > { %v11465_v60 = vcombine.low %v1162_v33, %v1172_v56  ;;  %v1181_v14 = vrot.slane %v1180_v50, 4  ;;  %v14374_v13 = vsel %vm14306_vm13, %v1861_v61, %v1862_v54  ;;  %v11516_v19 = vcombine.low %v14334_v37, %v14340_v15  ;;  %v1799_v54 = vld [vmem:[#allocation2 + $0x54] sm:$0xe]  ;;  %v1800_v56 = vld [vmem:[#allocation2 + $0x60] sm:$0xe] }
  0xf1   : > { %v14380_v12 = vsel %vm14306_vm13, %v11502_v42, %v1866_v59  ;;  %v1868_v16 = vrot.slane %v1866_v59, 4  ;;  %v11503_v17 = vrot.slane %v1796_v36, 9  ;;  %v1191_v32 = vrot.slane %v1190_v18, 4  ;;  %v13670_v36 = vld [vmem:[#allocation2 + $0x40] sm:$0xf] }
  0xf2   : > { %12526 = vmatprep.mubr.bf16.mxu0 %v11465_v60  ;;  %v1186_v20 = vsel %vm14017_vm7, %v1181_v14, %v1185_v45  ;;  %v1873_v30 = vrot.slane %v13668_v34, 5  ;;  %v1876_v33 = vrot.slane %v13669_v35, 5  ;;  %v11517_v61 = vcombine.low %v14360_v8, %v14374_v13  ;;  %v13482_v45 = vld [vmem:[#allocation6 + $0x170] sm:$0xff]   ;;  %v13671_v63 = vld [vmem:[#allocation2 + $0x44] sm:$0x1] }
  0xf3   : > { %v14388_v50 = vsel %vm14306_vm13, %v1868_v16, %v1869_v9  ;;  %v11504_v23 = vrot.slane %v1797_v53, 9  ;;  %v1880_v39 = vrot.slane %v13670_v36, 5  ;;  %v1196_v42 = vsel %vm14017_vm7, %v1191_v32, %v1195_v47  ;;  %v1801_v16 = vld [vmem:[#allocation2 + $0x6c] sm:$0xe] }
  0xf4   : > { %v14394_v58 = vsel %vm14306_vm13, %v11503_v17, %v1873_v30  ;;  %v1875_v59 = vrot.slane %v1873_v30, 4  ;;  %v1883_v60 = vrot.slane %v13671_v63, 5  ;;  %v11466_v14 = vcombine.low %v1186_v20, %v1196_v42 }
  0xf5   : > { %v11518_v9 = vcombine.low %v14380_v12, %v14388_v50  ;;  %v1882_v53 = vrot.slane %v1880_v39, 4  ;;  %v11505_v18 = vrot.slane %v1798_v57, 9  ;;  %v1887_v47 = vrot.slane %v14140_v6, 5 }
  0xf6   : > { %12643 = vmatmul.mubr.bf16.vlgmr.msra.gmra.mxu1 %v13468_v52  ;;  %v14400_v34 = vsel %vm14306_vm13, %v1875_v59, %v1876_v33  ;;  %v1890_v17 = vrot.slane %v14142_v7, 5  ;;  %v11506_v32 = vrot.slane %v1799_v54, 9  ;;  %12527 = vmatmul.mubr.bf16.gmra.mxu0 %v11466_v14  ;;  %v14408_v30 = vsel %vm14306_vm13, %v11504_v23, %v1880_v39  ;;  %v1802_v33 = vld [vmem:[#allocation2 + $0x78] sm:$0xe]  ;;  %v13471_v23 = vld [vmem:[#allocation2 + $0x30] sm:$0xff]   ;;  %v13473_v59 = vld [vmem:[#allocation2 + $0x3c] sm:$0xff]  }
  0xf7   : > { %12646 = vmatprep.mubr.bf16.mxu1 %v13470_v10  ;;  %v11519_v20 = vcombine.low %v14394_v58, %v14400_v34  ;;  %v1894_v52 = vrot.slane %v14157_v28, 5  ;;  %v1897_v35 = vrot.slane %v14159_v29, 5  ;;  %12594 = vmatprep.mubr.bf16.mxu0 %v11515_v46  ;;  %v14417_v6 = vsel %vm14306_vm13, %v1882_v53, %v1883_v60  ;;  %v13486_v46 = vld [vmem:[#allocation6 + $0x168] sm:$0xff]   ;;  %v1804_v60 = vld [vmem:[#allocation2 + $0x90] sm:$0xe] }
  0xf8   : > { %v14421_v7 = vsel %vm14306_vm13, %v11505_v18, %v1887_v47  ;;  %v1889_v10 = vrot.slane %v1887_v47, 4  ;;  %v11507_v57 = vrot.slane %v1800_v56, 9  ;;  %12723 = vmatpush3.bf16.msra.mxu1 %v14208_v22  ;;  %v1901_v24 = vrot.slane %v14169_v51, 5  ;;  %v1803_v56 = vld [vmem:[#allocation2 + $0x84] sm:$0xe]  ;;  %v13469_v18 = vld [vmem:[#allocation6 + $0x130] sm:$0xff]  }
  0xf9   : > { %v14426_v28 = vsel %vm14306_vm13, %v11506_v32, %v1894_v52  ;;  %v1896_v29 = vrot.slane %v1894_v52, 4  ;;  %v1904_v25 = vrot.slane %v14171_v55, 5  ;;  %12724 = vmatprep.subr.bf16.mxu1 %v13482_v45  ;;  %v11508_v39 = vrot.slane %v1801_v16, 9 }
  0xfa   : > { %v14432_v36 = vsel %vm14306_vm13, %v1889_v10, %v1890_v17  ;;  %v1908_v54 = vrot.slane %v14221_v21, 5  ;;  %v1911_v22 = vrot.slane %v14223_v43, 5  ;;  %v11520_v42 = vcombine.low %v14408_v30, %v14417_v6  ;;  %v13487_v10 = vld [vmem:[#allocation6 + $0x160] sm:$0xff]  }
  0xfb   : > { %v11521_v51 = vcombine.low %v14421_v7, %v14432_v36  ;;  %v14442_v55 = vsel %vm14306_vm13, %v1896_v29, %v1897_v35  ;;  %v1903_v63 = vrot.slane %v1901_v24, 4  ;;  %v14448_v21 = vsel %vm14306_vm13, %v11507_v57, %v1901_v24  ;;  %v1805_v57 = vld [vmem:[#allocation2 + $0x9c] sm:$0xe]  ;;  %v2669_v7 = vld [vmem:[#allocation2 + $0x24] sm:$0xf] }
  0xfc   : > { %v11522_v14 = vcombine.low %v14426_v28, %v14442_v55  ;;  %v1910_v43 = vrot.slane %v1908_v54, 4  ;;  %v11509_v53 = vrot.slane %v1802_v33, 9  ;;  %12725 = vmatpush3.bf16.msra.mxu1 %v13482_v45  ;;  %v1915_v47 = vrot.slane %v14232_v0, 5  ;;  %v13484_v36 = vld [vmem:[#allocation2 + $0x84] sm:$0xff]  }
  0xfd   : > { %v14452_v16 = vsel %vm14306_vm13, %v1903_v63, %v1904_v25  ;;  %v1918_v17 = vrot.slane %v14236_v2, 5  ;;  %v11510_v32 = vrot.slane %v1803_v56, 9  ;;  %12726 = vmatprep.subr.bf16.mxu1 %v13486_v46  ;;  %v14458_v52 = vsel %vm14306_vm13, %v11508_v39, %v1908_v54  ;;  %v1806_v25 = vld [vmem:[#allocation2 + $0xa8] sm:$0xe]  ;;  %v13476_v63 = vld [vmem:[#allocation2 + $0x54] sm:$0xff]  }
  0xfe   : > { %12647 = vmatmul.mubr.bf16.gmra.mxu1 %v13471_v23  ;;  %v14462_v35 = vsel %vm14306_vm13, %v1910_v43, %v1911_v22  ;;  %v1922_v45 = vrot.slane %v14246_v26, 5  ;;  %v1925_v33 = vrot.slane %v14248_v27, 5  ;;  %12595 = vmatmul.mubr.bf16.vlgmr.msra.gmra.mxu0 %v11516_v19  ;;  %v11523_v0 = vcombine.low %v14448_v21, %v14452_v16  ;;  %v13672_v26 = vld [vmem:[#allocation6 + $0x138] sm:$0xff]   ;;  %v13472_v27 = vld [vmem:[#allocation6 + $0x128] sm:$0xff]   ;;  %v13474_v22 = vld [vmem:[#allocation2 + $0x48] sm:$0xff]  }
  0xff   : > { %12650 = vmatprep.mubr.bf16.mxu1 %v13473_v59  ;;  %v14473_v2 = vsel %vm14306_vm13, %v11509_v53, %v1915_v47  ;;  %v1917_v29 = vrot.slane %v1915_v47, 4  ;;  %v11511_v24 = vrot.slane %v1804_v60, 9  ;;  %12675 = vmatpush3.bf16.msra.mxu0 %v13672_v26  ;;  %v1929_v19 = vrot.slane %v14257_v48, 5  ;;  %v303_v47 = vld [vmem:[%s14000_s9 + $0x78] sm:$0xf] }
 0x100   : > { %12598 = vmatprep.mubr.bf16.mxu0 %v11517_v61  ;;  %v14480_v37 = vsel %vm14306_vm13, %v11510_v32, %v1922_v45  ;;  %v1924_v15 = vrot.slane %v1922_v45, 4  ;;  %v1932_v23 = vrot.slane %v14264_v4, 5  ;;  %12676 = vmatprep.subr.bf16.mxu0 %v13469_v18  ;;  %v11524_v39 = vcombine.low %v14458_v52, %v14462_v35  ;;  %v1807_v61 = vld [vmem:[#allocation2 + $0xb4] sm:$0xe] }
 0x101   : > { %v14488_v54 = vsel %vm14306_vm13, %v1917_v29, %v1918_v17  ;;  %12727 = vmatpush3.bf16.msra.mxu1 %v13486_v46  ;;  %v11512_v8 = vrot.slane %v1805_v57, 9  ;;  %v1936_v13 = vrot.slane %v14310_v3, 5  ;;  %v14497_v4 = vsel %vm14306_vm13, %v11511_v24, %v1929_v19  ;;  %v13491_v46 = vld [vmem:[#allocation6 + $0x158] sm:$0xff]   ;;  %v13475_v57 = vld [vmem:[#allocation6 + $0x120] sm:$0xff]  }
 0x102   : > { %v14493_v48 = vsel %vm14306_vm13, %v1924_v15, %v1925_v33  ;;  %12728 = vmatprep.subr.bf16.mxu1 %v13487_v10  ;;  %v1931_v56 = vrot.slane %v1929_v19, 4  ;;  %v1939_v59 = vrot.slane %v14312_v5, 5  ;;  %v11525_v3 = vcombine.low %v14473_v2, %v14488_v54  ;;  %v304_v33 = vld [vmem:[%s14000_s9 + $0x7c] sm:$0xf] }
 0x103   : > { %v1938_v43 = vrot.slane %v1936_v13, 4  ;;  %v11513_v53 = vrot.slane %v1806_v25, 9  ;;  %12677 = vmatpush3.bf16.msra.mxu0 %v13469_v18  ;;  %v1943_v32 = vrot.slane %v14342_v38, 5  ;;  %v1946_v5 = vrot.slane %v14344_v44, 5  ;;  %v13492_v18 = vld [vmem:[#allocation6 + $0x150] sm:$0xff]  }
 0x104   : > { %v14507_v17 = vsel %vm14306_vm13, %v1931_v56, %v1932_v23  ;;  %v11514_v45 = vrot.slane %v1807_v61, 9  ;;  %12678 = vmatprep.subr.bf16.mxu0 %v13472_v27  ;;  %v14516_v24 = vsel %vm14306_vm13, %v11512_v8, %v1936_v13  ;;  %v1950_v25 = vrot.slane %v14354_v11, 5  ;;  %v2663_v38 = vld [vmem:[#allocation2 + $0xc] sm:$0xf]  ;;  %v739_v13 = vld [vmem:[#allocation2 + $0xc0] sm:$0xf] }
 0x105   : > { %12729 = vmatpush3.bf16.msra.mxu1 %v13487_v10  ;;  %v1953_v26 = vrot.slane %v14356_v62, 5  ;;  %v14522_v44 = vsel %vm14306_vm13, %v1938_v43, %v1939_v59  ;;  %v14526_v15 = vsel %vm14306_vm13, %v11513_v53, %v1943_v32  ;;  %v1945_v10 = vrot.slane %v1943_v32, 4  ;;  %v13478_v61 = vld [vmem:[#allocation6 + $0x118] sm:$0xff]   ;;  %v13477_v43 = vld [vmem:[#allocation2 + $0x60] sm:$0xff]  }
 0x106   : > { %12651 = vmatmul.mubr.bf16.gmra.mxu1 %v13474_v22  ;;  %12730 = vmatprep.subr.bf16.mxu1 %v13491_v46  ;;  %v564_v19 = vshrl.u32 %v303_v47, 16  ;;  %v14533_v11 = vsel %vm14306_vm13, %v11514_v45, %v1950_v25  ;;  %v1952_v62 = vrot.slane %v1950_v25, 4  ;;  %v567_v23 = vshll.u32 %v303_v47, 16  ;;  %v13479_v53 = vld [vmem:[#allocation2 + $0x6c] sm:$0xff]   ;;  %v13496_v45 = vld [vmem:[#allocation6 + $0x148] sm:$0xff]  }
 0x107   : > { %12599 = vmatmul.mubr.bf16.gmra.mxu0 %v11518_v9  ;;  %12654 = vmatprep.mubr.bf16.mxu1 %v13476_v63  ;;  %v572_v8 = vshrl.u32 %v304_v33, 16  ;;  %v14540_v22 = vsel %vm14306_vm13, %v1945_v10, %v1946_v5  ;;  %v575_v50 = vshll.u32 %v304_v33, 16  ;;  %v14542_v9 = vld [vmem:[#allocation2 + $0x10] sm:$0xf]  ;;  %v2712_v56 = vshrl.u32 %v2663_v38, 16 }
 0x108   : > { %12602 = vmatprep.mubr.bf16.mxu0 %v11519_v20  ;;  %12679 = vmatpush3.bf16.msra.mxu0 %v13472_v27  ;;  %v566_v12 = vrot.slane %v564_v19, 7  ;;  %v14548_v58 = vsel %vm14306_vm13, %v1952_v62, %v1953_v26  ;;  %v14552_v20 = vld [vmem:[#allocation2 + $0x14] sm:$0x1]  ;;  %v2715_v27 = vshll.u32 %v2663_v38, 16  ;;  %v2666_v63 = vld [vmem:[#allocation2 + $0x18] sm:$0xf] }
 0x109   : > { %12680 = vmatprep.subr.bf16.mxu0 %v13475_v57  ;;  %12731 = vmatpush3.bf16.msra.mxu1 %v13491_v46  ;;  %v14550_v34 = vrot.slane %v572_v8, 7  ;;  %v2714_v46 = vrot.slane %v2712_v56, 4  ;;  %v2721_v10 = vshll.u32 %v14542_v9, 16  ;;  %v14560_v38 = vld [vmem:[#allocation2 + $0x1c] sm:$0xf]  ;;  %v13483_v62 = vld [vmem:[#allocation6 + $0x110] sm:$0xff]  }
 0x10a   : > { %12732 = vmatprep.subr.bf16.mxu1 %v13492_v18  ;;  %v569_v32 = vor.u32 %v567_v23, %v566_v12  ;;  %v570_v5 = vrot.slane %v566_v12, 4  ;;  %v2717_v26 = vrot.slane %v2715_v27, 5  ;;  %v14562_v19 = vld [vmem:[#allocation2 + $0x20] sm:$0x1]  ;;  %v2725_v8 = vshrl.u32 %v14542_v9, 16 }
 0x10b   : > { %v577_v25 = vor.u32 %v575_v50, %v14550_v34  ;;  %v2731_v12 = vshll.u32 %v14552_v20, 16  ;;  %v2736_v56 = vshrl.u32 %v2666_v63, 16  ;;  %v3417_v33 = vld [vmem:[#allocation2 + $0xc] sm:$0xe]  ;;  %v2723_v47 = vrot.slane %v2721_v10, 5 }
 0x10c   : > { %12681 = vmatpush3.bf16.msra.mxu0 %v13475_v57  ;;  %v740_v23 = vsel %vm14023_vm8, %v569_v32, %v739_v13  ;;  %v2718_v27 = vor.u32 %v2717_v26, %v2714_v46  ;;  %v2739_v59 = vshll.u32 %v2666_v63, 16  ;;  %v13497_v57 = vld [vmem:[#allocation6 + $0x140] sm:$0xff]   ;;  %v2727_v13 = vrot.slane %v2725_v8, 4 }
 0x10d   : > { %12682 = vmatprep.subr.bf16.mxu0 %v13478_v61  ;;  %12733 = vmatpush3.bf16.msra.mxu1 %v13492_v18  ;;  %v578_v50 = vsel %vm14029_vm9, %v570_v5, %v577_v25  ;;  %741 = vst [vmem:[#allocation2 + $0xc0] sm:$0xf] %v740_v23  ;;  %v2733_v32 = vrot.slane %v2731_v12, 5  ;;  %v2738_v29 = vrot.slane %v2736_v56, 4  ;;  %v2745_v60 = vshll.u32 %v14560_v38, 16  ;;  %v13488_v25 = vld [vmem:[#allocation6 + $0x108] sm:$0xff]  }
 0x10e   : > { %12655 = vmatmul.mubr.bf16.gmra.mxu1 %v13477_v43  ;;  %742 = vst [vmem:[#allocation2 + $0xc4] sm:$0xf] %v578_v50  ;;  %12734 = vmatprep.subr.bf16.mxu1 %v13496_v45  ;;  %v2719_v18 = vrot.slane %v2718_v27, 4  ;;  %v2741_v5 = vrot.slane %v2739_v59, 5  ;;  %v2749_v46 = vshrl.u32 %v14560_v38, 16  ;;  %v2755_v63 = vshll.u32 %v14562_v19, 16 }
 0x10f   : > { %12603 = vmatmul.mubr.bf16.gmra.mxu0 %v11520_v42  ;;  %12658 = vmatprep.mubr.bf16.mxu1 %v13479_v53  ;;  %v13480_v43 = vld [vmem:[#allocation2 + $0x78] sm:$0xff]   ;;  %v2728_v26 = vor.u32 %v2727_v13, %v2723_v47  ;;  %v2747_v10 = vrot.slane %v2745_v60, 5  ;;  %v11587_v23 = vrot.slane %v3417_v33, 9  ;;  %v3483_v30 = vrot.slane %v14542_v9, 5  ;;  %v14584_v33 = vld [vmem:[#allocation6 + $0x1f8] sm:$0xff]  }
 0x110   : > { %12606 = vmatprep.mubr.bf16.mxu0 %v11521_v51  ;;  %12683 = vmatpush3.bf16.msra.mxu0 %v13478_v61  ;;  %v579_v6 = vrot.slane %v14550_v34, 4  ;;  %v2724_v42 = vsel %vm14017_vm7, %v2719_v18, %v2723_v47  ;;  %v2742_v59 = vor.u32 %v2741_v5, %v2738_v29  ;;  %v2751_v53 = vrot.slane %v2749_v46, 4  ;;  %v3418_v8 = vld [vmem:[#allocation2 + $0x18] sm:$0xe]  ;;  %v14591_v47 = vld [vmem:[#allocation2 + $0x28] sm:$0xf] }
 0x111   : > { %12684 = vmatprep.subr.bf16.mxu0 %v13483_v62  ;;  %12735 = vmatpush3.bf16.msra.mxu1 %v13496_v45  ;;  %v2729_v51 = vrot.slane %v2728_v26, 4  ;;  %v2757_v61 = vrot.slane %v2755_v63, 5  ;;  %v3485_v12 = vrot.slane %v3483_v30, 4  ;;  %v3486_v60 = vrot.slane %v14552_v20, 5  ;;  %v13493_v9 = vld [vmem:[#allocation6 + $0x100] sm:$0xff]  }
 0x112   : > { %12736 = vmatprep.subr.bf16.mxu1 %v13497_v57  ;;  %v2743_v56 = vrot.slane %v2742_v59, 4  ;;  %v2752_v50 = vor.u32 %v2751_v53, %v2747_v10  ;;  %v14588_v45 = vsel %vm14306_vm13, %v11587_v23, %v3483_v30  ;;  %v3490_v29 = vrot.slane %v14560_v38, 5  ;;  %v14593_v27 = vld [vmem:[#allocation2 + $0x2c] sm:$0x1]  ;;  %v2672_v46 = vld [vmem:[#allocation2 + $0x30] sm:$0xf] }
 0x113   : > { %v2734_v13 = vsel %vm14017_vm7, %v2729_v51, %v2733_v32  ;;  %v14599_v20 = vsel %vm14306_vm13, %v3485_v12, %v3486_v60  ;;  %v11588_v18 = vrot.slane %v3418_v8, 9  ;;  %v2760_v5 = vshrl.u32 %v2669_v7, 16 }
 0x114   : > { %12685 = vmatpush3.bf16.msra.mxu0 %v13483_v62  ;;  %v14601_v63 = vcombine.low %v2724_v42, %v2734_v13  ;;  %v2748_v38 = vsel %vm14017_vm7, %v2743_v56, %v2747_v10  ;;  %v2753_v26 = vrot.slane %v2752_v50, 4  ;;  %v3493_v62 = vrot.slane %v14562_v19, 5  ;;  %v14617_v42 = vld [vmem:[#allocation2 + $0x34] sm:$0xf]  ;;  %v13489_v50 = vld [vmem:[#allocation2 + $0x9c] sm:$0xff]  }
 0x115   : > { %12686 = vmatprep.subr.bf16.mxu0 %v13488_v25  ;;  %12737 = vmatpush3.bf16.msra.mxu1 %v13497_v57  ;;  %v11603_v32 = vcombine.low %v14588_v45, %v14599_v20  ;;  %v3492_v23 = vrot.slane %v3490_v29, 4  ;;  %v2762_v30 = vrot.slane %v2760_v5, 4  ;;  %v2763_v59 = vshll.u32 %v2669_v7, 16  ;;  %v3419_v7 = vld [vmem:[#allocation2 + $0x24] sm:$0xe] }
 0x116   : > { %12659 = vmatmul.mubr.bf16.gmra.mxu1 %v13480_v43  ;;  %12818 = vmatprep.subr.bf16.mxu1 %v14584_v33  ;;  %v2758_v57 = vsel %vm14017_vm7, %v2753_v26, %v2757_v61  ;;  %v2769_v10 = vshll.u32 %v14591_v47, 16  ;;  %v2773_v19 = vshrl.u32 %v14591_v47, 16  ;;  %v2779_v43 = vshll.u32 %v14593_v27, 16 }
 0x117   : > { %12607 = vmatmul.mubr.bf16.gmra.mxu0 %v11522_v14  ;;  %12662 = vmatprep.mubr.bf16.mxu1 %v13484_v36  ;;  %v14622_v53 = vcombine.low %v2748_v38, %v2758_v57  ;;  %v14626_v28 = vsel %vm14306_vm13, %v11588_v18, %v3490_v29  ;;  %v2765_v55 = vrot.slane %v2763_v59, 5  ;;  %v14628_v14 = vld [vmem:[#allocation2 + $0x38] sm:$0x1]  ;;  %v2784_v8 = vshrl.u32 %v2672_v46, 16  ;;  %v14630_v36 = vld [vmem:[#allocation6 + $0x1b8] sm:$0xff]  }
 0x118   : > { %12610 = vmatprep.mubr.bf16.mxu0 %v11523_v0  ;;  %12687 = vmatpush3.bf16.msra.mxu0 %v13488_v25  ;;  %v14634_v51 = vsel %vm14306_vm13, %v3492_v23, %v3493_v62  ;;  %v2771_v21 = vrot.slane %v2769_v10, 5  ;;  %v2775_v16 = vrot.slane %v2773_v19, 4  ;;  %v2781_v0 = vrot.slane %v2779_v43, 5  ;;  %v13485_v25 = vld [vmem:[#allocation2 + $0x90] sm:$0xff]  }
 0x119   : > { %12688 = vmatprep.subr.bf16.mxu0 %v13493_v9  ;;  %v2766_v61 = vor.u32 %v2765_v55, %v2762_v30  ;;  %v2786_v12 = vrot.slane %v2784_v8, 4  ;;  %v2787_v60 = vshll.u32 %v2672_v46, 16  ;;  %v2793_v56 = vshll.u32 %v14617_v42, 16  ;;  %v3420_v59 = vld [vmem:[#allocation2 + $0x30] sm:$0xe] }
 0x11a   : > { %v2776_v29 = vor.u32 %v2775_v16, %v2771_v21  ;;  %v2797_v13 = vshrl.u32 %v14617_v42, 16  ;;  %v2803_v18 = vshll.u32 %v14628_v14, 16  ;;  %v11589_v5 = vrot.slane %v3419_v7, 9  ;;  %v2675_v16 = vld [vmem:[#allocation2 + $0x3c] sm:$0xf] }
 0x11b   : > { %v2767_v38 = vrot.slane %v2766_v61, 4  ;;  %v2789_v26 = vrot.slane %v2787_v60, 5  ;;  %v2795_v62 = vrot.slane %v2793_v56, 5  ;;  %v3497_v23 = vrot.slane %v14591_v47, 5  ;;  %v13494_v60 = vld [vmem:[#allocation2 + $0xb4] sm:$0xff]  }
 0x11c   : > { %12689 = vmatpush3.bf16.msra.mxu0 %v13493_v9  ;;  %v2777_v30 = vrot.slane %v2776_v29, 4  ;;  %v2799_v46 = vrot.slane %v2797_v13, 4  ;;  %v2805_v57 = vrot.slane %v2803_v18, 5  ;;  %v3500_v10 = vrot.slane %v14593_v27, 5 }
 0x11d   : > { %12770 = vmatprep.subr.bf16.mxu0 %v14630_v36  ;;  %v2772_v19 = vsel %vm14017_vm7, %v2767_v38, %v2771_v21  ;;  %v2790_v43 = vor.u32 %v2789_v26, %v2786_v12  ;;  %v14646_v9 = vsel %vm14306_vm13, %v11589_v5, %v3497_v23  ;;  %v3499_v55 = vrot.slane %v3497_v23, 4  ;;  %v14654_v21 = vld [vmem:[#allocation2 + $0x40] sm:$0xf]  ;;  %v14685_v23 = vld [vmem:[#allocation2 + $0x50] sm:$0x1] }
 0x11e   : > { %12663 = vmatmul.mubr.bf16.gmra.mxu1 %v13485_v25  ;;  %v2782_v47 = vsel %vm14017_vm7, %v2777_v30, %v2781_v0  ;;  %v2800_v8 = vor.u32 %v2799_v46, %v2795_v62  ;;  %v11590_v27 = vrot.slane %v3420_v59, 9  ;;  %v3504_v7 = vrot.slane %v14617_v42, 5  ;;  %v14666_v0 = vld [vmem:[#allocation2 + $0x44] sm:$0x1]  ;;  %v13490_v42 = vld [vmem:[#allocation2 + $0xa8] sm:$0xff]  }
 0x11f   : > { %12611 = vmatmul.mubr.bf16.gmra.mxu0 %v11524_v39  ;;  %12666 = vmatprep.mubr.bf16.mxu1 %v13489_v50  ;;  %v11604_v25 = vcombine.low %v14626_v28, %v14634_v51  ;;  %v2791_v52 = vrot.slane %v2790_v43, 4  ;;  %v14663_v35 = vsel %vm14306_vm13, %v3499_v55, %v3500_v10  ;;  %v3507_v39 = vrot.slane %v14628_v14, 5  ;;  %v14675_v14 = vld [vmem:[#allocation2 + $0x4c] sm:$0xf]  ;;  %v3421_v10 = vld [vmem:[#allocation2 + $0x3c] sm:$0xe] }
 0x120   : > { %12614 = vmatprep.mubr.bf16.mxu0 %v11525_v3  ;;  %v14668_v61 = vcombine.low %v2772_v19, %v2782_v47  ;;  %v2801_v12 = vrot.slane %v2800_v8, 4  ;;  %v11605_v2 = vcombine.low %v14646_v9, %v14663_v35  ;;  %v3506_v54 = vrot.slane %v3504_v7, 4  ;;  %v2678_v3 = vld [vmem:[#allocation2 + $0x48] sm:$0xf] }
 0x121   : > { %v2796_v56 = vsel %vm14017_vm7, %v2791_v52, %v2795_v62  ;;  %v2808_v50 = vshrl.u32 %v2675_v16, 16  ;;  %v2811_v29 = vshll.u32 %v2675_v16, 16  ;;  %v2817_v13 = vshll.u32 %v14654_v21, 16  ;;  %v3422_v47 = vld [vmem:[#allocation2 + $0x48] sm:$0xe] }
 0x122   : > { %v2806_v18 = vsel %vm14017_vm7, %v2801_v12, %v2805_v57  ;;  %v14681_v5 = vsel %vm14306_vm13, %v11590_v27, %v3504_v7  ;;  %v2821_v38 = vshrl.u32 %v14654_v21, 16  ;;  %v2827_v26 = vshll.u32 %v14666_v0, 16 }
 0x123   : > { %v14687_v62 = vcombine.low %v2796_v56, %v2806_v18  ;;  %v14691_v59 = vsel %vm14306_vm13, %v3506_v54, %v3507_v39  ;;  %v2810_v30 = vrot.slane %v2808_v50, 4  ;;  %v2813_v46 = vrot.slane %v2811_v29, 5 }
 0x124   : > { %v2819_v57 = vrot.slane %v2817_v13, 5  ;;  %v2823_v19 = vrot.slane %v2821_v38, 4  ;;  %v2829_v43 = vrot.slane %v2827_v26, 5  ;;  %v2832_v55 = vshrl.u32 %v2678_v3, 16 }
 0x125   : > { %v2814_v8 = vor.u32 %v2813_v46, %v2810_v30  ;;  %v2835_v27 = vshll.u32 %v2678_v3, 16  ;;  %v2841_v7 = vshll.u32 %v14675_v14, 16  ;;  %v2845_v16 = vshrl.u32 %v14675_v14, 16 }
 0x126   : > { %12667 = vmatmul.mubr.bf16.gmra.mxu1 %v13490_v42  ;;  %v18984_v52 = vcombine.low %v14480_v37, %v14493_v48  ;;  %v2824_v39 = vor.u32 %v2823_v19, %v2819_v57  ;;  %v2834_v12 = vrot.slane %v2832_v55, 4  ;;  %v2851_v54 = vshll.u32 %v14685_v23, 16  ;;  %v13495_v48 = vld [vmem:[#allocation2 + $0xc0] sm:$0xff]   ;;  %v2681_v19 = vld [vmem:[#allocation2 + $0x54] sm:$0xf] }
 0x127   : > { %12670 = vmatprep.mubr.bf16.mxu1 %v13494_v60  ;;  %v11591_v56 = vrot.slane %v3421_v10, 9  ;;  %v18985_v50 = vcombine.low %v14497_v4, %v14507_v17  ;;  %v2815_v42 = vrot.slane %v2814_v8, 4  ;;  %v2837_v3 = vrot.slane %v2835_v27, 5 }
 0x128   : > { %12615 = vmatmul.mubr.bf16.gmra.mxu0 %v18984_v52  ;;  %v2843_v29 = vrot.slane %v2841_v7, 5  ;;  %v2847_v13 = vrot.slane %v2845_v16, 4  ;;  %v2825_v18 = vrot.slane %v2824_v39, 4  ;;  %v2853_v38 = vrot.slane %v2851_v54, 5  ;;  %v2684_v16 = vld [vmem:[#allocation2 + $0x60] sm:$0xf] }
 0x129   : > { %12618 = vmatprep.mubr.bf16.mxu0 %v18985_v50  ;;  %v3511_v26 = vrot.slane %v14654_v21, 5  ;;  %v3514_v37 = vrot.slane %v14666_v0, 5  ;;  %v2820_v60 = vsel %vm14017_vm7, %v2815_v42, %v2819_v57  ;;  %v2838_v30 = vor.u32 %v2837_v3, %v2834_v12  ;;  %v14711_v21 = vld [vmem:[#allocation2 + $0x58] sm:$0xf]  ;;  %v14713_v0 = vld [vmem:[#allocation2 + $0x5c] sm:$0x1] }
 0x12a   : > { %v2848_v46 = vor.u32 %v2847_v13, %v2843_v29  ;;  %v11592_v10 = vrot.slane %v3422_v47, 9  ;;  %v11606_v4 = vcombine.low %v14681_v5, %v14691_v59  ;;  %v2830_v17 = vsel %vm14017_vm7, %v2825_v18, %v2829_v43  ;;  %v14726_v12 = vld [vmem:[#allocation2 + $0x64] sm:$0xf]  ;;  %v14736_v42 = vld [vmem:[#allocation2 + $0x68] sm:$0x1] }
 0x12b   : > { %v3513_v55 = vrot.slane %v3511_v26, 4  ;;  %v3518_v8 = vrot.slane %v14675_v14, 5  ;;  %v2839_v27 = vrot.slane %v2838_v30, 4  ;;  %v14717_v57 = vsel %vm14306_vm13, %v11591_v56, %v3511_v26  ;;  %v3423_v26 = vld [vmem:[#allocation2 + $0x54] sm:$0xe]  ;;  %v13500_v5 = vld [vmem:[#allocation6 + $0x1a8] sm:$0xff]  }
 0x12c   : > { %v2849_v7 = vrot.slane %v2848_v46, 4  ;;  %v3521_v47 = vrot.slane %v14685_v23, 5  ;;  %v14720_v52 = vcombine.low %v2820_v60, %v2830_v17  ;;  %v2856_v39 = vshrl.u32 %v2681_v19, 16 }
 0x12d   : > { %v14724_v43 = vsel %vm14306_vm13, %v3513_v55, %v3514_v37  ;;  %v3520_v14 = vrot.slane %v3518_v8, 4  ;;  %v2844_v54 = vsel %vm14017_vm7, %v2839_v27, %v2843_v29  ;;  %v14734_v23 = vsel %vm14306_vm13, %v11592_v10, %v3518_v8  ;;  %v3424_v27 = vld [vmem:[#allocation2 + $0x60] sm:$0xe] }
 0x12e   : > { %12671 = vmatmul.mubr.bf16.gmra.mxu1 %v13495_v48  ;;  %v2854_v56 = vsel %vm14017_vm7, %v2849_v7, %v2853_v38  ;;  %v2859_v50 = vshll.u32 %v2681_v19, 16  ;;  %v18986_v3 = vcombine.low %v14516_v24, %v14522_v44  ;;  %v11607_v29 = vcombine.low %v14717_v57, %v14724_v43 }
 0x12f   : > { %12738 = vmatprep.mubr.bf16.mxu1 %v11603_v32  ;;  %v14744_v13 = vcombine.low %v2844_v54, %v2854_v56  ;;  %v2858_v18 = vrot.slane %v2856_v39, 4  ;;  %v2865_v38 = vshll.u32 %v14711_v21, 16  ;;  %v18987_v37 = vcombine.low %v14526_v15, %v14540_v22 }
 0x130   : > { %12619 = vmatmul.mubr.bf16.gmra.mxu0 %v18986_v3  ;;  %v14754_v24 = vsel %vm14306_vm13, %v3520_v14, %v3521_v47  ;;  %v2861_v44 = vrot.slane %v2859_v50, 5  ;;  %v2869_v45 = vshrl.u32 %v14711_v21, 16  ;;  %v2875_v20 = vshll.u32 %v14713_v0, 16  ;;  %v2687_v3 = vld [vmem:[#allocation2 + $0x6c] sm:$0xf] }
 0x131   : > { %12622 = vmatprep.mubr.bf16.mxu0 %v18987_v37  ;;  %v2867_v32 = vrot.slane %v2865_v38, 5  ;;  %v2880_v48 = vshrl.u32 %v2684_v16, 16  ;;  %v2883_v60 = vshll.u32 %v2684_v16, 16  ;;  %v2889_v30 = vshll.u32 %v14726_v12, 16 }
 0x132   : > { %v2862_v46 = vor.u32 %v2861_v44, %v2858_v18  ;;  %v2871_v10 = vrot.slane %v2869_v45, 4  ;;  %v2877_v19 = vrot.slane %v2875_v20, 5  ;;  %v2893_v15 = vshrl.u32 %v14726_v12, 16  ;;  %v13504_v18 = vld [vmem:[#allocation6 + $0x1f0] sm:$0xff]   ;;  %v14768_v20 = vld [vmem:[#allocation2 + $0x70] sm:$0xf] }
 0x133   : > { %v2882_v22 = vrot.slane %v2880_v48, 4  ;;  %v2885_v17 = vrot.slane %v2883_v60, 5  ;;  %v2891_v55 = vrot.slane %v2889_v30, 5  ;;  %v2899_v8 = vshll.u32 %v14736_v42, 16  ;;  %v14798_v60 = vld [vmem:[#allocation2 + $0x7c] sm:$0xf] }
 0x134   : > { %v2863_v7 = vrot.slane %v2862_v46, 4  ;;  %v2872_v47 = vor.u32 %v2871_v10, %v2867_v32  ;;  %v2895_v14 = vrot.slane %v2893_v15, 4  ;;  %v11593_v39 = vrot.slane %v3423_v26, 9  ;;  %v13506_v30 = vld [vmem:[#allocation6 + $0x1e8] sm:$0xff]  }
 0x135   : > { %v2886_v54 = vor.u32 %v2885_v17, %v2882_v22  ;;  %v2901_v56 = vrot.slane %v2899_v8, 5  ;;  %v3525_v16 = vrot.slane %v14711_v21, 5  ;;  %v3528_v50 = vrot.slane %v14713_v0, 5  ;;  %v14781_v0 = vld [vmem:[#allocation2 + $0x74] sm:$0x1] }
 0x136   : > { %12739 = vmatmul.mubr.bf16.vlgmr.msra.gmra.mxu1 %v11604_v25  ;;  %v2868_v38 = vsel %vm14017_vm7, %v2863_v7, %v2867_v32  ;;  %v2873_v37 = vrot.slane %v2872_v47, 4  ;;  %v2896_v44 = vor.u32 %v2895_v14, %v2891_v55  ;;  %v11594_v45 = vrot.slane %v3424_v27, 9  ;;  %v14808_v15 = vld [vmem:[#allocation2 + $0x80] sm:$0x1]  ;;  %v13499_v14 = vld [vmem:[#allocation6 + $0x1b0] sm:$0xff]  }
 0x137   : > { %v18988_v26 = vcombine.low %v14533_v11, %v14548_v58  ;;  %12742 = vmatprep.mubr.bf16.mxu1 %v11605_v2  ;;  %v2887_v21 = vrot.slane %v2886_v54, 4  ;;  %v14778_v28 = vsel %vm14306_vm13, %v11593_v39, %v3525_v16  ;;  %v3527_v51 = vrot.slane %v3525_v16, 4  ;;  %v2690_v2 = vld [vmem:[#allocation2 + $0x78] sm:$0xf]  ;;  %12819 = vmatpush3.bf16.msra.mxu1 %v14584_v33 }
 0x138   : > { %v3532_v25 = vrot.slane %v14726_v12, 5  ;;  %v11608_v11 = vcombine.low %v14734_v23, %v14754_v24  ;;  %v2878_v58 = vsel %vm14017_vm7, %v2873_v37, %v2877_v19  ;;  %v2897_v9 = vrot.slane %v2896_v44, 4  ;;  %12820 = vmatprep.subr.bf16.mxu1 %v13504_v18 }
 0x139   : > { %12623 = vmatmul.mubr.bf16.gmra.mxu0 %v18988_v26  ;;  %v2904_v35 = vshrl.u32 %v2687_v3, 16  ;;  %v14789_v32 = vcombine.low %v2868_v38, %v2878_v58  ;;  %v2892_v12 = vsel %vm14017_vm7, %v2887_v21, %v2891_v55  ;;  %v14795_v48 = vsel %vm14306_vm13, %v3527_v51, %v3528_v50  ;;  %v3425_v50 = vld [vmem:[#allocation2 + $0x6c] sm:$0xe]  ;;  %v3426_v58 = vld [vmem:[#allocation2 + $0x78] sm:$0xe] }
 0x13a   : > { %12690 = vmatprep.mubr.bf16.mxu0 %v14601_v63  ;;  %v3535_v63 = vrot.slane %v14736_v42, 5  ;;  %v2902_v46 = vsel %vm14017_vm7, %v2897_v9, %v2901_v56  ;;  %v11609_v33 = vcombine.low %v14778_v28, %v14795_v48  ;;  %v14806_v10 = vsel %vm14306_vm13, %v11594_v45, %v3532_v25  ;;  %v13502_v48 = vld [vmem:[#allocation6 + $0x198] sm:$0xff]  }
 0x13b   : > { %v3534_v19 = vrot.slane %v3532_v25, 4  ;;  %v2906_v22 = vrot.slane %v2904_v35, 4  ;;  %v2907_v17 = vshll.u32 %v2687_v3, 16  ;;  %v2913_v42 = vshll.u32 %v14768_v20, 16  ;;  %12821 = vmatpush3.bf16.msra.mxu1 %v13504_v18  ;;  %v13507_v18 = vld [vmem:[#allocation6 + $0x1e0] sm:$0xff]  }
 0x13c   : > { %v2917_v55 = vshrl.u32 %v14768_v20, 16  ;;  %v14812_v8 = vcombine.low %v2892_v12, %v2902_v46  ;;  %v2923_v27 = vshll.u32 %v14781_v0, 16  ;;  %v2928_v7 = vshrl.u32 %v2690_v2, 16  ;;  %12822 = vmatprep.subr.bf16.mxu1 %v13506_v30  ;;  %v2693_v35 = vld [vmem:[#allocation2 + $0x84] sm:$0xf] }
 0x13d   : > { %v2931_v47 = vshll.u32 %v2690_v2, 16  ;;  %v14817_v39 = vsel %vm14306_vm13, %v3534_v19, %v3535_v63  ;;  %v2909_v54 = vrot.slane %v2907_v17, 5  ;;  %v2915_v56 = vrot.slane %v2913_v42, 5  ;;  %v13509_v2 = vld [vmem:[#allocation6 + $0x1d8] sm:$0xff]   ;;  %v14843_v17 = vld [vmem:[#allocation2 + $0x88] sm:$0xf] }
 0x13e   : > { %v2919_v16 = vrot.slane %v2917_v55, 4  ;;  %12743 = vmatmul.mubr.bf16.gmra.mxu1 %v11606_v4  ;;  %v2925_v3 = vrot.slane %v2923_v27, 5  ;;  %v2930_v38 = vrot.slane %v2928_v7, 4  ;;  %v2937_v44 = vshll.u32 %v14798_v60, 16  ;;  %v2696_v7 = vld [vmem:[#allocation2 + $0x90] sm:$0xf] }
 0x13f   : > { %v2933_v37 = vrot.slane %v2931_v47, 5  ;;  %12746 = vmatprep.mubr.bf16.mxu1 %v11607_v29  ;;  %v2910_v45 = vor.u32 %v2909_v54, %v2906_v22  ;;  %v2941_v21 = vshrl.u32 %v14798_v60, 16  ;;  %v2947_v51 = vshll.u32 %v14808_v15, 16  ;;  %12823 = vmatpush3.bf16.msra.mxu1 %v13506_v30  ;;  %v14845_v30 = vld [vmem:[#allocation2 + $0x8c] sm:$0x1]  ;;  %v13501_v47 = vld [vmem:[#allocation6 + $0x1a0] sm:$0xff]  }
 0x140   : > { %v2920_v26 = vor.u32 %v2919_v16, %v2915_v56  ;;  %v2939_v4 = vrot.slane %v2937_v44, 5  ;;  %v11595_v25 = vrot.slane %v3425_v50, 9  ;;  %v11610_v57 = vcombine.low %v14806_v10, %v14817_v39  ;;  %12824 = vmatprep.subr.bf16.mxu1 %v13507_v18  ;;  %v14865_v44 = vld [vmem:[#allocation2 + $0x98] sm:$0x1] }
 0x141   : > { %12691 = vmatmul.mubr.bf16.vlgmr.msra.gmra.mxu0 %v14622_v53  ;;  %v2934_v59 = vor.u32 %v2933_v37, %v2930_v38  ;;  %v3539_v53 = vrot.slane %v14768_v20, 5  ;;  %v2911_v43 = vrot.slane %v2910_v45, 4  ;;  %v2943_v9 = vrot.slane %v2941_v21, 4  ;;  %v14867_v45 = vld [vmem:[#allocation2 + $0x84] sm:$0xe] }
 0x142   : > { %12771 = vmatpush3.bf16.msra.mxu0 %v14630_v36  ;;  %12694 = vmatprep.mubr.bf16.mxu0 %v14668_v61  ;;  %v2921_v29 = vrot.slane %v2920_v26, 4  ;;  %v2949_v12 = vrot.slane %v2947_v51, 5  ;;  %v3542_v63 = vrot.slane %v14781_v0, 5  ;;  %v11596_v55 = vrot.slane %v3426_v58, 9 }
 0x143   : > { %12772 = vmatprep.subr.bf16.mxu0 %v13499_v14  ;;  %v2935_v36 = vrot.slane %v2934_v59, 4  ;;  %v3541_v61 = vrot.slane %v3539_v53, 4  ;;  %v2916_v20 = vsel %vm14017_vm7, %v2911_v43, %v2915_v56  ;;  %v2944_v19 = vor.u32 %v2943_v9, %v2939_v4  ;;  %12825 = vmatpush3.bf16.msra.mxu1 %v13507_v18  ;;  %v13512_v9 = vld [vmem:[#allocation6 + $0x1c8] sm:$0xff]  }
 0x144   : > { %v2926_v46 = vsel %vm14017_vm7, %v2921_v29, %v2925_v3  ;;  %v14841_v22 = vsel %vm14306_vm13, %v11595_v25, %v3539_v53  ;;  %v3546_v27 = vrot.slane %v14798_v60, 5  ;;  %v3549_v16 = vrot.slane %v14808_v15, 5  ;;  %12826 = vmatprep.subr.bf16.mxu1 %v13509_v2  ;;  %v13510_v15 = vld [vmem:[#allocation6 + $0x1d0] sm:$0xff]  }
 0x145   : > { %v14847_v42 = vcombine.low %v2916_v20, %v2926_v46  ;;  %v14851_v0 = vsel %vm14306_vm13, %v3541_v61, %v3542_v63  ;;  %v2940_v54 = vsel %vm14017_vm7, %v2935_v36, %v2939_v4  ;;  %v2945_v56 = vrot.slane %v2944_v19, 4  ;;  %v14869_v26 = vpop.f32.mrf.mxu1 }
 0x146   : > { %12773 = vmatpush3.bf16.msra.mxu0 %v13499_v14  ;;  %v2952_v50 = vshrl.u32 %v2693_v35, 16  ;;  %v14857_v14 = vld [vmem:[#allocation2 + $0x94] sm:$0xf]  ;;  %12747 = vmatmul.mubr.bf16.gmra.mxu1 %v11608_v11  ;;  %v11611_v60 = vcombine.low %v14841_v22, %v14851_v0  ;;  %v3548_v3 = vrot.slane %v3546_v27, 4  ;;  %v2955_v38 = vshll.u32 %v2693_v35, 16  ;;  %v13505_v0 = vld [vmem:[#allocation6 + $0x190] sm:$0xff]  }
 0x147   : > { %12774 = vmatprep.subr.bf16.mxu0 %v13500_v5  ;;  %v2961_v37 = vshll.u32 %v14843_v17, 16  ;;  %12750 = vmatprep.mubr.bf16.mxu1 %v11609_v33  ;;  %v2950_v23 = vsel %vm14017_vm7, %v2945_v56, %v2949_v12  ;;  %v2965_v11 = vshrl.u32 %v14843_v17, 16  ;;  %v2971_v18 = vshll.u32 %v14845_v30, 16 }
 0x148   : > { %v2954_v24 = vrot.slane %v2952_v50, 4  ;;  %v14880_v21 = vcombine.low %v2940_v54, %v2950_v23  ;;  %v2957_v51 = vrot.slane %v2955_v38, 5  ;;  %v14890_v33 = vsel %vm14306_vm13, %v3548_v3, %v3549_v16  ;;  %12827 = vmatpush3.bf16.msra.mxu1 %v13509_v2  ;;  %v2699_v50 = vld [vmem:[#allocation2 + $0x9c] sm:$0xf]  ;;  %v2702_v23 = vld [vmem:[#allocation2 + $0xa8] sm:$0xf] }
 0x149   : > { %12695 = vmatmul.mubr.bf16.gmra.mxu0 %v14687_v62  ;;  %v14884_v62 = vsel %vm14306_vm13, %v11596_v55, %v3546_v27  ;;  %v14886_v28 = vrot.slane %v2961_v37, 5  ;;  %v2967_v59 = vrot.slane %v2965_v11, 4  ;;  %v2973_v4 = vrot.slane %v2971_v18, 5  ;;  %12828 = vmatprep.subr.bf16.mxu1 %v13510_v15  ;;  %v13513_v3 = vld [vmem:[#allocation6 + $0x1c0] sm:$0xff]   ;;  %v14924_v37 = vld [vmem:[#allocation2 + $0xa4] sm:$0x1] }
 0x14a   : > { %12698 = vmatprep.mubr.bf16.mxu0 %v14720_v52  ;;  %12775 = vmatpush3.bf16.msra.mxu0 %v13500_v5  ;;  %v2976_v25 = vshrl.u32 %v2696_v7, 16  ;;  %v3428_v52 = vld [vmem:[#allocation2 + $0x90] sm:$0xe]  ;;  %v14892_v5 = vpop.f32.mrf.mxu1  ;;  %v2958_v53 = vor.u32 %v2957_v51, %v2954_v24  ;;  %v2979_v58 = vshll.u32 %v2696_v7, 16  ;;  %v2985_v43 = vshll.u32 %v14857_v14, 16 }
 0x14b   : > { %12776 = vmatprep.subr.bf16.mxu0 %v13501_v47  ;;  %v2989_v29 = vshrl.u32 %v14857_v14, 16  ;;  %v2968_v35 = vor.u32 %v2967_v59, %v14886_v28  ;;  %v2995_v12 = vshll.u32 %v14865_v44, 16  ;;  %v11597_v61 = vrot.slane %v14867_v45, 9  ;;  %v14934_v24 = vld [vmem:[#allocation2 + $0xac] sm:$0xf] }
 0x14c   : > { %v2978_v36 = vrot.slane %v2976_v25, 4  ;;  %v2959_v63 = vrot.slane %v2958_v53, 4  ;;  %v2981_v2 = vrot.slane %v2979_v58, 5  ;;  %v14899_v20 = vrot.slane %v2985_v43, 5  ;;  %12829 = vmatpush3.bf16.msra.mxu1 %v13510_v15  ;;  %v14905_v7 = vpop.f32.mrf.mxu1 }
 0x14d   : > { %v2991_v46 = vrot.slane %v2989_v29, 4  ;;  %v11612_v19 = vcombine.low %v14884_v62, %v14890_v33  ;;  %v2969_v22 = vrot.slane %v2968_v35, 4  ;;  %v3553_v55 = vrot.slane %v14843_v17, 5  ;;  %12830 = vmatprep.subr.bf16.mxu1 %v13512_v9  ;;  %v14913_v38 = vpop.f32.mrf.mxu0 }
 0x14e   : > { %12777 = vmatpush3.bf16.msra.mxu0 %v13501_v47  ;;  %v3556_v27 = vrot.slane %v14845_v30, 5  ;;  %12751 = vmatmul.mubr.bf16.gmra.mxu1 %v11610_v57  ;;  %v2982_v47 = vor.u32 %v2981_v2, %v2978_v36  ;;  %v14911_v56 = vrot.slane %v2995_v12, 5  ;;  %v11598_v16 = vrot.slane %v3428_v52, 9  ;;  %v14922_v30 = vld [vmem:[#allocation2 + $0xa0] sm:$0xf] }
 0x14f   : > { %12778 = vmatprep.subr.bf16.mxu0 %v13502_v48  ;;  %v2992_v54 = vor.u32 %v2991_v46, %v14899_v20  ;;  %12754 = vmatprep.mubr.bf16.mxu1 %v11611_v60  ;;  %v2964_v17 = vsel %vm14017_vm7, %v2959_v63, %v14886_v28  ;;  %v2974_v10 = vsel %vm14017_vm7, %v2969_v22, %v2973_v4  ;;  %v3555_v39 = vrot.slane %v3553_v55, 4  ;;  %v14942_v28 = vpop.f32.mrf.mxu1  ;;  %v14954_v25 = vpop.f32.mrf.mxu0  ;;  %v14965_v12 = vld [vmem:[#allocation2 + $0xb0] sm:$0x1] }
 0x150   : > { %v3560_v57 = vrot.slane %v14857_v14, 5  ;;  %v14927_v45 = vrot.slane %v2982_v47, 4  ;;  %v3554_v60 = vsel %vm14306_vm13, %v11597_v61, %v3553_v55  ;;  %v3563_v15 = vrot.slane %v14865_v44, 5  ;;  %v13508_v14 = vld [vmem:[#allocation6 + $0x188] sm:$0xff]   ;;  %12831 = vmatpush3.bf16.msra.mxu1 %v13512_v9  ;;  %18989 = vst [vmem:[#allocation18_spill] sm:$0xff] %v14942_v28  ;;  %v13511_v61 = vld [vmem:[#allocation6 + $0x180] sm:$0xff]  }
 0x151   : > { %12699 = vmatmul.mubr.bf16.gmra.mxu0 %v14744_v13  ;;  %v14929_v13 = vrot.slane %v2992_v54, 4  ;;  %v3557_v11 = vsel %vm14306_vm13, %v3555_v39, %v3556_v27  ;;  %v3000_v51 = vshrl.u32 %v2699_v50, 16  ;;  %v3003_v4 = vshll.u32 %v2699_v50, 16  ;;  %12832 = vmatprep.subr.bf16.mxu1 %v13513_v3  ;;  %v3429_v55 = vld [vmem:[#allocation2 + $0x9c] sm:$0xe]  ;;  %v14974_v50 = vpop.f32.mrf.mxu0 }
 0x152   : > { %12702 = vmatprep.mubr.bf16.mxu0 %v14789_v32  ;;  %12779 = vmatpush3.bf16.msra.mxu0 %v13502_v48  ;;  %v14940_v32 = vsel %vm14306_vm13, %v11598_v16, %v3560_v57  ;;  %v3562_v18 = vrot.slane %v3560_v57, 4  ;;  %v14944_v48 = vcombine.low %v2964_v17, %v2974_v10  ;;  %v2988_v44 = vsel %vm14017_vm7, %v14927_v45, %v14899_v20  ;;  %v3430_v57 = vld [vmem:[#allocation2 + $0xa8] sm:$0xe] }
 0x153   : > { %12780 = vmatprep.subr.bf16.mxu0 %v13505_v0  ;;  %v2998_v59 = vsel %vm14017_vm7, %v14929_v13, %v14911_v56  ;;  %v11613_v52 = vcombine.low %v3554_v60, %v3557_v11  ;;  %v3002_v58 = vrot.slane %v3000_v51, 4  ;;  %v3009_v43 = vshll.u32 %v14922_v30, 16  ;;  %v14985_v51 = vld [vmem:[#allocation6 + $0x238] sm:$0xff]  }
 0x154   : > { %v14958_v53 = vsel %vm14306_vm13, %v3562_v18, %v3563_v15  ;;  %v3005_v9 = vrot.slane %v3003_v4, 5  ;;  %v3013_v35 = vshrl.u32 %v14922_v30, 16  ;;  %v3019_v36 = vshll.u32 %v14924_v37, 16  ;;  %12833 = vmatpush3.bf16.msra.mxu1 %v13513_v3  ;;  %v2705_v18 = vld [vmem:[#allocation2 + $0xb4] sm:$0xf] }
 0x155   : > { %v11614_v29 = vcombine.low %v14940_v32, %v14958_v53  ;;  %v3011_v63 = vrot.slane %v3009_v43, 5  ;;  %v3024_v2 = vshrl.u32 %v2702_v23, 16  ;;  %v3027_v46 = vshll.u32 %v2702_v23, 16  ;;  %v14992_v43 = vld [vmem:[#allocation2 + $0xb8] sm:$0xf] }
 0x156   : > { %12781 = vmatpush3.bf16.msra.mxu0 %v13505_v0  ;;  %v3033_v22 = vshll.u32 %v14934_v24, 16  ;;  %v14968_v0 = vpop.f32.mrf.mxu1  ;;  %12755 = vmatmul.mubr.bf16.gmra.mxu1 %v11612_v19  ;;  %v3006_v27 = vor.u32 %v3005_v9, %v3002_v58  ;;  %v3015_v47 = vrot.slane %v3013_v35, 4  ;;  %v3021_v54 = vrot.slane %v3019_v36, 5  ;;  %v14994_v9 = vpop.f32.mrf.mxu0  ;;  %v2709_v53 = vld [vmem:[#allocation2 + $0xc4] sm:$0xf] }
 0x157   : > { %12782 = vmatprep.subr.bf16.mxu0 %v13508_v14  ;;  %v3037_v16 = vshrl.u32 %v14934_v24, 16  ;;  %12758 = vmatprep.mubr.bf16.mxu1 %v11613_v52  ;;  %v3026_v17 = vrot.slane %v3024_v2, 4  ;;  %v3029_v10 = vrot.slane %v3027_v46, 5  ;;  %v3043_v3 = vshll.u32 %v14965_v12, 16  ;;  %18990 = vst [vmem:[#allocation19_spill] sm:$0xff] %v14994_v9 }
 0x158   : > { %v14977_v39 = vrot.slane %v3033_v22, 5  ;;  %v3007_v62 = vrot.slane %v3006_v27, 4  ;;  %v3016_v33 = vor.u32 %v3015_v47, %v3011_v63  ;;  %v11599_v60 = vrot.slane %v3429_v55, 9  ;;  %v14987_v4 = vpop.f32.mrf.mxu1  ;;  %v15001_v2 = vld [vmem:[#allocation2 + $0xbc] sm:$0x1] }
 0x159   : > { %12703 = vmatmul.mubr.bf16.gmra.mxu0 %v14812_v8  ;;  %v3039_v19 = vrot.slane %v3037_v16, 4  ;;  %v3030_v15 = vor.u32 %v3029_v10, %v3026_v17  ;;  %v14981_v23 = vrot.slane %v3043_v3, 5  ;;  %v3567_v8 = vrot.slane %v14922_v30, 5  ;;  %v743_v46 = vld [vmem:[#allocation2 + $0xc8] sm:$0x1] }
 0x15a   : > { %12706 = vmatprep.mubr.bf16.mxu0 %v14847_v42  ;;  %12783 = vmatpush3.bf16.msra.mxu0 %v13508_v14  ;;  %v3570_v11 = vrot.slane %v14924_v37, 5  ;;  %v3012_v42 = vsel %vm14017_vm7, %v3007_v62, %v3011_v63  ;;  %v3017_v52 = vrot.slane %v3016_v33, 4  ;;  %v11600_v14 = vrot.slane %v3430_v57, 9  ;;  %v15025_v16 = vpop.f32.mrf.mxu1  ;;  %v3431_v62 = vld [vmem:[#allocation2 + $0xb4] sm:$0xe] }
 0x15b   : > { %12784 = vmatprep.subr.bf16.mxu0 %v13511_v61  ;;  %v3040_v58 = vor.u32 %v3039_v19, %v14977_v39  ;;  %v14996_v30 = vrot.slane %v3030_v15, 4  ;;  %v3568_v37 = vsel %vm14306_vm13, %v11599_v60, %v3567_v8  ;;  %v3569_v35 = vrot.slane %v3567_v8, 4  ;;  %v3432_v33 = vld [vmem:[#allocation2 + $0xc0] sm:$0xe] }
 0x15c   : > { %v3574_v36 = vrot.slane %v14934_v24, 5  ;;  %v3022_v63 = vsel %vm14017_vm7, %v3017_v52, %v3021_v54  ;;  %v3577_v55 = vrot.slane %v14965_v12, 5  ;;  %v3048_v27 = vshrl.u32 %v2705_v18, 16 }
 0x15d   : > { %v15005_v22 = vrot.slane %v3040_v58, 4  ;;  %v11574_v24 = vcombine.low %v2988_v44, %v2998_v59  ;;  %v11575_v47 = vcombine.low %v3012_v42, %v3022_v63  ;;  %v3036_v54 = vsel %vm14017_vm7, %v14996_v30, %v14977_v39  ;;  %v15036_v44 = vpop.f32.mrf.mxu0 }
 0x15e   : > { %12785 = vmatpush3.bf16.msra.mxu0 %v13511_v61  ;;  %v3571_v12 = vsel %vm14306_vm13, %v3569_v35, %v3570_v11  ;;  %v2708_v61 = vld [vmem:[#allocation2 + $0xc0] sm:$0xf]  ;;  %12759 = vmatmul.mubr.bf16.gmra.mxu1 %v11614_v29  ;;  %v3575_v45 = vsel %vm14306_vm13, %v11600_v14, %v3574_v36  ;;  %v3576_v13 = vrot.slane %v3574_v36, 4  ;;  %v3050_v59 = vrot.slane %v3048_v27, 4 }
 0x15f   : > { %12866 = vmatprep.subr.bf16.mxu0 %v14985_v51  ;;  %v3046_v20 = vsel %vm14017_vm7, %v15005_v22, %v14981_v23  ;;  %v11615_v56 = vcombine.low %v3568_v37, %v3571_v12  ;;  %v3051_v17 = vshll.u32 %v2705_v18, 16  ;;  %v3057_v10 = vshll.u32 %v14992_v43, 16  ;;  %v15051_v52 = vpop.f32.mrf.mxu0 }
 0x160   : > { %v3061_v32 = vshrl.u32 %v14992_v43, 16  ;;  %v3578_v29 = vsel %vm14306_vm13, %v3576_v13, %v3577_v55  ;;  %v3067_v3 = vshll.u32 %v15001_v2, 16  ;;  %v3072_v57 = vshrl.u32 %v2708_v61, 16 }
 0x161   : > { %12707 = vmatmul.mubr.bf16.gmra.mxu0 %v14880_v21  ;;  %12762 = vmatprep.mubr.bf16.mxu1 %v11615_v56  ;;  %v744_v21 = vsel %vm14037_vm10, %v579_v6, %v743_v46  ;;  %v11616_v19 = vcombine.low %v3575_v45, %v3578_v29  ;;  %v3053_v60 = vrot.slane %v3051_v17, 5  ;;  %v3059_v15 = vrot.slane %v3057_v10, 5  ;;  %v4303_v29 = vld [vmem:[#allocation2 + $0x1c] sm:$0xf] }
 0x162   : > { %12710 = vmatprep.mubr.bf16.mxu0 %v14944_v48  ;;  %v3063_v23 = vrot.slane %v3061_v32, 4  ;;  %745 = vst [vmem:[#allocation2 + $0xc8] sm:$0x1] %v744_v21  ;;  %v15049_v48 = vpop.f32.mrf.mxu1  ;;  %v3069_v8 = vrot.slane %v3067_v3, 5  ;;  %v3074_v11 = vrot.slane %v3072_v57, 4  ;;  %v3075_v18 = vshll.u32 %v2708_v61, 16 }
 0x163   : > { %v3081_v42 = vshll.u32 %v2709_v53, 16  ;;  %v3054_v34 = vor.u32 %v3053_v60, %v3050_v59  ;;  %v3085_v14 = vshrl.u32 %v2709_v53, 16  ;;  %v11601_v6 = vrot.slane %v3431_v62, 9  ;;  %v15061_v59 = vpop.f32.mrf.mxu0  ;;  %v4302_v32 = vld [vmem:[#allocation2 + $0x18] sm:$0xf] }
 0x164   : > { %v3064_v58 = vor.u32 %v3063_v23, %v3059_v15  ;;  %v3077_v37 = vrot.slane %v3075_v18, 5  ;;  %v3581_v36 = vrot.slane %v14992_v43, 5  ;;  %v3584_v46 = vrot.slane %v15001_v2, 5  ;;  %v15057_v12 = vpop.f32.mrf.mxu1  ;;  %v4304_v62 = vld [vmem:[#allocation2 + $0x20] sm:$0x1] }
 0x165   : > { %v15053_v35 = vrot.slane %v3081_v42, 5  ;;  %v3055_v63 = vrot.slane %v3054_v34, 4  ;;  %v3087_v55 = vrot.slane %v3085_v14, 4  ;;  %v11602_v27 = vrot.slane %v3432_v33, 9 }
 0x166   : > { %v3065_v22 = vrot.slane %v3064_v58, 4  ;;  %12763 = vmatmul.mubr.bf16.gmra.mxu1 %v11616_v19  ;;  %v3078_v61 = vor.u32 %v3077_v37, %v3074_v11  ;;  %v3582_v56 = vsel %vm14306_vm13, %v11601_v6, %v3581_v36  ;;  %v3583_v45 = vrot.slane %v3581_v36, 4  ;;  %v15081_v60 = vpop.f32.mrf.mxu1 }
 0x167   : > { %v3588_v13 = vrot.slane %v2709_v53, 5  ;;  %v3060_v43 = vsel %vm14017_vm7, %v3055_v63, %v3059_v15  ;;  %v3088_v17 = vor.u32 %v3087_v55, %v15053_v35  ;;  %v15070_v10 = vadd.f32 %v14869_v26, %v14913_v38 }
 0x168   : > { %v3070_v2 = vsel %vm14017_vm7, %v3065_v22, %v3069_v8  ;;  %v3079_v21 = vrot.slane %v3078_v61, 4  ;;  %v3585_v57 = vsel %vm14306_vm13, %v3583_v45, %v3584_v46  ;;  %v4351_v39 = vshrl.u32 %v4302_v32, 16  ;;  %v15094_v22 = vld [vmem:[#allocation2 + $0x2c] sm:$0x1]  ;;  %v15096_v55 = vpop.f32.mrf.mxu1 }
 0x169   : > { %12711 = vmatmul.mubr.bf16.gmra.mxu0 %v11574_v24  ;;  %v11576_v24 = vcombine.low %v3036_v54, %v3046_v20  ;;  %v11577_v53 = vcombine.low %v3060_v43, %v3070_v2  ;;  %v2710_v3 = vld [vmem:[#allocation2 + $0xc8] sm:$0x1]  ;;  %v11617_v19 = vcombine.low %v3582_v56, %v3585_v57  ;;  %v3589_v26 = vsel %vm14306_vm13, %v11602_v27, %v3588_v13  ;;  %v15083_v20 = vpop.f32.mrf.mxu0  ;;  %v4308_v2 = vld [vmem:[#allocation2 + $0x30] sm:$0xf] }
 0x16a   : > { %12714 = vmatprep.mubr.bf16.mxu0 %v11575_v47  ;;  %v3091_v33 = vshll.u32 %v2710_v3, 16  ;;  %v3590_v38 = vrot.slane %v3588_v13, 4  ;;  %v4305_v47 = vld [vmem:[#allocation2 + $0x24] sm:$0xf]  ;;  %v3089_v15 = vrot.slane %v3088_v17, 4  ;;  %v3591_v23 = vrot.slane %v2710_v3, 5 }
 0x16b   : > { %v4354_v30 = vshll.u32 %v4302_v32, 16  ;;  %v4306_v54 = vld [vmem:[#allocation2 + $0x28] sm:$0xf]  ;;  %12766 = vmatprep.mubr.bf16.mxu1 %v11617_v19  ;;  %v4360_v11 = vshll.u32 %v4303_v29, 16  ;;  %v4364_v18 = vshrl.u32 %v4303_v29, 16  ;;  %v4370_v42 = vshll.u32 %v4304_v62, 16 }
 0x16c   : > { %v3093_v8 = vrot.slane %v3091_v33, 5  ;;  %v3592_v34 = vsel %vm14306_vm13, %v3590_v38, %v3591_v23  ;;  %v4353_v58 = vrot.slane %v4351_v39, 4  ;;  %v15089_v6 = vadd.f32 %v14892_v5, %v14954_v25  ;;  %v4309_v3 = vld [vmem:[#allocation2 + $0x34] sm:$0xf]  ;;  %v15103_v19 = vld [vmem:[#allocation2 + $0x38] sm:$0x1] }
 0x16d   : > { %v4356_v14 = vrot.slane %v4354_v30, 5  ;;  %v3084_v37 = vsel %vm14017_vm7, %v3079_v21, %v15053_v35  ;;  %v11618_v36 = vcombine.low %v3589_v26, %v3592_v34  ;;  %v4362_v46 = vrot.slane %v4360_v11, 5  ;;  %v15100_v13 = vpop.f32.mrf.mxu0  ;;  %v15105_v26 = vpop.f32.mrf.mxu1  ;;  %v13514_v11 = vld [vmem:[#allocation2 + $0x18] sm:$0xff]  }
 0x16e   : > { %v4366_v63 = vrot.slane %v4364_v18, 4  ;;  %v3094_v27 = vsel %vm14017_vm7, %v3089_v15, %v3093_v8  ;;  %v4372_v56 = vrot.slane %v4370_v42, 5  ;;  %v4375_v45 = vshrl.u32 %v4305_v47, 16  ;;  %18991 = vst [vmem:[#allocation20_spill] sm:$0xff] %v15105_v26  ;;  %v4311_v8 = vld [vmem:[#allocation2 + $0x3c] sm:$0xf] }
 0x16f   : > { %v4357_v61 = vor.u32 %v4356_v14, %v4353_v58  ;;  %12767 = vmatmul.mubr.bf16.gmra.mxu1 %v11618_v36  ;;  %v4378_v25 = vshll.u32 %v4305_v47, 16  ;;  %v4384_v35 = vshll.u32 %v4306_v54, 16  ;;  %v4388_v43 = vshrl.u32 %v4306_v54, 16  ;;  %v15113_v15 = vpop.f32.mrf.mxu0  ;;  %v15122_v36 = vld [vmem:[#allocation2 + $0x40] sm:$0xf] }
 0x170   : > { %v4367_v5 = vor.u32 %v4366_v63, %v4362_v46  ;;  %v4377_v32 = vrot.slane %v4375_v45, 4  ;;  %v4394_v29 = vshll.u32 %v15094_v22, 16  ;;  %v15119_v54 = vadd.f32 %v14968_v0, %v15036_v44  ;;  %v15319_v26 = vld [vmem:[#allocation2 + $0xc8] sm:$0x1] }
 0x171   : > { %12715 = vmatmul.mubr.bf16.gmra.mxu0 %v11576_v24  ;;  %v4358_v17 = vrot.slane %v4357_v61, 4  ;;  %v4380_v57 = vrot.slane %v4378_v25, 5  ;;  %v4386_v62 = vrot.slane %v4384_v35, 5  ;;  %v4390_v33 = vrot.slane %v4388_v43, 4  ;;  %v15130_v61 = vld [vmem:[#allocation2 + $0x44] sm:$0x1] }
 0x172   : > { %12718 = vmatprep.mubr.bf16.mxu0 %v11577_v53  ;;  %v4368_v21 = vrot.slane %v4367_v5, 4  ;;  %v11578_v24 = vcombine.low %v3084_v37, %v3094_v27  ;;  %v4396_v47 = vrot.slane %v4394_v29, 5  ;;  %v15111_v53 = vadd.f32 %v14905_v7, %v14974_v50  ;;  %19013 = vst [vmem:[#allocation42_spill] sm:$0xff] %v15319_v26 }
 0x173   : > { %v4363_v38 = vsel %vm14017_vm7, %v4358_v17, %v4362_v46  ;;  %v4381_v39 = vor.u32 %v4380_v57, %v4377_v32  ;;  %v4391_v30 = vor.u32 %v4390_v33, %v4386_v62  ;;  %v4399_v42 = vshrl.u32 %v4308_v2, 16  ;;  %v15124_v46 = vpop.f32.mrf.mxu1 }
 0x174   : > { %v4373_v23 = vsel %vm14017_vm7, %v4368_v21, %v4372_v56  ;;  %v4402_v34 = vshll.u32 %v4308_v2, 16  ;;  %v4408_v58 = vshll.u32 %v4309_v3, 16  ;;  %v4412_v50 = vshrl.u32 %v4309_v3, 16  ;;  %v15132_v56 = vpop.f32.mrf.mxu0 }
 0x175   : > { %v11651_v18 = vcombine.low %v4363_v38, %v4373_v23  ;;  %v4382_v14 = vrot.slane %v4381_v39, 4  ;;  %v4392_v7 = vrot.slane %v4391_v30, 4  ;;  %v4418_v37 = vshll.u32 %v15103_v19, 16  ;;  %v15143_v33 = vpop.f32.mrf.mxu1  ;;  %v15149_v30 = vld [vmem:[#allocation2 + $0x50] sm:$0x1] }
 0x176   : > { %v4401_v63 = vrot.slane %v4399_v42, 4  ;;  %v4404_v27 = vrot.slane %v4402_v34, 5  ;;  %v4410_v0 = vrot.slane %v4408_v58, 5  ;;  %v15128_v44 = vadd.f32 %v14987_v4, %v15051_v52  ;;  %v4314_v4 = vld [vmem:[#allocation2 + $0x48] sm:$0xf] }
 0x177   : > { %12834 = vmatprep.mubr.bf16.mxu1 %v11651_v18  ;;  %v4387_v45 = vsel %vm14017_vm7, %v4382_v14, %v4386_v62  ;;  %v4397_v5 = vsel %vm14017_vm7, %v4392_v7, %v4396_v47  ;;  %v4414_v25 = vrot.slane %v4412_v50, 4  ;;  %v4420_v35 = vrot.slane %v4418_v37, 5  ;;  %v13515_v52 = vld [vmem:[#allocation2 + $0x24] sm:$0xff]   ;;  %v15141_v62 = vld [vmem:[#allocation2 + $0x4c] sm:$0xf] }
 0x178   : > { %v11652_v43 = vcombine.low %v4387_v45, %v4397_v5  ;;  %v4405_v2 = vor.u32 %v4404_v27, %v4401_v63  ;;  %v4423_v17 = vshrl.u32 %v4311_v8, 16  ;;  %v4426_v32 = vshll.u32 %v4311_v8, 16  ;;  %v15151_v8 = vpop.f32.mrf.mxu0  ;;  %v13519_v50 = vld [vmem:[#allocation6 + $0x230] sm:$0xff]   ;;  %v15161_v27 = vpop.f32.mrf.mxu1 }
 0x179   : > { %12719 = vmatmul.mubr.bf16.gmra.mxu0 %v11578_v24  ;;  %v4415_v29 = vor.u32 %v4414_v25, %v4410_v0  ;;  %v4432_v3 = vshll.u32 %v15122_v36, 16  ;;  %v4436_v21 = vshrl.u32 %v15122_v36, 16  ;;  %v4442_v57 = vshll.u32 %v15130_v61, 16  ;;  %v13517_v24 = vld [vmem:[#allocation2 + $0x30] sm:$0xff]   ;;  %18992 = vst [vmem:[#allocation21_spill] sm:$0xff] %v15151_v8 }
 0x17a   : > { %12786 = vmatprep.mubr.bf16.mxu0 %v13514_v11  ;;  %12835 = vmatmul.mubr.bf16.vlgmr.msra.gmra.mxu1 %v11652_v43  ;;  %v4406_v38 = vrot.slane %v4405_v2, 4  ;;  %v4425_v47 = vrot.slane %v4423_v17, 4  ;;  %v4428_v23 = vrot.slane %v4426_v32, 5  ;;  %v15147_v39 = vadd.f32 %v15025_v16, %v15061_v59  ;;  %v4317_v43 = vld [vmem:[#allocation2 + $0x54] sm:$0xf]  ;;  %v12512_v2 = vpop.f32.mrf.mxu0 }
 0x17b   : > { %v4416_v11 = vrot.slane %v4415_v29, 4  ;;  %v4434_v18 = vrot.slane %v4432_v3, 5  ;;  %v4438_v42 = vrot.slane %v4436_v21, 4  ;;  %v4444_v34 = vrot.slane %v4442_v57, 5  ;;  %v13522_v29 = vld [vmem:[#allocation6 + $0x228] sm:$0xff]  }
 0x17c   : > { %v4411_v58 = vsel %vm14017_vm7, %v4406_v38, %v4410_v0  ;;  %v4429_v14 = vor.u32 %v4428_v23, %v4425_v47  ;;  %v15157_v7 = vadd.f32 %v15057_v12, %v15100_v13  ;;  %v4447_v37 = vshrl.u32 %v4314_v4, 16  ;;  %v13518_v38 = vld [vmem:[#allocation2 + $0x3c] sm:$0xff]  }
 0x17d   : > { %v4421_v16 = vsel %vm14017_vm7, %v4416_v11, %v4420_v35  ;;  %v4439_v59 = vor.u32 %v4438_v42, %v4434_v18  ;;  %v4450_v63 = vshll.u32 %v4314_v4, 16  ;;  %v4456_v25 = vshll.u32 %v15141_v62, 16  ;;  %v15166_v35 = vld [vmem:[#allocation2 + $0x58] sm:$0xf]  ;;  %v4320_v11 = vld [vmem:[#allocation2 + $0x60] sm:$0xf] }
 0x17e   : > { %v11653_v45 = vcombine.low %v4411_v58, %v4421_v16  ;;  %v4430_v5 = vrot.slane %v4429_v14, 4  ;;  %v4460_v0 = vshrl.u32 %v15141_v62, 16  ;;  %v4449_v13 = vrot.slane %v4447_v37, 4  ;;  %v1408_v16 = vpop.f32.mrf.mxu0 }
 0x17f   : > { %v4440_v12 = vrot.slane %v4439_v59, 4  ;;  %v4452_v17 = vrot.slane %v4450_v63, 5  ;;  %v4466_v32 = vshll.u32 %v15149_v30, 16  ;;  %v4458_v3 = vrot.slane %v4456_v25, 5 }
 0x180   : > { %v4435_v4 = vsel %vm14017_vm7, %v4430_v5, %v4434_v18  ;;  %v4462_v21 = vrot.slane %v4460_v0, 4  ;;  %v15173_v57 = vadd.f32 %v15081_v60, %v15113_v15  ;;  %12838 = vmatprep.mubr.bf16.mxu1 %v11653_v45  ;;  %v4471_v23 = vshrl.u32 %v4317_v43, 16  ;;  %v15179_v18 = vpop.f32.mrf.mxu1  ;;  %v15182_v15 = vld [vmem:[#allocation2 + $0x64] sm:$0xf]  ;;  %v13520_v45 = vld [vmem:[#allocation2 + $0x48] sm:$0xff]  }
 0x181   : > { %12787 = vmatmul.mubr.bf16.vlgmr.msra.gmra.mxu0 %v13515_v52  ;;  %v15175_v52 = vld [vmem:[#allocation2 + $0x5c] sm:$0x1]  ;;  %v4445_v47 = vsel %vm14017_vm7, %v4440_v12, %v4444_v34  ;;  %v4474_v14 = vshll.u32 %v4317_v43, 16  ;;  %v4480_v60 = vshll.u32 %v15166_v35, 16  ;;  %v4484_v63 = vshrl.u32 %v15166_v35, 16 }
 0x182   : > { %12867 = vmatpush3.bf16.msra.mxu0 %v14985_v51  ;;  %12790 = vmatprep.mubr.bf16.mxu0 %v13517_v24  ;;  %v4453_v51 = vor.u32 %v4452_v17, %v4449_v13  ;;  %v4468_v24 = vrot.slane %v4466_v32, 5  ;;  %v11654_v42 = vcombine.low %v4435_v4, %v4445_v47  ;;  %v4463_v58 = vor.u32 %v4462_v21, %v4458_v3  ;;  %v13525_v32 = vld [vmem:[#allocation6 + $0x220] sm:$0xff]   ;;  %v15192_v4 = vld [vmem:[#allocation2 + $0x68] sm:$0x1] }
 0x183   : > { %12868 = vmatprep.subr.bf16.mxu0 %v13519_v50  ;;  %v4473_v37 = vrot.slane %v4471_v23, 4  ;;  %v4490_v34 = vshll.u32 %v15175_v52, 16  ;;  %v4476_v25 = vrot.slane %v4474_v14, 5  ;;  %v4482_v0 = vrot.slane %v4480_v60, 5  ;;  %v4323_v14 = vld [vmem:[#allocation2 + $0x6c] sm:$0xf] }
 0x184   : > { %v4454_v59 = vrot.slane %v4453_v51, 4  ;;  %12839 = vmatmul.mubr.bf16.gmra.mxu1 %v11654_v42  ;;  %v4464_v5 = vrot.slane %v4463_v58, 4  ;;  %v15188_v43 = vadd.f32 %v15096_v55, %v15132_v56  ;;  %v4486_v13 = vrot.slane %v4484_v63, 4  ;;  %v15194_v21 = vpop.f32.mrf.mxu1  ;;  %v12513_v56 = vpop.f32.mrf.mxu0 }
 0x185   : > { %v4492_v17 = vrot.slane %v4490_v34, 5  ;;  %v4477_v47 = vor.u32 %v4476_v25, %v4473_v37  ;;  %v15199_v51 = vadd.f32 %v15124_v46, %v12512_v2  ;;  %v4495_v55 = vshrl.u32 %v4320_v11, 16  ;;  %v15204_v37 = vld [vmem:[#allocation2 + $0x70] sm:$0xf] }
 0x186   : > { %12869 = vmatpush3.bf16.msra.mxu0 %v13519_v50  ;;  %18993 = vst [vmem:[#allocation22_spill] sm:$0xff] %v15188_v43  ;;  %v4459_v12 = vsel %vm14017_vm7, %v4454_v59, %v4458_v3  ;;  %v4469_v50 = vsel %vm14017_vm7, %v4464_v5, %v4468_v24  ;;  %v4487_v42 = vor.u32 %v4486_v13, %v4482_v0  ;;  %v4498_v3 = vshll.u32 %v4320_v11, 16  ;;  %v15206_v46 = vpop.f32.mrf.mxu1 }
 0x187   : > { %12870 = vmatprep.subr.bf16.mxu0 %v13522_v29  ;;  %18994 = vst [vmem:[#allocation23_spill] sm:$0xff] %v15199_v51  ;;  %v11655_v23 = vcombine.low %v4459_v12, %v4469_v50  ;;  %v4504_v58 = vshll.u32 %v15182_v15, 16  ;;  %v4478_v60 = vrot.slane %v4477_v47, 4  ;;  %v4497_v59 = vrot.slane %v4495_v55, 4  ;;  %v15213_v12 = vld [vmem:[#allocation2 + $0x74] sm:$0x1]  ;;  %v1411_v50 = vpop.f32.mrf.mxu0 }
 0x188   : > { %v4508_v63 = vshrl.u32 %v15182_v15, 16  ;;  %v4514_v24 = vshll.u32 %v15192_v4, 16  ;;  %v4488_v2 = vrot.slane %v4487_v42, 4  ;;  %v15209_v34 = vadd.f32 %v15143_v33, %v1408_v16  ;;  %v13521_v47 = vld [vmem:[#allocation2 + $0x54] sm:$0xff]   ;;  %v13523_v16 = vld [vmem:[#allocation2 + $0x60] sm:$0xff]  }
 0x189   : > { %12791 = vmatmul.mubr.bf16.gmra.mxu0 %v13518_v38  ;;  %12842 = vmatprep.mubr.bf16.mxu1 %v11655_v23  ;;  %v4500_v38 = vrot.slane %v4498_v3, 5  ;;  %v4506_v11 = vrot.slane %v4504_v58, 5  ;;  %v4519_v13 = vshrl.u32 %v4323_v14, 16  ;;  %v4522_v42 = vshll.u32 %v4323_v14, 16 }
 0x18a   : > { %12794 = vmatprep.mubr.bf16.mxu0 %v13520_v45  ;;  %12871 = vmatpush3.bf16.msra.mxu0 %v13522_v29  ;;  %18995 = vst [vmem:[#allocation24_spill] sm:$0xff] %v15209_v34  ;;  %v13528_v45 = vld [vmem:[#allocation6 + $0x218] sm:$0xff]   ;;  %v4483_v29 = vsel %vm14017_vm7, %v4478_v60, %v4482_v0  ;;  %v4510_v5 = vrot.slane %v4508_v63, 4  ;;  %v4516_v25 = vrot.slane %v4514_v24, 5  ;;  %v4493_v55 = vsel %vm14017_vm7, %v4488_v2, %v4492_v17  ;;  %v15219_v60 = vpop.f32.mrf.mxu1  ;;  %v13531_v63 = vld [vmem:[#allocation6 + $0x210] sm:$0xff]  }
 0x18b   : > { %12872 = vmatprep.subr.bf16.mxu0 %v13525_v32  ;;  %v4501_v23 = vor.u32 %v4500_v38, %v4497_v59  ;;  %v4528_v3 = vshll.u32 %v15204_v37, 16  ;;  %v11656_v33 = vcombine.low %v4483_v29, %v4493_v55  ;;  %v4521_v40 = vrot.slane %v4519_v13, 4  ;;  %v4326_v17 = vld [vmem:[#allocation2 + $0x78] sm:$0xf]  ;;  %v15228_v29 = vld [vmem:[#allocation2 + $0x7c] sm:$0xf] }
 0x18c   : > { %v4511_v58 = vor.u32 %v4510_v5, %v4506_v11  ;;  %v4532_v0 = vshrl.u32 %v15204_v37, 16  ;;  %v4524_v49 = vrot.slane %v4522_v42, 5  ;;  %v4538_v28 = vshll.u32 %v15213_v12, 16  ;;  %v15235_v42 = vld [vmem:[#allocation2 + $0x80] sm:$0x1] }
 0x18d   : > { %v4502_v24 = vrot.slane %v4501_v23, 4  ;;  %v4530_v41 = vrot.slane %v4528_v3, 5  ;;  %12843 = vmatmul.mubr.bf16.gmra.mxu1 %v11656_v33  ;;  %v15223_v2 = vadd.f32 %v15161_v27, %v12513_v56  ;;  %v4543_v56 = vshrl.u32 %v4326_v17, 16  ;;  %v15239_v33 = vpop.f32.mrf.mxu1 }
 0x18e   : > { %12873 = vmatpush3.bf16.msra.mxu0 %v13525_v32  ;;  %v4512_v14 = vrot.slane %v4511_v58, 4  ;;  %v4534_v59 = vrot.slane %v4532_v0, 4  ;;  %v15226_v32 = vadd.f32 %v15179_v18, %v1411_v50  ;;  %v12516_v38 = vpop.f32.mrf.mxu0  ;;  %v4525_v13 = vor.u32 %v4524_v49, %v4521_v40  ;;  %18999 = vst [vmem:[#allocation28_spill] sm:$0xff] %v15239_v33  ;;  %v15243_v58 = vld [vmem:[#allocation2 + $0x88] sm:$0xf]  ;;  %v13526_v0 = vld [vmem:[#allocation2 + $0x78] sm:$0xff]  }
 0x18f   : > { %12874 = vmatprep.subr.bf16.mxu0 %v13528_v45  ;;  %18996 = vst [vmem:[#allocation25_spill] sm:$0xff] %v15223_v2  ;;  %v4507_v5 = vsel %vm14017_vm7, %v4502_v24, %v4506_v11  ;;  %v4540_v55 = vrot.slane %v4538_v28, 5  ;;  %v15233_v23 = vadd.f32 %v15194_v21, %v12516_v38  ;;  %v4546_v50 = vshll.u32 %v4326_v17, 16  ;;  %v13524_v11 = vld [vmem:[#allocation2 + $0x6c] sm:$0xff]   ;;  %v13537_v33 = vld [vmem:[#allocation6 + $0x200] sm:$0xff]  }
 0x190   : > { %18997 = vst [vmem:[#allocation26_spill] sm:$0xff] %v15226_v32  ;;  %v4517_v27 = vsel %vm14017_vm7, %v4512_v14, %v4516_v25  ;;  %v4535_v18 = vor.u32 %v4534_v59, %v4530_v41  ;;  %v1424_v3 = vpop.f32.mrf.mxu0  ;;  %v4526_v49 = vrot.slane %v4525_v13, 4  ;;  %v4552_v28 = vshll.u32 %v15228_v29, 16  ;;  %v15246_v14 = vld [vmem:[#allocation2 + $0x8c] sm:$0x1]  ;;  %v12568_v32 = vpop.f32.mrf.mxu1 }
 0x191   : > { %12795 = vmatmul.mubr.bf16.gmra.mxu0 %v13521_v47  ;;  %18998 = vst [vmem:[#allocation27_spill] sm:$0xff] %v15233_v23  ;;  %v4329_v47 = vld [vmem:[#allocation2 + $0x84] sm:$0xf]  ;;  %v11657_v40 = vcombine.low %v4507_v5, %v4517_v27  ;;  %v4556_v21 = vshrl.u32 %v15228_v29, 16  ;;  %v4545_v24 = vrot.slane %v4543_v56, 4  ;;  %v4548_v17 = vrot.slane %v4546_v50, 5 }
 0x192   : > { %12798 = vmatprep.mubr.bf16.mxu0 %v13523_v16  ;;  %12875 = vmatpush3.bf16.msra.mxu0 %v13528_v45  ;;  %v13534_v16 = vld [vmem:[#allocation6 + $0x208] sm:$0xff]   ;;  %v4536_v25 = vrot.slane %v4535_v18, 4  ;;  %v4562_v45 = vshll.u32 %v15235_v42, 16  ;;  %v12517_v59 = vpop.f32.mrf.mxu0  ;;  %v4531_v38 = vsel %vm14017_vm7, %v4526_v49, %v4530_v41  ;;  %v4554_v5 = vrot.slane %v4552_v28, 5  ;;  %v4332_v2 = vld [vmem:[#allocation2 + $0x90] sm:$0xf] }
 0x193   : > { %12876 = vmatprep.subr.bf16.mxu0 %v13531_v63  ;;  %12846 = vmatprep.mubr.bf16.mxu1 %v11657_v40  ;;  %v4558_v13 = vrot.slane %v4556_v21, 4  ;;  %v15251_v27 = vadd.f32 %v15206_v46, %v1424_v3  ;;  %v4549_v56 = vor.u32 %v4548_v17, %v4545_v24  ;;  %v4567_v9 = vshrl.u32 %v4329_v47, 16  ;;  %v15258_v28 = vld [vmem:[#allocation2 + $0x94] sm:$0xf]  ;;  %v15262_v24 = vld [vmem:[#allocation2 + $0x98] sm:$0x1] }
 0x194   : > { %v4541_v18 = vsel %vm14017_vm7, %v4536_v25, %v4540_v55  ;;  %v4564_v50 = vrot.slane %v4562_v45, 5  ;;  %v15255_v23 = vpop.f32.mrf.mxu0  ;;  %v4570_v41 = vshll.u32 %v4329_v47, 16  ;;  %v4576_v49 = vshll.u32 %v15243_v58, 16  ;;  %19002 = vst [vmem:[#allocation31_spill] sm:$0xff] %v15262_v24 }
 0x195   : > { %19000 = vst [vmem:[#allocation29_spill] sm:$0xff] %v15251_v27  ;;  %19001 = vst [vmem:[#allocation30_spill] sm:$0xff] %v15255_v23  ;;  %v11658_v40 = vcombine.low %v4531_v38, %v4541_v18  ;;  %v4559_v34 = vor.u32 %v4558_v13, %v4554_v5  ;;  %v4550_v46 = vrot.slane %v4549_v56, 4  ;;  %v4569_v3 = vrot.slane %v4567_v9, 4  ;;  %v1745_v18 = vpop.f32.mrf.mxu1  ;;  %v4335_v56 = vld [vmem:[#allocation2 + $0x9c] sm:$0xf] }
 0x196   : > { %12877 = vmatpush3.bf16.msra.mxu0 %v13531_v63  ;;  %v4580_v55 = vshrl.u32 %v15243_v58, 16  ;;  %v4586_v21 = vshll.u32 %v15246_v14, 16  ;;  %v12520_v25 = vpop.f32.mrf.mxu0  ;;  %v4572_v17 = vrot.slane %v4570_v41, 5  ;;  %v4578_v45 = vrot.slane %v4576_v49, 5  ;;  %v13527_v23 = vld [vmem:[#allocation2 + $0x84] sm:$0xff]  }
 0x197   : > { %12878 = vmatprep.subr.bf16.mxu0 %v13534_v16  ;;  %12847 = vmatmul.mubr.bf16.gmra.mxu1 %v11658_v40  ;;  %v4560_v63 = vrot.slane %v4559_v34, 4  ;;  %v15265_v47 = vadd.f32 %v15219_v60, %v12517_v59  ;;  %v4555_v38 = vsel %vm14017_vm7, %v4550_v46, %v4554_v5  ;;  %v15271_v34 = vadd.f32 %v12568_v32, %v12520_v25  ;;  %v15273_v60 = vld [vmem:[#allocation2 + $0xa0] sm:$0xf] }
 0x198   : > { %v4582_v9 = vrot.slane %v4580_v55, 4  ;;  %v4588_v13 = vrot.slane %v4586_v21, 5  ;;  %v4573_v40 = vor.u32 %v4572_v17, %v4569_v3  ;;  %v4591_v41 = vshrl.u32 %v4332_v2, 16  ;;  %v1440_v49 = vpop.f32.mrf.mxu0  ;;  %v13529_v3 = vld [vmem:[#allocation2 + $0x90] sm:$0xff]  }
 0x199   : > { %12799 = vmatmul.mubr.bf16.gmra.mxu0 %v13524_v11  ;;  %19003 = vst [vmem:[#allocation32_spill] sm:$0xff] %v15265_v47  ;;  %v4565_v11 = vsel %vm14017_vm7, %v4560_v63, %v4564_v50  ;;  %19004 = vst [vmem:[#allocation33_spill] sm:$0xff] %v15271_v34  ;;  %v4594_v5 = vshll.u32 %v4332_v2, 16  ;;  %v4600_v46 = vshll.u32 %v15258_v28, 16  ;;  %v4610_v47 = vshll.u32 %v15262_v24, 16 }
 0x19a   : > { %12802 = vmatprep.mubr.bf16.mxu0 %v13526_v0  ;;  %12879 = vmatpush3.bf16.msra.mxu0 %v13534_v16  ;;  %v11659_v0 = vcombine.low %v4555_v38, %v4565_v11  ;;  %v4583_v59 = vor.u32 %v4582_v9, %v4578_v45  ;;  %v4574_v55 = vrot.slane %v4573_v40, 4  ;;  %v4593_v21 = vrot.slane %v4591_v41, 4  ;;  %v15278_v50 = vld [vmem:[#allocation2 + $0xa4] sm:$0x1]  ;;  %v12569_v38 = vpop.f32.mrf.mxu1  ;;  %v4338_v41 = vld [vmem:[#allocation2 + $0xa8] sm:$0xf] }
 0x19b   : > { %12880 = vmatprep.subr.bf16.mxu0 %v13537_v33  ;;  %v4604_v16 = vshrl.u32 %v15258_v28, 16  ;;  %19005 = vst [vmem:[#allocation34_spill] sm:$0xff] %v15278_v50  ;;  %v4596_v25 = vrot.slane %v4594_v5, 5  ;;  %v4602_v63 = vrot.slane %v4600_v46, 5  ;;  %v15280_v17 = vadd.f32 %v1745_v18, %v1440_v49  ;;  %v12521_v5 = vpop.f32.mrf.mxu0  ;;  %v15287_v46 = vld [vmem:[#allocation2 + $0xac] sm:$0xf] }
 0x19c   : > { %12850 = vmatprep.mubr.bf16.mxu1 %v11659_v0  ;;  %v4584_v32 = vrot.slane %v4583_v59, 4  ;;  %v4579_v2 = vsel %vm14017_vm7, %v4574_v55, %v4578_v45  ;;  %v4612_v11 = vrot.slane %v4610_v47, 5  ;;  %v4615_v40 = vshrl.u32 %v4335_v56, 16 }
 0x19d   : > { %19006 = vst [vmem:[#allocation35_spill] sm:$0xff] %v15280_v17  ;;  %v4606_v9 = vrot.slane %v4604_v16, 4  ;;  %v4597_v27 = vor.u32 %v4596_v25, %v4593_v21  ;;  %v4618_v0 = vshll.u32 %v4335_v56, 16  ;;  %v4624_v59 = vshll.u32 %v15273_v60, 16  ;;  %v15293_v56 = vld [vmem:[#allocation2 + $0xb0] sm:$0x1] }
 0x19e   : > { %12881 = vmatpush3.bf16.msra.mxu0 %v13537_v33  ;;  %v4589_v34 = vsel %vm14017_vm7, %v4584_v32, %v4588_v13  ;;  %v4617_v49 = vrot.slane %v4615_v40, 4  ;;  %v4628_v45 = vshrl.u32 %v15273_v60, 16  ;;  %v4634_v17 = vshll.u32 %v15278_v50, 16  ;;  %v15291_v13 = vpop.f32.mrf.mxu1  ;;  %19008 = vst [vmem:[#allocation37_spill] sm:$0xff] %v15293_v56  ;;  %v13530_v21 = vld [vmem:[#allocation2 + $0x9c] sm:$0xff]  }
 0x19f   : > { %v11660_v18 = vcombine.low %v4579_v2, %v4589_v34  ;;  %v4607_v33 = vor.u32 %v4606_v9, %v4602_v63  ;;  %v4598_v47 = vrot.slane %v4597_v27, 4  ;;  %v4620_v55 = vrot.slane %v4618_v0, 5  ;;  %19007 = vst [vmem:[#allocation36_spill] sm:$0xff] %v15291_v13  ;;  %v4341_v34 = vld [vmem:[#allocation2 + $0xb4] sm:$0xf] }
 0x1a0   : > { %v4626_v16 = vrot.slane %v4624_v59, 5  ;;  %v4630_v25 = vrot.slane %v4628_v45, 4  ;;  %v4636_v27 = vrot.slane %v4634_v17, 5  ;;  %v4639_v9 = vshrl.u32 %v4338_v41, 16  ;;  %v15299_v40 = vld [vmem:[#allocation2 + $0xb8] sm:$0xf] }
 0x1a1   : > { %12803 = vmatmul.mubr.bf16.gmra.mxu0 %v13527_v23  ;;  %12851 = vmatmul.mubr.bf16.gmra.mxu1 %v11660_v18  ;;  %v4608_v32 = vrot.slane %v4607_v33, 4  ;;  %v15295_v23 = vadd.f32 %v12569_v38, %v12521_v5  ;;  %v4603_v2 = vsel %vm14017_vm7, %v4598_v47, %v4602_v63  ;;  %19010 = vst [vmem:[#allocation39_spill] sm:$0xff] %v15299_v40  ;;  %v4642_v13 = vshll.u32 %v4338_v41, 16  ;;  %v13532_v38 = vld [vmem:[#allocation2 + $0xa8] sm:$0xff]   ;;  %v15305_v63 = vld [vmem:[#allocation2 + $0xbc] sm:$0x1] }
 0x1a2   : > { %12806 = vmatprep.mubr.bf16.mxu0 %v13529_v3  ;;  %v4621_v3 = vor.u32 %v4620_v55, %v4617_v49  ;;  %v4631_v59 = vor.u32 %v4630_v25, %v4626_v16  ;;  %v4648_v18 = vshll.u32 %v15287_v46, 16  ;;  %v4652_v51 = vshrl.u32 %v15287_v46, 16  ;;  %19011 = vst [vmem:[#allocation40_spill] sm:$0xff] %v15305_v63  ;;  %v4344_v50 = vld [vmem:[#allocation2 + $0xc0] sm:$0xf] }
 0x1a3   : > { %19009 = vst [vmem:[#allocation38_spill] sm:$0xff] %v15295_v23  ;;  %v4613_v0 = vsel %vm14017_vm7, %v4608_v32, %v4612_v11  ;;  %v4641_v23 = vrot.slane %v4639_v9, 4  ;;  %v4644_v49 = vrot.slane %v4642_v13, 5  ;;  %v4658_v55 = vshll.u32 %v15293_v56, 16 }
 0x1a4   : > { %v11661_v33 = vcombine.low %v4603_v2, %v4613_v0  ;;  %v4622_v45 = vrot.slane %v4621_v3, 4  ;;  %v12572_v5 = vpop.f32.mrf.mxu1  ;;  %v4632_v17 = vrot.slane %v4631_v59, 4  ;;  %v4650_v47 = vrot.slane %v4648_v18, 5  ;;  %v15310_v3 = vld [vmem:[#allocation2 + $0xc4] sm:$0xf] }
 0x1a5   : > { %v4654_v41 = vrot.slane %v4652_v51, 4  ;;  %v4663_v25 = vshrl.u32 %v4341_v34, 16  ;;  %v4666_v2 = vshll.u32 %v4341_v34, 16  ;;  %v4645_v0 = vor.u32 %v4644_v49, %v4641_v23  ;;  %v15315_v51 = vpop.f32.mrf.mxu0 }
 0x1a6   : > { %12854 = vmatprep.mubr.bf16.mxu1 %v11661_v33  ;;  %v4627_v11 = vsel %vm14017_vm7, %v4622_v45, %v4626_v16  ;;  %v1761_v32 = vpop.f32.mrf.mxu1  ;;  %v4637_v9 = vsel %vm14017_vm7, %v4632_v17, %v4636_v27  ;;  %v4660_v13 = vrot.slane %v4658_v55, 5  ;;  %v4672_v59 = vshll.u32 %v15299_v40, 16  ;;  %19012 = vst [vmem:[#allocation41_spill] sm:$0xff] %v15315_v51  ;;  %v4347_v55 = vld [vmem:[#allocation2 + $0xcc] sm:$0xf] }
 0x1a7   : > { %v11662_v18 = vcombine.low %v4627_v11, %v4637_v9  ;;  %v4655_v33 = vor.u32 %v4654_v41, %v4650_v47  ;;  %v4665_v56 = vrot.slane %v4663_v25, 4  ;;  %v4668_v24 = vrot.slane %v4666_v2, 5  ;;  %v13533_v11 = vld [vmem:[#allocation2 + $0xb4] sm:$0xff]  }
 0x1a8   : > { %v12573_v16 = vpop.f32.mrf.mxu1  ;;  %v4646_v45 = vrot.slane %v4645_v0, 4  ;;  %v4674_v34 = vrot.slane %v4672_v59, 5  ;;  %v4676_v43 = vshrl.u32 %v15299_v40, 16  ;;  %v4690_v49 = vshll.u32 %v4344_v50, 16  ;;  %v15326_v0 = vld [vmem:[#allocation2 + $0xd0] sm:$0xf] }
 0x1a9   : > { %12807 = vmatmul.mubr.bf16.gmra.mxu0 %v13530_v21  ;;  %v4682_v21 = vshll.u32 %v15305_v63, 16  ;;  %12855 = vmatmul.mubr.bf16.gmra.mxu1 %v11662_v18  ;;  %v4656_v23 = vrot.slane %v4655_v33, 4  ;;  %v4669_v27 = vor.u32 %v4668_v24, %v4665_v56  ;;  %v4696_v9 = vshll.u32 %v15310_v3, 16  ;;  %v13535_v24 = vld [vmem:[#allocation2 + $0xc0] sm:$0xff]  }
 0x1aa   : > { %12810 = vmatprep.mubr.bf16.mxu0 %v13532_v38  ;;  %v15321_v17 = vpop.f32.mrf.mxu1  ;;  %v4687_v38 = vshrl.u32 %v4344_v50, 16  ;;  %v4651_v41 = vsel %vm14017_vm7, %v4646_v45, %v4650_v47  ;;  %v4678_v25 = vrot.slane %v4676_v43, 4  ;;  %v4692_v33 = vrot.slane %v4690_v49, 5 }
 0x1ab   : > { %19014 = vst [vmem:[#allocation43_spill] sm:$0xff] %v15321_v17  ;;  %v4684_v2 = vrot.slane %v4682_v21, 5  ;;  %v4661_v59 = vsel %vm14017_vm7, %v4656_v23, %v4660_v13  ;;  %v4670_v18 = vrot.slane %v4669_v27, 4  ;;  %v4698_v63 = vrot.slane %v4696_v9, 5  ;;  %v15336_v13 = vld [vmem:[#allocation2 + $0xd4] sm:$0x1] }
 0x1ac   : > { %v4689_v56 = vrot.slane %v4687_v38, 4  ;;  %v11663_v50 = vcombine.low %v4651_v41, %v4661_v59  ;;  %v4679_v51 = vor.u32 %v4678_v25, %v4674_v34  ;;  %v4700_v40 = vshrl.u32 %v15310_v3, 16  ;;  %19016 = vst [vmem:[#allocation45_spill] sm:$0xff] %v15336_v13  ;;  %v5056_v25 = vld [vmem:[#allocation2 + $0x18] sm:$0xe] }
 0x1ad   : > { %v12524_v17 = vpop.f32.mrf.mxu0  ;;  %v4675_v43 = vsel %vm14017_vm7, %v4670_v18, %v4674_v34  ;;  %v4706_v8 = vshll.u32 %v15319_v26, 16  ;;  %v4711_v49 = vshrl.u32 %v4347_v55, 16  ;;  %v4714_v41 = vshll.u32 %v4347_v55, 16 }
 0x1ae   : > { %v15331_v47 = vadd.f32 %v12572_v5, %v12524_v17  ;;  %v12576_v45 = vpop.f32.mrf.mxu1  ;;  %v4693_v21 = vor.u32 %v4692_v33, %v4689_v56  ;;  %12858 = vmatprep.mubr.bf16.mxu1 %v11663_v50  ;;  %v4680_v27 = vrot.slane %v4679_v51, 4  ;;  %v4702_v38 = vrot.slane %v4700_v40, 4  ;;  %v5057_v51 = vld [vmem:[#allocation2 + $0x24] sm:$0xe] }
 0x1af   : > { %v1456_v23 = vpop.f32.mrf.mxu0  ;;  %v4708_v17 = vrot.slane %v4706_v8, 5  ;;  %v4720_v59 = vshll.u32 %v15326_v0, 16  ;;  %v4713_v33 = vrot.slane %v4711_v49, 4  ;;  %v4716_v50 = vrot.slane %v4714_v41, 5  ;;  %v5058_v8 = vld [vmem:[#allocation2 + $0x30] sm:$0xe] }
 0x1b0   : > { %19015 = vst [vmem:[#allocation44_spill] sm:$0xff] %v15331_v47  ;;  %v15338_v9 = vadd.f32 %v1761_v32, %v1456_v23  ;;  %v4694_v5 = vrot.slane %v4693_v21, 4  ;;  %v1777_v34 = vpop.f32.mrf.mxu1  ;;  %v4685_v18 = vsel %vm14017_vm7, %v4680_v27, %v4684_v2  ;;  %v13536_v23 = vld [vmem:[#allocation2 + $0xcc] sm:$0xff]   ;;  %v4724_v2 = vshrl.u32 %v15326_v0, 16  ;;  %v13673_v49 = vld [vmem:[#allocation2 + $0x1c] sm:$0xf] }
 0x1b1   : > { %12811 = vmatmul.mubr.bf16.gmra.mxu0 %v13533_v11  ;;  %v12525_v56 = vpop.f32.mrf.mxu0  ;;  %v4703_v11 = vor.u32 %v4702_v38, %v4698_v63  ;;  %v11664_v40 = vcombine.low %v4675_v43, %v4685_v18  ;;  %v4722_v55 = vrot.slane %v4720_v59, 5  ;;  %v4717_v26 = vor.u32 %v4716_v50, %v4713_v33  ;;  %v13674_v41 = vld [vmem:[#allocation2 + $0x20] sm:$0x1]  ;;  %v5059_v33 = vld [vmem:[#allocation2 + $0x3c] sm:$0xe] }
 0x1b2   : > { %19017 = vst [vmem:[#allocation46_spill] sm:$0xff] %v15338_v9  ;;  %12814 = vmatprep.mubr.bf16.mxu0 %v13535_v24  ;;  %v15343_v47 = vadd.f32 %v12573_v16, %v12525_v56  ;;  %v4699_v32 = vsel %vm14017_vm7, %v4694_v5, %v4698_v63  ;;  %v12577_v24 = vpop.f32.mrf.mxu1  ;;  %v4730_v27 = vshll.u32 %v15336_v13, 16  ;;  %v5132_v38 = vrot.slane %v15094_v22, 5 }
 0x1b3   : > { %v15347_v21 = vpop.f32.mrf.mxu0  ;;  %v4704_v9 = vrot.slane %v4703_v11, 4  ;;  %12859 = vmatmul.mubr.bf16.gmra.mxu1 %v11664_v40  ;;  %v11675_v43 = vrot.slane %v5056_v25, 9  ;;  %v5122_v63 = vrot.slane %v13673_v49, 5  ;;  %v5125_v5 = vrot.slane %v13674_v41, 5  ;;  %v13675_v41 = vld [vmem:[#allocation2 + $0x28] sm:$0xf] }
 0x1b4   : > { %19018 = vst [vmem:[#allocation47_spill] sm:$0xff] %v15343_v47  ;;  %19019 = vst [vmem:[#allocation48_spill] sm:$0xff] %v15347_v21  ;;  %v15352_v16 = vpop.f32.mrf.mxu1  ;;  %v4718_v18 = vrot.slane %v4717_v26, 4  ;;  %v4726_v56 = vrot.slane %v4724_v2, 4  ;;  %v4732_v11 = vrot.slane %v4730_v27, 5  ;;  %v11676_v40 = vrot.slane %v5057_v51, 9 }
 0x1b5   : > { %19020 = vst [vmem:[#allocation49_spill] sm:$0xff] %v15352_v16  ;;  %v4709_v59 = vsel %vm14017_vm7, %v4704_v9, %v4708_v17  ;;  %v5123_v21 = vsel %vm14306_vm13, %v11675_v43, %v5122_v63  ;;  %v5124_v22 = vrot.slane %v5122_v63, 4  ;;  %v5129_v13 = vrot.slane %v13675_v41, 5  ;;  %v13676_v2 = vld [vmem:[#allocation2 + $0x34] sm:$0xf] }
 0x1b6   : > { %v11665_v50 = vcombine.low %v4699_v32, %v4709_v59  ;;  %v12644_v47 = vpop.f32.mrf.mxu1  ;;  %v12528_v16 = vpop.f32.mrf.mxu0  ;;  %v4723_v25 = vsel %vm14017_vm7, %v4718_v18, %v4722_v55  ;;  %v4727_v49 = vor.u32 %v4726_v56, %v4722_v55  ;;  %v11677_v9 = vrot.slane %v5058_v8, 9  ;;  %v5060_v43 = vld [vmem:[#allocation2 + $0x48] sm:$0xe] }
 0x1b7   : > { %v15360_v26 = vadd.f32 %v12576_v45, %v12528_v16  ;;  %v5126_v17 = vsel %vm14306_vm13, %v5124_v22, %v5125_v5  ;;  %v5136_v27 = vrot.slane %v13676_v2, 5  ;;  %v5139_v51 = vrot.slane %v15103_v19, 5 }
 0x1b8   : > { %12862 = vmatprep.mubr.bf16.mxu1 %v11665_v50  ;;  %v2504_v32 = vpop.f32.mrf.mxu1  ;;  %v4728_v63 = vrot.slane %v4727_v49, 4  ;;  %v11691_v59 = vcombine.low %v5123_v21, %v5126_v17  ;;  %v5130_v55 = vsel %vm14306_vm13, %v11676_v40, %v5129_v13  ;;  %v5131_v18 = vrot.slane %v5129_v13, 4 }
 0x1b9   : > { %12815 = vmatmul.mubr.bf16.gmra.mxu0 %v13536_v23  ;;  %v1472_v23 = vpop.f32.mrf.mxu0  ;;  %v5137_v16 = vsel %vm14306_vm13, %v11677_v9, %v5136_v27  ;;  %v5138_v5 = vrot.slane %v5136_v27, 4  ;;  %v11678_v56 = vrot.slane %v5059_v33, 9  ;;  %v5143_v22 = vrot.slane %v15122_v36, 5  ;;  %v5061_v27 = vld [vmem:[#allocation2 + $0x54] sm:$0xe] }
 0x1ba   : > { %v15367_v8 = vadd.f32 %v1777_v34, %v1472_v23  ;;  %v12645_v45 = vpop.f32.mrf.mxu1  ;;  %v4733_v50 = vsel %vm14017_vm7, %v4728_v63, %v4732_v11  ;;  %12882 = vmatprep.mubr.bf16.mxu0 %v11691_v59  ;;  %v5133_v21 = vsel %vm14306_vm13, %v5131_v18, %v5132_v38  ;;  %v5146_v13 = vrot.slane %v15130_v61, 5 }
 0x1bb   : > { %v12529_v19 = vpop.f32.mrf.mxu0  ;;  %v11666_v34 = vcombine.low %v4723_v25, %v4733_v50  ;;  %v11692_v49 = vcombine.low %v5130_v55, %v5133_v21  ;;  %v5140_v41 = vsel %vm14306_vm13, %v5138_v5, %v5139_v51  ;;  %v5145_v17 = vrot.slane %v5143_v22, 4 }
 0x1bc   : > { %v15377_v40 = vadd.f32 %v12577_v24, %v12529_v19  ;;  %v15381_v33 = vpop.f32.mrf.mxu1  ;;  %v11693_v11 = vcombine.low %v5137_v16, %v5140_v41  ;;  %v11679_v2 = vrot.slane %v5060_v43, 9  ;;  %v5150_v36 = vrot.slane %v15141_v62, 5 }
 0x1bd   : > { %v15383_v9 = vpop.f32.mrf.mxu0  ;;  %12863 = vmatmul.mubr.bf16.gmra.mxu1 %v11666_v34  ;;  %v5153_v61 = vrot.slane %v15149_v30, 5  ;;  %v5144_v24 = vsel %vm14306_vm13, %v11678_v56, %v5143_v22  ;;  %v5147_v23 = vsel %vm14306_vm13, %v5145_v17, %v5146_v13  ;;  %v5157_v59 = vrot.slane %v15166_v35, 5  ;;  %v5062_v56 = vld [vmem:[#allocation2 + $0x60] sm:$0xe] }
 0x1be   : > { %19021 = vst [vmem:[#allocation50_spill] sm:$0xff] %v15383_v9  ;;  %v12648_v38 = vpop.f32.mrf.mxu1  ;;  %v5152_v43 = vrot.slane %v5150_v36, 4  ;;  %v5151_v62 = vsel %vm14306_vm13, %v11679_v2, %v5150_v36  ;;  %v5164_v30 = vrot.slane %v15182_v15, 5  ;;  %v11694_v19 = vcombine.low %v5144_v24, %v5147_v23 }
 0x1bf   : > { %v12596_v25 = vpop.f32.mrf.mxu0  ;;  %v11680_v21 = vrot.slane %v5061_v27, 9  ;;  %v5160_v35 = vrot.slane %v15175_v52, 5  ;;  %v5063_v52 = vld [vmem:[#allocation2 + $0x6c] sm:$0xe]  ;;  %v5171_v27 = vrot.slane %v15204_v37, 5  ;;  %v5178_v23 = vrot.slane %v15228_v29, 5 }
 0x1c0   : > { %v2247_v51 = vadd.f32 %v12596_v25, %v15070_v10  ;;  %v2520_v63 = vpop.f32.mrf.mxu1  ;;  %v5154_v10 = vsel %vm14306_vm13, %v5152_v43, %v5153_v61  ;;  %v5166_v41 = vrot.slane %v5164_v30, 4  ;;  %v5064_v61 = vld [vmem:[#allocation2 + $0x78] sm:$0xe]  ;;  %v11682_v37 = vrot.slane %v5063_v52, 9 }
 0x1c1   : > { %12883 = vmatmul.mubr.bf16.vlgmr.msra.gmra.mxu0 %v11692_v49  ;;  %v2118_v55 = vpop.f32.mrf.mxu0  ;;  %v11695_v34 = vcombine.low %v5151_v62, %v5154_v10  ;;  %v11681_v49 = vrot.slane %v5062_v56, 9  ;;  %v5174_v10 = vrot.slane %v15213_v12, 5  ;;  %v11683_v56 = vrot.slane %v5064_v61, 9  ;;  %v15452_v61 = vld [vmem:[#allocation2 + $0xa8] sm:$0xe] }
 0x1c2   : > { %12886 = vmatprep.mubr.bf16.mxu0 %v11693_v11  ;;  %v2245_v18 = vadd.f32 %v2118_v55, %v15089_v6  ;;  %v15397_v16 = vadd.f32 %v12644_v47, %v2247_v51  ;;  %v12649_v5 = vpop.f32.mrf.mxu1  ;;  %v5159_v6 = vrot.slane %v5157_v59, 4  ;;  %v5167_v11 = vrot.slane %v15192_v4, 5 }
 0x1c3   : > { %v12597_v50 = vpop.f32.mrf.mxu0 }
 0x1c4   : > { %v2248_v22 = vadd.f32 %v12597_v50, %v15111_v53  ;;  %v15403_v13 = vadd.f32 %v2504_v32, %v2245_v18  ;;  %v15405_v15 = vpop.f32.mrf.mxu1  ;;  %v5158_v32 = vsel %vm14306_vm13, %v11680_v21, %v5157_v59  ;;  %v5161_v25 = vsel %vm14306_vm13, %v5159_v6, %v5160_v35 }
 0x1c5   : > { %v15407_v47 = vpop.f32.mrf.mxu0  ;;  %v5168_v51 = vsel %vm14306_vm13, %v5166_v41, %v5167_v11  ;;  %v11696_v18 = vcombine.low %v5158_v32, %v5161_v25  ;;  %v5173_v21 = vrot.slane %v5171_v27, 4  ;;  %v15445_v11 = vld [vmem:[#allocation2 + $0x9c] sm:$0xe] }
 0x1c6   : > { %v15410_v17 = vadd.f32 %v12645_v45, %v2248_v22  ;;  %v12652_v2 = vpop.f32.mrf.mxu1  ;;  %v5165_v45 = vsel %vm14306_vm13, %v11681_v49, %v5164_v30  ;;  %v5172_v49 = vsel %vm14306_vm13, %v11682_v37, %v5171_v27  ;;  %v5188_v27 = vrot.slane %v15246_v14, 5  ;;  %v19024_v37 = vld [vmem:[#allocation22_spill] sm:$0xff] }
 0x1c7   : > { %v12600_v36 = vpop.f32.mrf.mxu0  ;;  %v5175_v41 = vsel %vm14306_vm13, %v5173_v21, %v5174_v10  ;;  %v11686_v21 = vrot.slane %v15445_v11, 9 }
 0x1c8   : > { %v2251_v53 = vadd.f32 %v12600_v36, %v15119_v54  ;;  %v2536_v24 = vpop.f32.mrf.mxu1  ;;  %v1685_v54 = vadd.f32 %v15049_v48, %v15083_v20  ;;  %v5065_v48 = vld [vmem:[#allocation2 + $0x84] sm:$0xe]  ;;  %v5179_v36 = vsel %vm14306_vm13, %v11683_v56, %v5178_v23 }
 0x1c9   : > { %12887 = vmatmul.mubr.bf16.gmra.mxu0 %v11694_v19  ;;  %v2134_v4 = vpop.f32.mrf.mxu0  ;;  %v11697_v19 = vcombine.low %v5165_v45, %v5168_v51  ;;  %v11684_v52 = vrot.slane %v5065_v48, 9  ;;  %v11698_v51 = vcombine.low %v5172_v49, %v5175_v41  ;;  %v19026_v48 = vld [vmem:[#allocation34_spill] sm:$0xff]  ;;  %v19027_v49 = vld [vmem:[#allocation37_spill] sm:$0xff] }
 0x1ca   : > { %12890 = vmatprep.mubr.bf16.mxu0 %v11695_v34  ;;  %v2249_v43 = vadd.f32 %v2134_v4, %v15128_v44  ;;  %v15426_v59 = vadd.f32 %v12648_v38, %v2251_v53  ;;  %v12653_v55 = vpop.f32.mrf.mxu1  ;;  %v5180_v44 = vrot.slane %v5178_v23, 4  ;;  %v5181_v38 = vrot.slane %v15235_v42, 5 }
 0x1cb   : > { %v12601_v62 = vpop.f32.mrf.mxu0  ;;  %v5199_v4 = vrot.slane %v15273_v60, 5  ;;  %v5209_v41 = vrot.slane %v19027_v49, 5  ;;  %v19034_v49 = vld [vmem:[#allocation27_spill] sm:$0xff] }
 0x1cc   : > { %v2252_v30 = vadd.f32 %v12601_v62, %v15147_v39  ;;  %v15430_v50 = vadd.f32 %v2520_v63, %v2249_v43  ;;  %v15432_v29 = vpop.f32.mrf.mxu1  ;;  %v5185_v39 = vrot.slane %v15243_v58, 5  ;;  %v5066_v63 = vld [vmem:[#allocation2 + $0x90] sm:$0xe]  ;;  %v5182_v58 = vsel %vm14306_vm13, %v5180_v44, %v5181_v38  ;;  %v19022_v62 = vld [vmem:[#allocation21_spill] sm:$0xff] }
 0x1cd   : > { %v2137_v20 = vpop.f32.mrf.mxu0  ;;  %v5206_v43 = vrot.slane %v15287_v46, 5 }
 0x1ce   : > { %v15435_v35 = vadd.f32 %v2137_v20, %v1685_v54  ;;  %v15437_v22 = vadd.f32 %v12649_v5, %v2252_v30  ;;  %v12656_v34 = vpop.f32.mrf.mxu1  ;;  %v5187_v23 = vrot.slane %v5185_v39, 4  ;;  %v11685_v54 = vrot.slane %v5066_v63, 9 }
 0x1cf   : > { %v12604_v12 = vpop.f32.mrf.mxu0  ;;  %v5202_v20 = vrot.slane %v19026_v48, 5  ;;  %v5186_v11 = vsel %vm14306_vm13, %v11684_v52, %v5185_v39 }
 0x1d0   : > { %v2255_v6 = vadd.f32 %v12604_v12, %v15157_v7  ;;  %v2552_v42 = vpop.f32.mrf.mxu1  ;;  %v5192_v7 = vrot.slane %v15258_v28, 5  ;;  %v5201_v12 = vrot.slane %v5199_v4, 4 }
 0x1d1   : > { %12891 = vmatmul.mubr.bf16.gmra.mxu0 %v11696_v18  ;;  %v2150_v5 = vpop.f32.mrf.mxu0  ;;  %v19023_v18 = vld [vmem:[#allocation20_spill] sm:$0xff] }
 0x1d2   : > { %12894 = vmatprep.mubr.bf16.mxu0 %v11697_v19  ;;  %v2253_v53 = vadd.f32 %v2150_v5, %v15173_v57  ;;  %v15455_v32 = vadd.f32 %v12652_v2, %v2255_v6  ;;  %v12657_v25 = vpop.f32.mrf.mxu1  ;;  %v1701_v28 = vadd.f32 %v19023_v18, %v19022_v62  ;;  %v11699_v57 = vcombine.low %v5179_v36, %v5182_v58  ;;  %v19025_v19 = vld [vmem:[#allocation31_spill] sm:$0xff] }
 0x1d3   : > { %v12605_v45 = vpop.f32.mrf.mxu0  ;;  %v5194_v14 = vrot.slane %v5192_v7, 4  ;;  %v5195_v60 = vrot.slane %v19025_v19, 5  ;;  %v5208_v6 = vrot.slane %v5206_v43, 4  ;;  %v19028_v5 = vld [vmem:[#allocation23_spill] sm:$0xff]  ;;  %v5189_v58 = vsel %vm14306_vm13, %v5187_v23, %v5188_v27  ;;  %v19031_v27 = vld [vmem:[#allocation25_spill] sm:$0xff] }
 0x1d4   : > { %v2256_v10 = vadd.f32 %v12605_v45, %v19024_v37  ;;  %v15463_v56 = vadd.f32 %v2536_v24, %v2253_v53  ;;  %v15465_v2 = vpop.f32.mrf.mxu1  ;;  %v11687_v24 = vrot.slane %v15452_v61, 9  ;;  %v5193_v45 = vsel %vm14306_vm13, %v11685_v54, %v5192_v7 }
 0x1d5   : > { %v2153_v30 = vpop.f32.mrf.mxu0  ;;  %v5196_v61 = vsel %vm14306_vm13, %v5194_v14, %v5195_v60  ;;  %v5220_v18 = vrot.slane %v15310_v3, 5  ;;  %v19033_v14 = vld [vmem:[#allocation26_spill] sm:$0xff] }
 0x1d6   : > { %v15470_v44 = vadd.f32 %v2153_v30, %v1701_v28  ;;  %v15472_v46 = vadd.f32 %v12653_v55, %v2256_v10  ;;  %v12660_v38 = vpop.f32.mrf.mxu1  ;;  %v19030_v28 = vld [vmem:[#allocation24_spill] sm:$0xff]  ;;  %v11701_v19 = vcombine.low %v5193_v45, %v5196_v61  ;;  %v19035_v45 = vld [vmem:[#allocation29_spill] sm:$0xff] }
 0x1d7   : > { %v12608_v63 = vpop.f32.mrf.mxu0 }
 0x1d8   : > { %v2259_v36 = vadd.f32 %v12608_v63, %v19028_v5  ;;  %v2568_v55 = vpop.f32.mrf.mxu1  ;;  %v5069_v63 = vld [vmem:[#allocation2 + $0xb4] sm:$0xe] }
 0x1d9   : > { %12895 = vmatmul.mubr.bf16.gmra.mxu0 %v11698_v51  ;;  %v2166_v53 = vpop.f32.mrf.mxu0  ;;  %v19029_v51 = vld [vmem:[#allocation39_spill] sm:$0xff] }
 0x1da   : > { %12898 = vmatprep.mubr.bf16.mxu0 %v11699_v57  ;;  %v5213_v62 = vrot.slane %v19029_v51, 5  ;;  %v2257_v37 = vadd.f32 %v2166_v53, %v19030_v28  ;;  %v15488_v10 = vadd.f32 %v12656_v34, %v2259_v36  ;;  %v12661_v39 = vpop.f32.mrf.mxu1  ;;  %v11700_v57 = vcombine.low %v5186_v11, %v5189_v58 }
 0x1db   : > { %v12609_v52 = vpop.f32.mrf.mxu0  ;;  %v5203_v36 = vsel %vm14306_vm13, %v5201_v12, %v5202_v20  ;;  %v5207_v53 = vsel %vm14306_vm13, %v11687_v24, %v5206_v43  ;;  %v19037_v20 = vld [vmem:[#allocation32_spill] sm:$0xff] }
 0x1dc   : > { %v2260_v23 = vadd.f32 %v12609_v52, %v19031_v27  ;;  %v15491_v30 = vadd.f32 %v2552_v42, %v2257_v37  ;;  %v15493_v7 = vpop.f32.mrf.mxu1  ;;  %v5200_v42 = vsel %vm14306_vm13, %v11686_v21, %v5199_v4  ;;  %v5070_v37 = vld [vmem:[#allocation2 + $0xc0] sm:$0xe]  ;;  %v11688_v4 = vrot.slane %v5069_v63, 9  ;;  %v19036_v21 = vld [vmem:[#allocation40_spill] sm:$0xff] }
 0x1dd   : > { %19032 = vst [vmem:[#allocation21_spill] sm:$0xff] %v15493_v7  ;;  %v2169_v54 = vpop.f32.mrf.mxu0  ;;  %v5216_v27 = vrot.slane %v19036_v21, 5  ;;  %v5215_v24 = vrot.slane %v5213_v62, 4 }
 0x1de   : > { %v15496_v60 = vadd.f32 %v2169_v54, %v19033_v14  ;;  %v15498_v48 = vadd.f32 %v12657_v25, %v2260_v23  ;;  %v12664_v3 = vpop.f32.mrf.mxu1  ;;  %v5210_v25 = vsel %vm14306_vm13, %v5208_v6, %v5209_v41  ;;  %v11689_v41 = vrot.slane %v5070_v37, 9  ;;  %v19039_v54 = vld [vmem:[#allocation42_spill] sm:$0xff]  ;;  %v19041_v37 = vld [vmem:[#allocation35_spill] sm:$0xff] }
 0x1df   : > { %v12612_v34 = vpop.f32.mrf.mxu0  ;;  %v5223_v14 = vrot.slane %v19039_v54, 5 }
 0x1e0   : > { %v2263_v5 = vadd.f32 %v12612_v34, %v19034_v49  ;;  %v2584_v11 = vpop.f32.mrf.mxu1 }
 0x1e1   : > { %12899 = vmatmul.mubr.bf16.gmra.mxu0 %v11700_v57  ;;  %v2182_v58 = vpop.f32.mrf.mxu0  ;;  %v11702_v57 = vcombine.low %v5200_v42, %v5203_v36  ;;  %v5217_v36 = vsel %vm14306_vm13, %v5215_v24, %v5216_v27  ;;  %v19042_v27 = vld [vmem:[#allocation45_spill] sm:$0xff] }
 0x1e2   : > { %12902 = vmatprep.mubr.bf16.mxu0 %v11701_v19  ;;  %v2261_v61 = vadd.f32 %v2182_v58, %v19035_v45  ;;  %v15510_v51 = vadd.f32 %v12660_v38, %v2263_v5  ;;  %v12665_v28 = vpop.f32.mrf.mxu1  ;;  %v11703_v19 = vcombine.low %v5207_v53, %v5210_v25  ;;  %v5222_v38 = vrot.slane %v5220_v18, 4  ;;  %v19040_v5 = vld [vmem:[#allocation33_spill] sm:$0xff]  ;;  %v5071_v53 = vld [vmem:[#allocation2 + $0xcc] sm:$0xe] }
 0x1e3   : > { %v12613_v52 = vpop.f32.mrf.mxu0  ;;  %v5227_v25 = vrot.slane %v15326_v0, 5 }
 0x1e4   : > { %v2264_v12 = vadd.f32 %v12613_v52, %v19037_v20  ;;  %v15514_v23 = vadd.f32 %v2568_v55, %v2261_v61  ;;  %v15516_v43 = vpop.f32.mrf.mxu1  ;;  %v5214_v55 = vsel %vm14306_vm13, %v11688_v4, %v5213_v62  ;;  %v5224_v61 = vsel %vm14306_vm13, %v5222_v38, %v5223_v14 }
 0x1e5   : > { %19038 = vst [vmem:[#allocation20_spill] sm:$0xff] %v15516_v43  ;;  %v15518_v6 = vpop.f32.mrf.mxu0  ;;  %v11704_v4 = vcombine.low %v5214_v55, %v5217_v36  ;;  %v11690_v20 = vrot.slane %v5071_v53, 9 }
 0x1e6   : > { %v15521_v34 = vadd.f32 %v12661_v39, %v2264_v12  ;;  %v12668_v49 = vpop.f32.mrf.mxu1  ;;  %v5221_v39 = vsel %vm14306_vm13, %v11689_v41, %v5220_v18  ;;  %v5230_v12 = vrot.slane %v19042_v27, 5  ;;  %v5229_v18 = vrot.slane %v5227_v25, 4 }
 0x1e7   : > { %v11705_v54 = vcombine.low %v5221_v39, %v5224_v61  ;;  %v5228_v55 = vsel %vm14306_vm13, %v11690_v20, %v5227_v25 }
 0x1e8   : > { %v12616_v63 = vpop.f32.mrf.mxu0  ;;  %v2600_v58 = vpop.f32.mrf.mxu1 }
 0x1e9   : > { %12903 = vmatmul.mubr.bf16.gmra.mxu0 %v11702_v57  ;;  %v2267_v42 = vadd.f32 %v12616_v63, %v19040_v5  ;;  %v19046_v5 = vld [vmem:[#allocation44_spill] sm:$0xff] }
 0x1ea   : > { %12906 = vmatprep.mubr.bf16.mxu0 %v11703_v19  ;;  %v2198_v45 = vpop.f32.mrf.mxu0  ;;  %v12669_v21 = vpop.f32.mrf.mxu1  ;;  %v19043_v19 = vld [vmem:[#allocation38_spill] sm:$0xff] }
 0x1eb   : > { %v2265_v52 = vadd.f32 %v2198_v45, %v19041_v37  ;;  %v15534_v57 = vadd.f32 %v12664_v3, %v2267_v42  ;;  %v19047_v45 = vld [vmem:[#allocation46_spill] sm:$0xff] }
 0x1ec   : > { %v12617_v62 = vpop.f32.mrf.mxu0  ;;  %v15540_v63 = vpop.f32.mrf.mxu1 }
 0x1ed   : > { %v2268_v24 = vadd.f32 %v12617_v62, %v19043_v19  ;;  %v15538_v0 = vadd.f32 %v2584_v11, %v2265_v52  ;;  %19044 = vst [vmem:[#allocation22_spill] sm:$0xff] %v15540_v63  ;;  %v5231_v11 = vsel %vm14306_vm13, %v5229_v18, %v5230_v12  ;;  %v19048_v62 = vld [vmem:[#allocation47_spill] sm:$0xff] }
 0x1ee   : > { %v15542_v41 = vpop.f32.mrf.mxu0  ;;  %v12672_v3 = vpop.f32.mrf.mxu1  ;;  %v11706_v52 = vcombine.low %v5228_v55, %v5231_v11 }
 0x1ef   : > { %19045 = vst [vmem:[#allocation31_spill] sm:$0xff] %v15542_v41  ;;  %v15544_v38 = vadd.f32 %v12665_v28, %v2268_v24 }
 0x1f0   : > { %v12620_v14 = vpop.f32.mrf.mxu0  ;;  %v2616_v36 = vpop.f32.mrf.mxu1 }
 0x1f1   : > { %12907 = vmatmul.mubr.bf16.gmra.mxu0 %v11704_v4  ;;  %v2271_v42 = vadd.f32 %v12620_v14, %v19046_v5 }
 0x1f2   : > { %12910 = vmatprep.mubr.bf16.mxu0 %v11705_v54  ;;  %v2214_v53 = vpop.f32.mrf.mxu0  ;;  %v12673_v28 = vpop.f32.mrf.mxu1 }
 0x1f3   : > { %v2269_v39 = vadd.f32 %v2214_v53, %v19047_v45  ;;  %v15552_v61 = vadd.f32 %v12668_v49, %v2271_v42 }
 0x1f4   : > { %v12621_v37 = vpop.f32.mrf.mxu0  ;;  %v15557_v19 = vpop.f32.mrf.mxu1 }
 0x1f5   : > { %v2272_v4 = vadd.f32 %v12621_v37, %v19048_v62  ;;  %v15555_v27 = vadd.f32 %v2600_v58, %v2269_v39  ;;  %19049 = vst [vmem:[#allocation34_spill] sm:$0xff] %v15557_v19 }
 0x1f6   : > { %v15559_v24 = vpop.f32.mrf.mxu0  ;;  %v12740_v20 = vpop.f32.mrf.mxu1 }
 0x1f7   : > { %19050 = vst [vmem:[#allocation37_spill] sm:$0xff] %v15559_v24  ;;  %v15561_v25 = vadd.f32 %v12669_v21, %v2272_v4 }
 0x1f8   : > { %v3756_v49 = vpop.f32.mrf.mxu1 }
 0x1f9   : > { %v12624_v12 = vpop.f32.mrf.mxu0  ;;  %12911 = vmatmul.mubr.bf16.gmra.mxu0 %v11706_v52 }
 0x1fa   : > { %v2275_v54 = vadd.f32 %v12624_v12, %v15360_v26  ;;  %v12741_v42 = vpop.f32.mrf.mxu1 }
 0x1fb   : > { %v2230_v18 = vpop.f32.mrf.mxu0 }
 0x1fc   : > { %v2273_v14 = vadd.f32 %v2230_v18, %v15367_v8  ;;  %v15565_v5 = vadd.f32 %v12672_v3, %v2275_v54  ;;  %v15570_v53 = vpop.f32.mrf.mxu1 }
 0x1fd   : > { %v12625_v58 = vpop.f32.mrf.mxu0 }
 0x1fe   : > { %v2276_v55 = vadd.f32 %v12625_v58, %v15377_v40  ;;  %v15568_v11 = vadd.f32 %v2616_v36, %v2273_v14  ;;  %v12744_v39 = vpop.f32.mrf.mxu1 }
 0x1ff   : > { %v15572_v21 = vpop.f32.mrf.mxu0 }
 0x200   : > { %19051 = vst [vmem:[#allocation23_spill] sm:$0xff] %v15572_v21  ;;  %v15574_v45 = vadd.f32 %v12673_v28, %v2276_v55  ;;  %v15577_v52 = vpop.f32.mrf.mxu1 }
 0x201   : > { %v12692_v26 = vpop.f32.mrf.mxu0 }
 0x202   : > { %v3387_v37 = vadd.f32 %v12692_v26, %v15397_v16  ;;  %v12745_v40 = vpop.f32.mrf.mxu1 }
 0x203   : > { %v3258_v8 = vpop.f32.mrf.mxu0 }
 0x204   : > { %v3385_v3 = vadd.f32 %v3258_v8, %v15403_v13  ;;  %v15580_v62 = vadd.f32 %v12740_v20, %v3387_v37  ;;  %v15585_v54 = vpop.f32.mrf.mxu1 }
 0x205   : > { %v12693_v36 = vpop.f32.mrf.mxu0 }
 0x206   : > { %v3388_v4 = vadd.f32 %v12693_v36, %v15410_v17  ;;  %v15583_v12 = vadd.f32 %v3756_v49, %v3385_v3  ;;  %v12748_v16 = vpop.f32.mrf.mxu1 }
 0x207   : > { %v15587_v28 = vpop.f32.mrf.mxu0 }
 0x208   : > { %v15589_v18 = vadd.f32 %v12741_v42, %v3388_v4  ;;  %v15592_v55 = vpop.f32.mrf.mxu1 }
 0x209   : > { %v12696_v14 = vpop.f32.mrf.mxu0 }
 0x20a   : > { %v3391_v58 = vadd.f32 %v12696_v14, %v15426_v59  ;;  %v12749_v17 = vpop.f32.mrf.mxu1 }
 0x20b   : > { %v3274_v13 = vpop.f32.mrf.mxu0 }
 0x20c   : > { %v15595_v20 = vadd.f32 %v3274_v13, %v15430_v50  ;;  %v15597_v26 = vadd.f32 %v12744_v39, %v3391_v58  ;;  %v15600_v8 = vpop.f32.mrf.mxu1 }
 0x20d   : > { %v12697_v49 = vpop.f32.mrf.mxu0 }
 0x20e   : > { %v3392_v37 = vadd.f32 %v12697_v49, %v15437_v22  ;;  %v12752_v36 = vpop.f32.mrf.mxu1 }
 0x20f   : > { %v15602_v42 = vpop.f32.mrf.mxu0 }
 0x210   : > { %v15604_v3 = vadd.f32 %v12745_v40, %v3392_v37  ;;  %v15607_v14 = vpop.f32.mrf.mxu1 }
 0x211   : > { %v12700_v59 = vpop.f32.mrf.mxu0 }
 0x212   : > { %v3395_v4 = vadd.f32 %v12700_v59, %v15455_v32  ;;  %v12753_v13 = vpop.f32.mrf.mxu1 }
 0x213   : > { %v3290_v50 = vpop.f32.mrf.mxu0 }
 0x214   : > { %v15610_v39 = vadd.f32 %v3290_v50, %v15463_v56  ;;  %v15612_v58 = vadd.f32 %v12748_v16, %v3395_v4  ;;  %v15615_v1 = vpop.f32.mrf.mxu1 }
 0x215   : > { %v12701_v22 = vpop.f32.mrf.mxu0 }
 0x216   : > { %v3396_v49 = vadd.f32 %v12701_v22, %v15472_v46  ;;  %v12756_v31 = vpop.f32.mrf.mxu1 }
 0x217   : > { %v15617_v40 = vpop.f32.mrf.mxu0 }
 0x218   : > { %v15619_v37 = vadd.f32 %v12749_v17, %v3396_v49  ;;  %v15622_v19 = vpop.f32.mrf.mxu1 }
 0x219   : > { %v12704_v32 = vpop.f32.mrf.mxu0  ;;  %19052 = vst [vmem:[#allocation39_spill] sm:$0xff] %v15622_v19 }
 0x21a   : > { %v3399_v59 = vadd.f32 %v12704_v32, %v15488_v10  ;;  %v12757_v50 = vpop.f32.mrf.mxu1 }
 0x21b   : > { %v3306_v56 = vpop.f32.mrf.mxu0 }
 0x21c   : > { %v15625_v16 = vadd.f32 %v3306_v56, %v15491_v30  ;;  %v15627_v4 = vadd.f32 %v12752_v36, %v3399_v59  ;;  %v15630_v21 = vpop.f32.mrf.mxu1 }
 0x21d   : > { %v12705_v46 = vpop.f32.mrf.mxu0  ;;  %19053 = vst [vmem:[#allocation24_spill] sm:$0xff] %v15630_v21 }
 0x21e   : > { %v3400_v22 = vadd.f32 %v12705_v46, %v15498_v48  ;;  %v12760_v9 = vpop.f32.mrf.mxu1 }
 0x21f   : > { %v15632_v17 = vpop.f32.mrf.mxu0 }
 0x220   : > { %v15634_v49 = vadd.f32 %v12753_v13, %v3400_v22  ;;  %v15637_v63 = vpop.f32.mrf.mxu1 }
 0x221   : > { %v12708_v10 = vpop.f32.mrf.mxu0  ;;  %19054 = vst [vmem:[#allocation25_spill] sm:$0xff] %v15637_v63 }
 0x222   : > { %v3403_v32 = vadd.f32 %v12708_v10, %v15510_v51  ;;  %v12761_v56 = vpop.f32.mrf.mxu1 }
 0x223   : > { %v3322_v30 = vpop.f32.mrf.mxu0 }
 0x224   : > { %v15640_v36 = vadd.f32 %v3322_v30, %v15514_v23  ;;  %v15642_v59 = vadd.f32 %v12756_v31, %v3403_v32  ;;  %v15645_v24 = vpop.f32.mrf.mxu1 }
 0x225   : > { %v12709_v48 = vpop.f32.mrf.mxu0  ;;  %19056 = vst [vmem:[#allocation27_spill] sm:$0xff] %v15645_v24 }
 0x226   : > { %19055 = vst [vmem:[#allocation26_spill] sm:$0xff] %v15640_v36  ;;  %v3404_v46 = vadd.f32 %v12709_v48, %v15521_v34  ;;  %v12764_v43 = vpop.f32.mrf.mxu1 }
 0x227   : > { %v15647_v13 = vpop.f32.mrf.mxu0 }
 0x228   : > { %19057 = vst [vmem:[#allocation29_spill] sm:$0xff] %v15647_v13  ;;  %v15649_v22 = vadd.f32 %v12757_v50, %v3404_v46  ;;  %v15652_v63 = vpop.f32.mrf.mxu1 }
 0x229   : > { %v12712_v51 = vpop.f32.mrf.mxu0  ;;  %19058 = vst [vmem:[#allocation40_spill] sm:$0xff] %v15652_v63 }
 0x22a   : > { %v3407_v10 = vadd.f32 %v12712_v51, %v15534_v57  ;;  %v12765_v30 = vpop.f32.mrf.mxu1 }
 0x22b   : > { %v3338_v23 = vpop.f32.mrf.mxu0 }
 0x22c   : > { %v15655_v31 = vadd.f32 %v3338_v23, %v15538_v0  ;;  %v15657_v32 = vadd.f32 %v12760_v9, %v3407_v10  ;;  %v15660_v24 = vpop.f32.mrf.mxu1 }
 0x22d   : > { %v12713_v34 = vpop.f32.mrf.mxu0  ;;  %19060 = vst [vmem:[#allocation42_spill] sm:$0xff] %v15660_v24 }
 0x22e   : > { %19059 = vst [vmem:[#allocation32_spill] sm:$0xff] %v15655_v31  ;;  %v3408_v48 = vadd.f32 %v12713_v34, %v15544_v38 }
 0x22f   : > { %v15662_v50 = vpop.f32.mrf.mxu0  ;;  %v12768_v57 = vpop.f32.mrf.mxu1 }
 0x230   : > { %19061 = vst [vmem:[#allocation33_spill] sm:$0xff] %v15662_v50  ;;  %v15664_v46 = vadd.f32 %v12761_v56, %v3408_v48 }
 0x231   : > { %v12716_v21 = vpop.f32.mrf.mxu0  ;;  %v15667_v41 = vpop.f32.mrf.mxu1 }
 0x232   : > { %v3411_v51 = vadd.f32 %v12716_v21, %v15552_v61  ;;  %19062 = vst [vmem:[#allocation35_spill] sm:$0xff] %v15667_v41 }
 0x233   : > { %v3354_v63 = vpop.f32.mrf.mxu0  ;;  %v12769_v23 = vpop.f32.mrf.mxu1 }
 0x234   : > { %v15670_v9 = vadd.f32 %v3354_v63, %v15555_v27  ;;  %v15672_v0 = vadd.f32 %v12764_v43, %v3411_v51 }
 0x235   : > { %v12717_v10 = vpop.f32.mrf.mxu0  ;;  %v15680_v61 = vpop.f32.mrf.mxu1 }
 0x236   : > { %19063 = vst [vmem:[#allocation45_spill] sm:$0xff] %v15670_v9  ;;  %v3412_v38 = vadd.f32 %v12717_v10, %v15561_v25  ;;  %19065 = vst [vmem:[#allocation44_spill] sm:$0xff] %v15680_v61 }
 0x237   : > { %v15675_v34 = vpop.f32.mrf.mxu0 }
 0x238   : > { %19064 = vst [vmem:[#allocation38_spill] sm:$0xff] %v15675_v34  ;;  %v15677_v56 = vadd.f32 %v12765_v30, %v3412_v38 }
 0x239   : > { %v12720_v48 = vpop.f32.mrf.mxu0 }
 0x23a   : > { %v3415_v24 = vadd.f32 %v12720_v48, %v15565_v5  ;;  %v15688_v25 = vpop.f32.mrf.mxu1 }
 0x23b   : > { %v3370_v21 = vpop.f32.mrf.mxu0 }
 0x23c   : > { %v15683_v41 = vadd.f32 %v3370_v21, %v15568_v11  ;;  %v15685_v63 = vadd.f32 %v12768_v57, %v3415_v24  ;;  %v15697_v38 = vpop.f32.mrf.mxu1 }
 0x23d   : > { %v12721_v43 = vpop.f32.mrf.mxu0 }
 0x23e   : > { %19066 = vst [vmem:[#allocation46_spill] sm:$0xff] %v15683_v41  ;;  %v3416_v27 = vadd.f32 %v12721_v43, %v15574_v45  ;;  %v15705_v45 = vpop.f32.mrf.mxu1 }
 0x23f   : > { %v15690_v51 = vpop.f32.mrf.mxu0 }
 0x240   : > { %19067 = vst [vmem:[#allocation47_spill] sm:$0xff] %v15690_v51  ;;  %v15692_v30 = vadd.f32 %v12769_v23, %v3416_v27 }
 0x241   : > { %v12788_v10 = vpop.f32.mrf.mxu0 }
 0x242   : > { %v15695_v5 = vadd.f32 %v12788_v10, %v15580_v62  ;;  %v15712_v62 = vpop.f32.mrf.mxu1 }
 0x243   : > { %v4143_v48 = vpop.f32.mrf.mxu0 }
 0x244   : > { %v15700_v11 = vadd.f32 %v4143_v48, %v15583_v12  ;;  %v15716_v61 = vpop.f32.mrf.mxu1 }
 0x245   : > { %v12789_v24 = vpop.f32.mrf.mxu0 }
 0x246   : > { %v15703_v57 = vadd.f32 %v12789_v24, %v15589_v18  ;;  %v15723_v24 = vpop.f32.mrf.mxu1 }
 0x247   : > { %v15707_v21 = vpop.f32.mrf.mxu0 }
 0x248   : > { %v15730_v41 = vpop.f32.mrf.mxu1 }
 0x249   : > { %v12792_v23 = vpop.f32.mrf.mxu0 }
 0x24a   : > { %v15710_v43 = vadd.f32 %v12792_v23, %v15597_v26 }
 0x24b   : > { %v15714_v27 = vpop.f32.mrf.mxu0 }
 0x24d   : > { %v12793_v10 = vpop.f32.mrf.mxu0 }
 0x24e   : > { %v15719_v12 = vadd.f32 %v12793_v10, %v15604_v3  ;;  %v15737_v10 = vpop.f32.mrf.mxu1 }
 0x24f   : > { %v15721_v18 = vpop.f32.mrf.mxu0 }
 0x251   : > { %v12796_v48 = vpop.f32.mrf.mxu0 }
 0x252   : > { %v15726_v51 = vadd.f32 %v12796_v48, %v15612_v58  ;;  %v15744_v48 = vpop.f32.mrf.mxu1 }
 0x253   : > { %v15728_v26 = vpop.f32.mrf.mxu0 }
 0x255   : > { %v12797_v23 = vpop.f32.mrf.mxu0 }
 0x256   : > { %v15733_v34 = vadd.f32 %v12797_v23, %v15619_v37  ;;  %v15751_v23 = vpop.f32.mrf.mxu1 }
 0x257   : > { %v15735_v9 = vpop.f32.mrf.mxu0 }
 0x258   : > { %19068 = vst [vmem:[#allocation51_spill] sm:$0xff] %v15733_v34 }
 0x259   : > { %v12800_v3 = vpop.f32.mrf.mxu0 }
 0x25a   : > { %v15740_v50 = vadd.f32 %v12800_v3, %v15627_v4  ;;  %v15758_v3 = vpop.f32.mrf.mxu1 }
 0x25b   : > { %v15742_v31 = vpop.f32.mrf.mxu0  ;;  %19074 = vst [vmem:[#allocation57_spill] sm:$0xff] %v15758_v3 }
 0x25c   : > { %19069 = vst [vmem:[#allocation52_spill] sm:$0xff] %v15740_v50 }
 0x25d   : > { %v12801_v58 = vpop.f32.mrf.mxu0 }
 0x25e   : > { %v15747_v13 = vadd.f32 %v12801_v58, %v15634_v49  ;;  %v15765_v58 = vpop.f32.mrf.mxu1 }
 0x25f   : > { %v15749_v19 = vpop.f32.mrf.mxu0 }
 0x260   : > { %19070 = vst [vmem:[#allocation53_spill] sm:$0xff] %v15747_v13  ;;  %19071 = vst [vmem:[#allocation54_spill] sm:$0xff] %v15749_v19 }
 0x261   : > { %v12804_v37 = vpop.f32.mrf.mxu0 }
 0x262   : > { %v15754_v36 = vadd.f32 %v12804_v37, %v15642_v59  ;;  %v15772_v37 = vpop.f32.mrf.mxu1 }
 0x263   : > { %v15756_v7 = vpop.f32.mrf.mxu0  ;;  %19079 = vst [vmem:[#allocation62_spill] sm:$0xff] %v15772_v37 }
 0x264   : > { %19072 = vst [vmem:[#allocation55_spill] sm:$0xff] %v15754_v36  ;;  %19073 = vst [vmem:[#allocation56_spill] sm:$0xff] %v15756_v7 }
 0x265   : > { %v12805_v4 = vpop.f32.mrf.mxu0 }
 0x266   : > { %v15761_v50 = vadd.f32 %v12805_v4, %v15649_v22  ;;  %v15779_v4 = vpop.f32.mrf.mxu1 }
 0x267   : > { %v15763_v34 = vpop.f32.mrf.mxu0 }
 0x268   : > { %19075 = vst [vmem:[#allocation58_spill] sm:$0xff] %v15761_v50  ;;  %19076 = vst [vmem:[#allocation59_spill] sm:$0xff] %v15763_v34  ;;  %v15789_v37 = vpop.f32.mrf.mxu1 }
 0x269   : > { %v12808_v49 = vpop.f32.mrf.mxu0 }
 0x26a   : > { %v15768_v13 = vadd.f32 %v12808_v49, %v15657_v32  ;;  %v19083_v32 = vld [vmem:[#allocation19_spill] sm:$0xff]  ;;  %v19084_v49 = vld [vmem:[#allocation18_spill] sm:$0xff] }
 0x26b   : > { %v15770_v19 = vpop.f32.mrf.mxu0 }
 0x26c   : > { %19077 = vst [vmem:[#allocation60_spill] sm:$0xff] %v15768_v13  ;;  %19078 = vst [vmem:[#allocation61_spill] sm:$0xff] %v15770_v19  ;;  %v1669_v13 = vadd.f32 %v19084_v49, %v19083_v32 }
 0x26d   : > { %v12809_v59 = vpop.f32.mrf.mxu0 }
 0x26e   : > { %v15775_v36 = vadd.f32 %v12809_v59, %v15664_v46  ;;  %v2246_v3 = vadd.f32 %v15407_v47, %v1669_v13 }
 0x26f   : > { %v15777_v7 = vpop.f32.mrf.mxu0 }
 0x270   : > { %19080 = vst [vmem:[#allocation63_spill] sm:$0xff] %v15775_v36  ;;  %19081 = vst [vmem:[#allocation64_spill] sm:$0xff] %v15777_v7  ;;  %v2632_v7 = vadd.f32 %v15381_v33, %v2246_v3  ;;  %v2636_v33 = vadd.f32 %v15405_v15, %v15435_v35  ;;  %v5026_v15 = vadd.f32 %v15688_v25, %v15695_v5 }
 0x271   : > { %v12812_v22 = vpop.f32.mrf.mxu0 }
 0x272   : > { %v15782_v50 = vadd.f32 %v12812_v22, %v15672_v0  ;;  %v15797_v0 = vpop.f32.mrf.mxu1  ;;  %v3386_v32 = vadd.f32 %v15587_v28, %v2632_v7  ;;  %v3887_v7 = vadd.f32 %v15577_v52, %v15595_v20  ;;  %v3390_v28 = vadd.f32 %v15602_v42, %v2636_v33 }
 0x273   : > { %v15784_v34 = vpop.f32.mrf.mxu0  ;;  %v5027_v42 = vadd.f32 %v15705_v45, %v15703_v57 }
 0x274   : > { %19082 = vst [vmem:[#allocation65_spill] sm:$0xff] %v15782_v50  ;;  %v15805_v13 = vpop.f32.mrf.mxu1  ;;  %v3884_v49 = vadd.f32 %v15570_v53, %v3386_v32  ;;  %v3888_v52 = vadd.f32 %v15585_v54, %v3390_v28 }
 0x275   : > { %v12813_v19 = vpop.f32.mrf.mxu0 }
 0x276   : > { %v15792_v46 = vadd.f32 %v12813_v19, %v15677_v56  ;;  %v4275_v5 = vadd.f32 %v15721_v18, %v3888_v52 }
 0x277   : > { %v15794_v59 = vpop.f32.mrf.mxu0 }
 0x279   : > { %v12816_v36 = vpop.f32.mrf.mxu0 }
 0x27a   : > { %v15800_v22 = vadd.f32 %v12816_v36, %v15685_v63  ;;  %v4271_v36 = vadd.f32 %v15707_v21, %v3884_v49  ;;  %v15816_v63 = vpop.f32.mrf.mxu1 }
 0x27b   : > { %v15802_v50 = vpop.f32.mrf.mxu0 }
 0x27c   : > { %19085 = vst [vmem:[#allocation19_spill] sm:$0xff] %v15800_v22  ;;  %v5025_v35 = vadd.f32 %v15712_v62, %v4271_v36  ;;  %v15827_v21 = vpop.f32.mrf.mxu1 }
 0x27d   : > { %v12817_v47 = vpop.f32.mrf.mxu0 }
 0x27e   : > { %v15808_v19 = vadd.f32 %v12817_v47, %v15692_v30  ;;  %v5024_v30 = vadd.f32 %v15697_v38, %v15700_v11  ;;  %v4274_v47 = vadd.f32 %v15714_v27, %v3887_v7  ;;  %v2640_v11 = vadd.f32 %v15432_v29, %v15470_v44  ;;  %v15842_v27 = vpop.f32.mrf.mxu1 }
 0x27f   : > { %v15810_v56 = vpop.f32.mrf.mxu0  ;;  %v3891_v29 = vadd.f32 %v15592_v55, %v15610_v39  ;;  %v5030_v7 = vadd.f32 %v15716_v61, %v15710_v43 }
 0x280   : > { %v5028_v25 = vadd.f32 %v15723_v24, %v4274_v47  ;;  %v3394_v44 = vadd.f32 %v15617_v40, %v2640_v11  ;;  %v5029_v47 = vadd.f32 %v15737_v10, %v4275_v5  ;;  %v15864_v55 = vpop.f32.mrf.mxu1 }
 0x281   : > { %v12884_v3 = vpop.f32.mrf.mxu0  ;;  %v4278_v28 = vadd.f32 %v15728_v26, %v3891_v29 }
 0x282   : > { %v15834_v49 = vadd.f32 %v12884_v3, %v5026_v15  ;;  %v3892_v15 = vadd.f32 %v15600_v8, %v3394_v44 }
 0x283   : > { %v5395_v22 = vpop.f32.mrf.mxu0  ;;  %v5032_v11 = vadd.f32 %v15751_v23, %v4278_v28 }
 0x284   : > { %v15829_v32 = vadd.f32 %v5395_v22, %v5024_v30  ;;  %v5593_v24 = vmul.f32 %v15834_v49, %v15834_v49  ;;  %v4279_v8 = vadd.f32 %v15735_v9, %v3892_v15 }
 0x285   : > { %v12885_v53 = vpop.f32.mrf.mxu0 }
 0x286   : > { %v5591_v54 = vmul.f32 %v15829_v32, %v15829_v32  ;;  %v15846_v22 = vadd.f32 %v12885_v53, %v5027_v42  ;;  %v2644_v42 = vadd.f32 %v15465_v2, %v15496_v60  ;;  %v3895_v2 = vadd.f32 %v15607_v14, %v15625_v16 }
 0x287   : > { %v5398_v20 = vpop.f32.mrf.mxu0  ;;  %v5033_v14 = vadd.f32 %v15765_v58, %v4279_v8 }
 0x288   : > { %v15836_v38 = vadd.f32 %v5398_v20, %v5025_v35  ;;  %v5594_v39 = vmul.f32 %v15846_v22, %v15846_v22  ;;  %v5031_v35 = vadd.f32 %v15730_v41, %v15719_v12  ;;  %v15883_v41 = vpop.f32.mrf.mxu1  ;;  %v3398_v60 = vadd.f32 %v15632_v17, %v2644_v42 }
 0x289   : > { %v12888_v62 = vpop.f32.mrf.mxu0 }
 0x28a   : > { %v5554_v57 = vadd.f32 %v15836_v38, %v15829_v32  ;;  %v5592_v45 = vmul.f32 %v15836_v38, %v15836_v38  ;;  %v15872_v52 = vadd.f32 %v12888_v62, %v5030_v7  ;;  %v4282_v7 = vadd.f32 %v15742_v31, %v3895_v2  ;;  %v15905_v16 = vpop.f32.mrf.mxu1  ;;  %v19095_v2 = vld [vmem:[#allocation39_spill] sm:$0xff] }
 0x28b   : > { %v5411_v18 = vpop.f32.mrf.mxu0 }
 0x28c   : > { %v5555_v33 = vadd.f32 %v5554_v57, %v15834_v49  ;;  %v5623_v3 = vadd.f32 %v5592_v45, %v5591_v54  ;;  %v15858_v36 = vadd.f32 %v5411_v18, %v5028_v25  ;;  %v19086_v57 = vld [vmem:[#allocation30_spill] sm:$0xff]  ;;  %v19087_v45 = vld [vmem:[#allocation28_spill] sm:$0xff]  ;;  %v5597_v23 = vmul.f32 %v15872_v52, %v15872_v52 }
 0x28d   : > { %v12889_v30 = vpop.f32.mrf.mxu0  ;;  %v1733_v29 = vadd.f32 %v19087_v45, %v19086_v57  ;;  %v19093_v57 = vld [vmem:[#allocation36_spill] sm:$0xff] }
 0x28e   : > { %v5624_v40 = vadd.f32 %v5623_v3, %v5593_v24  ;;  %v5556_v53 = vadd.f32 %v5555_v33, %v15846_v22  ;;  %v5595_v26 = vmul.f32 %v15858_v36, %v15858_v36  ;;  %v15885_v5 = vadd.f32 %v12889_v30, %v5031_v35 }
 0x28f   : > { %v5414_v61 = vpop.f32.mrf.mxu0  ;;  %v2262_v33 = vadd.f32 %v15518_v6, %v1733_v29  ;;  %v5034_v3 = vadd.f32 %v15744_v48, %v15726_v51  ;;  %v19089_v6 = vld [vmem:[#allocation57_spill] sm:$0xff]  ;;  %v19094_v29 = vld [vmem:[#allocation26_spill] sm:$0xff] }
 0x290   : > { %v5557_v43 = vadd.f32 %v5556_v53, %v15858_v36  ;;  %v5625_v10 = vadd.f32 %v5624_v40, %v5594_v39  ;;  %v15877_v20 = vadd.f32 %v5414_v61, %v5029_v47  ;;  %v5598_v17 = vmul.f32 %v15885_v5, %v15885_v5  ;;  %v19088_v40 = vld [vmem:[#allocation51_spill] sm:$0xff]  ;;  %v19090_v61 = vld [vmem:[#allocation21_spill] sm:$0xff] }
 0x291   : > { %v12892_v25 = vpop.f32.mrf.mxu0  ;;  %v3896_v39 = vadd.f32 %v15615_v1, %v3398_v60  ;;  %v5035_v53 = vadd.f32 %v19089_v6, %v19088_v40  ;;  %v3899_v60 = vadd.f32 %v19095_v2, %v19094_v29  ;;  %v19104_v2 = vld [vmem:[#allocation59_spill] sm:$0xff] }
 0x292   : > { %v5626_v12 = vadd.f32 %v5625_v10, %v5595_v26  ;;  %v5558_v62 = vadd.f32 %v5557_v43, %v15877_v20  ;;  %v5596_v54 = vmul.f32 %v15877_v20, %v15877_v20  ;;  %v15913_v15 = vadd.f32 %v12892_v25, %v5034_v3  ;;  %v19091_v10 = vld [vmem:[#allocation54_spill] sm:$0xff] }
 0x293   : > { %v5427_v9 = vpop.f32.mrf.mxu0  ;;  %v2648_v43 = vadd.f32 %v19090_v61, %v2262_v33  ;;  %v5036_v26 = vadd.f32 %v15779_v4, %v4282_v7  ;;  %v4283_v1 = vadd.f32 %v19091_v10, %v3896_v39  ;;  %v19096_v4 = vld [vmem:[#allocation29_spill] sm:$0xff]  ;;  %v19097_v7 = vld [vmem:[#allocation31_spill] sm:$0xff] }
 0x294   : > { %v5559_v44 = vadd.f32 %v5558_v62, %v15872_v52  ;;  %v5627_v18 = vadd.f32 %v5626_v12, %v5596_v54  ;;  %v15898_v24 = vadd.f32 %v5427_v9, %v5032_v11  ;;  %v15923_v11 = vpop.f32.mrf.mxu1  ;;  %v19092_v54 = vld [vmem:[#allocation41_spill] sm:$0xff] }
 0x295   : > { %v12893_v28 = vpop.f32.mrf.mxu0  ;;  %v1749_v45 = vadd.f32 %v19093_v57, %v19092_v54  ;;  %v3402_v9 = vadd.f32 %v19096_v4, %v2648_v43  ;;  %v5037_v6 = vadd.f32 %v15797_v0, %v4283_v1  ;;  %v19102_v43 = vld [vmem:[#allocation53_spill] sm:$0xff]  ;;  %v13541_v54 = vld [vmem:[#allocation8 + $0x38] sm:$0xff]  }
 0x296   : > { %v5628_v30 = vadd.f32 %v5627_v18, %v5597_v23  ;;  %v5560_v47 = vadd.f32 %v5559_v44, %v15885_v5  ;;  %v5599_v48 = vmul.f32 %v15898_v24, %v15898_v24  ;;  %v15925_v25 = vadd.f32 %v12893_v28, %v5035_v53  ;;  %v15945_v53 = vpop.f32.mrf.mxu1  ;;  %v19103_v57 = vld [vmem:[#allocation20_spill] sm:$0xff]  ;;  %12962 = vmatprep.subr.bf16.mxu0 %v13541_v54 }
 0x297   : > { %v5430_v51 = vpop.f32.mrf.mxu0  ;;  %v5601_v44 = vmul.f32 %v15913_v15, %v15913_v15  ;;  %v2266_v28 = vadd.f32 %v19097_v7, %v1749_v45  ;;  %12963 = vmatpush3.bf16.msra.mxu0 %v13541_v54 }
 0x298   : > { %v5561_v31 = vadd.f32 %v5560_v47, %v15898_v24  ;;  %v5629_v58 = vadd.f32 %v5628_v30, %v5598_v17  ;;  %v15918_v35 = vadd.f32 %v5430_v51, %v5033_v14  ;;  %v19098_v14 = vld [vmem:[#allocation52_spill] sm:$0xff]  ;;  %v19099_v17 = vld [vmem:[#allocation62_spill] sm:$0xff]  ;;  %v5602_v51 = vmul.f32 %v15925_v25, %v15925_v25 }
 0x299   : > { %v12896_v42 = vpop.f32.mrf.mxu0  ;;  %v5038_v30 = vadd.f32 %v19099_v17, %v19098_v14  ;;  %v19100_v47 = vld [vmem:[#allocation56_spill] sm:$0xff]  ;;  %v2652_v45 = vadd.f32 %v19103_v57, %v2266_v28  ;;  %v19108_v14 = vld [vmem:[#allocation25_spill] sm:$0xff] }
 0x29a   : > { %v5630_v8 = vadd.f32 %v5629_v58, %v5599_v48  ;;  %v5562_v12 = vadd.f32 %v5561_v31, %v15918_v35  ;;  %v5600_v62 = vmul.f32 %v15918_v35, %v15918_v35  ;;  %v4286_v39 = vadd.f32 %v19100_v47, %v3899_v60  ;;  %v19101_v58 = vld [vmem:[#allocation24_spill] sm:$0xff]  ;;  %v19109_v17 = vld [vmem:[#allocation33_spill] sm:$0xff] }
 0x29b   : > { %v5443_v23 = vpop.f32.mrf.mxu0  ;;  %v3900_v61 = vadd.f32 %v19101_v58, %v3402_v9  ;;  %v15953_v10 = vadd.f32 %v12896_v42, %v5038_v30  ;;  %v19107_v28 = vld [vmem:[#allocation32_spill] sm:$0xff]  ;;  %v3406_v30 = vadd.f32 %v19109_v17, %v2652_v45 }
 0x29c   : > { %v5563_v18 = vadd.f32 %v5562_v12, %v15913_v15  ;;  %v5631_v33 = vadd.f32 %v5630_v8, %v5600_v62  ;;  %v15938_v3 = vadd.f32 %v5443_v23, %v5036_v26  ;;  %v5039_v26 = vadd.f32 %v15789_v37, %v19102_v43  ;;  %v15963_v37 = vpop.f32.mrf.mxu1  ;;  %v19116_v17 = vld [vmem:[#allocation64_spill] sm:$0xff] }
 0x29d   : > { %v12897_v40 = vpop.f32.mrf.mxu0  ;;  %v5040_v29 = vadd.f32 %v15816_v63, %v4286_v39  ;;  %v4287_v60 = vadd.f32 %v19104_v2, %v3900_v61  ;;  %v3903_v63 = vadd.f32 %v19108_v14, %v19107_v28  ;;  %v5605_v39 = vmul.f32 %v15953_v10, %v15953_v10  ;;  %v19111_v61 = vld [vmem:[#allocation55_spill] sm:$0xff]  ;;  %v19115_v28 = vld [vmem:[#allocation22_spill] sm:$0xff] }
 0x29e   : > { %v5632_v31 = vadd.f32 %v5631_v33, %v5601_v44  ;;  %v5564_v48 = vadd.f32 %v5563_v18, %v15925_v25  ;;  %v5603_v0 = vmul.f32 %v15938_v3, %v15938_v3  ;;  %v15965_v9 = vadd.f32 %v12897_v40, %v5039_v26  ;;  %v19105_v18 = vld [vmem:[#allocation48_spill] sm:$0xff]  ;;  %v19106_v33 = vld [vmem:[#allocation43_spill] sm:$0xff]  ;;  %v19112_v26 = vld [vmem:[#allocation61_spill] sm:$0xff] }
 0x29f   : > { %v5446_v8 = vpop.f32.mrf.mxu0  ;;  %v1765_v7 = vadd.f32 %v19106_v33, %v19105_v18  ;;  %v5042_v43 = vadd.f32 %v15805_v13, %v19111_v61  ;;  %v19118_v61 = vld [vmem:[#allocation49_spill] sm:$0xff] }
 0x2a0   : > { %v5565_v12 = vadd.f32 %v5564_v48, %v15938_v3  ;;  %v5633_v1 = vadd.f32 %v5632_v31, %v5602_v51  ;;  %v15958_v62 = vadd.f32 %v5446_v8, %v5037_v6  ;;  %v13543_v31 = vld [vmem:[#allocation8 + $0x30] sm:$0xff]   ;;  %v19110_v48 = vld [vmem:[#allocation37_spill] sm:$0xff]  ;;  %v4290_v8 = vadd.f32 %v19112_v26, %v3903_v63 }
 0x2a1   : > { %v12900_v4 = vpop.f32.mrf.mxu0  ;;  %v2270_v58 = vadd.f32 %v19110_v48, %v1765_v7  ;;  %v5606_v54 = vmul.f32 %v15965_v9, %v15965_v9  ;;  %12964 = vmatprep.subr.bf16.mxu0 %v13543_v31  ;;  %v13544_v7 = vld [vmem:[#allocation8 + $0x28] sm:$0xff]  }
 0x2a2   : > { %v5634_v42 = vadd.f32 %v5633_v1, %v5603_v0  ;;  %v5566_v23 = vadd.f32 %v5565_v12, %v15958_v62  ;;  %v5604_v44 = vmul.f32 %v15958_v62, %v15958_v62  ;;  %v5041_v0 = vadd.f32 %v15842_v27, %v4287_v60  ;;  %v15985_v1 = vpop.f32.mrf.mxu1  ;;  %12965 = vmatpush3.bf16.msra.mxu0 %v13543_v31  ;;  %v19117_v48 = vld [vmem:[#allocation50_spill] sm:$0xff] }
 0x2a3   : > { %v5459_v47 = vpop.f32.mrf.mxu0  ;;  %v15993_v13 = vadd.f32 %v12900_v4, %v5042_v43  ;;  %v2656_v14 = vadd.f32 %v19115_v28, %v2270_v58  ;;  %v5044_v63 = vadd.f32 %v15883_v41, %v4290_v8  ;;  %v13538_v4 = vld [vmem:[#allocation8 + $0x78] sm:$0xff]   ;;  %12966 = vmatprep.subr.bf16.mxu0 %v13544_v7  ;;  %v1781_v58 = vadd.f32 %v19118_v61, %v19117_v48  ;;  %v19119_v43 = vld [vmem:[#allocation45_spill] sm:$0xff]  ;;  %v19121_v8 = vld [vmem:[#allocation38_spill] sm:$0xff] }
 0x2a4   : > { %v5567_v40 = vadd.f32 %v5566_v23, %v15953_v10  ;;  %v5635_v6 = vadd.f32 %v5634_v42, %v5604_v44  ;;  %v15978_v51 = vadd.f32 %v5459_v47, %v5040_v29  ;;  %v19113_v29 = vld [vmem:[#allocation27_spill] sm:$0xff]  ;;  %v19114_v42 = vld [vmem:[#allocation58_spill] sm:$0xff]  ;;  %v16003_v47 = vpop.f32.mrf.mxu1  ;;  %v19120_v41 = vld [vmem:[#allocation40_spill] sm:$0xff]  ;;  %12914 = vmatprep.subr.bf16.mxu1 %v13538_v4 }
 0x2a5   : > { %v12901_v12 = vpop.f32.mrf.mxu0  ;;  %v3904_v2 = vadd.f32 %v19113_v29, %v3406_v30  ;;  %v5043_v23 = vadd.f32 %v15827_v21, %v19114_v42  ;;  %v3907_v26 = vadd.f32 %v19120_v41, %v19119_v43  ;;  %12915 = vmatpush3.bf16.msra.mxu1 %v13538_v4  ;;  %v19122_v42 = vld [vmem:[#allocation23_spill] sm:$0xff]  ;;  %v19124_v4 = vld [vmem:[#allocation42_spill] sm:$0xff]  ;;  %v13547_v43 = vld [vmem:[#allocation8 + $0x18] sm:$0xff]  }
 0x2a6   : > { %v5636_v57 = vadd.f32 %v5635_v6, %v5605_v39  ;;  %v5568_v45 = vadd.f32 %v5567_v40, %v15965_v9  ;;  %v5607_v60 = vmul.f32 %v15978_v51, %v15978_v51  ;;  %12967 = vmatpush3.bf16.msra.mxu0 %v13544_v7  ;;  %v13539_v28 = vld [vmem:[#allocation8 + $0x70] sm:$0xff]   ;;  %v19126_v41 = vld [vmem:[#allocation34_spill] sm:$0xff] }
 0x2a7   : > { %v5462_v44 = vpop.f32.mrf.mxu0  ;;  %v4291_v30 = vadd.f32 %v19116_v17, %v3904_v2  ;;  %v16005_v40 = vadd.f32 %v12901_v12, %v5043_v23  ;;  %v5609_v12 = vmul.f32 %v15993_v13, %v15993_v13  ;;  %v13546_v2 = vld [vmem:[#allocation8 + $0x20] sm:$0xff]   ;;  %v2274_v23 = vadd.f32 %v19122_v42, %v1781_v58  ;;  %12916 = vmatprep.subr.bf16.mxu1 %v13539_v28  ;;  %v19127_v42 = vld [vmem:[#allocation46_spill] sm:$0xff] }
 0x2a8   : > { %v5569_v27 = vadd.f32 %v5568_v45, %v15978_v51  ;;  %v5637_v18 = vadd.f32 %v5636_v57, %v5606_v54  ;;  %v15998_v33 = vadd.f32 %v5462_v44, %v5041_v0  ;;  %v3410_v0 = vadd.f32 %v19121_v8, %v2656_v14  ;;  %v19123_v44 = vld [vmem:[#allocation60_spill] sm:$0xff]  ;;  %v12864_v14 = vpop.f32.mrf.mxu1  ;;  %12968 = vmatprep.subr.bf16.mxu0 %v13546_v2 }
 0x2a9   : > { %v12904_v21 = vpop.f32.mrf.mxu0  ;;  %v5045_v7 = vadd.f32 %v15923_v11, %v4291_v30  ;;  %v5610_v17 = vmul.f32 %v16005_v40, %v16005_v40  ;;  %12917 = vmatpush3.bf16.msra.mxu1 %v13539_v28 }
 0x2aa   : > { %v5638_v39 = vadd.f32 %v5637_v18, %v5607_v60  ;;  %v5570_v6 = vadd.f32 %v5569_v27, %v15998_v33  ;;  %v5608_v31 = vmul.f32 %v15998_v33, %v15998_v33  ;;  %v5046_v27 = vadd.f32 %v15864_v55, %v19123_v44  ;;  %12969 = vmatpush3.bf16.msra.mxu0 %v13546_v2  ;;  %v19128_v44 = vld [vmem:[#allocation35_spill] sm:$0xff] }
 0x2ab   : > { %v5475_v54 = vpop.f32.mrf.mxu0  ;;  %v4294_v60 = vadd.f32 %v15784_v34, %v3907_v26  ;;  %v2660_v26 = vadd.f32 %v19126_v41, %v2274_v23  ;;  %12970 = vmatprep.subr.bf16.mxu0 %v13547_v43  ;;  %v19129_v23 = vld [vmem:[#allocation47_spill] sm:$0xff] }
 0x2ac   : > { %v5571_v57 = vadd.f32 %v5570_v6, %v15993_v13  ;;  %v5639_v45 = vadd.f32 %v5638_v39, %v5608_v31  ;;  %v16018_v29 = vadd.f32 %v5475_v54, %v5044_v63  ;;  %v3908_v6 = vadd.f32 %v19124_v4, %v3410_v0  ;;  %v19125_v31 = vld [vmem:[#allocation63_spill] sm:$0xff]  ;;  %v13540_v0 = vld [vmem:[#allocation8 + $0x68] sm:$0xff]   ;;  %v5009_v54 = vpop.f32.mrf.mxu1 }
 0x2ad   : > { %v12905_v18 = vpop.f32.mrf.mxu0  ;;  %v5047_v48 = vadd.f32 %v15905_v16, %v19125_v31  ;;  %v16031_v55 = vadd.f32 %v12904_v21, %v5046_v27  ;;  %v5048_v8 = vadd.f32 %v15963_v37, %v4294_v60  ;;  %v3911_v27 = vadd.f32 %v19128_v44, %v19127_v42  ;;  %12918 = vmatprep.subr.bf16.mxu1 %v13540_v0  ;;  %v13542_v31 = vld [vmem:[#allocation8 + $0x60] sm:$0xff]  }
 0x2ae   : > { %v5640_v39 = vadd.f32 %v5639_v45, %v5609_v12  ;;  %v5572_v63 = vadd.f32 %v5571_v57, %v16005_v40  ;;  %v5611_v30 = vmul.f32 %v16018_v29, %v16018_v29  ;;  %v4295_v16 = vadd.f32 %v15794_v59, %v3908_v6  ;;  %12971 = vmatpush3.bf16.msra.mxu0 %v13547_v43  ;;  %v19131_v43 = vld [vmem:[#allocation44_spill] sm:$0xff] }
 0x2af   : > { %v5478_v34 = vpop.f32.mrf.mxu0  ;;  %v16041_v57 = vadd.f32 %v12905_v18, %v5047_v48  ;;  %v3414_v28 = vadd.f32 %v19129_v23, %v2660_v26  ;;  %v5613_v59 = vmul.f32 %v16031_v55, %v16031_v55  ;;  %12919 = vmatpush3.bf16.msra.mxu1 %v13540_v0  ;;  %v4298_v4 = vadd.f32 %v15802_v50, %v3911_v27  ;;  %v13548_v27 = vld [vmem:[#allocation8 + $0x50] sm:$0xff]   ;;  %v6290_v23 = vld [vmem:[#allocation2] sm:$0xf] }
 0x2b0   : > { %v5573_v11 = vadd.f32 %v5572_v63, %v16018_v29  ;;  %v5641_v61 = vadd.f32 %v5640_v39, %v5610_v17  ;;  %v16036_v58 = vadd.f32 %v5478_v34, %v5045_v7  ;;  %v13549_v17 = vld [vmem:[#allocation8 + $0x10] sm:$0xff]   ;;  %v19130_v39 = vld [vmem:[#allocation65_spill] sm:$0xff]  ;;  %v5049_v48 = vadd.f32 %v16003_v47, %v4295_v16  ;;  %v12865_v34 = vpop.f32.mrf.mxu1  ;;  %12920 = vmatprep.subr.bf16.mxu1 %v13542_v31 }
 0x2b1   : > { %v12908_v21 = vpop.f32.mrf.mxu0  ;;  %v5050_v63 = vadd.f32 %v15945_v53, %v19130_v39  ;;  %12972 = vmatprep.subr.bf16.mxu0 %v13549_v17  ;;  %v3912_v41 = vadd.f32 %v19131_v43, %v3414_v28  ;;  %v5051_v26 = vadd.f32 %v15985_v1, %v15792_v46  ;;  %v5052_v44 = vadd.f32 %v5009_v54, %v4298_v4 }
 0x2b2   : > { %v5642_v12 = vadd.f32 %v5641_v61, %v5611_v30  ;;  %v5574_v45 = vadd.f32 %v5573_v11, %v16036_v58  ;;  %v5612_v2 = vmul.f32 %v16036_v58, %v16036_v58  ;;  %v5614_v11 = vmul.f32 %v16041_v57, %v16041_v57  ;;  %12973 = vmatpush3.bf16.msra.mxu0 %v13549_v17  ;;  %v6291_v17 = vld [vmem:[#allocation2 + $0x4] sm:$0xf] }
 0x2b3   : > { %v5491_v37 = vpop.f32.mrf.mxu0  ;;  %v16064_v53 = vadd.f32 %v12908_v21, %v5050_v63  ;;  %12921 = vmatpush3.bf16.msra.mxu1 %v13542_v31  ;;  %v4299_v46 = vadd.f32 %v15810_v56, %v3912_v41  ;;  %v5055_v1 = vadd.f32 %v12865_v34, %v15808_v19  ;;  %v6355_v56 = vshrl.u32 %v6290_v23, 16  ;;  %v6338_v34 = vld [vmem:[#allocation2 + $0x8] sm:$0x1] }
 0x2b4   : > { %v5575_v60 = vadd.f32 %v5574_v45, %v16031_v55  ;;  %v5643_v18 = vadd.f32 %v5642_v12, %v5612_v2  ;;  %v16052_v7 = vadd.f32 %v5491_v37, %v5048_v8  ;;  %v13545_v12 = vld [vmem:[#allocation8 + $0x58] sm:$0xff]   ;;  %v13550_v45 = vld [vmem:[#allocation8 + $0x8] sm:$0xff]   ;;  %v19132_v2 = vld [vmem:[#allocation19_spill] sm:$0xff]  ;;  %v6358_v39 = vshll.u32 %v6290_v23, 16 }
 0x2b5   : > { %v12909_v6 = vpop.f32.mrf.mxu0  ;;  %v5054_v42 = vadd.f32 %v12864_v14, %v19132_v2  ;;  %12922 = vmatprep.subr.bf16.mxu1 %v13545_v12  ;;  %v5012_v14 = vpop.f32.mrf.mxu1  ;;  %12974 = vmatprep.subr.bf16.mxu0 %v13550_v45  ;;  %v6368_v19 = vshrl.u32 %v6291_v17, 16  ;;  %v11771_v63 = vcombine.low %v6290_v23, %v6291_v17  ;;  %v5617_v4 = vmul.f32 %v16064_v53, %v16064_v53 }
 0x2b6   : > { %v5644_v30 = vadd.f32 %v5643_v18, %v5613_v59  ;;  %v5576_v61 = vadd.f32 %v5575_v60, %v16041_v57  ;;  %v5615_v8 = vmul.f32 %v16052_v7, %v16052_v7  ;;  %v16074_v37 = vadd.f32 %v12909_v6, %v5051_v26  ;;  %v13552_v18 = vld [vmem:[#allocation8] sm:$0xff]   ;;  %12975 = vmatpush3.bf16.msra.mxu0 %v13550_v45 }
 0x2b7   : > { %v5494_v50 = vpop.f32.mrf.mxu0  ;;  %12923 = vmatpush3.bf16.msra.mxu1 %v13545_v12  ;;  %v6360_v43 = vrot.slane %v6358_v39, 5  ;;  %v6364_v41 = vshll.u32 %v6291_v17, 16  ;;  %v6370_v26 = vrot.slane %v6368_v19, 4  ;;  %12976 = vmatprep.subr.bf16.mxu0 %v13552_v18  ;;  %v13555_v17 = vld [vmem:[#allocation8 + $0x40] sm:$0xff]  }
 0x2b8   : > { %v5577_v47 = vadd.f32 %v5576_v61, %v16052_v7  ;;  %v5645_v16 = vadd.f32 %v5644_v30, %v5614_v11  ;;  %v16069_v0 = vadd.f32 %v5494_v50, %v5049_v48  ;;  %12924 = vmatprep.subr.bf16.mxu1 %v13548_v27  ;;  %v13551_v30 = vld [vmem:[#allocation8 + $0x48] sm:$0xff]   ;;  %v6357_v61 = vrot.slane %v6355_v56, 4  ;;  %12978 = vmatprep.mubr.bf16.mxu0 %v11771_v63  ;;  %v6238_v63 = vld [vmem:[#allocation2 + $0x74] sm:$0x1] }
 0x2b9   : > { %v12912_v21 = vpop.f32.mrf.mxu0  ;;  %v5053_v50 = vadd.f32 %v5012_v14, %v4299_v46  ;;  %v6366_v23 = vrot.slane %v6364_v41, 5  ;;  %v13559_v41 = vld [vmem:[#allocation8 + $0xb8] sm:$0xff]  }
 0x2ba   : > { %v5646_v28 = vadd.f32 %v5645_v16, %v5615_v8  ;;  %v5578_v59 = vadd.f32 %v5577_v47, %v16069_v0  ;;  %v5616_v60 = vmul.f32 %v16069_v0, %v16069_v0  ;;  %v5618_v47 = vmul.f32 %v16074_v37, %v16074_v37  ;;  %12977 = vmatpush3.bf16.msra.mxu0 %v13552_v18 }
 0x2bb   : > { %v5507_v54 = vpop.f32.mrf.mxu0  ;;  %v16087_v2 = vadd.f32 %v12912_v21, %v5054_v42  ;;  %12925 = vmatpush3.bf16.msra.mxu1 %v13548_v27  ;;  %v6371_v42 = vor.u32 %v6370_v26, %v6366_v23 }
 0x2bc   : > { %v5579_v6 = vadd.f32 %v5578_v59, %v16064_v53  ;;  %v5647_v31 = vadd.f32 %v5646_v28, %v5616_v60  ;;  %v16082_v48 = vadd.f32 %v5507_v54, %v5052_v44  ;;  %v6361_v44 = vor.u32 %v6360_v43, %v6357_v61  ;;  %12926 = vmatprep.subr.bf16.mxu1 %v13551_v30 }
 0x2bd   : > { %v12913_v11 = vpop.f32.mrf.mxu0  ;;  %v6374_v28 = vshll.u32 %v6338_v34, 16  ;;  %v5621_v27 = vmul.f32 %v16087_v2, %v16087_v2 }
 0x2be   : > { %v5648_v8 = vadd.f32 %v5647_v31, %v5617_v4  ;;  %v5580_v16 = vadd.f32 %v5579_v6, %v16074_v37  ;;  %v5619_v59 = vmul.f32 %v16082_v48, %v16082_v48  ;;  %v6362_v14 = vrot.slane %v6361_v44, 4 }
 0x2bf   : > { %v5510_v12 = vpop.f32.mrf.mxu0  ;;  %v6376_v21 = vrot.slane %v6374_v28, 5  ;;  %v16094_v56 = vadd.f32 %v12913_v11, %v5055_v1  ;;  %v6372_v6 = vrot.slane %v6371_v42, 4  ;;  %12927 = vmatpush3.bf16.msra.mxu1 %v13551_v30 }
 0x2c0   : > { %v5581_v45 = vadd.f32 %v5580_v16, %v16082_v48  ;;  %v5649_v46 = vadd.f32 %v5648_v8, %v5618_v47  ;;  %v16092_v60 = vadd.f32 %v5510_v12, %v5053_v50  ;;  %v6367_v4 = vsel %vm14017_vm7, %v6362_v14, %v6366_v23  ;;  %12928 = vmatprep.subr.bf16.mxu1 %v13555_v17 }
 0x2c1   : > { %v6377_v1 = vsel %vm14017_vm7, %v6372_v6, %v6376_v21  ;;  %v5622_v34 = vmul.f32 %v16094_v56, %v16094_v56 }
 0x2c2   : > { %v5650_v54 = vadd.f32 %v5649_v46, %v5619_v59  ;;  %v5582_v39 = vadd.f32 %v5581_v45, %v16092_v60  ;;  %v5620_v19 = vmul.f32 %v16092_v60, %v16092_v60  ;;  %v11747_v43 = vcombine.low %v6367_v4, %v6377_v1 }
 0x2c3   : > { %12929 = vmatpush3.bf16.msra.mxu1 %v13555_v17 }
 0x2c4   : > { %v5583_v18 = vadd.f32 %v5582_v39, %v16087_v2  ;;  %v5651_v31 = vadd.f32 %v5650_v54, %v5620_v19  ;;  %12930 = vmatprep.mubr.bf16.mxu1 %v11747_v43  ;;  %13010 = vmatprep.subr.bf16.mxu1 %v13559_v41 }
 0x2c6   : > { %v5584_v11 = vadd.f32 %v5583_v18, %v16094_v56  ;;  %v5652_v61 = vadd.f32 %v5651_v31, %v5621_v27 }
 0x2c8   : > { %v5585_v26 = vrot.slane %v5584_v11, 4  ;;  %v5653_v50 = vadd.f32 %v5652_v61, %v5622_v34 }
 0x2ca   : > { %v5586_v47 = vadd.f32 %v5585_v26, %v5584_v11  ;;  %v5654_v8 = vrot.slane %v5653_v50, 4 }
 0x2cc   : > { %v5587_v30 = vrot.slane %v5586_v47, 2  ;;  %v5655_v16 = vadd.f32 %v5654_v8, %v5653_v50 }
 0x2ce   : > { %v5588_v12 = vadd.f32 %v5587_v30, %v5586_v47  ;;  %v5656_v44 = vrot.slane %v5655_v16, 2 }
 0x2d0   : > { %v5589_v23 = vrot.slane %v5588_v12, 1  ;;  %v5657_v28 = vadd.f32 %v5656_v44, %v5655_v16 }
 0x2d2   : > { %v5590_v45 = vadd.f32 %v5589_v23, %v5588_v12  ;;  %v5658_v59 = vrot.slane %v5657_v28, 1 }
 0x2d4   : > { %v5659_v46 = vadd.f32 %v5658_v59, %v5657_v28  ;;  %v16109_v14 = vmul.f32 0.00390625, %v5590_v45 }
 0x2d6   : > { %v5661_v42 = vmul.f32 0.00390625, %v5659_v46  ;;  %v5662_v21 = vmul.f32 %v16109_v14, %v16109_v14  ;;  %v5693_v17 = vsub.f32 %v16082_v48, %v16109_v14  ;;  %v5694_v54 = vsub.f32 %v16092_v60, %v16109_v14 }
 0x2d7   : > { %v5674_v19 = vsub.f32 %v15918_v35, %v16109_v14  ;;  %v5677_v6 = vsub.f32 %v15938_v3, %v16109_v14  ;;  %v5678_v27 = vsub.f32 %v15958_v62, %v16109_v14  ;;  %v5679_v18 = vsub.f32 %v15953_v10, %v16109_v14  ;;  %v16137_v10 = vld [vmem:[#allocation8 + $0xf8] sm:$0xff]  }
 0x2d8   : > { %v5663_v39 = vsub.f32 %v5661_v42, %v5662_v21  ;;  %v5680_v48 = vsub.f32 %v15965_v9, %v16109_v14  ;;  %v5681_v60 = vsub.f32 %v15978_v51, %v16109_v14  ;;  %v5682_v31 = vsub.f32 %v15998_v33, %v16109_v14  ;;  %19134 = vst [vmem:[#allocation18_spill] sm:$0xff] %v16137_v10 }
 0x2d9   : > { %v5683_v1 = vsub.f32 %v15993_v13, %v16109_v14  ;;  %v5684_v3 = vsub.f32 %v16005_v40, %v16109_v14  ;;  %v5685_v62 = vsub.f32 %v16018_v29, %v16109_v14  ;;  %v5686_v9 = vsub.f32 %v16036_v58, %v16109_v14  ;;  %13058 = vmatprep.subr.bf16.mxu0 %v16137_v10  ;;  %v6252_v10 = vld [vmem:[#allocation2 + $0x8c] sm:$0x1] }
 0x2da   : > { %v5664_v4 = vmax.f32 %v5663_v39, 0.0  ;;  %v5687_v51 = vsub.f32 %v16031_v55, %v16109_v14  ;;  %v5688_v33 = vsub.f32 %v16041_v57, %v16109_v14  ;;  %v5689_v13 = vsub.f32 %v16052_v7, %v16109_v14 }
 0x2db   : > { %v5690_v40 = vsub.f32 %v16069_v0, %v16109_v14  ;;  %v5691_v29 = vsub.f32 %v16064_v53, %v16109_v14  ;;  %v5692_v34 = vsub.f32 %v16074_v37, %v16109_v14  ;;  %v5695_v55 = vsub.f32 %v16087_v2, %v16109_v14 }
 0x2dc   : > { %v5697_v35 = vadd.f32 1e-05, %v5664_v4  ;;  %v5696_v58 = vsub.f32 %v16094_v56, %v16109_v14  ;;  %v5665_v57 = vsub.f32 %v15829_v32, %v16109_v14  ;;  %v5666_v7 = vsub.f32 %v15836_v38, %v16109_v14 }
 0x2dd   : > { %v5667_v53 = vsub.f32 %v15834_v49, %v16109_v14  ;;  %v5668_v0 = vsub.f32 %v15846_v22, %v16109_v14  ;;  %v5669_v37 = vsub.f32 %v15858_v36, %v16109_v14  ;;  %v5670_v2 = vsub.f32 %v15877_v20, %v16109_v14 }
 0x2de   : > { %13658 = vrsqrt.f32 %v5697_v35  ;;  %v5671_v56 = vsub.f32 %v15872_v52, %v16109_v14  ;;  %v5672_v32 = vsub.f32 %v15885_v5, %v16109_v14  ;;  %v5673_v38 = vsub.f32 %v15898_v24, %v16109_v14 }
 0x2df   : > { %v5675_v49 = vsub.f32 %v15913_v15, %v16109_v14  ;;  %v5676_v22 = vsub.f32 %v15925_v25, %v16109_v14 }
 0x2eb   : > { %v13659_v11 = vpop.eup %13658 }
 0x2ec   : > { %v5727_v36 = vmul.f32 %v13659_v11, %v5693_v17  ;;  %v5728_v61 = vmul.f32 %v13659_v11, %v5694_v54  ;;  %v16180_v43 = vmul.f32 %v13659_v11, %v5665_v57  ;;  %v16182_v20 = vmul.f32 %v13659_v11, %v5666_v7 }
 0x2ed   : > { %v16184_v52 = vmul.f32 %v13659_v11, %v5667_v53  ;;  %v16186_v41 = vmul.f32 %v13659_v11, %v5668_v0  ;;  %v16188_v5 = vmul.f32 %v13659_v11, %v5669_v37  ;;  %v16190_v26 = vmul.f32 %v13659_v11, %v5670_v2 }
 0x2ee   : > { %v5759_v24 = vmax.f32 %v5727_v36, 0.0  ;;  %v5760_v50 = vmax.f32 %v5728_v61, 0.0  ;;  %v16192_v15 = vmul.f32 %v13659_v11, %v5671_v56  ;;  %v16194_v47 = vmul.f32 %v13659_v11, %v5672_v32 }
 0x2ef   : > { %v16196_v25 = vmul.f32 %v13659_v11, %v5673_v38  ;;  %v16198_v8 = vmul.f32 %v13659_v11, %v5674_v19  ;;  %v16200_v30 = vmul.f32 %v13659_v11, %v5675_v49  ;;  %v16202_v16 = vmul.f32 %v13659_v11, %v5676_v22 }
 0x2f0   : > { %v16204_v12 = vpack.c.bf16 %v5759_v24, %v5759_v24  ;;  %v12046_v44 = vpack.c.bf16 %v5760_v50, %v5760_v50  ;;  %v16206_v23 = vmul.f32 %v13659_v11, %v5677_v6  ;;  %v16208_v28 = vmul.f32 %v13659_v11, %v5678_v27 }
 0x2f1   : > { %v16210_v45 = vmul.f32 %v13659_v11, %v5679_v18  ;;  %v16212_v59 = vmul.f32 %v13659_v11, %v5680_v48  ;;  %v16214_v46 = vmul.f32 %v13659_v11, %v5681_v60  ;;  %v16216_v14 = vmul.f32 %v13659_v11, %v5682_v31  ;;  %v6280_v31 = vld [vmem:[#allocation2 + $0xbc] sm:$0x1] }
 0x2f2   : > { %v6098_v42 = vshrl.u32 %v16204_v12, 16  ;;  %v6106_v21 = vshrl.u32 %v12046_v44, 16  ;;  %v6109_v17 = vshll.u32 %v12046_v44, 16  ;;  %v6101_v54 = vshll.u32 %v16204_v12, 16 }
 0x2f3   : > { %v16220_v39 = vmul.f32 %v13659_v11, %v5683_v1  ;;  %v16222_v19 = vmul.f32 %v13659_v11, %v5684_v3  ;;  %v16224_v4 = vmul.f32 %v13659_v11, %v5685_v62  ;;  %v16226_v6 = vmul.f32 %v13659_v11, %v5686_v9 }
 0x2f4   : > { %v16228_v27 = vrot.slane %v6098_v42, 7  ;;  %v6108_v18 = vrot.slane %v6106_v21, 7  ;;  %v16230_v48 = vmul.f32 %v13659_v11, %v5687_v51  ;;  %v16232_v60 = vmul.f32 %v13659_v11, %v5688_v33 }
 0x2f5   : > { %v16234_v35 = vmul.f32 %v13659_v11, %v5689_v13  ;;  %v16236_v57 = vmul.f32 %v13659_v11, %v5690_v40  ;;  %v16238_v1 = vmul.f32 %v13659_v11, %v5691_v29  ;;  %v16240_v3 = vmul.f32 %v13659_v11, %v5692_v34  ;;  %v6283_v40 = vld [vmem:[#allocation2 + $0xc0] sm:$0xf] }
 0x2f6   : > { %v6104_v62 = vrot.slane %v16228_v27, 4  ;;  %v6111_v9 = vor.u32 %v6109_v17, %v6108_v18  ;;  %v6113_v7 = vrot.slane %v6108_v18, 4  ;;  %v16243_v53 = vmul.f32 %v13659_v11, %v5695_v55 }
 0x2f7   : > { %v16245_v0 = vmul.f32 %v13659_v11, %v5696_v58  ;;  %v5731_v51 = vmax.f32 %v16180_v43, 0.0  ;;  %v5732_v33 = vmax.f32 %v16182_v20, 0.0  ;;  %v5733_v13 = vmax.f32 %v16184_v52, 0.0 }
 0x2f8   : > { %v6112_v29 = vsel %vm14029_vm9, %v6104_v62, %v6111_v9  ;;  %v6281_v34 = vsel %vm14037_vm10, %v6113_v7, %v6280_v31  ;;  %v5734_v2 = vmax.f32 %v16186_v41, 0.0  ;;  %v5735_v56 = vmax.f32 %v16188_v5, 0.0 }
 0x2f9   : > { %6279 = vst [vmem:[#allocation2 + $0xb8] sm:$0xf] %v6112_v29  ;;  %6282 = vst [vmem:[#allocation2 + $0xbc] sm:$0x1] %v6281_v34  ;;  %v5736_v55 = vmax.f32 %v16190_v26, 0.0  ;;  %v5737_v58 = vmax.f32 %v16192_v15, 0.0 }
 0x2fa   : > { %v5738_v11 = vmax.f32 %v16194_v47, 0.0  ;;  %v5739_v32 = vmax.f32 %v16196_v25, 0.0  ;;  %v5740_v38 = vmax.f32 %v16198_v8, 0.0  ;;  %v5741_v49 = vmax.f32 %v16200_v30, 0.0 }
 0x2fb   : > { %v5742_v22 = vmax.f32 %v16202_v16, 0.0  ;;  %v5743_v36 = vmax.f32 %v16206_v23, 0.0  ;;  %v5744_v61 = vmax.f32 %v16208_v28, 0.0  ;;  %v5745_v43 = vmax.f32 %v16210_v45, 0.0 }
 0x2fc   : > { %v5746_v20 = vmax.f32 %v16212_v59, 0.0  ;;  %v5747_v52 = vmax.f32 %v16214_v46, 0.0  ;;  %v5748_v41 = vmax.f32 %v16216_v14, 0.0  ;;  %v5749_v5 = vmax.f32 %v16220_v39, 0.0 }
 0x2fd   : > { %v5750_v26 = vmax.f32 %v16222_v19, 0.0  ;;  %v5751_v24 = vmax.f32 %v16224_v4, 0.0  ;;  %v5752_v50 = vmax.f32 %v16226_v6, 0.0  ;;  %v5753_v15 = vmax.f32 %v16230_v48, 0.0 }
 0x2fe   : > { %v5754_v47 = vmax.f32 %v16232_v60, 0.0  ;;  %v5755_v25 = vmax.f32 %v16234_v35, 0.0  ;;  %v5756_v8 = vmax.f32 %v16236_v57, 0.0  ;;  %v5757_v30 = vmax.f32 %v16238_v1, 0.0 }
 0x2ff   : > { %v5758_v16 = vmax.f32 %v16240_v3, 0.0  ;;  %v5761_v44 = vmax.f32 %v16243_v53, 0.0  ;;  %v5762_v23 = vmax.f32 %v16245_v0, 0.0  ;;  %v12017_v28 = vpack.c.bf16 %v5731_v51, %v5731_v51 }
 0x300   : > { %v12018_v45 = vpack.c.bf16 %v5732_v33, %v5732_v33  ;;  %v12019_v59 = vpack.c.bf16 %v5733_v13, %v5733_v13  ;;  %v12020_v46 = vpack.c.bf16 %v5734_v2, %v5734_v2  ;;  %v12021_v14 = vpack.c.bf16 %v5735_v56, %v5735_v56 }
 0x301   : > { %v12022_v42 = vpack.c.bf16 %v5736_v55, %v5736_v55  ;;  %v16281_v21 = vpack.c.bf16 %v5737_v58, %v5737_v58  ;;  %v16283_v17 = vpack.c.bf16 %v5738_v11, %v5738_v11  ;;  %v16285_v39 = vpack.c.bf16 %v5739_v32, %v5739_v32 }
 0x302   : > { %v16287_v19 = vpack.c.bf16 %v5740_v38, %v5740_v38  ;;  %v16289_v4 = vpack.c.bf16 %v5741_v49, %v5741_v49  ;;  %v16291_v6 = vpack.c.bf16 %v5742_v22, %v5742_v22  ;;  %v16293_v18 = vpack.c.bf16 %v5743_v36, %v5743_v36 }
 0x303   : > { %v16295_v48 = vpack.c.bf16 %v5744_v61, %v5744_v61  ;;  %v16297_v60 = vpack.c.bf16 %v5745_v43, %v5745_v43  ;;  %v16299_v31 = vpack.c.bf16 %v5746_v20, %v5746_v20  ;;  %v16301_v35 = vpack.c.bf16 %v5747_v52, %v5747_v52 }
 0x304   : > { %v16303_v57 = vpack.c.bf16 %v5748_v41, %v5748_v41  ;;  %v16305_v1 = vpack.c.bf16 %v5749_v5, %v5749_v5  ;;  %v16307_v3 = vpack.c.bf16 %v5750_v26, %v5750_v26  ;;  %v16309_v62 = vpack.c.bf16 %v5751_v24, %v5751_v24 }
 0x305   : > { %v16311_v9 = vpack.c.bf16 %v5752_v50, %v5752_v50  ;;  %v16313_v7 = vpack.c.bf16 %v5753_v15, %v5753_v15  ;;  %v16315_v53 = vpack.c.bf16 %v5754_v47, %v5754_v47  ;;  %v16317_v0 = vpack.c.bf16 %v5755_v25, %v5755_v25 }
 0x306   : > { %v16319_v51 = vpack.c.bf16 %v5756_v8, %v5756_v8  ;;  %v16321_v33 = vpack.c.bf16 %v5757_v30, %v5757_v30  ;;  %v16323_v13 = vpack.c.bf16 %v5758_v16, %v5758_v16  ;;  %v16325_v29 = vpack.c.bf16 %v5761_v44, %v5761_v44 }
 0x307   : > { %v16327_v34 = vpack.c.bf16 %v5762_v23, %v5762_v23  ;;  %v5860_v2 = vshrl.u32 %v12017_v28, 16  ;;  %v5863_v56 = vshll.u32 %v12017_v28, 16  ;;  %v5868_v55 = vshrl.u32 %v12018_v45, 16 }
 0x308   : > { %v5871_v58 = vshll.u32 %v12018_v45, 16  ;;  %v5877_v11 = vshrl.u32 %v12019_v59, 16  ;;  %v5880_v38 = vshll.u32 %v12019_v59, 16  ;;  %v5885_v49 = vshrl.u32 %v12020_v46, 16 }
 0x309   : > { %v5862_v32 = vrot.slane %v5860_v2, 7  ;;  %v5888_v22 = vshll.u32 %v12020_v46, 16  ;;  %v16329_v36 = vrot.slane %v5868_v55, 7  ;;  %v5894_v43 = vshrl.u32 %v12021_v14, 16 }
 0x30a   : > { %v5879_v61 = vrot.slane %v5877_v11, 7  ;;  %v5897_v20 = vshll.u32 %v12021_v14, 16  ;;  %v16333_v5 = vrot.slane %v5885_v49, 7  ;;  %v5902_v26 = vshrl.u32 %v12022_v42, 16 }
 0x30b   : > { %v16331_v52 = vor.u32 %v5863_v56, %v5862_v32  ;;  %v5866_v41 = vrot.slane %v5862_v32, 4  ;;  %v5873_v24 = vor.u32 %v5871_v58, %v16329_v36  ;;  %v5875_v50 = vrot.slane %v16329_v36, 4 }
 0x30c   : > { %v16337_v15 = vor.u32 %v5880_v38, %v5879_v61  ;;  %v5883_v47 = vrot.slane %v5879_v61, 4  ;;  %v5890_v25 = vor.u32 %v5888_v22, %v16333_v5  ;;  %v5896_v30 = vrot.slane %v5894_v43, 7 }
 0x30d   : > { %v16341_v16 = vrot.slane %v5902_v26, 7  ;;  %v5874_v44 = vsel %vm14029_vm9, %v5866_v41, %v5873_v24  ;;  %v5905_v23 = vshll.u32 %v12022_v42, 16  ;;  %v5911_v28 = vshrl.u32 %v16281_v21, 16 }
 0x30e   : > { %v5914_v45 = vshll.u32 %v16281_v21, 16  ;;  %v5891_v59 = vsel %vm14029_vm9, %v5883_v47, %v5890_v25  ;;  %v16349_v46 = vor.u32 %v5897_v20, %v5896_v30  ;;  %v5900_v14 = vrot.slane %v5896_v30, 4  ;;  %6181 = vst [vmem:[#allocation2 + $0x10] sm:$0xf] %v5874_v44 }
 0x30f   : > { %v5907_v56 = vor.u32 %v5905_v23, %v16341_v16  ;;  %v5913_v55 = vrot.slane %v5911_v28, 7  ;;  %v5919_v58 = vshrl.u32 %v16283_v17, 16  ;;  %v5922_v42 = vshll.u32 %v16283_v17, 16  ;;  %6188 = vst [vmem:[#allocation2 + $0x1c] sm:$0xf] %v5891_v59 }
 0x310   : > { %v5928_v11 = vshrl.u32 %v16285_v39, 16  ;;  %v5931_v21 = vshll.u32 %v16285_v39, 16  ;;  %v5936_v32 = vshrl.u32 %v16287_v19, 16  ;;  %v5939_v38 = vshll.u32 %v16287_v19, 16  ;;  %v13677_v19 = vld [vmem:[#allocation2 + $0xc] sm:$0xf] }
 0x311   : > { %v5908_v49 = vsel %vm14029_vm9, %v5900_v14, %v5907_v56  ;;  %v16361_v22 = vor.u32 %v5914_v45, %v5913_v55  ;;  %v5917_v61 = vrot.slane %v5913_v55, 4  ;;  %v16363_v43 = vrot.slane %v5919_v58, 7 }
 0x312   : > { %v5930_v20 = vrot.slane %v5928_v11, 7  ;;  %v16365_v41 = vrot.slane %v5936_v32, 7  ;;  %v5945_v17 = vshrl.u32 %v16289_v4, 16  ;;  %v5948_v26 = vshll.u32 %v16289_v4, 16  ;;  %6195 = vst [vmem:[#allocation2 + $0x28] sm:$0xf] %v5908_v49 }
 0x313   : > { %v5924_v39 = vor.u32 %v5922_v42, %v16363_v43  ;;  %v5953_v24 = vshrl.u32 %v16291_v6, 16  ;;  %v5956_v47 = vshll.u32 %v16291_v6, 16  ;;  %v5962_v59 = vshrl.u32 %v16293_v18, 16 }
 0x314   : > { %v16373_v25 = vor.u32 %v5931_v21, %v5930_v20  ;;  %v5934_v30 = vrot.slane %v5930_v20, 4  ;;  %v5941_v44 = vor.u32 %v5939_v38, %v16365_v41  ;;  %v5947_v4 = vrot.slane %v5945_v17, 7 }
 0x315   : > { %v5925_v28 = vsel %vm14029_vm9, %v5917_v61, %v5924_v39  ;;  %v16379_v45 = vrot.slane %v5953_v24, 7  ;;  %v5965_v6 = vshll.u32 %v16293_v18, 16  ;;  %v5970_v56 = vshrl.u32 %v16295_v48, 16 }
 0x316   : > { %v5942_v14 = vsel %vm14029_vm9, %v5934_v30, %v5941_v44  ;;  %v5973_v55 = vshll.u32 %v16295_v48, 16  ;;  %6202 = vst [vmem:[#allocation2 + $0x34] sm:$0xf] %v5925_v28  ;;  %v16387_v58 = vor.u32 %v5948_v26, %v5947_v4  ;;  %v5951_v42 = vrot.slane %v5947_v4, 4 }
 0x317   : > { %v5958_v11 = vor.u32 %v5956_v47, %v16379_v45  ;;  %6209 = vst [vmem:[#allocation2 + $0x40] sm:$0xf] %v5942_v14  ;;  %v5964_v32 = vrot.slane %v5962_v59, 7  ;;  %v16391_v38 = vrot.slane %v5970_v56, 7  ;;  %v5979_v49 = vshrl.u32 %v16297_v60, 16 }
 0x318   : > { %v5982_v18 = vshll.u32 %v16297_v60, 16  ;;  %v5987_v48 = vshrl.u32 %v16299_v31, 16  ;;  %v5990_v20 = vshll.u32 %v16299_v31, 16  ;;  %v5996_v17 = vshrl.u32 %v16301_v35, 16  ;;  %v6206_v47 = vld [vmem:[#allocation2 + $0x3c] sm:$0xf] }
 0x319   : > { %v5959_v61 = vsel %vm14029_vm9, %v5951_v42, %v5958_v11  ;;  %v16400_v26 = vor.u32 %v5965_v6, %v5964_v32  ;;  %v5968_v39 = vrot.slane %v5964_v32, 4  ;;  %v5975_v24 = vor.u32 %v5973_v55, %v16391_v38  ;;  %v6199_v42 = vld [vmem:[#allocation2 + $0x30] sm:$0xf] }
 0x31a   : > { %6216 = vst [vmem:[#allocation2 + $0x4c] sm:$0xf] %v5959_v61  ;;  %v5981_v30 = vrot.slane %v5979_v49, 7  ;;  %v16404_v44 = vrot.slane %v5987_v48, 7  ;;  %v5998_v60 = vrot.slane %v5996_v17, 7  ;;  %v5999_v28 = vshll.u32 %v16301_v35, 16 }
 0x31b   : > { %v5976_v4 = vsel %vm14029_vm9, %v5968_v39, %v5975_v24  ;;  %v6004_v31 = vshrl.u32 %v16303_v57, 16  ;;  %v6007_v59 = vshll.u32 %v16303_v57, 16  ;;  %v6013_v14 = vshrl.u32 %v16305_v1, 16 }
 0x31c   : > { %v16412_v6 = vor.u32 %v5982_v18, %v5981_v30  ;;  %v5985_v56 = vrot.slane %v5981_v30, 4  ;;  %v5992_v55 = vor.u32 %v5990_v20, %v16404_v44  ;;  %6223 = vst [vmem:[#allocation2 + $0x58] sm:$0xf] %v5976_v4  ;;  %v16416_v11 = vor.u32 %v5999_v28, %v5998_v60 }
 0x31d   : > { %v6002_v35 = vrot.slane %v5998_v60, 4  ;;  %v16418_v32 = vrot.slane %v6004_v31, 7  ;;  %v6015_v49 = vrot.slane %v6013_v14, 7  ;;  %v6016_v57 = vshll.u32 %v16305_v1, 16 }
 0x31e   : > { %v5993_v61 = vsel %vm14029_vm9, %v5985_v56, %v5992_v55  ;;  %v6021_v18 = vshrl.u32 %v16307_v3, 16  ;;  %v6024_v48 = vshll.u32 %v16307_v3, 16  ;;  %v6030_v24 = vshrl.u32 %v16309_v62, 16  ;;  %v6192_v56 = vld [vmem:[#allocation2 + $0x24] sm:$0xf] }
 0x31f   : > { %v6009_v20 = vor.u32 %v6007_v59, %v16418_v32  ;;  %v6019_v39 = vrot.slane %v6015_v49, 4  ;;  %6230 = vst [vmem:[#allocation2 + $0x64] sm:$0xf] %v5993_v61  ;;  %v16428_v30 = vor.u32 %v6016_v57, %v6015_v49  ;;  %v6033_v28 = vshll.u32 %v16309_v62, 16 }
 0x320   : > { %v16430_v60 = vrot.slane %v6021_v18, 7  ;;  %v6038_v1 = vshrl.u32 %v16311_v9, 16  ;;  %v6032_v3 = vrot.slane %v6030_v24, 7  ;;  %v6041_v31 = vshll.u32 %v16311_v9, 16 }
 0x321   : > { %v6010_v4 = vsel %vm14029_vm9, %v6002_v35, %v6009_v20  ;;  %v6047_v59 = vshrl.u32 %v16313_v7, 16  ;;  %v6050_v49 = vshll.u32 %v16313_v7, 16  ;;  %v6055_v35 = vshrl.u32 %v16315_v53, 16 }
 0x322   : > { %v6026_v14 = vor.u32 %v6024_v48, %v16430_v60  ;;  %v16440_v55 = vrot.slane %v6038_v1, 7  ;;  %6237 = vst [vmem:[#allocation2 + $0x70] sm:$0xf] %v6010_v4  ;;  %v16443_v62 = vor.u32 %v6033_v28, %v6032_v3  ;;  %v6036_v61 = vrot.slane %v6032_v3, 4  ;;  %v6182_v48 = vld [vmem:[#allocation2 + $0x14] sm:$0x1] }
 0x323   : > { %v6049_v57 = vrot.slane %v6047_v59, 7  ;;  %v6058_v20 = vshll.u32 %v16315_v53, 16  ;;  %v16453_v7 = vrot.slane %v6055_v35, 7  ;;  %v6064_v28 = vshrl.u32 %v16317_v0, 16 }
 0x324   : > { %v6027_v9 = vsel %vm14029_vm9, %v6019_v39, %v6026_v14  ;;  %v6043_v18 = vor.u32 %v6041_v31, %v16440_v55  ;;  %v6067_v3 = vshll.u32 %v16317_v0, 16  ;;  %v6072_v39 = vshrl.u32 %v16319_v51, 16 }
 0x325   : > { %v16451_v24 = vor.u32 %v6050_v49, %v6049_v57  ;;  %v6053_v1 = vrot.slane %v6049_v57, 4  ;;  %6244 = vst [vmem:[#allocation2 + $0x7c] sm:$0xf] %v6027_v9  ;;  %v6075_v31 = vshll.u32 %v16319_v51, 16  ;;  %v6060_v59 = vor.u32 %v6058_v20, %v16453_v7  ;;  %v6185_v9 = vld [vmem:[#allocation2 + $0x18] sm:$0xf] }
 0x326   : > { %v6044_v4 = vsel %vm14029_vm9, %v6036_v61, %v6043_v18  ;;  %v6066_v14 = vrot.slane %v6064_v28, 7  ;;  %v6081_v49 = vshrl.u32 %v16321_v33, 16  ;;  %v16464_v57 = vrot.slane %v6072_v39, 7  ;;  %v6189_v18 = vld [vmem:[#allocation2 + $0x20] sm:$0x1] }
 0x327   : > { %6251 = vst [vmem:[#allocation2 + $0x88] sm:$0xf] %v6044_v4  ;;  %v6084_v35 = vshll.u32 %v16321_v33, 16  ;;  %v6089_v61 = vshrl.u32 %v16323_v13, 16  ;;  %v6092_v0 = vshll.u32 %v16323_v13, 16  ;;  %v6061_v51 = vsel %vm14029_vm9, %v6053_v1, %v6060_v59 }
 0x328   : > { %v16471_v20 = vor.u32 %v6067_v3, %v6066_v14  ;;  %v6070_v28 = vrot.slane %v6066_v14, 4  ;;  %v6083_v53 = vrot.slane %v6081_v49, 7  ;;  %v6196_v4 = vld [vmem:[#allocation2 + $0x2c] sm:$0x1]  ;;  %v6077_v39 = vor.u32 %v6075_v31, %v16464_v57  ;;  %6258 = vst [vmem:[#allocation2 + $0x94] sm:$0xf] %v6061_v51 }
 0x329   : > { %v16475_v17 = vrot.slane %v6089_v61, 7  ;;  %v16480_v13 = vor.u32 %v6101_v54, %v16228_v27  ;;  %v6203_v1 = vld [vmem:[#allocation2 + $0x38] sm:$0x1]  ;;  %v6115_v14 = vshrl.u32 %v16325_v29, 16  ;;  %v6118_v49 = vshll.u32 %v16325_v29, 16 }
 0x32a   : > { %v16482_v3 = vor.u32 %v6084_v35, %v6083_v53  ;;  %v6087_v59 = vrot.slane %v6083_v53, 4  ;;  %v6213_v31 = vld [vmem:[#allocation2 + $0x48] sm:$0xf]  ;;  %v6217_v33 = vld [vmem:[#allocation2 + $0x50] sm:$0x1]  ;;  %v6078_v21 = vsel %vm14029_vm9, %v6070_v28, %v6077_v39  ;;  %v6123_v27 = vshrl.u32 %v16327_v34, 16 }
 0x32b   : > { %19137 = vst [vmem:[#allocation30_spill] sm:$0xff] %v16480_v13  ;;  %v6210_v61 = vld [vmem:[#allocation2 + $0x44] sm:$0x1]  ;;  %v6094_v12 = vor.u32 %v6092_v0, %v16475_v17  ;;  %v16491_v35 = vld [vmem:[#allocation2 + $0x60] sm:$0xf]  ;;  %v6117_v23 = vrot.slane %v6115_v14, 7  ;;  %v6179_v8 = vsel %vm14023_vm8, %v16331_v52, %v13677_v19  ;;  %v6183_v0 = vsel %vm14037_vm10, %v5875_v50, %v6182_v48 }
 0x32c   : > { %v16493_v53 = vld [vmem:[#allocation2 + $0x54] sm:$0xf]  ;;  %v6224_v51 = vld [vmem:[#allocation2 + $0x5c] sm:$0x1]  ;;  %v6126_v29 = vshll.u32 %v16327_v34, 16  ;;  %v16507_v34 = vrot.slane %v6123_v27, 7  ;;  %v6186_v36 = vsel %vm14023_vm8, %v16337_v15, %v6185_v9 }
 0x32d   : > { %6265 = vst [vmem:[#allocation2 + $0xa0] sm:$0xf] %v6078_v21  ;;  %v6231_v28 = vld [vmem:[#allocation2 + $0x68] sm:$0x1]  ;;  %v16503_v39 = vld [vmem:[#allocation2 + $0x78] sm:$0xf]  ;;  %v6095_v14 = vsel %vm14029_vm9, %v6087_v59, %v6094_v12  ;;  %v16516_v13 = vor.u32 %v6118_v49, %v6117_v23 }
 0x32e   : > { %v6234_v54 = vld [vmem:[#allocation2 + $0x6c] sm:$0xf]  ;;  %6180 = vst [vmem:[#allocation2 + $0xc] sm:$0xf] %v6179_v8  ;;  %6184 = vst [vmem:[#allocation2 + $0x14] sm:$0x1] %v6183_v0  ;;  %v6193_v8 = vsel %vm14023_vm8, %v16349_v46, %v6192_v56  ;;  %v6128_v27 = vor.u32 %v6126_v29, %v16507_v34  ;;  %v6207_v29 = vsel %vm14023_vm8, %v16373_v25, %v6206_v47 }
 0x32f   : > { %v19139_v52 = vrot.slane %v16333_v5, 4  ;;  %v6245_v19 = vld [vmem:[#allocation2 + $0x80] sm:$0x1]  ;;  %v6255_v21 = vld [vmem:[#allocation2 + $0x90] sm:$0xf]  ;;  %v6121_v59 = vrot.slane %v6117_v23, 4  ;;  %v6200_v23 = vsel %vm14023_vm8, %v16361_v22, %v6199_v42  ;;  %v6214_v22 = vsel %vm14023_vm8, %v16387_v58, %v6213_v31 }
 0x330   : > { %v6248_v48 = vld [vmem:[#allocation2 + $0x84] sm:$0xf]  ;;  %v19140_v12 = vrot.slane %v16341_v16, 4  ;;  %6272 = vst [vmem:[#allocation2 + $0xac] sm:$0xf] %v6095_v14  ;;  %v6130_v49 = vrot.slane %v16507_v34, 4 }
 0x331   : > { %v6190_v50 = vsel %vm14037_vm10, %v19139_v52, %v6189_v18  ;;  %6187 = vst [vmem:[#allocation2 + $0x18] sm:$0xf] %v6186_v36  ;;  %v6259_v15 = vld [vmem:[#allocation2 + $0x98] sm:$0x1]  ;;  %v6269_v9 = vld [vmem:[#allocation2 + $0xa8] sm:$0xf] }
 0x332   : > { %6191 = vst [vmem:[#allocation2 + $0x20] sm:$0x1] %v6190_v50  ;;  %v6197_v5 = vsel %vm14037_vm10, %v19140_v12, %v6196_v4  ;;  %v6262_v18 = vld [vmem:[#allocation2 + $0x9c] sm:$0xf]  ;;  %v19141_v46 = vrot.slane %v16363_v43, 4  ;;  %v19142_v0 = vrot.slane %v16365_v41, 4  ;;  %v6221_v41 = vsel %vm14023_vm8, %v16400_v26, %v16493_v53 }
 0x333   : > { %6198 = vst [vmem:[#allocation2 + $0x2c] sm:$0x1] %v6197_v5  ;;  %6194 = vst [vmem:[#allocation2 + $0x24] sm:$0xf] %v6193_v8  ;;  %v6273_v56 = vld [vmem:[#allocation2 + $0xb0] sm:$0x1] }
 0x334   : > { %v6204_v16 = vsel %vm14037_vm10, %v19141_v46, %v6203_v1  ;;  %v6266_v4 = vld [vmem:[#allocation2 + $0xa4] sm:$0x1]  ;;  %v6211_v14 = vsel %vm14037_vm10, %v19142_v0, %v6210_v61  ;;  %v19143_v43 = vrot.slane %v16379_v45, 4  ;;  %6201 = vst [vmem:[#allocation2 + $0x30] sm:$0xf] %v6200_v23  ;;  %v6129_v1 = vsel %vm14029_vm9, %v6121_v59, %v6128_v27 }
 0x335   : > { %6205 = vst [vmem:[#allocation2 + $0x38] sm:$0x1] %v6204_v16  ;;  %6212 = vst [vmem:[#allocation2 + $0x44] sm:$0x1] %v6211_v14  ;;  %v19144_v25 = vrot.slane %v16391_v38, 4  ;;  %v6228_v45 = vsel %vm14023_vm8, %v16412_v6, %v16491_v35  ;;  %v19145_v31 = vrot.slane %v16404_v44, 4  ;;  %v6235_v38 = vsel %vm14023_vm8, %v16416_v11, %v6234_v54 }
 0x336   : > { %v6218_v42 = vsel %vm14037_vm10, %v19143_v43, %v6217_v33  ;;  %6208 = vst [vmem:[#allocation2 + $0x3c] sm:$0xf] %v6207_v29  ;;  %6215 = vst [vmem:[#allocation2 + $0x48] sm:$0xf] %v6214_v22  ;;  %v6276_v47 = vld [vmem:[#allocation2 + $0xb4] sm:$0xf]  ;;  %v6242_v35 = vsel %vm14023_vm8, %v16428_v30, %v16503_v39  ;;  %v6256_v30 = vsel %vm14023_vm8, %v16451_v24, %v6255_v21 }
 0x337   : > { %6219 = vst [vmem:[#allocation2 + $0x50] sm:$0x1] %v6218_v42  ;;  %v6225_v58 = vsel %vm14037_vm10, %v19144_v25, %v6224_v51  ;;  %v6287_v33 = vld [vmem:[#allocation2 + $0xc8] sm:$0x1]  ;;  %v6232_v26 = vsel %vm14037_vm10, %v19145_v31, %v6231_v28  ;;  %v19146_v61 = vrot.slane %v16418_v32, 4  ;;  %v19147_v44 = vrot.slane %v16430_v60, 4 }
 0x338   : > { %6226 = vst [vmem:[#allocation2 + $0x5c] sm:$0x1] %v6225_v58  ;;  %6286 = vst [vmem:[#allocation2 + $0xc4] sm:$0xf] %v6129_v1  ;;  %v6249_v32 = vsel %vm14023_vm8, %v16443_v62, %v6248_v48  ;;  %v16591_v53 = vld [vmem:[#allocation2 + $0x10] sm:$0xf]  ;;  %v6270_v51 = vsel %vm14023_vm8, %v16482_v3, %v6269_v9  ;;  %v6284_v3 = vsel %vm14023_vm8, %v16516_v13, %v6283_v40 }
 0x339   : > { %v6239_v6 = vsel %vm14037_vm10, %v19146_v61, %v6238_v63  ;;  %6222 = vst [vmem:[#allocation2 + $0x54] sm:$0xf] %v6221_v41  ;;  %6229 = vst [vmem:[#allocation2 + $0x60] sm:$0xf] %v6228_v45  ;;  %v6246_v11 = vsel %vm14037_vm10, %v19147_v44, %v6245_v19  ;;  %v19148_v63 = vrot.slane %v16440_v55, 4  ;;  %v19149_v60 = vrot.slane %v16453_v7, 4 }
 0x33a   : > { %6233 = vst [vmem:[#allocation2 + $0x68] sm:$0x1] %v6232_v26  ;;  %6240 = vst [vmem:[#allocation2 + $0x74] sm:$0x1] %v6239_v6  ;;  %v6263_v55 = vsel %vm14023_vm8, %v16471_v20, %v6262_v18  ;;  %v6292_v28 = vld [vmem:[#allocation2 + $0xc] sm:$0xf]  ;;  %v6288_v36 = vsel %vm14037_vm10, %v6130_v49, %v6287_v33 }
 0x33b   : > { %v6253_v54 = vsel %vm14037_vm10, %v19148_v63, %v6252_v10  ;;  %6236 = vst [vmem:[#allocation2 + $0x6c] sm:$0xf] %v6235_v38  ;;  %6243 = vst [vmem:[#allocation2 + $0x78] sm:$0xf] %v6242_v35  ;;  %v6260_v62 = vsel %vm14037_vm10, %v19149_v60, %v6259_v15  ;;  %v19150_v10 = vrot.slane %v16464_v57, 4  ;;  %v19151_v39 = vrot.slane %v16475_v17, 4 }
 0x33c   : > { %6247 = vst [vmem:[#allocation2 + $0x80] sm:$0x1] %v6246_v11  ;;  %6254 = vst [vmem:[#allocation2 + $0x8c] sm:$0x1] %v6253_v54  ;;  %v16607_v7 = vld [vmem:[#allocation2 + $0x1c] sm:$0xf]  ;;  %v11772_v48 = vcombine.low %v6292_v28, %v16591_v53 }
 0x33d   : > { %v6267_v24 = vsel %vm14037_vm10, %v19150_v10, %v6266_v4  ;;  %6250 = vst [vmem:[#allocation2 + $0x84] sm:$0xf] %v6249_v32  ;;  %6257 = vst [vmem:[#allocation2 + $0x90] sm:$0xf] %v6256_v30  ;;  %v6274_v20 = vsel %vm14037_vm10, %v19151_v39, %v6273_v56  ;;  %v19152_v57 = vld [vmem:[#allocation30_spill] sm:$0xff]  ;;  %v6379_v17 = vshrl.u32 %v6292_v28, 16 }
 0x33e   : > { %6261 = vst [vmem:[#allocation2 + $0x98] sm:$0x1] %v6260_v62  ;;  %6268 = vst [vmem:[#allocation2 + $0xa4] sm:$0x1] %v6267_v24  ;;  %v6277_v34 = vsel %vm14023_vm8, %v19152_v57, %v6276_v47  ;;  %v6294_v52 = vld [vmem:[#allocation2 + $0x18] sm:$0xf]  ;;  %12979 = vmatmul.mubr.bf16.vlgmr.msra.gmra.mxu0 %v11772_v48 }
 0x33f   : > { %6264 = vst [vmem:[#allocation2 + $0x9c] sm:$0xf] %v6263_v55  ;;  %6271 = vst [vmem:[#allocation2 + $0xa8] sm:$0xf] %v6270_v51  ;;  %v16621_v50 = vld [vmem:[#allocation2 + $0x28] sm:$0xf]  ;;  %v11773_v12 = vcombine.low %v6294_v52, %v16607_v7 }
 0x340   : > { %6275 = vst [vmem:[#allocation2 + $0xb0] sm:$0x1] %v6274_v20  ;;  %6289 = vst [vmem:[#allocation2 + $0xc8] sm:$0x1] %v6288_v36  ;;  %v6382_v19 = vshll.u32 %v6292_v28, 16  ;;  %v6392_v21 = vshrl.u32 %v16591_v53, 16 }
 0x341   : > { %6278 = vst [vmem:[#allocation2 + $0xb4] sm:$0xf] %v6277_v34  ;;  %6285 = vst [vmem:[#allocation2 + $0xc0] sm:$0xf] %v6284_v3  ;;  %v6296_v2 = vld [vmem:[#allocation2 + $0x24] sm:$0xf]  ;;  %12982 = vmatprep.mubr.bf16.mxu0 %v11773_v12 }
 0x342   : > { %v13570_v13 = vld [vmem:[#allocation8 + $0xf0] sm:$0xff]   ;;  %v6403_v59 = vshrl.u32 %v6294_v52, 16  ;;  %v6406_v37 = vshll.u32 %v6294_v52, 16  ;;  %v6416_v8 = vshrl.u32 %v16607_v7, 16  ;;  %v16627_v5 = vld [vmem:[#allocation2 + $0x14] sm:$0x1]  ;;  %v11774_v56 = vcombine.low %v6296_v2, %v16621_v50 }
 0x343   : > { %v6381_v15 = vrot.slane %v6379_v17, 4  ;;  %v6384_v9 = vrot.slane %v6382_v19, 5  ;;  %v6427_v18 = vshrl.u32 %v6296_v2, 16  ;;  %v6430_v27 = vshll.u32 %v6296_v2, 16  ;;  %v6298_v49 = vld [vmem:[#allocation2 + $0x30] sm:$0xf] }
 0x344   : > { %v6405_v23 = vrot.slane %v6403_v59, 4  ;;  %v6408_v46 = vrot.slane %v6406_v37, 5  ;;  %v6440_v16 = vshrl.u32 %v16621_v50, 16  ;;  %v16631_v4 = vld [vmem:[#allocation2 + $0x34] sm:$0xf]  ;;  %v19153_v29 = vld [vmem:[#allocation18_spill] sm:$0xff] }
 0x345   : > { %13059 = vmatpush3.bf16.msra.mxu0 %v19153_v29  ;;  %v6429_v0 = vrot.slane %v6427_v18, 4  ;;  %v6432_v14 = vrot.slane %v6430_v27, 5  ;;  %v6385_v22 = vor.u32 %v6384_v9, %v6381_v15  ;;  %v6388_v43 = vshll.u32 %v16591_v53, 16  ;;  %v13572_v42 = vld [vmem:[#allocation8 + $0xe8] sm:$0xff]   ;;  %v16640_v26 = vld [vmem:[#allocation2 + $0x3c] sm:$0xf] }
 0x346   : > { %13060 = vmatprep.subr.bf16.mxu0 %v13570_v13  ;;  %v6394_v1 = vrot.slane %v6392_v21, 4  ;;  %v6398_v41 = vshll.u32 %v16627_v5, 16  ;;  %v6451_v25 = vshrl.u32 %v6298_v49, 16  ;;  %v6454_v58 = vshll.u32 %v6298_v49, 16  ;;  %v16636_v45 = vld [vmem:[#allocation2 + $0x20] sm:$0x1]  ;;  %12983 = vmatmul.mubr.bf16.gmra.mxu0 %v11774_v56 }
 0x347   : > { %v6386_v40 = vrot.slane %v6385_v22, 4  ;;  %v6390_v47 = vrot.slane %v6388_v43, 5  ;;  %v6464_v33 = vshrl.u32 %v16631_v4, 16  ;;  %v11775_v31 = vcombine.low %v6298_v49, %v16631_v4  ;;  %v16644_v44 = vld [vmem:[#allocation2 + $0x40] sm:$0xf]  ;;  %v13575_v60 = vld [vmem:[#allocation8 + $0xe0] sm:$0xff]  }
 0x348   : > { %v6400_v38 = vrot.slane %v6398_v41, 5  ;;  %v16642_v61 = vrot.slane %v6451_v25, 4  ;;  %v6456_v6 = vrot.slane %v6454_v58, 5  ;;  %v6409_v35 = vor.u32 %v6408_v46, %v6405_v23  ;;  %v16655_v57 = vld [vmem:[#allocation2 + $0x2c] sm:$0x1]  ;;  %v13577_v59 = vld [vmem:[#allocation8 + $0xd8] sm:$0xff]  }
 0x349   : > { %13061 = vmatpush3.bf16.msra.mxu0 %v13570_v13  ;;  %v6391_v32 = vsel %vm14017_vm7, %v6386_v40, %v6390_v47  ;;  %v6395_v63 = vor.u32 %v6394_v1, %v6390_v47  ;;  %v6412_v54 = vshll.u32 %v16607_v7, 16  ;;  %v6418_v30 = vrot.slane %v6416_v8, 4  ;;  %12986 = vmatprep.mubr.bf16.mxu0 %v11775_v31  ;;  %v6302_v17 = vld [vmem:[#allocation2 + $0x48] sm:$0xf]  ;;  %v16666_v13 = vld [vmem:[#allocation2 + $0x4c] sm:$0xf] }
 0x34a   : > { %13062 = vmatprep.subr.bf16.mxu0 %v13572_v42  ;;  %v6410_v62 = vrot.slane %v6409_v35, 4  ;;  %v6422_v55 = vshll.u32 %v16636_v45, 16  ;;  %v6475_v10 = vshrl.u32 %v16640_v26, 16  ;;  %v6478_v24 = vshll.u32 %v16640_v26, 16  ;;  %v13562_v9 = vld [vmem:[#allocation8 + $0xb0] sm:$0xff]   ;;  %v13678_v43 = vld [vmem:[#allocation8 + $0xb8] sm:$0xff]  }
 0x34b   : > { %v6396_v51 = vrot.slane %v6395_v63, 4  ;;  %v6414_v28 = vrot.slane %v6412_v54, 5  ;;  %v6488_v39 = vshrl.u32 %v16644_v44, 16  ;;  %v11776_v20 = vcombine.low %v16640_v26, %v16644_v44  ;;  %v16674_v22 = vld [vmem:[#allocation2 + $0x54] sm:$0xf]  ;;  %v13565_v26 = vld [vmem:[#allocation8 + $0xa8] sm:$0xff]  }
 0x34c   : > { %v6424_v34 = vrot.slane %v6422_v55, 5  ;;  %v16657_v3 = vrot.slane %v6475_v10, 4  ;;  %v16659_v36 = vrot.slane %v6478_v24, 5  ;;  %v6433_v52 = vor.u32 %v6432_v14, %v6429_v0  ;;  %v16671_v0 = vld [vmem:[#allocation2 + $0x38] sm:$0x1] }
 0x34d   : > { %13063 = vmatpush3.bf16.msra.mxu0 %v13572_v42  ;;  %v6401_v19 = vsel %vm14017_vm7, %v6396_v51, %v6400_v38  ;;  %v6415_v21 = vsel %vm14017_vm7, %v6410_v62, %v6414_v28  ;;  %v6419_v48 = vor.u32 %v6418_v30, %v6414_v28  ;;  %v6436_v2 = vshll.u32 %v16621_v50, 16  ;;  %v16682_v25 = vld [vmem:[#allocation2 + $0x58] sm:$0xf]  ;;  %v13580_v38 = vld [vmem:[#allocation8 + $0xd0] sm:$0xff]   ;;  %v16691_v63 = vld [vmem:[#allocation2 + $0x64] sm:$0xf] }
 0x34e   : > { %13064 = vmatprep.subr.bf16.mxu0 %v13575_v60  ;;  %v11748_v37 = vcombine.low %v6391_v32, %v6401_v19  ;;  %v6434_v8 = vrot.slane %v6433_v52, 4  ;;  %v6442_v12 = vrot.slane %v6440_v16, 4  ;;  %v6446_v15 = vshll.u32 %v16655_v57, 16  ;;  %12987 = vmatmul.mubr.bf16.gmra.mxu0 %v11776_v20  ;;  %v16697_v55 = vld [vmem:[#allocation2 + $0x44] sm:$0x1]  ;;  %v13569_v10 = vld [vmem:[#allocation8 + $0xa0] sm:$0xff]  }
 0x34f   : > { %v6420_v18 = vrot.slane %v6419_v48, 4  ;;  %v6438_v27 = vrot.slane %v6436_v2, 5  ;;  %v6499_v49 = vshrl.u32 %v6302_v17, 16  ;;  %v6502_v23 = vshll.u32 %v6302_v17, 16  ;;  %v6306_v20 = vld [vmem:[#allocation2 + $0x60] sm:$0xf] }
 0x350   : > { %12931 = vmatmul.mubr.bf16.vlgmr.msra.gmra.mxu1 %v11748_v37  ;;  %v6448_v46 = vrot.slane %v6446_v15, 5  ;;  %v6512_v56 = vshrl.u32 %v16666_v13, 16  ;;  %v11777_v29 = vcombine.low %v6302_v17, %v16666_v13  ;;  %v6457_v14 = vor.u32 %v6456_v6, %v16642_v61 }
 0x351   : > { %13065 = vmatpush3.bf16.msra.mxu0 %v13575_v60  ;;  %v6425_v16 = vsel %vm14017_vm7, %v6420_v18, %v6424_v34  ;;  %13011 = vmatpush3.bf16.msra.mxu1 %v13678_v43  ;;  %v6439_v42 = vsel %vm14017_vm7, %v6434_v8, %v6438_v27  ;;  %v6443_v1 = vor.u32 %v6442_v12, %v6438_v27  ;;  %v16680_v41 = vrot.slane %v6499_v49, 4 }
 0x352   : > { %13066 = vmatprep.subr.bf16.mxu0 %v13577_v59  ;;  %v11749_v58 = vcombine.low %v6415_v21, %v6425_v16  ;;  %v16684_v40 = vrot.slane %v6502_v23, 5  ;;  %13012 = vmatprep.subr.bf16.mxu1 %v13562_v9  ;;  %v6458_v47 = vrot.slane %v6457_v14, 4  ;;  %v6460_v31 = vshll.u32 %v16631_v4, 16  ;;  %v13582_v21 = vld [vmem:[#allocation8 + $0xc8] sm:$0xff]   ;;  %v6308_v23 = vld [vmem:[#allocation2 + $0x6c] sm:$0xf] }
 0x353   : > { %v6444_v61 = vrot.slane %v6443_v1, 4  ;;  %v6466_v6 = vrot.slane %v6464_v33, 4  ;;  %v6470_v35 = vshll.u32 %v16671_v0, 16  ;;  %v6523_v32 = vshrl.u32 %v16674_v22, 16  ;;  %12990 = vmatprep.mubr.bf16.mxu0 %v11777_v29  ;;  %v13574_v16 = vld [vmem:[#allocation8 + $0x98] sm:$0xff]  }
 0x354   : > { %12934 = vmatprep.mubr.bf16.mxu1 %v11749_v58  ;;  %v6462_v54 = vrot.slane %v6460_v31, 5  ;;  %v6526_v30 = vshll.u32 %v16674_v22, 16  ;;  %v6536_v60 = vshrl.u32 %v16682_v25, 16  ;;  %v11778_v62 = vcombine.low %v16674_v22, %v16682_v25  ;;  %v16726_v22 = vld [vmem:[#allocation2 + $0x70] sm:$0xf]  ;;  %v13585_v58 = vld [vmem:[#allocation8 + $0xc0] sm:$0xff]  }
 0x355   : > { %v6449_v33 = vsel %vm14017_vm7, %v6444_v61, %v6448_v46  ;;  %v6472_v24 = vrot.slane %v6470_v35, 5  ;;  %13013 = vmatpush3.bf16.msra.mxu1 %v13562_v9  ;;  %v16701_v51 = vrot.slane %v6523_v32, 4  ;;  %v6481_v28 = vor.u32 %v16659_v36, %v16657_v3  ;;  %13067 = vmatpush3.bf16.msra.mxu0 %v13577_v59  ;;  %v16713_v36 = vld [vmem:[#allocation2 + $0x50] sm:$0x1]  ;;  %v16735_v32 = vld [vmem:[#allocation2 + $0x5c] sm:$0x1] }
 0x356   : > { %v11750_v34 = vcombine.low %v6439_v42, %v6449_v33  ;;  %v6463_v52 = vsel %vm14017_vm7, %v6458_v47, %v6462_v54  ;;  %v6467_v17 = vor.u32 %v6466_v6, %v6462_v54  ;;  %v16707_v19 = vrot.slane %v6526_v30, 5  ;;  %13014 = vmatprep.subr.bf16.mxu1 %v13565_v26  ;;  %13068 = vmatprep.subr.bf16.mxu0 %v13580_v38  ;;  %v13579_v54 = vld [vmem:[#allocation8 + $0x90] sm:$0xff]  }
 0x357   : > { %v6482_v48 = vrot.slane %v6481_v28, 4  ;;  %v6484_v2 = vshll.u32 %v16644_v44, 16  ;;  %v6490_v37 = vrot.slane %v6488_v39, 4  ;;  %v6494_v3 = vshll.u32 %v16697_v55, 16  ;;  %12991 = vmatmul.mubr.bf16.gmra.mxu0 %v11778_v62 }
 0x358   : > { %12935 = vmatmul.mubr.bf16.gmra.mxu1 %v11750_v34  ;;  %v6468_v59 = vrot.slane %v6467_v17, 4  ;;  %v6547_v8 = vshrl.u32 %v6306_v20, 16  ;;  %v6550_v12 = vshll.u32 %v6306_v20, 16  ;;  %v6560_v15 = vshrl.u32 %v16691_v63, 16 }
 0x359   : > { %v6486_v9 = vrot.slane %v6484_v2, 5  ;;  %v6496_v18 = vrot.slane %v6494_v3, 5  ;;  %v11779_v27 = vcombine.low %v6306_v20, %v16691_v63  ;;  %v6505_v49 = vor.u32 %v16684_v40, %v16680_v41  ;;  %13015 = vmatpush3.bf16.msra.mxu1 %v13565_v26  ;;  %13069 = vmatpush3.bf16.msra.mxu0 %v13580_v38  ;;  %v16753_v3 = vld [vmem:[#allocation8 + $0x178] sm:$0xff]  }
 0x35a   : > { %v6473_v39 = vsel %vm14017_vm7, %v6468_v59, %v6472_v24  ;;  %v16721_v46 = vrot.slane %v6547_v8, 4  ;;  %v16723_v29 = vrot.slane %v6550_v12, 5  ;;  %v6508_v14 = vshll.u32 %v16666_v13, 16  ;;  %13016 = vmatprep.subr.bf16.mxu1 %v13569_v10  ;;  %13070 = vmatprep.subr.bf16.mxu0 %v13582_v21  ;;  %v6310_v24 = vld [vmem:[#allocation2 + $0x78] sm:$0xf] }
 0x35b   : > { %v11751_v43 = vcombine.low %v6463_v52, %v6473_v39  ;;  %v6487_v42 = vsel %vm14017_vm7, %v6482_v48, %v6486_v9  ;;  %v6491_v1 = vor.u32 %v6490_v37, %v6486_v9  ;;  %v6506_v41 = vrot.slane %v6505_v49, 4  ;;  %12994 = vmatprep.mubr.bf16.mxu0 %v11779_v27  ;;  %v16748_v52 = vld [vmem:[#allocation2 + $0x7c] sm:$0xf]  ;;  %v13583_v37 = vld [vmem:[#allocation8 + $0x88] sm:$0xff]  }
 0x35c   : > { %v6510_v40 = vrot.slane %v6508_v14, 5  ;;  %v6514_v47 = vrot.slane %v6512_v56, 4  ;;  %v6518_v31 = vshll.u32 %v16713_v36, 16  ;;  %v6571_v26 = vshrl.u32 %v6308_v23, 16  ;;  %v6312_v49 = vld [vmem:[#allocation2 + $0x84] sm:$0xf] }
 0x35d   : > { %12938 = vmatprep.mubr.bf16.mxu1 %v11751_v43  ;;  %v6492_v38 = vrot.slane %v6491_v1, 4  ;;  %v6574_v61 = vshll.u32 %v6308_v23, 16  ;;  %v6584_v6 = vshrl.u32 %v16726_v22, 16  ;;  %v11780_v35 = vcombine.low %v6308_v23, %v16726_v22  ;;  %13017 = vmatpush3.bf16.msra.mxu1 %v13569_v10 }
 0x35e   : > { %v6511_v30 = vsel %vm14017_vm7, %v6506_v41, %v6510_v40  ;;  %v6515_v62 = vor.u32 %v6514_v47, %v6510_v40  ;;  %v6520_v33 = vrot.slane %v6518_v31, 5  ;;  %v16739_v56 = vrot.slane %v6571_v26, 4  ;;  %13018 = vmatprep.subr.bf16.mxu1 %v13574_v16  ;;  %13071 = vmatpush3.bf16.msra.mxu0 %v13582_v21  ;;  %v16770_v47 = vld [vmem:[#allocation2 + $0x74] sm:$0x1] }
 0x35f   : > { %v6497_v28 = vsel %vm14017_vm7, %v6492_v38, %v6496_v18  ;;  %v16743_v20 = vrot.slane %v6574_v61, 5  ;;  %v6529_v34 = vor.u32 %v16707_v19, %v16701_v51  ;;  %v6532_v10 = vshll.u32 %v16682_v25, 16  ;;  %13072 = vmatprep.subr.bf16.mxu0 %v13585_v58  ;;  %v16755_v51 = vld [vmem:[#allocation2 + $0x68] sm:$0x1]  ;;  %12995 = vmatmul.mubr.bf16.gmra.mxu0 %v11780_v35  ;;  %v16773_v35 = vld [vmem:[#allocation2 + $0x94] sm:$0xf] }
 0x360   : > { %v11752_v17 = vcombine.low %v6487_v42, %v6497_v28  ;;  %v6516_v48 = vrot.slane %v6515_v62, 4  ;;  %v6538_v2 = vrot.slane %v6536_v60, 4  ;;  %v6542_v21 = vshll.u32 %v16735_v32, 16  ;;  %v16763_v42 = vld [vmem:[#allocation2 + $0x88] sm:$0xf] }
 0x361   : > { %v6530_v59 = vrot.slane %v6529_v34, 4  ;;  %v6534_v8 = vrot.slane %v6532_v10, 5  ;;  %v6595_v12 = vshrl.u32 %v6310_v24, 16  ;;  %v6598_v9 = vshll.u32 %v6310_v24, 16  ;;  %13019 = vmatpush3.bf16.msra.mxu1 %v13574_v16 }
 0x362   : > { %12939 = vmatmul.mubr.bf16.gmra.mxu1 %v11752_v17  ;;  %v6521_v19 = vsel %vm14017_vm7, %v6516_v48, %v6520_v33  ;;  %v6544_v18 = vrot.slane %v6542_v21, 5  ;;  %v6608_v27 = vshrl.u32 %v16748_v52, 16  ;;  %v11781_v60 = vcombine.low %v6310_v24, %v16748_v52  ;;  %13020 = vmatprep.subr.bf16.mxu1 %v13579_v54  ;;  %v6314_v33 = vld [vmem:[#allocation2 + $0x90] sm:$0xf] }
 0x363   : > { %v11753_v23 = vcombine.low %v6511_v30, %v6521_v19  ;;  %v6535_v39 = vsel %vm14017_vm7, %v6530_v59, %v6534_v8  ;;  %v6539_v14 = vor.u32 %v6538_v2, %v6534_v8  ;;  %v6597_v43 = vrot.slane %v6595_v12, 4  ;;  %13073 = vmatpush3.bf16.msra.mxu0 %v13585_v58  ;;  %v16788_v12 = vld [vmem:[#allocation8 + $0x138] sm:$0xff]  }
 0x364   : > { %v6600_v16 = vrot.slane %v6598_v9, 5  ;;  %12998 = vmatprep.mubr.bf16.mxu0 %v11781_v60  ;;  %v6553_v1 = vor.u32 %v16723_v29, %v16721_v46  ;;  %v6556_v41 = vshll.u32 %v16691_v63, 16  ;;  %v6562_v40 = vrot.slane %v6560_v15, 4  ;;  %v13587_v15 = vld [vmem:[#allocation8 + $0x80] sm:$0xff]   ;;  %13154 = vmatprep.subr.bf16.mxu0 %v16753_v3 }
 0x365   : > { %12942 = vmatprep.mubr.bf16.mxu1 %v11753_v23  ;;  %v6540_v31 = vrot.slane %v6539_v14, 4  ;;  %v6566_v26 = vshll.u32 %v16755_v51, 16  ;;  %v6619_v38 = vshrl.u32 %v6312_v49, 16  ;;  %v6622_v61 = vshll.u32 %v6312_v49, 16  ;;  %13021 = vmatpush3.bf16.msra.mxu1 %v13579_v54 }
 0x366   : > { %v6554_v30 = vrot.slane %v6553_v1, 4  ;;  %v6558_v62 = vrot.slane %v6556_v41, 5  ;;  %v6632_v46 = vshrl.u32 %v16763_v42, 16  ;;  %v11782_v29 = vcombine.low %v6312_v49, %v16763_v42  ;;  %13022 = vmatprep.subr.bf16.mxu1 %v13583_v37  ;;  %v16791_v49 = vld [vmem:[#allocation2 + $0x80] sm:$0x1] }
 0x367   : > { %v6545_v58 = vsel %vm14017_vm7, %v6540_v31, %v6544_v18  ;;  %v6568_v24 = vrot.slane %v6566_v26, 5  ;;  %v6621_v28 = vrot.slane %v6619_v38, 4  ;;  %v6624_v34 = vrot.slane %v6622_v61, 5 }
 0x368   : > { %v11754_v10 = vcombine.low %v6535_v39, %v6545_v58  ;;  %v6559_v54 = vsel %vm14017_vm7, %v6554_v30, %v6558_v62  ;;  %v6563_v17 = vor.u32 %v6562_v40, %v6558_v62  ;;  %v6577_v48 = vor.u32 %v16743_v20, %v16739_v56  ;;  %12999 = vmatmul.mubr.bf16.gmra.mxu0 %v11782_v29  ;;  %v6316_v39 = vld [vmem:[#allocation2 + $0x9c] sm:$0xf]  ;;  %v16799_v40 = vld [vmem:[#allocation2 + $0xa0] sm:$0xf] }
 0x369   : > { %v6580_v2 = vshll.u32 %v16726_v22, 16  ;;  %v6586_v21 = vrot.slane %v6584_v6, 4  ;;  %v6590_v59 = vshll.u32 %v16770_v47, 16  ;;  %v6643_v8 = vshrl.u32 %v6314_v33, 16  ;;  %13023 = vmatpush3.bf16.msra.mxu1 %v13583_v37 }
 0x36a   : > { %12943 = vmatmul.mubr.bf16.gmra.mxu1 %v11754_v10  ;;  %v6564_v9 = vrot.slane %v6563_v17, 4  ;;  %v6578_v19 = vrot.slane %v6577_v48, 4  ;;  %v6646_v18 = vshll.u32 %v6314_v33, 16  ;;  %v6656_v60 = vshrl.u32 %v16773_v35, 16  ;;  %13024 = vmatprep.subr.bf16.mxu1 %v13587_v15  ;;  %v16809_v10 = vld [vmem:[#allocation2 + $0x8c] sm:$0x1] }
 0x36b   : > { %v6582_v56 = vrot.slane %v6580_v2, 5  ;;  %v6592_v20 = vrot.slane %v6590_v59, 5  ;;  %v16793_v23 = vrot.slane %v6643_v8, 4  ;;  %v11783_v6 = vcombine.low %v6314_v33, %v16773_v35  ;;  %v6318_v48 = vld [vmem:[#allocation2 + $0xa8] sm:$0xf] }
 0x36c   : > { %v6569_v37 = vsel %vm14017_vm7, %v6564_v9, %v6568_v24  ;;  %v6648_v14 = vrot.slane %v6646_v18, 5  ;;  %v6601_v1 = vor.u32 %v6600_v16, %v6597_v43  ;;  %v6604_v41 = vshll.u32 %v16748_v52, 16  ;;  %v16816_v9 = vld [vmem:[#allocation2 + $0xac] sm:$0xf] }
 0x36d   : > { %v11755_v31 = vcombine.low %v6559_v54, %v6569_v37  ;;  %v6583_v26 = vsel %vm14017_vm7, %v6578_v19, %v6582_v56  ;;  %v6587_v38 = vor.u32 %v6586_v21, %v6582_v56  ;;  %13002 = vmatprep.mubr.bf16.mxu0 %v11783_v6  ;;  %v6610_v61 = vrot.slane %v6608_v27, 4  ;;  %13025 = vmatpush3.bf16.msra.mxu1 %v13587_v15 }
 0x36e   : > { %v6602_v30 = vrot.slane %v6601_v1, 4  ;;  %v6606_v62 = vrot.slane %v6604_v41, 5  ;;  %v6614_v29 = vshll.u32 %v16791_v49, 16  ;;  %v6667_v33 = vshrl.u32 %v6316_v39, 16  ;;  %13106 = vmatprep.subr.bf16.mxu1 %v16788_v12 }
 0x36f   : > { %12946 = vmatprep.mubr.bf16.mxu1 %v11755_v31  ;;  %v6588_v43 = vrot.slane %v6587_v38, 4  ;;  %v6670_v16 = vshll.u32 %v6316_v39, 16  ;;  %v6680_v58 = vshrl.u32 %v16799_v40, 16  ;;  %v11784_v24 = vcombine.low %v6316_v39, %v16799_v40  ;;  %v6320_v38 = vld [vmem:[#allocation2 + $0xb4] sm:$0xf] }
 0x370   : > { %v6607_v27 = vsel %vm14017_vm7, %v6602_v30, %v6606_v62  ;;  %v6611_v15 = vor.u32 %v6610_v61, %v6606_v62  ;;  %v6616_v54 = vrot.slane %v6614_v29, 5  ;;  %v6669_v17 = vrot.slane %v6667_v33, 4  ;;  %v16829_v29 = vld [vmem:[#allocation2 + $0xb8] sm:$0xf] }
 0x371   : > { %v6593_v2 = vsel %vm14017_vm7, %v6588_v43, %v6592_v20  ;;  %v6672_v21 = vrot.slane %v6670_v16, 5  ;;  %v6625_v59 = vor.u32 %v6624_v34, %v6621_v28  ;;  %v6628_v8 = vshll.u32 %v16763_v42, 16  ;;  %13003 = vmatmul.mubr.bf16.gmra.mxu0 %v11784_v24 }
 0x372   : > { %v11756_v19 = vcombine.low %v6583_v26, %v6593_v2  ;;  %v6612_v18 = vrot.slane %v6611_v15, 4  ;;  %v6634_v56 = vrot.slane %v6632_v46, 4  ;;  %v6638_v6 = vshll.u32 %v16809_v10, 16  ;;  %v16825_v26 = vld [vmem:[#allocation2 + $0x98] sm:$0x1] }
 0x373   : > { %v6626_v39 = vrot.slane %v6625_v59, 4  ;;  %v6630_v37 = vrot.slane %v6628_v8, 5  ;;  %v6691_v1 = vshrl.u32 %v6318_v48, 16  ;;  %v6694_v41 = vshll.u32 %v6318_v48, 16 }
 0x374   : > { %12947 = vmatmul.mubr.bf16.gmra.mxu1 %v11756_v19  ;;  %v6617_v28 = vsel %vm14017_vm7, %v6612_v18, %v6616_v54  ;;  %v6640_v34 = vrot.slane %v6638_v6, 5  ;;  %v6704_v20 = vshrl.u32 %v16816_v9, 16  ;;  %v11785_v31 = vcombine.low %v6318_v48, %v16816_v9  ;;  %v16838_v18 = vld [vmem:[#allocation2 + $0xa4] sm:$0x1] }
 0x375   : > { %v11757_v46 = vcombine.low %v6607_v27, %v6617_v28  ;;  %v6631_v61 = vsel %vm14017_vm7, %v6626_v39, %v6630_v37  ;;  %v6635_v30 = vor.u32 %v6634_v56, %v6630_v37  ;;  %v6693_v62 = vrot.slane %v6691_v1, 4  ;;  %v16844_v28 = vld [vmem:[#allocation2 + $0xb0] sm:$0x1] }
 0x376   : > { %v6696_v33 = vrot.slane %v6694_v41, 5  ;;  %13006 = vmatprep.mubr.bf16.mxu0 %v11785_v31  ;;  %v6649_v43 = vor.u32 %v6648_v14, %v16793_v23  ;;  %v6652_v16 = vshll.u32 %v16773_v35, 16  ;;  %v6658_v24 = vrot.slane %v6656_v60, 4  ;;  %v13584_v41 = vld [vmem:[#allocation2 + $0xc] sm:$0xff]  }
 0x377   : > { %12950 = vmatprep.mubr.bf16.mxu1 %v11757_v46  ;;  %v6636_v15 = vrot.slane %v6635_v30, 4  ;;  %v6662_v27 = vshll.u32 %v16825_v26, 16  ;;  %v6715_v54 = vshrl.u32 %v6320_v38, 16  ;;  %v6718_v48 = vshll.u32 %v6320_v38, 16 }
 0x378   : > { %v6650_v2 = vrot.slane %v6649_v43, 4  ;;  %v6654_v59 = vrot.slane %v6652_v16, 5  ;;  %v6728_v8 = vshrl.u32 %v16829_v29, 16  ;;  %v11786_v19 = vcombine.low %v6320_v38, %v16829_v29 }
 0x379   : > { %v6641_v23 = vsel %vm14017_vm7, %v6636_v15, %v6640_v34  ;;  %v6664_v14 = vrot.slane %v6662_v27, 5  ;;  %v6717_v56 = vrot.slane %v6715_v54, 4  ;;  %v6720_v60 = vrot.slane %v6718_v48, 5 }
 0x37a   : > { %v11758_v6 = vcombine.low %v6631_v61, %v6641_v23  ;;  %v6655_v39 = vsel %vm14017_vm7, %v6650_v2, %v6654_v59  ;;  %v6659_v37 = vor.u32 %v6658_v24, %v6654_v59  ;;  %v6673_v1 = vor.u32 %v6672_v21, %v6669_v17  ;;  %13007 = vmatmul.mubr.bf16.gmra.mxu0 %v11786_v19 }
 0x37b   : > { %v6676_v31 = vshll.u32 %v16799_v40, 16  ;;  %v6682_v38 = vrot.slane %v6680_v58, 4  ;;  %v6686_v46 = vshll.u32 %v16838_v18, 16  ;;  %v6697_v30 = vor.u32 %v6696_v33, %v6693_v62  ;;  %13074 = vmatprep.mubr.bf16.mxu0 %v13584_v41  ;;  %v16852_v58 = vld [vmem:[#allocation2 + $0xbc] sm:$0x1] }
 0x37c   : > { %12951 = vmatmul.mubr.bf16.gmra.mxu1 %v11758_v6  ;;  %v6660_v34 = vrot.slane %v6659_v37, 4  ;;  %v6674_v43 = vrot.slane %v6673_v1, 4  ;;  %v6700_v61 = vshll.u32 %v16816_v9, 16  ;;  %v6706_v16 = vrot.slane %v6704_v20, 4  ;;  %v7333_v33 = vld [vmem:[#allocation2] sm:$0xe] }
 0x37d   : > { %v6678_v15 = vrot.slane %v6676_v31, 5  ;;  %v6688_v24 = vrot.slane %v6686_v46, 5  ;;  %v6698_v17 = vrot.slane %v6697_v30, 4  ;;  %v6710_v21 = vshll.u32 %v16844_v28, 16  ;;  %v13586_v31 = vld [vmem:[#allocation2 + $0x18] sm:$0xff]  }
 0x37e   : > { %v6665_v27 = vsel %vm14017_vm7, %v6660_v34, %v6664_v14  ;;  %v6702_v54 = vrot.slane %v6700_v61, 5  ;;  %v6721_v48 = vor.u32 %v6720_v60, %v6717_v56  ;;  %v6724_v62 = vshll.u32 %v16829_v29, 16  ;;  %v7334_v14 = vld [vmem:[#allocation2 + $0xc] sm:$0xe]  ;;  %v13588_v34 = vld [vmem:[#allocation2 + $0x24] sm:$0xff]  }
 0x37f   : > { %v11759_v2 = vcombine.low %v6655_v39, %v6665_v27  ;;  %v6679_v59 = vsel %vm14017_vm7, %v6674_v43, %v6678_v15  ;;  %v6683_v20 = vor.u32 %v6682_v38, %v6678_v15  ;;  %v6712_v19 = vrot.slane %v6710_v21, 5  ;;  %v13602_v39 = vld [vmem:[#allocation8 + $0x170] sm:$0xff]   ;;  %v13679_v43 = vld [vmem:[#allocation2 + $0x4] sm:$0xf] }
 0x380   : > { %v6703_v23 = vsel %vm14017_vm7, %v6698_v17, %v6702_v54  ;;  %v6707_v6 = vor.u32 %v6706_v16, %v6702_v54  ;;  %v6722_v37 = vrot.slane %v6721_v48, 4  ;;  %v6726_v1 = vrot.slane %v6724_v62, 5  ;;  %v13680_v15 = vld [vmem:[#allocation2 + $0x8] sm:$0x1]  ;;  %v7335_v54 = vld [vmem:[#allocation2 + $0x18] sm:$0xe] }
 0x381   : > { %12954 = vmatprep.mubr.bf16.mxu1 %v11759_v2  ;;  %v6684_v41 = vrot.slane %v6683_v20, 4  ;;  %v6730_v56 = vrot.slane %v6728_v8, 4  ;;  %v6734_v60 = vshll.u32 %v16852_v58, 16  ;;  %v11795_v46 = vrot.slane %v7333_v33, 9 }
 0x382   : > { %v6708_v30 = vrot.slane %v6707_v6, 4  ;;  %v6727_v38 = vsel %vm14017_vm7, %v6722_v37, %v6726_v1  ;;  %v7383_v61 = vrot.slane %v13679_v43, 5  ;;  %v7386_v16 = vrot.slane %v13680_v15, 5  ;;  %13075 = vmatmul.mubr.bf16.vlgmr.msra.gmra.mxu0 %v13586_v31  ;;  %v13589_v43 = vld [vmem:[#allocation2 + $0x30] sm:$0xff]  }
 0x383   : > { %v6689_v17 = vsel %vm14017_vm7, %v6684_v41, %v6688_v24  ;;  %v6731_v21 = vor.u32 %v6730_v56, %v6726_v1  ;;  %v6736_v27 = vrot.slane %v6734_v60, 5  ;;  %v11796_v8 = vrot.slane %v7334_v14, 9  ;;  %13078 = vmatprep.mubr.bf16.mxu0 %v13588_v34  ;;  %13155 = vmatpush3.bf16.msra.mxu0 %v16753_v3  ;;  %v7336_v14 = vld [vmem:[#allocation2 + $0x24] sm:$0xe]  ;;  %v7337_v60 = vld [vmem:[#allocation2 + $0x30] sm:$0xe] }
 0x384   : > { %v11760_v48 = vcombine.low %v6679_v59, %v6689_v17  ;;  %v6713_v62 = vsel %vm14017_vm7, %v6708_v30, %v6712_v19  ;;  %v16868_v2 = vsel %vm14306_vm13, %v11795_v46, %v7383_v61  ;;  %v7385_v20 = vrot.slane %v7383_v61, 4  ;;  %13156 = vmatprep.subr.bf16.mxu0 %v13602_v39  ;;  %v13604_v59 = vld [vmem:[#allocation8 + $0x168] sm:$0xff]  }
 0x385   : > { %v11761_v6 = vcombine.low %v6703_v23, %v6713_v62  ;;  %v6732_v37 = vrot.slane %v6731_v21, 4  ;;  %v7390_v24 = vrot.slane %v16591_v53, 5  ;;  %v7393_v1 = vrot.slane %v16627_v5, 5 }
 0x386   : > { %12955 = vmatmul.mubr.bf16.gmra.mxu1 %v11760_v48  ;;  %v7387_v19 = vsel %vm14306_vm13, %v7385_v20, %v7386_v16  ;;  %v11797_v41 = vrot.slane %v7335_v54, 9  ;;  %v7397_v31 = vrot.slane %v16607_v7, 5  ;;  %v7400_v56 = vrot.slane %v16636_v45, 5  ;;  %v7338_v45 = vld [vmem:[#allocation2 + $0x3c] sm:$0xe] }
 0x387   : > { %12958 = vmatprep.mubr.bf16.mxu1 %v11761_v6  ;;  %v6737_v3 = vsel %vm14017_vm7, %v6732_v37, %v6736_v27  ;;  %v11811_v53 = vcombine.low %v16868_v2, %v7387_v19  ;;  %v16882_v5 = vsel %vm14306_vm13, %v11796_v8, %v7390_v24  ;;  %v7392_v23 = vrot.slane %v7390_v24, 4  ;;  %13157 = vmatpush3.bf16.msra.mxu0 %v13602_v39  ;;  %v13590_v27 = vld [vmem:[#allocation2 + $0x3c] sm:$0xff]   ;;  %v7339_v48 = vld [vmem:[#allocation2 + $0x48] sm:$0xe]  ;;  %v7340_v37 = vld [vmem:[#allocation2 + $0x54] sm:$0xe] }
 0x388   : > { %v11762_v46 = vcombine.low %v6727_v38, %v6737_v3  ;;  %v16886_v30 = vsel %vm14306_vm13, %v11797_v41, %v7397_v31  ;;  %v7399_v7 = vrot.slane %v7397_v31, 4  ;;  %v11798_v34 = vrot.slane %v7336_v14, 9  ;;  %13158 = vmatprep.subr.bf16.mxu0 %v13604_v59  ;;  %v13607_v38 = vld [vmem:[#allocation8 + $0x160] sm:$0xff]   ;;  %v7341_v41 = vld [vmem:[#allocation2 + $0x60] sm:$0xe]  ;;  %v13609_v31 = vld [vmem:[#allocation8 + $0x158] sm:$0xff]  }
 0x389   : > { %v16890_v61 = vsel %vm14306_vm13, %v7392_v23, %v7393_v1  ;;  %v7404_v15 = vrot.slane %v16621_v50, 5  ;;  %v7407_v16 = vrot.slane %v16655_v57, 5  ;;  %v11799_v17 = vrot.slane %v7337_v60, 9  ;;  %v7342_v23 = vld [vmem:[#allocation2 + $0x6c] sm:$0xe] }
 0x38a   : > { %v11812_v21 = vcombine.low %v16882_v5, %v16890_v61  ;;  %v16898_v8 = vsel %vm14306_vm13, %v7399_v7, %v7400_v56  ;;  %v7411_v39 = vrot.slane %v16631_v4, 5  ;;  %v7414_v54 = vrot.slane %v16671_v0, 5  ;;  %13079 = vmatmul.mubr.bf16.gmra.mxu0 %v13589_v43 }
 0x38b   : > { %v11813_v50 = vcombine.low %v16886_v30, %v16898_v8  ;;  %v16906_v57 = vsel %vm14306_vm13, %v11798_v34, %v7404_v15  ;;  %v7406_v62 = vrot.slane %v7404_v15, 4  ;;  %v11800_v2 = vrot.slane %v7338_v45, 9  ;;  %13082 = vmatprep.mubr.bf16.mxu0 %v13590_v27  ;;  %13159 = vmatpush3.bf16.msra.mxu0 %v13604_v59  ;;  %v7343_v27 = vld [vmem:[#allocation2 + $0x78] sm:$0xe] }
 0x38c   : > { %v16910_v20 = vsel %vm14306_vm13, %v11799_v17, %v7411_v39  ;;  %v7413_v6 = vrot.slane %v7411_v39, 4  ;;  %v7418_v4 = vrot.slane %v16644_v44, 5  ;;  %v7421_v0 = vrot.slane %v16697_v55, 5  ;;  %13160 = vmatprep.subr.bf16.mxu0 %v13607_v38  ;;  %v13612_v39 = vld [vmem:[#allocation8 + $0x150] sm:$0xff]  }
 0x38d   : > { %v16916_v24 = vsel %vm14306_vm13, %v7406_v62, %v7407_v16  ;;  %v11801_v1 = vrot.slane %v7339_v48, 9  ;;  %v7425_v14 = vrot.slane %v16666_v13, 5  ;;  %v7428_v19 = vrot.slane %v16713_v36, 5 }
 0x38e   : > { %12959 = vmatmul.mubr.bf16.gmra.mxu1 %v11762_v46  ;;  %v11814_v44 = vcombine.low %v16906_v57, %v16916_v24  ;;  %v16924_v55 = vsel %vm14306_vm13, %v7413_v6, %v7414_v54  ;;  %v16928_v59 = vsel %vm14306_vm13, %v11800_v2, %v7418_v4  ;;  %v7420_v56 = vrot.slane %v7418_v4, 4  ;;  %v7344_v6 = vld [vmem:[#allocation2 + $0x84] sm:$0xe]  ;;  %v13594_v4 = vld [vmem:[#allocation8 + $0x130] sm:$0xff]  }
 0x38f   : > { %13026 = vmatprep.mubr.bf16.mxu1 %v11811_v53  ;;  %v11815_v13 = vcombine.low %v16910_v20, %v16924_v55  ;;  %v16934_v36 = vsel %vm14306_vm13, %v11801_v1, %v7425_v14  ;;  %v7427_v60 = vrot.slane %v7425_v14, 4  ;;  %v11802_v3 = vrot.slane %v7340_v37, 9  ;;  %13161 = vmatpush3.bf16.msra.mxu0 %v13607_v38  ;;  %v13592_v53 = vld [vmem:[#allocation2 + $0x48] sm:$0xff]  }
 0x390   : > { %v16938_v46 = vsel %vm14306_vm13, %v7420_v56, %v7421_v0  ;;  %v7432_v7 = vrot.slane %v16682_v25, 5  ;;  %v7435_v34 = vrot.slane %v16735_v32, 5  ;;  %v11803_v45 = vrot.slane %v7341_v41, 9  ;;  %13162 = vmatprep.subr.bf16.mxu0 %v13609_v31  ;;  %v13593_v25 = vld [vmem:[#allocation2 + $0x54] sm:$0xff]  }
 0x391   : > { %v11816_v43 = vcombine.low %v16928_v59, %v16938_v46  ;;  %v16946_v15 = vsel %vm14306_vm13, %v7427_v60, %v7428_v19  ;;  %v7439_v16 = vrot.slane %v16691_v63, 5  ;;  %v7442_v17 = vrot.slane %v16755_v51, 5  ;;  %v7345_v19 = vld [vmem:[#allocation2 + $0x90] sm:$0xe]  ;;  %v13614_v60 = vld [vmem:[#allocation8 + $0x148] sm:$0xff]  }
 0x392   : > { %v11817_v32 = vcombine.low %v16934_v36, %v16946_v15  ;;  %v16954_v38 = vsel %vm14306_vm13, %v11802_v3, %v7432_v7  ;;  %v7434_v54 = vrot.slane %v7432_v7, 4  ;;  %v11804_v48 = vrot.slane %v7342_v23, 9  ;;  %13083 = vmatmul.mubr.bf16.gmra.mxu0 %v13592_v53  ;;  %v7346_v23 = vld [vmem:[#allocation2 + $0x9c] sm:$0xe]  ;;  %v13597_v7 = vld [vmem:[#allocation8 + $0x128] sm:$0xff]  }
 0x393   : > { %v16958_v62 = vsel %vm14306_vm13, %v11803_v45, %v7439_v16  ;;  %v7441_v63 = vrot.slane %v7439_v16, 4  ;;  %v7446_v51 = vrot.slane %v16726_v22, 5  ;;  %v7449_v2 = vrot.slane %v16770_v47, 5  ;;  %13086 = vmatprep.mubr.bf16.mxu0 %v13593_v25  ;;  %13163 = vmatpush3.bf16.msra.mxu0 %v13609_v31  ;;  %v16997_v45 = vld [vmem:[#allocation2 + $0x10] sm:$0xf] }
 0x394   : > { %v16964_v0 = vsel %vm14306_vm13, %v7434_v54, %v7435_v34  ;;  %v11805_v37 = vrot.slane %v7343_v27, 9  ;;  %v7453_v1 = vrot.slane %v16748_v52, 5  ;;  %v7456_v14 = vrot.slane %v16791_v49, 5  ;;  %13164 = vmatprep.subr.bf16.mxu0 %v13612_v39  ;;  %v13596_v16 = vld [vmem:[#allocation2 + $0x6c] sm:$0xff]   ;;  %v8959_v59 = vld [vmem:[#allocation2 + $0x3c] sm:$0xe] }
 0x395   : > { %v11818_v41 = vcombine.low %v16954_v38, %v16964_v0  ;;  %v16972_v22 = vsel %vm14306_vm13, %v7441_v63, %v7442_v17  ;;  %v16976_v47 = vsel %vm14306_vm13, %v11804_v48, %v7446_v51  ;;  %v7448_v56 = vrot.slane %v7446_v51, 4  ;;  %v7347_v63 = vld [vmem:[#allocation2 + $0xa8] sm:$0xe]  ;;  %v13616_v51 = vld [vmem:[#allocation8 + $0x140] sm:$0xff]   ;;  %v17168_v0 = vld [vmem:[#allocation2 + $0x4c] sm:$0xf] }
 0x396   : > { %13027 = vmatmul.mubr.bf16.vlgmr.msra.gmra.mxu1 %v11812_v21  ;;  %v11819_v52 = vcombine.low %v16958_v62, %v16972_v22  ;;  %v16985_v49 = vsel %vm14306_vm13, %v11805_v37, %v7453_v1  ;;  %v7455_v31 = vrot.slane %v7453_v1, 4  ;;  %v11806_v3 = vrot.slane %v7344_v6, 9  ;;  %v17172_v22 = vld [vmem:[#allocation2 + $0x50] sm:$0x1] }
 0x397   : > { %13030 = vmatprep.mubr.bf16.mxu1 %v11813_v50  ;;  %13107 = vmatpush3.bf16.msra.mxu1 %v16788_v12  ;;  %v16993_v5 = vsel %vm14306_vm13, %v7448_v56, %v7449_v2  ;;  %v7460_v61 = vrot.slane %v16763_v42, 5  ;;  %v7463_v21 = vrot.slane %v16809_v10, 5  ;;  %v11807_v34 = vrot.slane %v7345_v19, 9  ;;  %v17007_v50 = vld [vmem:[#allocation2 + $0x14] sm:$0x1]  ;;  %v13595_v10 = vld [vmem:[#allocation2 + $0x60] sm:$0xff]  }
 0x398   : > { %13108 = vmatprep.subr.bf16.mxu1 %v13594_v4  ;;  %v11820_v53 = vcombine.low %v16976_v47, %v16993_v5  ;;  %v17003_v30 = vsel %vm14306_vm13, %v7455_v31, %v7456_v14  ;;  %v7467_v12 = vrot.slane %v16773_v35, 5  ;;  %v7470_v8 = vrot.slane %v16825_v26, 5  ;;  %13165 = vmatpush3.bf16.msra.mxu0 %v13612_v39  ;;  %v8955_v42 = vld [vmem:[#allocation2 + $0xc] sm:$0xe]  ;;  %v17021_v2 = vld [vmem:[#allocation2 + $0x1c] sm:$0xf] }
 0x399   : > { %v11821_v17 = vcombine.low %v16985_v49, %v17003_v30  ;;  %v17013_v27 = vsel %vm14306_vm13, %v11806_v3, %v7460_v61  ;;  %v7462_v25 = vrot.slane %v7460_v61, 4  ;;  %13166 = vmatprep.subr.bf16.mxu0 %v13614_v60  ;;  %v11808_v54 = vrot.slane %v7346_v23, 9  ;;  %v8956_v19 = vld [vmem:[#allocation2 + $0x18] sm:$0xe]  ;;  %v17039_v3 = vld [vmem:[#allocation2 + $0x20] sm:$0x1] }
 0x39a   : > { %v17017_v35 = vsel %vm14306_vm13, %v11807_v34, %v7467_v12  ;;  %v7469_v26 = vrot.slane %v7467_v12, 4  ;;  %v7474_v39 = vrot.slane %v16799_v40, 5  ;;  %v7477_v48 = vrot.slane %v16838_v18, 5  ;;  %13087 = vmatmul.mubr.bf16.gmra.mxu0 %v13595_v10  ;;  %v13601_v40 = vld [vmem:[#allocation8 + $0x120] sm:$0xff]   ;;  %v7348_v12 = vld [vmem:[#allocation2 + $0xb4] sm:$0xe] }
 0x39b   : > { %13109 = vmatpush3.bf16.msra.mxu1 %v13594_v4  ;;  %v17025_v6 = vsel %vm14306_vm13, %v7462_v25, %v7463_v21  ;;  %v11883_v37 = vrot.slane %v8955_v42, 9  ;;  %v9021_v1 = vrot.slane %v16997_v45, 5  ;;  %v9024_v14 = vrot.slane %v17007_v50, 5  ;;  %13090 = vmatprep.mubr.bf16.mxu0 %v13596_v16  ;;  %v17058_v25 = vld [vmem:[#allocation2 + $0x2c] sm:$0x1] }
 0x39c   : > { %13110 = vmatprep.subr.bf16.mxu1 %v13597_v7  ;;  %v17033_v4 = vsel %vm14306_vm13, %v7469_v26, %v7470_v8  ;;  %v17037_v56 = vsel %vm14306_vm13, %v11808_v54, %v7474_v39  ;;  %v7476_v31 = vrot.slane %v7474_v39, 4  ;;  %13167 = vmatpush3.bf16.msra.mxu0 %v13614_v60  ;;  %v11809_v34 = vrot.slane %v7347_v63, 9  ;;  %v17047_v8 = vld [vmem:[#allocation2 + $0x28] sm:$0xf]  ;;  %v17060_v54 = vld [vmem:[#allocation8 + $0x1f8] sm:$0xff]  }
 0x39d   : > { %v17045_v61 = vsel %vm14306_vm13, %v11883_v37, %v9021_v1  ;;  %v9023_v21 = vrot.slane %v9021_v1, 4  ;;  %v7481_v10 = vrot.slane %v16816_v9, 5  ;;  %v7484_v60 = vrot.slane %v16844_v28, 5  ;;  %13168 = vmatprep.subr.bf16.mxu0 %v13616_v51  ;;  %v13606_v26 = vld [vmem:[#allocation8 + $0x118] sm:$0xff]   ;;  %v8207_v39 = vld [vmem:[#allocation2 + $0x24] sm:$0xf] }
 0x39e   : > { %13031 = vmatmul.mubr.bf16.gmra.mxu1 %v11814_v44  ;;  %v17054_v42 = vsel %vm14306_vm13, %v7476_v31, %v7477_v48  ;;  %v11884_v16 = vrot.slane %v8956_v19, 9  ;;  %v9028_v9 = vrot.slane %v17021_v2, 5  ;;  %v9031_v28 = vrot.slane %v17039_v3, 5  ;;  %v8957_v44 = vld [vmem:[#allocation2 + $0x24] sm:$0xe]  ;;  %v13598_v48 = vld [vmem:[#allocation2 + $0x78] sm:$0xff]  }
 0x39f   : > { %13034 = vmatprep.mubr.bf16.mxu1 %v11815_v13  ;;  %13111 = vmatpush3.bf16.msra.mxu1 %v13597_v7  ;;  %v17069_v24 = vsel %vm14306_vm13, %v9023_v21, %v9024_v14  ;;  %v17077_v20 = vsel %vm14306_vm13, %v11809_v34, %v7481_v10  ;;  %v7483_v55 = vrot.slane %v7481_v10, 4  ;;  %v11810_v13 = vrot.slane %v7348_v12, 9  ;;  %v8201_v7 = vld [vmem:[#allocation2 + $0xc] sm:$0xf]  ;;  %v13600_v19 = vld [vmem:[#allocation2 + $0x84] sm:$0xff]  }
 0x3a0   : > { %13112 = vmatprep.subr.bf16.mxu1 %v13601_v40  ;;  %13169 = vmatpush3.bf16.msra.mxu0 %v13616_v51  ;;  %v17081_v63 = vsel %vm14306_vm13, %v11884_v16, %v9028_v9  ;;  %v9030_v37 = vrot.slane %v9028_v9, 4  ;;  %v7488_v1 = vrot.slane %v16829_v29, 5  ;;  %v7491_v14 = vrot.slane %v16852_v58, 5  ;;  %v13611_v51 = vld [vmem:[#allocation8 + $0x110] sm:$0xff]   ;;  %v17102_v16 = vld [vmem:[#allocation2 + $0x34] sm:$0xf] }
 0x3a1   : > { %v17087_v31 = vsel %vm14306_vm13, %v7483_v55, %v7484_v60  ;;  %v11885_v21 = vrot.slane %v8957_v44, 9  ;;  %v9035_v34 = vrot.slane %v17047_v8, 5  ;;  %v9038_v12 = vrot.slane %v17058_v25, 5  ;;  %13250 = vmatprep.subr.bf16.mxu0 %v17060_v54  ;;  %v8961_v5 = vld [vmem:[#allocation2 + $0x54] sm:$0xe] }
 0x3a2   : > { %13091 = vmatmul.mubr.bf16.gmra.mxu0 %v13598_v48  ;;  %v17096_v58 = vsel %vm14306_vm13, %v9030_v37, %v9031_v28  ;;  %v17100_v10 = vsel %vm14306_vm13, %v11810_v13, %v7488_v1  ;;  %v7490_v60 = vrot.slane %v7488_v1, 4  ;;  %v8250_v55 = vshrl.u32 %v8201_v7, 16  ;;  %v17110_v28 = vld [vmem:[#allocation2 + $0x38] sm:$0x1]  ;;  %v8213_v30 = vld [vmem:[#allocation2 + $0x3c] sm:$0xf] }
 0x3a3   : > { %13113 = vmatpush3.bf16.msra.mxu1 %v13601_v40  ;;  %13094 = vmatprep.mubr.bf16.mxu0 %v13600_v19  ;;  %v17108_v9 = vsel %vm14306_vm13, %v11885_v21, %v9035_v34  ;;  %v9037_v44 = vrot.slane %v9035_v34, 4  ;;  %v8253_v48 = vshll.u32 %v8201_v7, 16  ;;  %v8259_v37 = vshll.u32 %v16997_v45, 16  ;;  %v8958_v19 = vld [vmem:[#allocation2 + $0x30] sm:$0xe] }
 0x3a4   : > { %13114 = vmatprep.subr.bf16.mxu1 %v13606_v26  ;;  %v17114_v13 = vsel %vm14306_vm13, %v7490_v60, %v7491_v14  ;;  %v8263_v1 = vshrl.u32 %v16997_v45, 16  ;;  %v8252_v29 = vrot.slane %v8250_v55, 4  ;;  %v8269_v14 = vshll.u32 %v17007_v50, 16  ;;  %v8204_v7 = vld [vmem:[#allocation2 + $0x18] sm:$0xf]  ;;  %v13615_v60 = vld [vmem:[#allocation8 + $0x108] sm:$0xff]  }
 0x3a5   : > { %v17125_v34 = vsel %vm14306_vm13, %v9037_v44, %v9038_v12  ;;  %v8255_v46 = vrot.slane %v8253_v48, 5  ;;  %v11886_v12 = vrot.slane %v8958_v19, 9  ;;  %v9042_v44 = vrot.slane %v17102_v16, 5  ;;  %v13603_v55 = vld [vmem:[#allocation2 + $0x90] sm:$0xff]   ;;  %v17141_v19 = vld [vmem:[#allocation2 + $0x40] sm:$0xf] }
 0x3a6   : > { %13035 = vmatmul.mubr.bf16.gmra.mxu1 %v11816_v43  ;;  %v8261_v43 = vrot.slane %v8259_v37, 5  ;;  %v8265_v45 = vrot.slane %v8263_v1, 4  ;;  %v8271_v21 = vrot.slane %v8269_v14, 5  ;;  %v9045_v50 = vrot.slane %v17110_v28, 5  ;;  %v17143_v14 = vld [vmem:[#allocation2 + $0x44] sm:$0x1] }
 0x3a7   : > { %13038 = vmatprep.mubr.bf16.mxu1 %v11817_v32  ;;  %13115 = vmatpush3.bf16.msra.mxu1 %v13606_v26  ;;  %v8256_v57 = vor.u32 %v8255_v46, %v8252_v29  ;;  %v8274_v36 = vshrl.u32 %v8204_v7, 16  ;;  %v8277_v15 = vshll.u32 %v8204_v7, 16  ;;  %v13605_v32 = vld [vmem:[#allocation2 + $0x9c] sm:$0xff]   ;;  %v17137_v26 = vsel %vm14306_vm13, %v11886_v12, %v9042_v44 }
 0x3a8   : > { %13116 = vmatprep.subr.bf16.mxu1 %v13611_v51  ;;  %v8266_v40 = vor.u32 %v8265_v45, %v8261_v43  ;;  %v9044_v48 = vrot.slane %v9042_v44, 4  ;;  %v8283_v37 = vshll.u32 %v17021_v2, 16  ;;  %v8287_v1 = vshrl.u32 %v17021_v2, 16  ;;  %v13617_v12 = vld [vmem:[#allocation8 + $0x100] sm:$0xff]  }
 0x3a9   : > { %v8257_v29 = vrot.slane %v8256_v57, 4  ;;  %v8276_v45 = vrot.slane %v8274_v36, 4  ;;  %v8279_v7 = vrot.slane %v8277_v15, 5  ;;  %v8293_v18 = vshll.u32 %v17039_v3, 16 }
 0x3aa   : > { %13095 = vmatmul.mubr.bf16.gmra.mxu0 %v13603_v55  ;;  %v8267_v46 = vrot.slane %v8266_v40, 4  ;;  %v17147_v44 = vsel %vm14306_vm13, %v9044_v48, %v9045_v50  ;;  %v8285_v23 = vrot.slane %v8283_v37, 5  ;;  %v8289_v2 = vrot.slane %v8287_v1, 4  ;;  %v17166_v37 = vld [vmem:[#allocation8 + $0x1b8] sm:$0xff]  }
 0x3ab   : > { %13117 = vmatpush3.bf16.msra.mxu1 %v13611_v51  ;;  %13098 = vmatprep.mubr.bf16.mxu0 %v13605_v32  ;;  %v8262_v51 = vsel %vm14017_vm7, %v8257_v29, %v8261_v43  ;;  %v11902_v40 = vcombine.low %v17137_v26, %v17147_v44  ;;  %v8280_v55 = vor.u32 %v8279_v7, %v8276_v45  ;;  %v8295_v15 = vrot.slane %v8293_v18, 5  ;;  %v13608_v43 = vld [vmem:[#allocation2 + $0xa8] sm:$0xff]   ;;  %v13610_v45 = vld [vmem:[#allocation2 + $0xb4] sm:$0xff]  }
 0x3ac   : > { %13118 = vmatprep.subr.bf16.mxu1 %v13615_v60  ;;  %v8272_v57 = vsel %vm14017_vm7, %v8267_v46, %v8271_v21  ;;  %v8290_v36 = vor.u32 %v8289_v2, %v8285_v23  ;;  %v11887_v3 = vrot.slane %v8959_v59, 9  ;;  %v9049_v32 = vrot.slane %v17141_v19, 5 }
 0x3ad   : > { %v17159_v50 = vcombine.low %v8262_v51, %v8272_v57  ;;  %v8281_v21 = vrot.slane %v8280_v55, 4  ;;  %v9052_v48 = vrot.slane %v17143_v14, 5  ;;  %v8298_v38 = vshrl.u32 %v8207_v39, 16 }
 0x3ae   : > { %13039 = vmatmul.mubr.bf16.gmra.mxu1 %v11818_v41  ;;  %v8291_v41 = vrot.slane %v8290_v36, 4  ;;  %v8301_v18 = vshll.u32 %v8207_v39, 16  ;;  %v8307_v59 = vshll.u32 %v17047_v8, 16  ;;  %v8311_v62 = vshrl.u32 %v17047_v8, 16  ;;  %v8210_v8 = vld [vmem:[#allocation2 + $0x30] sm:$0xf] }
 0x3af   : > { %13042 = vmatprep.mubr.bf16.mxu1 %v11819_v52  ;;  %13119 = vmatpush3.bf16.msra.mxu1 %v13615_v60  ;;  %v8960_v52 = vld [vmem:[#allocation2 + $0x48] sm:$0xe]  ;;  %v8286_v60 = vsel %vm14017_vm7, %v8281_v21, %v8285_v23  ;;  %v17178_v1 = vsel %vm14306_vm13, %v11887_v3, %v9049_v32  ;;  %v9051_v29 = vrot.slane %v9049_v32, 4  ;;  %v8300_v46 = vrot.slane %v8298_v38, 4 }
 0x3b0   : > { %13120 = vmatprep.subr.bf16.mxu1 %v13617_v12  ;;  %v8296_v39 = vsel %vm14017_vm7, %v8291_v41, %v8295_v15  ;;  %v8303_v7 = vrot.slane %v8301_v18, 5  ;;  %v8309_v2 = vrot.slane %v8307_v59, 5  ;;  %v8313_v51 = vrot.slane %v8311_v62, 4 }
 0x3b1   : > { %v17182_v57 = vcombine.low %v8286_v60, %v8296_v39  ;;  %v17186_v23 = vsel %vm14306_vm13, %v9051_v29, %v9052_v48  ;;  %v8317_v55 = vshll.u32 %v17058_v25, 16  ;;  %v11888_v36 = vrot.slane %v8960_v52, 9  ;;  %v17194_v48 = vld [vmem:[#allocation2 + $0x58] sm:$0xf]  ;;  %v17203_v52 = vld [vmem:[#allocation2 + $0x5c] sm:$0x1] }
 0x3b2   : > { %13099 = vmatmul.mubr.bf16.gmra.mxu0 %v13608_v43  ;;  %v11903_v3 = vcombine.low %v17178_v1, %v17186_v23  ;;  %v8304_v15 = vor.u32 %v8303_v7, %v8300_v46  ;;  %v8314_v21 = vor.u32 %v8313_v51, %v8309_v2  ;;  %v9056_v43 = vrot.slane %v17168_v0, 5 }
 0x3b3   : > { %13121 = vmatpush3.bf16.msra.mxu1 %v13617_v12  ;;  %13102 = vmatprep.mubr.bf16.mxu0 %v13610_v45  ;;  %v8319_v12 = vrot.slane %v8317_v55, 5  ;;  %v9059_v32 = vrot.slane %v17172_v22, 5  ;;  %v8322_v38 = vshrl.u32 %v8210_v8, 16  ;;  %v8325_v41 = vshll.u32 %v8210_v8, 16 }
 0x3b4   : > { %13202 = vmatprep.subr.bf16.mxu1 %v17166_v37  ;;  %v8305_v25 = vrot.slane %v8304_v15, 4  ;;  %v8315_v18 = vrot.slane %v8314_v21, 4  ;;  %v17201_v59 = vsel %vm14306_vm13, %v11888_v36, %v9056_v43  ;;  %v9058_v62 = vrot.slane %v9056_v43, 4 }
 0x3b5   : > { %v8324_v60 = vrot.slane %v8322_v38, 4  ;;  %v8327_v29 = vrot.slane %v8325_v41, 5  ;;  %v8331_v46 = vshll.u32 %v17102_v16, 16  ;;  %v8335_v47 = vshrl.u32 %v17102_v16, 16 }
 0x3b6   : > { %13043 = vmatmul.mubr.bf16.gmra.mxu1 %v11820_v53  ;;  %v8310_v53 = vsel %vm14017_vm7, %v8305_v25, %v8309_v2  ;;  %v8320_v45 = vsel %vm14017_vm7, %v8315_v18, %v8319_v12  ;;  %v17216_v39 = vsel %vm14306_vm13, %v9058_v62, %v9059_v32  ;;  %v8341_v49 = vshll.u32 %v17110_v28, 16  ;;  %v17233_v62 = vld [vmem:[#allocation2 + $0x64] sm:$0xf] }
 0x3b7   : > { %13046 = vmatprep.mubr.bf16.mxu1 %v11821_v17  ;;  %v13613_v17 = vld [vmem:[#allocation2 + $0xc0] sm:$0xff]   ;;  %v17219_v7 = vcombine.low %v8310_v53, %v8320_v45  ;;  %v11904_v16 = vcombine.low %v17201_v59, %v17216_v39  ;;  %v8328_v51 = vor.u32 %v8327_v29, %v8324_v60  ;;  %v8333_v8 = vrot.slane %v8331_v46, 5  ;;  %v8966_v39 = vld [vmem:[#allocation2 + $0x90] sm:$0xe] }
 0x3b8   : > { %v8337_v55 = vrot.slane %v8335_v47, 4  ;;  %v8343_v2 = vrot.slane %v8341_v49, 5  ;;  %v11889_v36 = vrot.slane %v8961_v5, 9  ;;  %v9063_v15 = vrot.slane %v17194_v48, 5  ;;  %v8962_v60 = vld [vmem:[#allocation2 + $0x60] sm:$0xe] }
 0x3b9   : > { %v8329_v21 = vrot.slane %v8328_v51, 4  ;;  %v9066_v43 = vrot.slane %v17203_v52, 5  ;;  %v8346_v12 = vshrl.u32 %v8213_v30, 16  ;;  %v8349_v28 = vshll.u32 %v8213_v30, 16 }
 0x3ba   : > { %13103 = vmatmul.mubr.bf16.gmra.mxu0 %v13613_v17  ;;  %v19156_v32 = vcombine.low %v17045_v61, %v17069_v24  ;;  %v8338_v38 = vor.u32 %v8337_v55, %v8333_v8  ;;  %v17230_v41 = vsel %vm14306_vm13, %v11889_v36, %v9063_v15  ;;  %v9065_v25 = vrot.slane %v9063_v15, 4  ;;  %v17238_v61 = vld [vmem:[#allocation2 + $0x68] sm:$0x1] }
 0x3bb   : > { %v8355_v18 = vshll.u32 %v17141_v19, 16  ;;  %v8334_v29 = vsel %vm14017_vm7, %v8329_v21, %v8333_v8  ;;  %v8348_v46 = vrot.slane %v8346_v12, 4  ;;  %v8351_v47 = vrot.slane %v8349_v28, 5  ;;  %v8216_v17 = vld [vmem:[#allocation2 + $0x48] sm:$0xf] }
 0x3bc   : > { %13170 = vmatprep.mubr.bf16.mxu0 %v19156_v32  ;;  %v8359_v5 = vshrl.u32 %v17141_v19, 16  ;;  %v19157_v24 = vcombine.low %v17013_v27, %v17025_v6  ;;  %v8339_v53 = vrot.slane %v8338_v38, 4  ;;  %v17245_v45 = vsel %vm14306_vm13, %v9065_v25, %v9066_v43  ;;  %v13623_v28 = vld [vmem:[#allocation8 + $0x1f0] sm:$0xff]  }
 0x3bd   : > { %v8357_v49 = vrot.slane %v8355_v18, 5  ;;  %v8365_v30 = vshll.u32 %v17143_v14, 16  ;;  %v19158_v51 = vcombine.low %v17017_v35, %v17033_v4  ;;  %v11905_v19 = vcombine.low %v17230_v41, %v17245_v45  ;;  %v17259_v4 = vld [vmem:[#allocation2 + $0x70] sm:$0xf]  ;;  %v8963_v18 = vld [vmem:[#allocation2 + $0x6c] sm:$0xe] }
 0x3be   : > { %13047 = vmatmul.mubr.bf16.gmra.mxu1 %v19157_v24  ;;  %v8352_v8 = vor.u32 %v8351_v47, %v8348_v46  ;;  %v8361_v55 = vrot.slane %v8359_v5, 4  ;;  %v11890_v27 = vrot.slane %v8962_v60, 9  ;;  %v8344_v6 = vsel %vm14017_vm7, %v8339_v53, %v8343_v2  ;;  %v17272_v24 = vld [vmem:[#allocation2 + $0x74] sm:$0x1] }
 0x3bf   : > { %13050 = vmatprep.mubr.bf16.mxu1 %v19158_v51  ;;  %v8367_v36 = vrot.slane %v8365_v30, 5  ;;  %v9070_v15 = vrot.slane %v17233_v62, 5  ;;  %v9073_v21 = vrot.slane %v17238_v61, 5  ;;  %v17257_v14 = vcombine.low %v8334_v29, %v8344_v6  ;;  %v8219_v51 = vld [vmem:[#allocation2 + $0x54] sm:$0xf] }
 0x3c0   : > { %v8353_v43 = vrot.slane %v8352_v8, 4  ;;  %v8362_v12 = vor.u32 %v8361_v55, %v8357_v49  ;;  %v8370_v35 = vshrl.u32 %v8216_v17, 16  ;;  %v8373_v25 = vshll.u32 %v8216_v17, 16 }
 0x3c1   : > { %v17263_v32 = vsel %vm14306_vm13, %v11890_v27, %v9070_v15  ;;  %v9072_v38 = vrot.slane %v9070_v15, 4  ;;  %v8379_v2 = vshll.u32 %v17168_v0, 16  ;;  %v19159_v60 = vcombine.low %v17081_v63, %v17096_v58 }
 0x3c2   : > { %v8358_v29 = vsel %vm14017_vm7, %v8353_v43, %v8357_v49  ;;  %v8363_v46 = vrot.slane %v8362_v12, 4  ;;  %v8372_v47 = vrot.slane %v8370_v35, 4  ;;  %v8383_v5 = vshrl.u32 %v17168_v0, 16 }
 0x3c3   : > { %13171 = vmatmul.mubr.bf16.vlgmr.msra.gmra.mxu0 %v19159_v60  ;;  %v19160_v53 = vcombine.low %v17108_v9, %v17125_v34  ;;  %v17279_v30 = vsel %vm14306_vm13, %v9072_v38, %v9073_v21  ;;  %v8375_v17 = vrot.slane %v8373_v25, 5  ;;  %v8381_v63 = vrot.slane %v8379_v2, 5  ;;  %v13624_v34 = vld [vmem:[#allocation8 + $0x1e8] sm:$0xff]   ;;  %v17302_v25 = vld [vmem:[#allocation2 + $0x7c] sm:$0xf] }
 0x3c4   : > { %v8389_v58 = vshll.u32 %v17172_v22, 16  ;;  %13251 = vmatpush3.bf16.msra.mxu0 %v17060_v54  ;;  %v8368_v0 = vsel %vm14017_vm7, %v8363_v46, %v8367_v36  ;;  %v11906_v49 = vcombine.low %v17263_v32, %v17279_v30  ;;  %v8385_v8 = vrot.slane %v8383_v5, 4  ;;  %v13626_v2 = vld [vmem:[#allocation8 + $0x1e0] sm:$0xff]  }
 0x3c5   : > { %13174 = vmatprep.mubr.bf16.mxu0 %v19160_v53  ;;  %v11891_v9 = vrot.slane %v8963_v18, 9  ;;  %13252 = vmatprep.subr.bf16.mxu0 %v13623_v28  ;;  %v19161_v55 = vcombine.low %v17037_v56, %v17054_v42  ;;  %v17290_v27 = vcombine.low %v8358_v29, %v8368_v0  ;;  %v8376_v22 = vor.u32 %v8375_v17, %v8372_v47  ;;  %v8964_v29 = vld [vmem:[#allocation2 + $0x78] sm:$0xe]  ;;  %v17312_v17 = vld [vmem:[#allocation2 + $0x80] sm:$0x1] }
 0x3c6   : > { %v8391_v6 = vrot.slane %v8389_v58, 5  ;;  %v9077_v54 = vrot.slane %v17259_v4, 5  ;;  %v19162_v36 = vcombine.low %v17077_v20, %v17087_v31  ;;  %v8386_v15 = vor.u32 %v8385_v8, %v8381_v63 }
 0x3c7   : > { %13051 = vmatmul.mubr.bf16.gmra.mxu1 %v19161_v55  ;;  %v9080_v21 = vrot.slane %v17272_v24, 5  ;;  %v8394_v43 = vshrl.u32 %v8219_v51, 16  ;;  %v8397_v12 = vshll.u32 %v8219_v51, 16  ;;  %v8377_v35 = vrot.slane %v8376_v22, 4  ;;  %v17328_v22 = vld [vmem:[#allocation2 + $0x88] sm:$0xf] }
 0x3c8   : > { %13054 = vmatprep.mubr.bf16.mxu1 %v19162_v36  ;;  %v17299_v56 = vsel %vm14306_vm13, %v11891_v9, %v9077_v54  ;;  %v9079_v42 = vrot.slane %v9077_v54, 4  ;;  %v8403_v38 = vshll.u32 %v17194_v48, 16  ;;  %13253 = vmatpush3.bf16.msra.mxu0 %v13623_v28  ;;  %v8387_v18 = vrot.slane %v8386_v15, 4  ;;  %v8222_v28 = vld [vmem:[#allocation2 + $0x60] sm:$0xf] }
 0x3c9   : > { %v8396_v20 = vrot.slane %v8394_v43, 4  ;;  %v8399_v31 = vrot.slane %v8397_v12, 5  ;;  %v8407_v60 = vshrl.u32 %v17194_v48, 16  ;;  %13254 = vmatprep.subr.bf16.mxu0 %v13624_v34  ;;  %v8382_v46 = vsel %vm14017_vm7, %v8377_v35, %v8381_v63  ;;  %v8965_v36 = vld [vmem:[#allocation2 + $0x84] sm:$0xe] }
 0x3ca   : > { %v17309_v47 = vsel %vm14306_vm13, %v9079_v42, %v9080_v21  ;;  %v8405_v5 = vrot.slane %v8403_v38, 5  ;;  %v8413_v53 = vshll.u32 %v17203_v52, 16  ;;  %v8392_v48 = vsel %vm14017_vm7, %v8387_v18, %v8391_v6  ;;  %v13627_v6 = vld [vmem:[#allocation8 + $0x1d8] sm:$0xff]   ;;  %v8225_v18 = vld [vmem:[#allocation2 + $0x6c] sm:$0xf] }
 0x3cb   : > { %13175 = vmatmul.mubr.bf16.gmra.mxu0 %v11902_v40  ;;  %v11907_v63 = vcombine.low %v17299_v56, %v17309_v47  ;;  %v8400_v58 = vor.u32 %v8399_v31, %v8396_v20  ;;  %v8409_v51 = vrot.slane %v8407_v60, 4  ;;  %v17324_v52 = vcombine.low %v8382_v46, %v8392_v48  ;;  %v13629_v60 = vld [vmem:[#allocation8 + $0x1d0] sm:$0xff]  }
 0x3cc   : > { %13178 = vmatprep.mubr.bf16.mxu0 %v11903_v3  ;;  %v8415_v0 = vrot.slane %v8413_v53, 5  ;;  %v11892_v8 = vrot.slane %v8964_v29, 9  ;;  %v9084_v9 = vrot.slane %v17302_v25, 5  ;;  %13255 = vmatpush3.bf16.msra.mxu0 %v13624_v34  ;;  %v9087_v40 = vrot.slane %v17312_v17, 5 }
 0x3cd   : > { %v8401_v26 = vrot.slane %v8400_v58, 4  ;;  %v8410_v44 = vor.u32 %v8409_v51, %v8405_v5  ;;  %v8418_v55 = vshrl.u32 %v8222_v28, 16  ;;  %13256 = vmatprep.subr.bf16.mxu0 %v13626_v2  ;;  %v19163_v1 = vcombine.low %v17100_v10, %v17114_v13  ;;  %v17342_v10 = vld [vmem:[#allocation2 + $0x8c] sm:$0x1]  ;;  %v17360_v58 = vld [vmem:[#allocation2 + $0x94] sm:$0xf] }
 0x3ce   : > { %v17335_v23 = vsel %vm14306_vm13, %v11892_v8, %v9084_v9  ;;  %v9086_v3 = vrot.slane %v9084_v9, 4  ;;  %v8421_v54 = vshll.u32 %v8222_v28, 16  ;;  %v8427_v34 = vshll.u32 %v17233_v62, 16  ;;  %v13619_v51 = vld [vmem:[#allocation8 + $0x1b0] sm:$0xff]  }
 0x3cf   : > { %13055 = vmatmul.mubr.bf16.gmra.mxu1 %v19163_v1  ;;  %v8406_v15 = vsel %vm14017_vm7, %v8401_v26, %v8405_v5  ;;  %v8411_v21 = vrot.slane %v8410_v44, 4  ;;  %v8420_v43 = vrot.slane %v8418_v55, 4  ;;  %v8431_v12 = vshrl.u32 %v17233_v62, 16  ;;  %v13630_v55 = vld [vmem:[#allocation8 + $0x1c8] sm:$0xff]  }
 0x3d0   : > { %13122 = vmatprep.mubr.bf16.mxu1 %v17159_v50  ;;  %v17346_v13 = vsel %vm14306_vm13, %v9086_v3, %v9087_v40  ;;  %v8423_v35 = vrot.slane %v8421_v54, 5  ;;  %v8429_v42 = vrot.slane %v8427_v34, 5  ;;  %v8437_v38 = vshll.u32 %v17238_v61, 16  ;;  %13257 = vmatpush3.bf16.msra.mxu0 %v13626_v2  ;;  %v8228_v3 = vld [vmem:[#allocation2 + $0x78] sm:$0xf] }
 0x3d1   : > { %v8416_v50 = vsel %vm14017_vm7, %v8411_v21, %v8415_v0  ;;  %v11908_v20 = vcombine.low %v17335_v23, %v17346_v13  ;;  %v8433_v31 = vrot.slane %v8431_v12, 4  ;;  %v11893_v62 = vrot.slane %v8965_v36, 9  ;;  %13258 = vmatprep.subr.bf16.mxu0 %v13627_v6  ;;  %v13620_v36 = vld [vmem:[#allocation8 + $0x1a8] sm:$0xff]   ;;  %v13628_v13 = vld [vmem:[#allocation8 + $0x190] sm:$0xff]  }
 0x3d2   : > { %v17353_v29 = vcombine.low %v8406_v15, %v8416_v50  ;;  %v8424_v46 = vor.u32 %v8423_v35, %v8420_v43  ;;  %v8439_v5 = vrot.slane %v8437_v38, 5  ;;  %v9091_v53 = vrot.slane %v17328_v22, 5 }
 0x3d3   : > { %13179 = vmatmul.mubr.bf16.gmra.mxu0 %v11904_v16  ;;  %v8434_v61 = vor.u32 %v8433_v31, %v8429_v42  ;;  %v9094_v2 = vrot.slane %v17342_v10, 5  ;;  %v8442_v28 = vshrl.u32 %v8225_v18, 16  ;;  %v8445_v48 = vshll.u32 %v8225_v18, 16 }
 0x3d4   : > { %13182 = vmatprep.mubr.bf16.mxu0 %v11905_v19  ;;  %v8425_v0 = vrot.slane %v8424_v46, 4  ;;  %v17367_v8 = vsel %vm14306_vm13, %v11893_v62, %v9091_v53  ;;  %v9093_v9 = vrot.slane %v9091_v53, 4  ;;  %v8451_v59 = vshll.u32 %v17259_v4, 16  ;;  %13259 = vmatpush3.bf16.msra.mxu0 %v13627_v6  ;;  %v17379_v6 = vld [vmem:[#allocation2 + $0x98] sm:$0x1] }
 0x3d5   : > { %v8435_v16 = vrot.slane %v8434_v61, 4  ;;  %v8444_v26 = vrot.slane %v8442_v28, 4  ;;  %v8447_v44 = vrot.slane %v8445_v48, 5  ;;  %v8455_v40 = vshrl.u32 %v17259_v4, 16  ;;  %13260 = vmatprep.subr.bf16.mxu0 %v13629_v60  ;;  %v8967_v62 = vld [vmem:[#allocation2 + $0x9c] sm:$0xe] }
 0x3d6   : > { %v8430_v41 = vsel %vm14017_vm7, %v8425_v0, %v8429_v42  ;;  %v17376_v45 = vsel %vm14306_vm13, %v9093_v9, %v9094_v2  ;;  %v8453_v19 = vrot.slane %v8451_v59, 5  ;;  %v8461_v1 = vshll.u32 %v17272_v24, 16  ;;  %v17391_v42 = vld [vmem:[#allocation2 + $0xa0] sm:$0xf]  ;;  %v13632_v46 = vld [vmem:[#allocation8 + $0x1c0] sm:$0xff]  }
 0x3d7   : > { %13123 = vmatmul.mubr.bf16.vlgmr.msra.gmra.mxu1 %v17182_v57  ;;  %v8440_v57 = vsel %vm14017_vm7, %v8435_v16, %v8439_v5  ;;  %v11909_v4 = vcombine.low %v17367_v8, %v17376_v45  ;;  %v8448_v54 = vor.u32 %v8447_v44, %v8444_v26  ;;  %v8457_v34 = vrot.slane %v8455_v40, 4  ;;  %v17404_v2 = vld [vmem:[#allocation2 + $0xa4] sm:$0x1]  ;;  %v13622_v28 = vld [vmem:[#allocation8 + $0x1a0] sm:$0xff]  }
 0x3d8   : > { %13126 = vmatprep.mubr.bf16.mxu1 %v17219_v7  ;;  %13203 = vmatpush3.bf16.msra.mxu1 %v17166_v37  ;;  %v17387_v15 = vcombine.low %v8430_v41, %v8440_v57  ;;  %v8463_v24 = vrot.slane %v8461_v1, 5  ;;  %v11894_v21 = vrot.slane %v8966_v39, 9  ;;  %v9098_v43 = vrot.slane %v17360_v58, 5  ;;  %v13625_v41 = vld [vmem:[#allocation8 + $0x198] sm:$0xff]   ;;  %v17429_v1 = vld [vmem:[#allocation2 + $0xac] sm:$0xf] }
 0x3d9   : > { %13204 = vmatprep.subr.bf16.mxu1 %v13619_v51  ;;  %13261 = vmatpush3.bf16.msra.mxu0 %v13629_v60  ;;  %v8449_v7 = vrot.slane %v8448_v54, 4  ;;  %v8458_v12 = vor.u32 %v8457_v34, %v8453_v19  ;;  %v9101_v37 = vrot.slane %v17379_v6, 5  ;;  %v8466_v35 = vshrl.u32 %v8228_v3, 16  ;;  %v8968_v34 = vld [vmem:[#allocation2 + $0xa8] sm:$0xe] }
 0x3da   : > { %13262 = vmatprep.subr.bf16.mxu0 %v13630_v55  ;;  %v17395_v38 = vsel %vm14306_vm13, %v11894_v21, %v9098_v43  ;;  %v9100_v18 = vrot.slane %v9098_v43, 4  ;;  %v8469_v50 = vshll.u32 %v8228_v3, 16  ;;  %v8475_v31 = vshll.u32 %v17302_v25, 16 }
 0x3db   : > { %13183 = vmatmul.mubr.bf16.gmra.mxu0 %v11906_v49  ;;  %v8454_v60 = vsel %vm14017_vm7, %v8449_v7, %v8453_v19  ;;  %v8459_v5 = vrot.slane %v8458_v12, 4  ;;  %v8468_v53 = vrot.slane %v8466_v35, 4  ;;  %v8479_v61 = vshrl.u32 %v17302_v25, 16  ;;  %v17437_v7 = vld [vmem:[#allocation2 + $0xb0] sm:$0x1] }
 0x3dc   : > { %13205 = vmatpush3.bf16.msra.mxu1 %v13619_v51  ;;  %13186 = vmatprep.mubr.bf16.mxu0 %v11907_v63  ;;  %v17411_v48 = vsel %vm14306_vm13, %v9100_v18, %v9101_v37  ;;  %v8471_v32 = vrot.slane %v8469_v50, 5  ;;  %v8477_v30 = vrot.slane %v8475_v31, 5  ;;  %v8485_v49 = vshll.u32 %v17312_v17, 16  ;;  %v8231_v51 = vld [vmem:[#allocation2 + $0x84] sm:$0xf] }
 0x3dd   : > { %13206 = vmatprep.subr.bf16.mxu1 %v13620_v36  ;;  %v8464_v25 = vsel %vm14017_vm7, %v8459_v5, %v8463_v24  ;;  %v11910_v0 = vcombine.low %v17395_v38, %v17411_v48  ;;  %v8481_v9 = vrot.slane %v8479_v61, 4  ;;  %v11895_v56 = vrot.slane %v8967_v62, 9  ;;  %13263 = vmatpush3.bf16.msra.mxu0 %v13630_v55  ;;  %v8234_v12 = vld [vmem:[#allocation2 + $0x90] sm:$0xf]  ;;  %v17452_v5 = vld [vmem:[#allocation2 + $0xb8] sm:$0xf] }
 0x3de   : > { %v17419_v47 = vcombine.low %v8454_v60, %v8464_v25  ;;  %v8472_v63 = vor.u32 %v8471_v32, %v8468_v53  ;;  %v8487_v59 = vrot.slane %v8485_v49, 5  ;;  %v9105_v39 = vrot.slane %v17391_v42, 5  ;;  %13264 = vmatprep.subr.bf16.mxu0 %v13632_v46  ;;  %v8969_v61 = vld [vmem:[#allocation2 + $0xb4] sm:$0xe] }
 0x3df   : > { %13127 = vmatmul.mubr.bf16.gmra.mxu1 %v17257_v14  ;;  %v8482_v17 = vor.u32 %v8481_v9, %v8477_v30  ;;  %v9108_v16 = vrot.slane %v17404_v2, 5  ;;  %v8490_v26 = vshrl.u32 %v8231_v51, 16  ;;  %v8493_v44 = vshll.u32 %v8231_v51, 16 }
 0x3e0   : > { %13130 = vmatprep.mubr.bf16.mxu1 %v17290_v27  ;;  %13207 = vmatpush3.bf16.msra.mxu1 %v13620_v36  ;;  %v8473_v40 = vrot.slane %v8472_v63, 4  ;;  %v17426_v14 = vsel %vm14306_vm13, %v11895_v56, %v9105_v39  ;;  %v9107_v55 = vrot.slane %v9105_v39, 4  ;;  %v8499_v19 = vshll.u32 %v17328_v22, 16  ;;  %v8237_v63 = vld [vmem:[#allocation2 + $0x9c] sm:$0xf] }
 0x3e1   : > { %13208 = vmatprep.subr.bf16.mxu1 %v13622_v28  ;;  %v8483_v3 = vrot.slane %v8482_v17, 4  ;;  %v8492_v27 = vrot.slane %v8490_v26, 4  ;;  %v8495_v57 = vrot.slane %v8493_v44, 5  ;;  %v8503_v54 = vshrl.u32 %v17328_v22, 16  ;;  %13265 = vmatpush3.bf16.msra.mxu0 %v13632_v46 }
 0x3e2   : > { %v8478_v36 = vsel %vm14017_vm7, %v8473_v40, %v8477_v30  ;;  %v9109_v24 = vsel %vm14306_vm13, %v9107_v55, %v9108_v16  ;;  %v8501_v21 = vrot.slane %v8499_v19, 5  ;;  %v8509_v43 = vshll.u32 %v17342_v10, 16 }
 0x3e3   : > { %13187 = vmatmul.mubr.bf16.gmra.mxu0 %v11908_v20  ;;  %v8488_v22 = vsel %vm14017_vm7, %v8483_v3, %v8487_v59  ;;  %v11911_v37 = vcombine.low %v17426_v14, %v9109_v24  ;;  %v8496_v35 = vor.u32 %v8495_v57, %v8492_v27  ;;  %v8505_v18 = vrot.slane %v8503_v54, 4  ;;  %v17482_v54 = vld [vmem:[#allocation2 + $0xc4] sm:$0xf]  ;;  %v8970_v24 = vld [vmem:[#allocation2 + $0xc0] sm:$0xe] }
 0x3e4   : > { %13209 = vmatpush3.bf16.msra.mxu1 %v13622_v28  ;;  %13190 = vmatprep.mubr.bf16.mxu0 %v11909_v4  ;;  %v17448_v10 = vcombine.low %v8478_v36, %v8488_v22  ;;  %v8511_v50 = vrot.slane %v8509_v43, 5  ;;  %v11896_v31 = vrot.slane %v8968_v34, 9  ;;  %v9112_v23 = vrot.slane %v17429_v1, 5  ;;  %v13633_v34 = vld [vmem:[#allocation8 + $0x180] sm:$0xff]  }
 0x3e5   : > { %13210 = vmatprep.subr.bf16.mxu1 %v13625_v41  ;;  %v8497_v20 = vrot.slane %v8496_v35, 4  ;;  %v8506_v62 = vor.u32 %v8505_v18, %v8501_v21  ;;  %v9115_v46 = vrot.slane %v17437_v7, 5  ;;  %v8514_v60 = vshrl.u32 %v8234_v12, 16  ;;  %v8240_v35 = vld [vmem:[#allocation2 + $0xa8] sm:$0xf] }
 0x3e6   : > { %v17457_v8 = vsel %vm14306_vm13, %v11896_v31, %v9112_v23  ;;  %v9114_v45 = vrot.slane %v9112_v23, 4  ;;  %v8517_v4 = vshll.u32 %v8234_v12, 16  ;;  %v8523_v53 = vshll.u32 %v17360_v58, 16 }
 0x3e7   : > { %13131 = vmatmul.mubr.bf16.gmra.mxu1 %v17324_v52  ;;  %v8502_v28 = vsel %vm14017_vm7, %v8497_v20, %v8501_v21  ;;  %v8507_v32 = vrot.slane %v8506_v62, 4  ;;  %v8516_v30 = vrot.slane %v8514_v60, 4  ;;  %v8527_v49 = vshrl.u32 %v17360_v58, 16  ;;  %v17464_v52 = vld [vmem:[#allocation2 + $0xbc] sm:$0x1] }
 0x3e8   : > { %13134 = vmatprep.mubr.bf16.mxu1 %v17353_v29  ;;  %13211 = vmatpush3.bf16.msra.mxu1 %v13625_v41  ;;  %v9116_v51 = vsel %vm14306_vm13, %v9114_v45, %v9115_v46  ;;  %v8519_v25 = vrot.slane %v8517_v4, 5  ;;  %v8525_v9 = vrot.slane %v8523_v53, 5  ;;  %v8533_v56 = vshll.u32 %v17379_v6, 16  ;;  %v13631_v29 = vld [vmem:[#allocation8 + $0x188] sm:$0xff]  }
 0x3e9   : > { %13212 = vmatprep.subr.bf16.mxu1 %v13628_v13  ;;  %v8512_v59 = vsel %vm14017_vm7, %v8507_v32, %v8511_v50  ;;  %v11912_v39 = vcombine.low %v17457_v8, %v9116_v51  ;;  %v8529_v17 = vrot.slane %v8527_v49, 4  ;;  %v11897_v16 = vrot.slane %v8969_v61, 9  ;;  %v9839_v61 = vld [vmem:[#allocation2 + $0x18] sm:$0xf] }
 0x3ea   : > { %v17472_v58 = vcombine.low %v8502_v28, %v8512_v59  ;;  %v8520_v26 = vor.u32 %v8519_v25, %v8516_v30  ;;  %v8535_v44 = vrot.slane %v8533_v56, 5  ;;  %v9119_v40 = vrot.slane %v17452_v5, 5 }
 0x3eb   : > { %13191 = vmatmul.mubr.bf16.gmra.mxu0 %v11910_v0  ;;  %v8530_v6 = vor.u32 %v8529_v17, %v8525_v9  ;;  %v9122_v14 = vrot.slane %v17464_v52, 5  ;;  %v8538_v55 = vshrl.u32 %v8237_v63, 16  ;;  %v8541_v41 = vshll.u32 %v8237_v63, 16  ;;  %v17511_v63 = vld [vmem:[#allocation2 + $0x1c] sm:$0xf] }
 0x3ec   : > { %13213 = vmatpush3.bf16.msra.mxu1 %v13628_v13  ;;  %13194 = vmatprep.mubr.bf16.mxu0 %v11911_v37  ;;  %v8521_v19 = vrot.slane %v8520_v26, 4  ;;  %v9120_v3 = vsel %vm14306_vm13, %v11897_v16, %v9119_v40  ;;  %v9121_v27 = vrot.slane %v9119_v40, 4  ;;  %v8547_v57 = vshll.u32 %v17391_v42, 16  ;;  %v17491_v37 = vld [vmem:[#allocation2 + $0xc8] sm:$0x1] }
 0x3ed   : > { %13214 = vmatprep.subr.bf16.mxu1 %v13631_v29  ;;  %v8531_v38 = vrot.slane %v8530_v6, 4  ;;  %v8540_v48 = vrot.slane %v8538_v55, 4  ;;  %v8543_v0 = vrot.slane %v8541_v41, 5  ;;  %v8551_v36 = vshrl.u32 %v17391_v42, 16  ;;  %v17516_v17 = vld [vmem:[#allocation2 + $0x20] sm:$0x1] }
 0x3ee   : > { %v8526_v21 = vsel %vm14017_vm7, %v8521_v19, %v8525_v9  ;;  %v9123_v43 = vsel %vm14306_vm13, %v9121_v27, %v9122_v14  ;;  %v8549_v12 = vrot.slane %v8547_v57, 5  ;;  %v8557_v22 = vshll.u32 %v17404_v2, 16  ;;  %v17499_v2 = vld [vmem:[#allocation8 + $0x238] sm:$0xff]  }
 0x3ef   : > { %13135 = vmatmul.mubr.bf16.gmra.mxu1 %v17387_v15  ;;  %v8536_v42 = vsel %vm14017_vm7, %v8531_v38, %v8535_v44  ;;  %v11913_v18 = vcombine.low %v9120_v3, %v9123_v43  ;;  %v8544_v50 = vor.u32 %v8543_v0, %v8540_v48  ;;  %v8553_v15 = vrot.slane %v8551_v36, 4  ;;  %v8243_v16 = vld [vmem:[#allocation2 + $0xb4] sm:$0xf] }
 0x3f0   : > { %13138 = vmatprep.mubr.bf16.mxu1 %v17419_v47  ;;  %13215 = vmatpush3.bf16.msra.mxu1 %v13631_v29  ;;  %v17496_v31 = vcombine.low %v8526_v21, %v8536_v42  ;;  %v8559_v23 = vrot.slane %v8557_v22, 5  ;;  %v11898_v13 = vrot.slane %v8970_v24, 9  ;;  %v9126_v20 = vrot.slane %v17482_v54, 5  ;;  %v9842_v21 = vld [vmem:[#allocation2 + $0x24] sm:$0xf] }
 0x3f1   : > { %13216 = vmatprep.subr.bf16.mxu1 %v13633_v34  ;;  %v8545_v62 = vrot.slane %v8544_v50, 4  ;;  %v8554_v46 = vor.u32 %v8553_v15, %v8549_v12  ;;  %v9129_v47 = vrot.slane %v17491_v37, 5  ;;  %v8562_v60 = vshrl.u32 %v8240_v35, 16 }
 0x3f2   : > { %v9127_v8 = vsel %vm14306_vm13, %v11898_v13, %v9126_v20  ;;  %v9128_v45 = vrot.slane %v9126_v20, 4  ;;  %v8565_v4 = vshll.u32 %v8240_v35, 16  ;;  %v8571_v53 = vshll.u32 %v17429_v1, 16 }
 0x3f3   : > { %13195 = vmatmul.mubr.bf16.gmra.mxu0 %v11912_v39  ;;  %v8550_v28 = vsel %vm14017_vm7, %v8545_v62, %v8549_v12  ;;  %v8555_v32 = vrot.slane %v8554_v46, 4  ;;  %v8564_v30 = vrot.slane %v8562_v60, 4  ;;  %v8575_v49 = vshrl.u32 %v17429_v1, 16  ;;  %v17532_v46 = vld [vmem:[#allocation2 + $0x2c] sm:$0x1] }
 0x3f4   : > { %13217 = vmatpush3.bf16.msra.mxu1 %v13633_v34  ;;  %13198 = vmatprep.mubr.bf16.mxu0 %v11913_v18  ;;  %v9130_v51 = vsel %vm14306_vm13, %v9128_v45, %v9129_v47  ;;  %v8567_v25 = vrot.slane %v8565_v4, 5  ;;  %v8573_v9 = vrot.slane %v8571_v53, 5  ;;  %v8581_v56 = vshll.u32 %v17437_v7, 16  ;;  %v8246_v53 = vld [vmem:[#allocation2 + $0xc0] sm:$0xf] }
 0x3f5   : > { %13298 = vmatprep.subr.bf16.mxu1 %v17499_v2  ;;  %v8560_v29 = vsel %vm14017_vm7, %v8555_v32, %v8559_v23  ;;  %v11914_v59 = vcombine.low %v9127_v8, %v9130_v51  ;;  %v8577_v39 = vrot.slane %v8575_v49, 4  ;;  %v9888_v1 = vshrl.u32 %v9839_v61, 16  ;;  %v17530_v23 = vld [vmem:[#allocation2 + $0x28] sm:$0xf] }
 0x3f6   : > { %v11871_v26 = vcombine.low %v8550_v28, %v8560_v29  ;;  %v8568_v44 = vor.u32 %v8567_v25, %v8564_v30  ;;  %v8583_v40 = vrot.slane %v8581_v56, 5  ;;  %v9891_v6 = vshll.u32 %v9839_v61, 16 }
 0x3f7   : > { %13139 = vmatmul.mubr.bf16.gmra.mxu1 %v17448_v10  ;;  %v8578_v7 = vor.u32 %v8577_v39, %v8573_v9  ;;  %v9890_v14 = vrot.slane %v9888_v1, 4  ;;  %v9897_v55 = vshll.u32 %v17511_v63, 16  ;;  %v9901_v41 = vshrl.u32 %v17511_v63, 16 }
 0x3f8   : > { %13142 = vmatprep.mubr.bf16.mxu1 %v17472_v58  ;;  %v8569_v19 = vrot.slane %v8568_v44, 4  ;;  %v9893_v3 = vrot.slane %v9891_v6, 5  ;;  %v9907_v27 = vshll.u32 %v17516_v17, 16  ;;  %v8586_v57 = vshrl.u32 %v8243_v16, 16 }
 0x3f9   : > { %v8579_v34 = vrot.slane %v8578_v7, 4  ;;  %v9899_v38 = vrot.slane %v9897_v55, 5  ;;  %v9903_v10 = vrot.slane %v9901_v41, 4  ;;  %v8589_v48 = vshll.u32 %v8243_v16, 16  ;;  %v9845_v7 = vld [vmem:[#allocation2 + $0x30] sm:$0xf] }
 0x3fa   : > { %v8574_v0 = vsel %vm14017_vm7, %v8569_v19, %v8573_v9  ;;  %v9894_v36 = vor.u32 %v9893_v3, %v9890_v14  ;;  %v9909_v58 = vrot.slane %v9907_v27, 5  ;;  %v8588_v24 = vrot.slane %v8586_v57, 4  ;;  %v17550_v3 = vld [vmem:[#allocation2 + $0x34] sm:$0xf] }
 0x3fb   : > { %13199 = vmatmul.mubr.bf16.gmra.mxu0 %v11914_v59  ;;  %v8584_v43 = vsel %vm14017_vm7, %v8579_v34, %v8583_v40  ;;  %v9904_v12 = vor.u32 %v9903_v10, %v9899_v38  ;;  %v8591_v22 = vrot.slane %v8589_v48, 5  ;;  %v8595_v35 = vshll.u32 %v17452_v5, 16 }
 0x3fc   : > { %v11872_v42 = vcombine.low %v8574_v0, %v8584_v43  ;;  %v9895_v18 = vrot.slane %v9894_v36, 4  ;;  %v8599_v50 = vshrl.u32 %v17452_v5, 16  ;;  %v8605_v15 = vshll.u32 %v17464_v52, 16  ;;  %v17557_v36 = vld [vmem:[#allocation2 + $0x38] sm:$0x1] }
 0x3fd   : > { %v9905_v13 = vrot.slane %v9904_v12, 4  ;;  %v8592_v20 = vor.u32 %v8591_v22, %v8588_v24  ;;  %v8597_v62 = vrot.slane %v8595_v35, 5  ;;  %v9912_v47 = vshrl.u32 %v9842_v21, 16 }
 0x3fe   : > { %v9900_v60 = vsel %vm14017_vm7, %v9895_v18, %v9899_v38  ;;  %v8601_v8 = vrot.slane %v8599_v50, 4  ;;  %v8607_v45 = vrot.slane %v8605_v15, 5  ;;  %v9915_v4 = vshll.u32 %v9842_v21, 16  ;;  %v17544_v16 = vpop.f32.mrf.mxu0  ;;  %v17565_v15 = vld [vmem:[#allocation2 + $0x40] sm:$0xf] }
 0x3ff   : > { %13143 = vmatmul.mubr.bf16.gmra.mxu1 %v17496_v31  ;;  %v9910_v5 = vsel %vm14017_vm7, %v9905_v13, %v9909_v58  ;;  %v8593_v52 = vrot.slane %v8592_v20, 4  ;;  %v9914_v61 = vrot.slane %v9912_v47, 4  ;;  %v9921_v28 = vshll.u32 %v17530_v23, 16 }
 0x400   : > { %13146 = vmatprep.mubr.bf16.mxu1 %v11871_v26  ;;  %v11947_v32 = vcombine.low %v9900_v60, %v9910_v5  ;;  %v8602_v30 = vor.u32 %v8601_v8, %v8597_v62  ;;  %v9917_v49 = vrot.slane %v9915_v4, 5  ;;  %v9925_v31 = vshrl.u32 %v17530_v23, 16  ;;  %v17553_v10 = vpop.f32.mrf.mxu0 }
 0x401   : > { %v8598_v51 = vsel %vm14017_vm7, %v8593_v52, %v8597_v62  ;;  %v9923_v25 = vrot.slane %v9921_v28, 5  ;;  %v9931_v9 = vshll.u32 %v17532_v46, 16  ;;  %v8610_v56 = vshrl.u32 %v8246_v53, 16  ;;  %v17576_v28 = vld [vmem:[#allocation2 + $0x44] sm:$0x1] }
 0x402   : > { %13266 = vmatprep.mubr.bf16.mxu0 %v11947_v32  ;;  %v8603_v29 = vrot.slane %v8602_v30, 4  ;;  %v9918_v59 = vor.u32 %v9917_v49, %v9914_v61  ;;  %v9927_v39 = vrot.slane %v9925_v31, 4  ;;  %v8613_v1 = vshll.u32 %v8246_v53, 16  ;;  %v17560_v22 = vpop.f32.mrf.mxu0  ;;  %v9851_v49 = vld [vmem:[#allocation2 + $0x48] sm:$0xf] }
 0x403   : > { %v9933_v26 = vrot.slane %v9931_v9, 5  ;;  %v8612_v44 = vrot.slane %v8610_v56, 4  ;;  %v8619_v40 = vshll.u32 %v17482_v54, 16  ;;  %v8623_v6 = vshrl.u32 %v17482_v54, 16  ;;  %v17579_v56 = vld [vmem:[#allocation2 + $0x4c] sm:$0xf] }
 0x404   : > { %v8608_v14 = vsel %vm14017_vm7, %v8603_v29, %v8607_v45  ;;  %v9919_v55 = vrot.slane %v9918_v59, 4  ;;  %v9928_v41 = vor.u32 %v9927_v39, %v9923_v25  ;;  %v8615_v19 = vrot.slane %v8613_v1, 5  ;;  %v17567_v60 = vpop.f32.mrf.mxu0  ;;  %v13634_v59 = vld [vmem:[#allocation2 + $0x18] sm:$0xff]  }
 0x405   : > { %v11873_v27 = vcombine.low %v8598_v51, %v8608_v14  ;;  %v8621_v57 = vrot.slane %v8619_v40, 5  ;;  %v8625_v34 = vrot.slane %v8623_v6, 4  ;;  %v8629_v38 = vshll.u32 %v17491_v37, 16  ;;  %v9848_v37 = vld [vmem:[#allocation2 + $0x3c] sm:$0xf] }
 0x406   : > { %v9924_v54 = vsel %vm14017_vm7, %v9919_v55, %v9923_v25  ;;  %v9929_v48 = vrot.slane %v9928_v41, 4  ;;  %v8616_v0 = vor.u32 %v8615_v19, %v8612_v44  ;;  %v9936_v58 = vshrl.u32 %v9845_v7, 16  ;;  %v17574_v61 = vpop.f32.mrf.mxu0 }
 0x407   : > { %13147 = vmatmul.mubr.bf16.gmra.mxu1 %v11872_v42  ;;  %v8626_v24 = vor.u32 %v8625_v34, %v8621_v57  ;;  %v8631_v21 = vrot.slane %v8629_v38, 5  ;;  %v9939_v43 = vshll.u32 %v9845_v7, 16  ;;  %v9945_v12 = vshll.u32 %v17550_v3, 16 }
 0x408   : > { %13150 = vmatprep.mubr.bf16.mxu1 %v11873_v27  ;;  %v9934_v35 = vsel %vm14017_vm7, %v9929_v48, %v9933_v26  ;;  %v8617_v42 = vrot.slane %v8616_v0, 4  ;;  %v9938_v18 = vrot.slane %v9936_v58, 4  ;;  %v9949_v50 = vshrl.u32 %v17550_v3, 16  ;;  %v17582_v44 = vpop.f32.mrf.mxu0  ;;  %v17587_v27 = vld [vmem:[#allocation2 + $0x50] sm:$0x1] }
 0x409   : > { %v11948_v13 = vcombine.low %v9924_v54, %v9934_v35  ;;  %v8627_v20 = vrot.slane %v8626_v24, 4  ;;  %v9941_v62 = vrot.slane %v9939_v43, 5  ;;  %v9947_v47 = vrot.slane %v9945_v12, 5  ;;  %v9854_v24 = vld [vmem:[#allocation2 + $0x54] sm:$0xf] }
 0x40a   : > { %v8622_v8 = vsel %vm14017_vm7, %v8617_v42, %v8621_v57  ;;  %v9951_v45 = vrot.slane %v9949_v50, 4  ;;  %v9955_v4 = vshll.u32 %v17557_v36, 16  ;;  %v9960_v53 = vshrl.u32 %v9848_v37, 16  ;;  %v17590_v34 = vpop.f32.mrf.mxu0 }
 0x40b   : > { %13267 = vmatmul.mubr.bf16.vlgmr.msra.gmra.mxu0 %v11948_v13  ;;  %v8632_v5 = vsel %vm14017_vm7, %v8627_v20, %v8631_v21  ;;  %v9942_v52 = vor.u32 %v9941_v62, %v9938_v18  ;;  %v9963_v32 = vshll.u32 %v9848_v37, 16  ;;  %v9969_v30 = vshll.u32 %v17565_v15, 16  ;;  %v17601_v62 = vld [vmem:[#allocation2 + $0x58] sm:$0xf] }
 0x40c   : > { %v11874_v31 = vcombine.low %v8622_v8, %v8632_v5  ;;  %v9952_v51 = vor.u32 %v9951_v45, %v9947_v47  ;;  %v9957_v25 = vrot.slane %v9955_v4, 5  ;;  %v9962_v9 = vrot.slane %v9960_v53, 4  ;;  %v17597_v35 = vpop.f32.mrf.mxu0  ;;  %v17610_v4 = vld [vmem:[#allocation2 + $0x5c] sm:$0x1]  ;;  %v13635_v5 = vld [vmem:[#allocation2 + $0x24] sm:$0xff]  }
 0x40d   : > { %v9943_v29 = vrot.slane %v9942_v52, 4  ;;  %v9965_v39 = vrot.slane %v9963_v32, 5  ;;  %v9971_v1 = vrot.slane %v9969_v30, 5  ;;  %v9973_v26 = vshrl.u32 %v17565_v15, 16 }
 0x40e   : > { %v9953_v40 = vrot.slane %v9952_v51, 4  ;;  %v9979_v6 = vshll.u32 %v17576_v28, 16  ;;  %v9984_v7 = vshrl.u32 %v9851_v49, 16  ;;  %v9987_v14 = vshll.u32 %v9851_v49, 16  ;;  %v13639_v51 = vld [vmem:[#allocation8 + $0x230] sm:$0xff]  }
 0x40f   : > { %13151 = vmatmul.mubr.bf16.gmra.mxu1 %v11874_v31  ;;  %v9948_v55 = vsel %vm14017_vm7, %v9943_v29, %v9947_v47  ;;  %v9966_v41 = vor.u32 %v9965_v39, %v9962_v9  ;;  %v9975_v19 = vrot.slane %v9973_v26, 4  ;;  %v9993_v57 = vshll.u32 %v17579_v56, 16  ;;  %v13637_v9 = vld [vmem:[#allocation2 + $0x30] sm:$0xff]   ;;  %v9857_v39 = vld [vmem:[#allocation2 + $0x60] sm:$0xf] }
 0x410   : > { %13218 = vmatprep.mubr.bf16.mxu1 %v13634_v59  ;;  %v9958_v38 = vsel %vm14017_vm7, %v9953_v40, %v9957_v25  ;;  %v9981_v54 = vrot.slane %v9979_v6, 5  ;;  %v12932_v48 = vpop.f32.mrf.mxu1  ;;  %v9986_v0 = vrot.slane %v9984_v7, 4  ;;  %v9989_v58 = vrot.slane %v9987_v14, 5 }
 0x411   : > { %v11949_v21 = vcombine.low %v9948_v55, %v9958_v38  ;;  %v9967_v43 = vrot.slane %v9966_v41, 4  ;;  %v9976_v12 = vor.u32 %v9975_v19, %v9971_v1  ;;  %v17595_v37 = vadd.f32 %v17544_v16, %v12932_v48  ;;  %v17608_v16 = vpop.f32.mrf.mxu0  ;;  %v17622_v55 = vld [vmem:[#allocation2 + $0x64] sm:$0xf] }
 0x412   : > { %v9990_v42 = vor.u32 %v9989_v58, %v9986_v0  ;;  %v9995_v18 = vrot.slane %v9993_v57, 5  ;;  %v9997_v50 = vshrl.u32 %v17579_v56, 16  ;;  %v10003_v13 = vshll.u32 %v17587_v27, 16  ;;  %v6901_v20 = vpop.f32.mrf.mxu1 }
 0x413   : > { %13270 = vmatprep.mubr.bf16.mxu0 %v11949_v21  ;;  %v9972_v47 = vsel %vm14017_vm7, %v9967_v43, %v9971_v1  ;;  %v9977_v8 = vrot.slane %v9976_v12, 4  ;;  %v17606_v45 = vadd.f32 %v17553_v10, %v6901_v20  ;;  %v10008_v53 = vshrl.u32 %v9854_v24, 16  ;;  %v17618_v1 = vpop.f32.mrf.mxu0  ;;  %v13642_v21 = vld [vmem:[#allocation8 + $0x228] sm:$0xff]   ;;  %v17637_v12 = vld [vmem:[#allocation2 + $0x68] sm:$0x1] }
 0x414   : > { %v9991_v52 = vrot.slane %v9990_v42, 4  ;;  %v9999_v32 = vrot.slane %v9997_v50, 4  ;;  %v10005_v30 = vrot.slane %v10003_v13, 5  ;;  %v12933_v49 = vpop.f32.mrf.mxu1  ;;  %v10011_v31 = vshll.u32 %v9854_v24, 16 }
 0x415   : > { %v9982_v25 = vsel %vm14017_vm7, %v9977_v8, %v9981_v54  ;;  %v17615_v29 = vadd.f32 %v17560_v22, %v12933_v49  ;;  %v10010_v10 = vrot.slane %v10008_v53, 4  ;;  %v10017_v59 = vshll.u32 %v17601_v62, 16  ;;  %v17632_v38 = vpop.f32.mrf.mxu0  ;;  %v9860_v53 = vld [vmem:[#allocation2 + $0x6c] sm:$0xf] }
 0x416   : > { %v11950_v26 = vcombine.low %v9972_v47, %v9982_v25  ;;  %v9996_v40 = vsel %vm14017_vm7, %v9991_v52, %v9995_v18  ;;  %v10000_v6 = vor.u32 %v9999_v32, %v9995_v18  ;;  %v6904_v7 = vpop.f32.mrf.mxu1  ;;  %v10013_v14 = vrot.slane %v10011_v31, 5  ;;  %v17648_v31 = vld [vmem:[#allocation2 + $0x70] sm:$0xf]  ;;  %v13638_v25 = vld [vmem:[#allocation2 + $0x3c] sm:$0xff]  }
 0x417   : > { %13219 = vmatmul.mubr.bf16.vlgmr.msra.gmra.mxu1 %v13635_v5  ;;  %v17626_v22 = vadd.f32 %v17567_v60, %v6904_v7  ;;  %v17628_v41 = vrot.slane %v10017_v59, 5  ;;  %v10021_v19 = vshrl.u32 %v17601_v62, 16  ;;  %v10027_v57 = vshll.u32 %v17610_v4, 16  ;;  %v17640_v18 = vpop.f32.mrf.mxu0 }
 0x418   : > { %13222 = vmatprep.mubr.bf16.mxu1 %v13637_v9  ;;  %13299 = vmatpush3.bf16.msra.mxu1 %v17499_v2  ;;  %v10001_v54 = vrot.slane %v10000_v6, 4  ;;  %v10014_v48 = vor.u32 %v10013_v14, %v10010_v10  ;;  %v12936_v0 = vpop.f32.mrf.mxu1  ;;  %v10032_v58 = vshrl.u32 %v9857_v39, 16  ;;  %v10035_v24 = vshll.u32 %v9857_v39, 16  ;;  %v13640_v6 = vld [vmem:[#allocation2 + $0x48] sm:$0xff]   ;;  %v17660_v14 = vld [vmem:[#allocation2 + $0x74] sm:$0x1] }
 0x419   : > { %13271 = vmatmul.mubr.bf16.gmra.mxu0 %v11950_v26  ;;  %13300 = vmatprep.subr.bf16.mxu1 %v13639_v51  ;;  %v10023_v2 = vrot.slane %v10021_v19, 4  ;;  %v10029_v43 = vrot.slane %v10027_v57, 5  ;;  %v17635_v60 = vadd.f32 %v17574_v61, %v12936_v0  ;;  %v10041_v42 = vshll.u32 %v17622_v55, 16  ;;  %v17646_v49 = vpop.f32.mrf.mxu0  ;;  %v13645_v26 = vld [vmem:[#allocation8 + $0x220] sm:$0xff]  }
 0x41a   : > { %v10006_v50 = vsel %vm14017_vm7, %v10001_v54, %v10005_v30  ;;  %v10015_v13 = vrot.slane %v10014_v48, 4  ;;  %v10034_v20 = vrot.slane %v10032_v58, 4  ;;  %v10037_v47 = vrot.slane %v10035_v24, 5  ;;  %v6917_v8 = vpop.f32.mrf.mxu1  ;;  %v9863_v58 = vld [vmem:[#allocation2 + $0x78] sm:$0xf] }
 0x41b   : > { %19164 = vst [vmem:[#allocation28_spill] sm:$0xff] %v17635_v60  ;;  %v11951_v5 = vcombine.low %v9996_v40, %v10006_v50  ;;  %v10024_v52 = vor.u32 %v10023_v2, %v17628_v41  ;;  %v10043_v32 = vrot.slane %v10041_v42, 5  ;;  %v10045_v61 = vshrl.u32 %v17622_v55, 16  ;;  %v17662_v19 = vpop.f32.mrf.mxu0  ;;  %v17670_v50 = vld [vmem:[#allocation2 + $0x7c] sm:$0xf] }
 0x41c   : > { %13301 = vmatpush3.bf16.msra.mxu1 %v13639_v51  ;;  %v10020_v30 = vsel %vm14017_vm7, %v10015_v13, %v17628_v41  ;;  %v10038_v9 = vor.u32 %v10037_v47, %v10034_v20  ;;  %v10051_v10 = vshll.u32 %v17637_v12, 16  ;;  %v17655_v59 = vadd.f32 %v17582_v44, %v6917_v8  ;;  %v12937_v39 = vpop.f32.mrf.mxu1 }
 0x41d   : > { %13302 = vmatprep.subr.bf16.mxu1 %v13642_v21  ;;  %13274 = vmatprep.mubr.bf16.mxu0 %v11951_v5  ;;  %v10025_v51 = vrot.slane %v10024_v52, 4  ;;  %v10047_v40 = vrot.slane %v10045_v61, 4  ;;  %v17658_v7 = vadd.f32 %v17590_v34, %v12937_v39  ;;  %v10056_v41 = vshrl.u32 %v9860_v53, 16  ;;  %v17672_v13 = vpop.f32.mrf.mxu0 }
 0x41e   : > { %19165 = vst [vmem:[#allocation51_spill] sm:$0xff] %v17655_v59  ;;  %v10039_v57 = vrot.slane %v10038_v9, 4  ;;  %v10053_v54 = vrot.slane %v10051_v10, 5  ;;  %v6920_v44 = vpop.f32.mrf.mxu1  ;;  %v10059_v48 = vshll.u32 %v9860_v53, 16  ;;  %v10065_v0 = vshll.u32 %v17648_v31, 16 }
 0x41f   : > { %19166 = vst [vmem:[#allocation57_spill] sm:$0xff] %v17658_v7  ;;  %13223 = vmatmul.mubr.bf16.gmra.mxu1 %v13638_v25  ;;  %v10030_v24 = vsel %vm14017_vm7, %v10025_v51, %v10029_v43  ;;  %v10048_v2 = vor.u32 %v10047_v40, %v10043_v32  ;;  %v17668_v34 = vadd.f32 %v17597_v35, %v6920_v44  ;;  %v10058_v42 = vrot.slane %v10056_v41, 4  ;;  %v13648_v43 = vld [vmem:[#allocation8 + $0x218] sm:$0xff]   ;;  %v17680_v25 = vpop.f32.mrf.mxu0  ;;  %v9866_v44 = vld [vmem:[#allocation2 + $0x84] sm:$0xf] }
 0x420   : > { %13226 = vmatprep.mubr.bf16.mxu1 %v13640_v6  ;;  %13303 = vmatpush3.bf16.msra.mxu1 %v13642_v21  ;;  %v11952_v20 = vcombine.low %v10020_v30, %v10030_v24  ;;  %v10044_v47 = vsel %vm14017_vm7, %v10039_v57, %v10043_v32  ;;  %v10061_v8 = vrot.slane %v10059_v48, 5  ;;  %v17676_v53 = vrot.slane %v10065_v0, 5  ;;  %v17682_v30 = vld [vmem:[#allocation2 + $0x80] sm:$0x1]  ;;  %v13641_v24 = vld [vmem:[#allocation2 + $0x54] sm:$0xff]  }
 0x421   : > { %19167 = vst [vmem:[#allocation21_spill] sm:$0xff] %v17668_v34  ;;  %13304 = vmatprep.subr.bf16.mxu1 %v13645_v26  ;;  %v10049_v5 = vrot.slane %v10048_v2, 4  ;;  %v10069_v52 = vshrl.u32 %v17648_v31, 16  ;;  %v10075_v35 = vshll.u32 %v17660_v14, 16  ;;  %v10080_v61 = vshrl.u32 %v9863_v58, 16  ;;  %v17691_v57 = vpop.f32.mrf.mxu0 }
 0x422   : > { %13275 = vmatmul.mubr.bf16.gmra.mxu0 %v11952_v20  ;;  %v10062_v21 = vor.u32 %v10061_v8, %v10058_v42  ;;  %v12940_v9 = vpop.f32.mrf.mxu1  ;;  %v10083_v10 = vshll.u32 %v9863_v58, 16  ;;  %v10089_v32 = vshll.u32 %v17670_v50, 16  ;;  %v10093_v39 = vshrl.u32 %v17670_v50, 16  ;;  %v13651_v20 = vld [vmem:[#allocation8 + $0x210] sm:$0xff]   ;;  %v17743_v7 = vld [vmem:[#allocation2 + $0xa0] sm:$0xf] }
 0x423   : > { %v10054_v51 = vsel %vm14017_vm7, %v10049_v5, %v10053_v54  ;;  %v10071_v40 = vrot.slane %v10069_v52, 4  ;;  %v10077_v6 = vrot.slane %v10075_v35, 5  ;;  %v17689_v41 = vadd.f32 %v17608_v16, %v12940_v9  ;;  %v13643_v16 = vld [vmem:[#allocation2 + $0x60] sm:$0xff]   ;;  %v17695_v35 = vld [vmem:[#allocation2 + $0x88] sm:$0xf]  ;;  %v17697_v9 = vpop.f32.mrf.mxu0  ;;  %19176 = vst [vmem:[#allocation62_spill] sm:$0xff] %v17743_v7 }
 0x424   : > { %13305 = vmatpush3.bf16.msra.mxu1 %v13645_v26  ;;  %v11953_v48 = vcombine.low %v10044_v47, %v10054_v51  ;;  %v10063_v0 = vrot.slane %v10062_v21, 4  ;;  %v10082_v58 = vrot.slane %v10080_v61, 4  ;;  %v10085_v2 = vrot.slane %v10083_v10, 5  ;;  %v6933_v42 = vpop.f32.mrf.mxu1 }
 0x425   : > { %19168 = vst [vmem:[#allocation54_spill] sm:$0xff] %v17689_v41  ;;  %13306 = vmatprep.subr.bf16.mxu1 %v13648_v43  ;;  %v10072_v8 = vor.u32 %v10071_v40, %v17676_v53  ;;  %v10091_v54 = vrot.slane %v10089_v32, 5  ;;  %v10095_v5 = vrot.slane %v10093_v39, 4  ;;  %v10099_v52 = vshll.u32 %v17682_v30, 16  ;;  %v17708_v41 = vld [vmem:[#allocation2 + $0x8c] sm:$0x1] }
 0x426   : > { %13278 = vmatprep.mubr.bf16.mxu0 %v11953_v48  ;;  %v10068_v26 = vsel %vm14017_vm7, %v10063_v0, %v17676_v53  ;;  %v10086_v47 = vor.u32 %v10085_v2, %v10082_v58  ;;  %v17703_v61 = vadd.f32 %v17618_v1, %v6933_v42  ;;  %v12941_v21 = vpop.f32.mrf.mxu1  ;;  %v10104_v10 = vshrl.u32 %v9866_v44, 16  ;;  %v17710_v48 = vpop.f32.mrf.mxu0  ;;  %v13654_v2 = vld [vmem:[#allocation8 + $0x208] sm:$0xff]  }
 0x427   : > { %13227 = vmatmul.mubr.bf16.gmra.mxu1 %v13641_v24  ;;  %v10073_v32 = vrot.slane %v10072_v8, 4  ;;  %v10096_v39 = vor.u32 %v10095_v5, %v10091_v54  ;;  %v10101_v51 = vrot.slane %v10099_v52, 5  ;;  %v17706_v40 = vadd.f32 %v17632_v38, %v12941_v21  ;;  %v9869_v52 = vld [vmem:[#allocation2 + $0x90] sm:$0xf] }
 0x428   : > { %19169 = vst [vmem:[#allocation41_spill] sm:$0xff] %v17703_v61  ;;  %13230 = vmatprep.mubr.bf16.mxu1 %v13643_v16  ;;  %13307 = vmatpush3.bf16.msra.mxu1 %v13648_v43  ;;  %v10087_v53 = vrot.slane %v10086_v47, 4  ;;  %v6936_v0 = vpop.f32.mrf.mxu1  ;;  %v10106_v24 = vrot.slane %v10104_v10, 4  ;;  %v10107_v58 = vshll.u32 %v9866_v44, 16  ;;  %v10113_v1 = vshll.u32 %v17695_v35, 16  ;;  %v17719_v16 = vpop.f32.mrf.mxu0 }
 0x429   : > { %19170 = vst [vmem:[#allocation36_spill] sm:$0xff] %v17706_v40  ;;  %13308 = vmatprep.subr.bf16.mxu1 %v13651_v20  ;;  %v10078_v42 = vsel %vm14017_vm7, %v10073_v32, %v10077_v6  ;;  %v10097_v8 = vrot.slane %v10096_v39, 4  ;;  %v17716_v38 = vadd.f32 %v17640_v18, %v6936_v0  ;;  %v10117_v5 = vshrl.u32 %v17695_v35, 16  ;;  %v17723_v40 = vld [vmem:[#allocation2 + $0x94] sm:$0xf] }
 0x42a   : > { %v11954_v43 = vcombine.low %v10068_v26, %v10078_v42  ;;  %v10092_v44 = vsel %vm14017_vm7, %v10087_v53, %v10091_v54  ;;  %v10109_v47 = vrot.slane %v10107_v58, 5  ;;  %v10115_v21 = vrot.slane %v10113_v1, 5  ;;  %v12944_v10 = vpop.f32.mrf.mxu1  ;;  %19172 = vst [vmem:[#allocation39_spill] sm:$0xff] %v17723_v40  ;;  %v17731_v0 = vld [vmem:[#allocation2 + $0x98] sm:$0x1]  ;;  %v17733_v26 = vpop.f32.mrf.mxu0  ;;  %v13644_v58 = vld [vmem:[#allocation2 + $0x6c] sm:$0xff]  }
 0x42b   : > { %19171 = vst [vmem:[#allocation26_spill] sm:$0xff] %v17716_v38  ;;  %v10102_v6 = vsel %vm14017_vm7, %v10097_v8, %v10101_v51  ;;  %v10119_v32 = vrot.slane %v10117_v5, 4  ;;  %v10123_v18 = vshll.u32 %v17708_v41, 16  ;;  %v17729_v39 = vadd.f32 %v17646_v49, %v12944_v10  ;;  %19174 = vst [vmem:[#allocation31_spill] sm:$0xff] %v17731_v0  ;;  %v13657_v51 = vld [vmem:[#allocation8 + $0x200] sm:$0xff]  }
 0x42c   : > { %13309 = vmatpush3.bf16.msra.mxu1 %v13651_v20  ;;  %13279 = vmatmul.mubr.bf16.gmra.mxu0 %v11954_v43  ;;  %v11955_v54 = vcombine.low %v10092_v44, %v10102_v6  ;;  %v10110_v53 = vor.u32 %v10109_v47, %v10106_v24  ;;  %v10128_v1 = vshrl.u32 %v9869_v52, 16  ;;  %v10131_v42 = vshll.u32 %v9869_v52, 16  ;;  %v6949_v38 = vpop.f32.mrf.mxu1  ;;  %v13646_v10 = vld [vmem:[#allocation2 + $0x78] sm:$0xff]  }
 0x42d   : > { %19173 = vst [vmem:[#allocation29_spill] sm:$0xff] %v17729_v39  ;;  %13310 = vmatprep.subr.bf16.mxu1 %v13654_v2  ;;  %v10120_v8 = vor.u32 %v10119_v32, %v10115_v21  ;;  %v10125_v5 = vrot.slane %v10123_v18, 5  ;;  %v10137_v61 = vshll.u32 %v17723_v40, 16  ;;  %v10141_v49 = vshrl.u32 %v17723_v40, 16  ;;  %v17737_v39 = vpop.f32.mrf.mxu0  ;;  %v9872_v47 = vld [vmem:[#allocation2 + $0x9c] sm:$0xf] }
 0x42e   : > { %13282 = vmatprep.mubr.bf16.mxu0 %v11955_v54  ;;  %v10111_v20 = vrot.slane %v10110_v53, 4  ;;  %v10130_v43 = vrot.slane %v10128_v1, 4  ;;  %v10133_v24 = vrot.slane %v10131_v42, 5  ;;  %v10147_v44 = vshll.u32 %v17731_v0, 16  ;;  %v12945_v52 = vpop.f32.mrf.mxu1 }
 0x42f   : > { %13231 = vmatmul.mubr.bf16.gmra.mxu1 %v13644_v58  ;;  %v10121_v6 = vrot.slane %v10120_v8, 4  ;;  %v10139_v34 = vrot.slane %v10137_v61, 5  ;;  %v10143_v32 = vrot.slane %v10141_v49, 4  ;;  %v17741_v18 = vadd.f32 %v17662_v19, %v6949_v38  ;;  %v17745_v59 = vpop.f32.mrf.mxu0  ;;  %v17752_v61 = vld [vmem:[#allocation2 + $0xa4] sm:$0x1] }
 0x430   : > { %13234 = vmatprep.mubr.bf16.mxu1 %v13646_v10  ;;  %13311 = vmatpush3.bf16.msra.mxu1 %v13654_v2  ;;  %v10116_v54 = vsel %vm14017_vm7, %v10111_v20, %v10115_v21  ;;  %v10134_v53 = vor.u32 %v10133_v24, %v10130_v43  ;;  %v10149_v58 = vrot.slane %v10147_v44, 5  ;;  %v17750_v1 = vadd.f32 %v17672_v13, %v12945_v52  ;;  %v6952_v42 = vpop.f32.mrf.mxu1  ;;  %v9875_v49 = vld [vmem:[#allocation2 + $0xa8] sm:$0xf] }
 0x431   : > { %19175 = vst [vmem:[#allocation52_spill] sm:$0xff] %v17741_v18  ;;  %19178 = vst [vmem:[#allocation24_spill] sm:$0xff] %v17752_v61  ;;  %13312 = vmatprep.subr.bf16.mxu1 %v13657_v51  ;;  %v10126_v19 = vsel %vm14017_vm7, %v10121_v6, %v10125_v5  ;;  %v10144_v38 = vor.u32 %v10143_v32, %v10139_v34  ;;  %v17757_v8 = vadd.f32 %v17680_v25, %v6952_v42  ;;  %v17759_v10 = vpop.f32.mrf.mxu0  ;;  %v17764_v5 = vld [vmem:[#allocation2 + $0xac] sm:$0xf]  ;;  %v17770_v42 = vld [vmem:[#allocation2 + $0xb0] sm:$0x1] }
 0x432   : > { %19177 = vst [vmem:[#allocation56_spill] sm:$0xff] %v17750_v1  ;;  %v10152_v2 = vshrl.u32 %v9872_v47, 16  ;;  %v11956_v21 = vcombine.low %v10116_v54, %v10126_v19  ;;  %v10135_v20 = vrot.slane %v10134_v53, 4  ;;  %v10155_v43 = vshll.u32 %v9872_v47, 16  ;;  %19180 = vst [vmem:[#allocation20_spill] sm:$0xff] %v17764_v5  ;;  %v13647_v53 = vld [vmem:[#allocation2 + $0x84] sm:$0xff]  }
 0x433   : > { %19179 = vst [vmem:[#allocation53_spill] sm:$0xff] %v17757_v8  ;;  %v10161_v13 = vshll.u32 %v17743_v7, 16  ;;  %v10145_v24 = vrot.slane %v10144_v38, 4  ;;  %v10165_v52 = vshrl.u32 %v17743_v7, 16  ;;  %v10171_v1 = vshll.u32 %v17752_v61, 16  ;;  %v17766_v6 = vpop.f32.mrf.mxu0  ;;  %19181 = vst [vmem:[#allocation59_spill] sm:$0xff] %v17770_v42 }
 0x434   : > { %v10154_v44 = vrot.slane %v10152_v2, 4  ;;  %13313 = vmatpush3.bf16.msra.mxu1 %v13657_v51  ;;  %13283 = vmatmul.mubr.bf16.gmra.mxu0 %v11956_v21  ;;  %v10140_v25 = vsel %vm14017_vm7, %v10135_v20, %v10139_v34  ;;  %v10157_v32 = vrot.slane %v10155_v43, 5  ;;  %v12948_v47 = vpop.f32.mrf.mxu1  ;;  %v10176_v19 = vshrl.u32 %v9875_v49, 16  ;;  %v13649_v51 = vld [vmem:[#allocation2 + $0x90] sm:$0xff]  }
 0x435   : > { %v10163_v54 = vrot.slane %v10161_v13, 5  ;;  %v10150_v38 = vsel %vm14017_vm7, %v10145_v24, %v10149_v58  ;;  %v10167_v2 = vrot.slane %v10165_v52, 4  ;;  %v10173_v8 = vrot.slane %v10171_v1, 5  ;;  %v9878_v21 = vld [vmem:[#allocation2 + $0xb4] sm:$0xf]  ;;  %v17777_v61 = vpop.f32.mrf.mxu0 }
 0x436   : > { %v17775_v18 = vadd.f32 %v17691_v57, %v12948_v47  ;;  %v11957_v34 = vcombine.low %v10140_v25, %v10150_v38  ;;  %v10158_v20 = vor.u32 %v10157_v32, %v10154_v44  ;;  %v10178_v43 = vrot.slane %v10176_v19, 4  ;;  %v6965_v0 = vpop.f32.mrf.mxu1  ;;  %v17787_v38 = vld [vmem:[#allocation2 + $0xb8] sm:$0xf] }
 0x437   : > { %13235 = vmatmul.mubr.bf16.gmra.mxu1 %v13647_v53  ;;  %v10179_v13 = vshll.u32 %v9875_v49, 16  ;;  %v10168_v7 = vor.u32 %v10167_v2, %v10163_v54  ;;  %v10185_v60 = vshll.u32 %v17764_v5, 16  ;;  %v10189_v58 = vshrl.u32 %v17764_v5, 16  ;;  %v17782_v57 = vpop.f32.mrf.mxu0  ;;  %19184 = vst [vmem:[#allocation32_spill] sm:$0xff] %v17787_v38 }
 0x438   : > { %19182 = vst [vmem:[#allocation48_spill] sm:$0xff] %v17775_v18  ;;  %v10195_v1 = vshll.u32 %v17770_v42, 16  ;;  %13238 = vmatprep.mubr.bf16.mxu1 %v13649_v51  ;;  %13286 = vmatprep.mubr.bf16.mxu0 %v11957_v34  ;;  %v10159_v24 = vrot.slane %v10158_v20, 4  ;;  %v17785_v25 = vadd.f32 %v17697_v9, %v6965_v0  ;;  %v12949_v44 = vpop.f32.mrf.mxu1  ;;  %v10200_v32 = vshrl.u32 %v9878_v21, 16  ;;  %v17796_v9 = vld [vmem:[#allocation2 + $0xbc] sm:$0x1] }
 0x439   : > { %v10181_v52 = vrot.slane %v10179_v13, 5  ;;  %v10169_v49 = vrot.slane %v10168_v7, 4  ;;  %v10187_v47 = vrot.slane %v10185_v60, 5  ;;  %v10191_v53 = vrot.slane %v10189_v58, 4  ;;  %v17789_v2 = vpop.f32.mrf.mxu0  ;;  %19186 = vst [vmem:[#allocation33_spill] sm:$0xff] %v17796_v9 }
 0x43a   : > { %19183 = vst [vmem:[#allocation43_spill] sm:$0xff] %v17785_v25  ;;  %v10197_v19 = vrot.slane %v10195_v1, 5  ;;  %v10164_v51 = vsel %vm14017_vm7, %v10159_v24, %v10163_v54  ;;  %v17794_v34 = vadd.f32 %v17710_v48, %v12949_v44  ;;  %v6968_v20 = vpop.f32.mrf.mxu1  ;;  %v10202_v0 = vrot.slane %v10200_v32, 4  ;;  %v9881_v1 = vld [vmem:[#allocation2 + $0xc0] sm:$0xf] }
 0x43b   : > { %v10182_v42 = vor.u32 %v10181_v52, %v10178_v43  ;;  %v10174_v60 = vsel %vm14017_vm7, %v10169_v49, %v10173_v8  ;;  %v10192_v7 = vor.u32 %v10191_v53, %v10187_v47  ;;  %v17801_v13 = vadd.f32 %v17719_v16, %v6968_v20  ;;  %v17803_v25 = vpop.f32.mrf.mxu0  ;;  %v13650_v44 = vld [vmem:[#allocation2 + $0x9c] sm:$0xff]   ;;  %v17811_v16 = vld [vmem:[#allocation2 + $0xc4] sm:$0xf] }
 0x43c   : > { %19185 = vst [vmem:[#allocation25_spill] sm:$0xff] %v17794_v34  ;;  %v10203_v58 = vshll.u32 %v9878_v21, 16  ;;  %v11958_v54 = vcombine.low %v10164_v51, %v10174_v60  ;;  %v10209_v48 = vshll.u32 %v17787_v38, 16  ;;  %v10213_v24 = vshrl.u32 %v17787_v38, 16  ;;  %v12952_v52 = vpop.f32.mrf.mxu1  ;;  %v13652_v21 = vld [vmem:[#allocation2 + $0xa8] sm:$0xff]  }
 0x43d   : > { %19187 = vst [vmem:[#allocation37_spill] sm:$0xff] %v17801_v13  ;;  %v10183_v43 = vrot.slane %v10182_v42, 4  ;;  %v10193_v32 = vrot.slane %v10192_v7, 4  ;;  %v10219_v8 = vshll.u32 %v17796_v9, 16  ;;  %v17809_v49 = vadd.f32 %v17733_v26, %v12952_v52  ;;  %v17813_v53 = vpop.f32.mrf.mxu0  ;;  %v17817_v60 = vld [vmem:[#allocation2 + $0xc8] sm:$0x1] }
 0x43e   : > { %v10205_v34 = vrot.slane %v10203_v58, 5  ;;  %13287 = vmatmul.mubr.bf16.gmra.mxu0 %v11958_v54  ;;  %v10211_v51 = vrot.slane %v10209_v48, 5  ;;  %v10215_v20 = vrot.slane %v10213_v24, 4  ;;  %v10224_v7 = vshrl.u32 %v9881_v1, 16  ;;  %v6981_v58 = vpop.f32.mrf.mxu1 }
 0x43f   : > { %19188 = vst [vmem:[#allocation55_spill] sm:$0xff] %v17809_v49  ;;  %v10188_v42 = vsel %vm14017_vm7, %v10183_v43, %v10187_v47  ;;  %13239 = vmatmul.mubr.bf16.gmra.mxu1 %v13650_v44  ;;  %v10198_v26 = vsel %vm14017_vm7, %v10193_v32, %v10197_v19  ;;  %v10221_v49 = vrot.slane %v10219_v8, 5  ;;  %v10227_v13 = vshll.u32 %v9881_v1, 16  ;;  %v17821_v18 = vpop.f32.mrf.mxu0  ;;  %v10593_v8 = vld [vmem:[#allocation2 + $0x18] sm:$0xe] }
 0x440   : > { %v10206_v52 = vor.u32 %v10205_v34, %v10202_v0  ;;  %13242 = vmatprep.mubr.bf16.mxu1 %v13652_v21  ;;  %v11959_v54 = vcombine.low %v10188_v42, %v10198_v26  ;;  %v10216_v5 = vor.u32 %v10215_v20, %v10211_v51  ;;  %v10226_v9 = vrot.slane %v10224_v7, 4  ;;  %v12953_v43 = vpop.f32.mrf.mxu1  ;;  %v9884_v7 = vld [vmem:[#allocation2 + $0xcc] sm:$0xf] }
 0x441   : > { %v10233_v47 = vshll.u32 %v17811_v16, 16  ;;  %v10229_v24 = vrot.slane %v10227_v13, 5  ;;  %v10237_v44 = vshrl.u32 %v17811_v16, 16  ;;  %v10243_v38 = vshll.u32 %v17817_v60, 16  ;;  %v17826_v40 = vpop.f32.mrf.mxu0 }
 0x442   : > { %v10207_v48 = vrot.slane %v10206_v52, 4  ;;  %13290 = vmatprep.mubr.bf16.mxu0 %v11959_v54  ;;  %v10217_v19 = vrot.slane %v10216_v5, 4  ;;  %v17829_v0 = vadd.f32 %v17737_v39, %v6981_v58  ;;  %v17832_v1 = vadd.f32 %v17745_v59, %v12953_v43  ;;  %v6984_v32 = vpop.f32.mrf.mxu1  ;;  %v13653_v58 = vld [vmem:[#allocation2 + $0xb4] sm:$0xff]   ;;  %v17844_v52 = vld [vmem:[#allocation2 + $0xd0] sm:$0xf] }
 0x443   : > { %v10235_v34 = vrot.slane %v10233_v47, 5  ;;  %v10230_v21 = vor.u32 %v10229_v24, %v10226_v9  ;;  %v10239_v42 = vrot.slane %v10237_v44, 4  ;;  %v17836_v20 = vpop.f32.mrf.mxu0  ;;  %v10245_v26 = vrot.slane %v10243_v38, 5  ;;  %v13655_v9 = vld [vmem:[#allocation2 + $0xc0] sm:$0xff]  }
 0x444   : > { %19189 = vst [vmem:[#allocation61_spill] sm:$0xff] %v17832_v1  ;;  %v10212_v13 = vsel %vm14017_vm7, %v10207_v48, %v10211_v51  ;;  %v10222_v5 = vsel %vm14017_vm7, %v10217_v19, %v10221_v49  ;;  %v17841_v39 = vadd.f32 %v17759_v10, %v6984_v32  ;;  %v10659_v59 = vrot.slane %v17511_v63, 5 }
 0x445   : > { %v11960_v54 = vcombine.low %v10212_v13, %v10222_v5  ;;  %v10231_v47 = vrot.slane %v10230_v21, 4  ;;  %v10240_v51 = vor.u32 %v10239_v42, %v10235_v34  ;;  %v17846_v43 = vpop.f32.mrf.mxu0  ;;  %v11971_v48 = vrot.slane %v10593_v8, 9  ;;  %v17854_v13 = vld [vmem:[#allocation2 + $0xd4] sm:$0x1] }
 0x446   : > { %19190 = vst [vmem:[#allocation27_spill] sm:$0xff] %v17841_v39  ;;  %v12956_v24 = vpop.f32.mrf.mxu1  ;;  %v10661_v44 = vrot.slane %v10659_v59, 4  ;;  %v10662_v38 = vrot.slane %v17516_v17, 5  ;;  %v10248_v49 = vshrl.u32 %v9884_v7, 16  ;;  %v10251_v10 = vshll.u32 %v9884_v7, 16 }
 0x447   : > { %13243 = vmatmul.mubr.bf16.gmra.mxu1 %v13653_v58  ;;  %13291 = vmatmul.mubr.bf16.gmra.mxu0 %v11960_v54  ;;  %v10236_v63 = vsel %vm14017_vm7, %v10231_v47, %v10235_v34  ;;  %v10241_v19 = vrot.slane %v10240_v51, 4  ;;  %v17852_v32 = vadd.f32 %v17766_v6, %v12956_v24  ;;  %v10257_v8 = vshll.u32 %v17844_v52, 16  ;;  %v17857_v21 = vpop.f32.mrf.mxu0  ;;  %v10594_v34 = vld [vmem:[#allocation2 + $0x24] sm:$0xe]  ;;  %v10595_v24 = vld [vmem:[#allocation2 + $0x30] sm:$0xe] }
 0x448   : > { %13246 = vmatprep.mubr.bf16.mxu1 %v13655_v9  ;;  %v6997_v42 = vpop.f32.mrf.mxu1  ;;  %v10663_v17 = vsel %vm14306_vm13, %v10661_v44, %v10662_v38  ;;  %v10250_v7 = vrot.slane %v10248_v49, 4  ;;  %v10253_v5 = vrot.slane %v10251_v10, 5  ;;  %v10261_v58 = vshrl.u32 %v17844_v52, 16  ;;  %v13656_v38 = vld [vmem:[#allocation2 + $0xcc] sm:$0xff]  }
 0x449   : > { %19191 = vst [vmem:[#allocation58_spill] sm:$0xff] %v17852_v32  ;;  %v10246_v6 = vsel %vm14017_vm7, %v10241_v19, %v10245_v26  ;;  %v17865_v54 = vadd.f32 %v17777_v61, %v6997_v42  ;;  %v10660_v47 = vsel %vm14306_vm13, %v11971_v48, %v10659_v59  ;;  %v10259_v51 = vrot.slane %v10257_v8, 5  ;;  %v17869_v9 = vpop.f32.mrf.mxu0 }
 0x44a   : > { %v11961_v32 = vcombine.low %v10236_v63, %v10246_v6  ;;  %v12957_v44 = vpop.f32.mrf.mxu1  ;;  %v10254_v49 = vor.u32 %v10253_v5, %v10250_v7  ;;  %v10263_v10 = vrot.slane %v10261_v58, 4  ;;  %v10267_v39 = vshll.u32 %v17854_v13, 16 }
 0x44b   : > { %19192 = vst [vmem:[#allocation22_spill] sm:$0xff] %v17865_v54  ;;  %v17873_v1 = vadd.f32 %v17782_v57, %v12957_v44  ;;  %v11987_v26 = vcombine.low %v10660_v47, %v10663_v17  ;;  %v17875_v61 = vpop.f32.mrf.mxu0  ;;  %v11972_v19 = vrot.slane %v10594_v34, 9  ;;  %v10666_v59 = vrot.slane %v17530_v23, 5  ;;  %v10596_v54 = vld [vmem:[#allocation2 + $0x3c] sm:$0xe] }
 0x44c   : > { %13294 = vmatprep.mubr.bf16.mxu0 %v11961_v32  ;;  %v7000_v48 = vpop.f32.mrf.mxu1  ;;  %v10255_v8 = vrot.slane %v10254_v49, 4  ;;  %v10264_v42 = vor.u32 %v10263_v10, %v10259_v51  ;;  %v10269_v63 = vrot.slane %v10267_v39, 5  ;;  %v11973_v6 = vrot.slane %v10595_v24, 9 }
 0x44d   : > { %v17879_v7 = vadd.f32 %v17789_v2, %v7000_v48  ;;  %v10668_v5 = vrot.slane %v10666_v59, 4  ;;  %v10669_v57 = vrot.slane %v17532_v46, 5  ;;  %v17882_v58 = vpop.f32.mrf.mxu0  ;;  %v10673_v17 = vrot.slane %v17550_v3, 5  ;;  %v10597_v2 = vld [vmem:[#allocation2 + $0x48] sm:$0xe] }
 0x44e   : > { %v12960_v34 = vpop.f32.mrf.mxu1  ;;  %v10260_v23 = vsel %vm14017_vm7, %v10255_v8, %v10259_v51  ;;  %v10265_v32 = vrot.slane %v10264_v42, 4  ;;  %v10667_v39 = vsel %vm14306_vm13, %v11972_v19, %v10666_v59  ;;  %v10676_v47 = vrot.slane %v17557_v36, 5 }
 0x44f   : > { %13247 = vmatmul.mubr.bf16.gmra.mxu1 %v13656_v38  ;;  %v17891_v24 = vadd.f32 %v17803_v25, %v12960_v34  ;;  %v10670_v46 = vsel %vm14306_vm13, %v10668_v5, %v10669_v57  ;;  %v10675_v3 = vrot.slane %v10673_v17, 4  ;;  %v17895_v44 = vpop.f32.mrf.mxu0  ;;  %v11974_v38 = vrot.slane %v10596_v54, 9  ;;  %v10598_v25 = vld [vmem:[#allocation2 + $0x54] sm:$0xe] }
 0x450   : > { %13314 = vmatprep.mubr.bf16.mxu1 %v11987_v26  ;;  %v7013_v49 = vpop.f32.mrf.mxu1  ;;  %v10270_v51 = vsel %vm14017_vm7, %v10265_v32, %v10269_v63  ;;  %v11988_v10 = vcombine.low %v10667_v39, %v10670_v46  ;;  %v10674_v36 = vsel %vm14306_vm13, %v11973_v6, %v10673_v17  ;;  %v10680_v19 = vrot.slane %v17565_v15, 5 }
 0x451   : > { %v17903_v26 = vadd.f32 %v17813_v53, %v7013_v49  ;;  %v11962_v59 = vcombine.low %v10260_v23, %v10270_v51  ;;  %v10677_v48 = vsel %vm14306_vm13, %v10675_v3, %v10676_v47  ;;  %v17907_v8 = vpop.f32.mrf.mxu0  ;;  %v11975_v54 = vrot.slane %v10597_v2, 9  ;;  %v10599_v23 = vld [vmem:[#allocation2 + $0x60] sm:$0xe]  ;;  %v10600_v47 = vld [vmem:[#allocation2 + $0x6c] sm:$0xe] }
 0x452   : > { %v12961_v42 = vpop.f32.mrf.mxu1  ;;  %v11989_v11 = vcombine.low %v10674_v36, %v10677_v48  ;;  %v10682_v63 = vrot.slane %v10680_v19, 4  ;;  %v10683_v5 = vrot.slane %v17576_v28, 5  ;;  %v10687_v6 = vrot.slane %v17579_v56, 5 }
 0x453   : > { %13295 = vmatmul.mubr.bf16.gmra.mxu0 %v11962_v59  ;;  %v17912_v15 = vadd.f32 %v17821_v18, %v12961_v42  ;;  %v17914_v53 = vpop.f32.mrf.mxu0  ;;  %v10681_v57 = vsel %vm14306_vm13, %v11974_v38, %v10680_v19  ;;  %v11976_v17 = vrot.slane %v10598_v25, 9  ;;  %v10694_v34 = vrot.slane %v17601_v62, 5 }
 0x454   : > { %v7016_v32 = vpop.f32.mrf.mxu1  ;;  %v10684_v39 = vsel %vm14306_vm13, %v10682_v63, %v10683_v5  ;;  %v10688_v28 = vsel %vm14306_vm13, %v11975_v54, %v10687_v6  ;;  %v10689_v56 = vrot.slane %v10687_v6, 4  ;;  %v10690_v18 = vrot.slane %v17587_v27, 5 }
 0x455   : > { %19193 = vst [vmem:[#allocation64_spill] sm:$0xff] %v17912_v15  ;;  %v17925_v2 = vadd.f32 %v17826_v40, %v7016_v32  ;;  %v11990_v46 = vcombine.low %v10681_v57, %v10684_v39  ;;  %v17927_v3 = vpop.f32.mrf.mxu0  ;;  %v10696_v38 = vrot.slane %v10694_v34, 4  ;;  %v10697_v62 = vrot.slane %v17610_v4, 5  ;;  %v10601_v40 = vld [vmem:[#allocation2 + $0x78] sm:$0xe] }
 0x456   : > { %v13028_v49 = vpop.f32.mrf.mxu1  ;;  %v10691_v51 = vsel %vm14306_vm13, %v10689_v56, %v10690_v18  ;;  %v17934_v36 = vsel %vm14306_vm13, %v11976_v17, %v10694_v34  ;;  %v11977_v27 = vrot.slane %v10599_v23, 9  ;;  %v10701_v19 = vrot.slane %v17622_v55, 5  ;;  %v10602_v17 = vld [vmem:[#allocation2 + $0x84] sm:$0xe] }
 0x457   : > { %19194 = vst [vmem:[#allocation50_spill] sm:$0xff] %v17925_v2  ;;  %13315 = vmatmul.mubr.bf16.vlgmr.msra.gmra.mxu1 %v11988_v10  ;;  %v17938_v25 = vadd.f32 %v13028_v49, %v17595_v37  ;;  %v17940_v59 = vpop.f32.mrf.mxu0  ;;  %v17944_v4 = vsel %vm14306_vm13, %v10696_v38, %v10697_v62  ;;  %v10704_v10 = vrot.slane %v17637_v12, 5  ;;  %v11978_v48 = vrot.slane %v10600_v47, 9  ;;  %v10603_v47 = vld [vmem:[#allocation2 + $0x90] sm:$0xe] }
 0x458   : > { %13318 = vmatprep.mubr.bf16.mxu1 %v11989_v11  ;;  %v7656_v54 = vpop.f32.mrf.mxu1  ;;  %v11991_v42 = vcombine.low %v10688_v28, %v10691_v51  ;;  %v11992_v63 = vcombine.low %v17934_v36, %v17944_v4  ;;  %v10703_v55 = vrot.slane %v10701_v19, 4  ;;  %v10708_v5 = vrot.slane %v17648_v31, 5  ;;  %v10604_v51 = vld [vmem:[#allocation2 + $0x9c] sm:$0xe] }
 0x459   : > { %v17951_v37 = vadd.f32 %v7656_v54, %v17606_v45  ;;  %v17953_v11 = vpop.f32.mrf.mxu0  ;;  %v17957_v6 = vsel %vm14306_vm13, %v11977_v27, %v10701_v19  ;;  %v11979_v57 = vrot.slane %v10601_v40, 9  ;;  %v10715_v12 = vrot.slane %v17670_v50, 5 }
 0x45a   : > { %v13029_v34 = vpop.f32.mrf.mxu1  ;;  %v10705_v23 = vsel %vm14306_vm13, %v10703_v55, %v10704_v10  ;;  %v17964_v31 = vsel %vm14306_vm13, %v11978_v48, %v10708_v5  ;;  %v10710_v45 = vrot.slane %v10708_v5, 4  ;;  %v10711_v32 = vrot.slane %v17660_v14, 5  ;;  %v19195_v5 = vld [vmem:[#allocation39_spill] sm:$0xff] }
 0x45b   : > { %v17968_v39 = vadd.f32 %v13029_v34, %v17615_v29  ;;  %v17970_v28 = vpop.f32.mrf.mxu0  ;;  %v11993_v56 = vcombine.low %v17957_v6, %v10705_v23  ;;  %v10717_v50 = vrot.slane %v10715_v12, 4  ;;  %v10718_v18 = vrot.slane %v17682_v30, 5  ;;  %v19196_v6 = vld [vmem:[#allocation28_spill] sm:$0xff]  ;;  %v19197_v34 = vld [vmem:[#allocation62_spill] sm:$0xff] }
 0x45c   : > { %v7659_v38 = vpop.f32.mrf.mxu1  ;;  %v17976_v62 = vsel %vm14306_vm13, %v10710_v45, %v10711_v32  ;;  %v17980_v49 = vsel %vm14306_vm13, %v11979_v57, %v10715_v12  ;;  %v11980_v14 = vrot.slane %v10602_v17, 9  ;;  %v10722_v29 = vrot.slane %v17695_v35, 5 }
 0x45d   : > { %v7784_v27 = vadd.f32 %v7659_v38, %v17626_v22  ;;  %v17984_v19 = vpop.f32.mrf.mxu0  ;;  %v17990_v40 = vsel %vm14306_vm13, %v10717_v50, %v10718_v18  ;;  %v10725_v10 = vrot.slane %v17708_v41, 5  ;;  %v11981_v55 = vrot.slane %v10603_v47, 9  ;;  %v19198_v50 = vld [vmem:[#allocation31_spill] sm:$0xff] }
 0x45e   : > { %v13032_v48 = vpop.f32.mrf.mxu1  ;;  %v10724_v35 = vrot.slane %v10722_v29, 4  ;;  %v10729_v22 = vrot.slane %v19195_v5, 5  ;;  %v11982_v17 = vrot.slane %v10604_v51, 9  ;;  %v10736_v23 = vrot.slane %v19197_v34, 5  ;;  %v19199_v47 = vld [vmem:[#allocation51_spill] sm:$0xff]  ;;  %v19200_v5 = vld [vmem:[#allocation24_spill] sm:$0xff] }
 0x45f   : > { %13319 = vmatmul.mubr.bf16.gmra.mxu1 %v11990_v46  ;;  %v7789_v57 = vadd.f32 %v13032_v48, %v19196_v6  ;;  %v17997_v12 = vpop.f32.mrf.mxu0  ;;  %v18002_v41 = vsel %vm14306_vm13, %v11980_v14, %v10722_v29  ;;  %v10732_v18 = vrot.slane %v19198_v50, 5  ;;  %v10739_v6 = vrot.slane %v19200_v5, 5  ;;  %v10606_v34 = vld [vmem:[#allocation2 + $0xb4] sm:$0xe] }
 0x460   : > { %13322 = vmatprep.mubr.bf16.mxu1 %v11991_v42  ;;  %v7672_v45 = vpop.f32.mrf.mxu1  ;;  %v18006_v46 = vsel %vm14306_vm13, %v10724_v35, %v10725_v10  ;;  %v10731_v32 = vrot.slane %v10729_v22, 4  ;;  %v10738_v48 = vrot.slane %v10736_v23, 4  ;;  %v18017_v29 = vsel %vm14306_vm13, %v11981_v55, %v10729_v22  ;;  %v19201_v35 = vld [vmem:[#allocation57_spill] sm:$0xff] }
 0x461   : > { %v7787_v38 = vadd.f32 %v7672_v45, %v19199_v47  ;;  %v18010_v42 = vpop.f32.mrf.mxu0  ;;  %v18030_v5 = vsel %vm14306_vm13, %v11982_v17, %v10736_v23  ;;  %v19204_v23 = vld [vmem:[#allocation33_spill] sm:$0xff] }
 0x462   : > { %v13033_v14 = vpop.f32.mrf.mxu1  ;;  %v18021_v10 = vsel %vm14306_vm13, %v10731_v32, %v10732_v18  ;;  %v18034_v51 = vsel %vm14306_vm13, %v10738_v48, %v10739_v6  ;;  %v11984_v32 = vrot.slane %v10606_v34, 9  ;;  %v19202_v18 = vld [vmem:[#allocation32_spill] sm:$0xff]  ;;  %v10753_v48 = vrot.slane %v19204_v23, 5  ;;  %v19205_v6 = vld [vmem:[#allocation54_spill] sm:$0xff] }
 0x463   : > { %v7790_v45 = vadd.f32 %v13033_v14, %v19201_v35  ;;  %v18024_v50 = vpop.f32.mrf.mxu0  ;;  %v11998_v22 = vcombine.low %v18030_v5, %v18034_v51  ;;  %v10750_v14 = vrot.slane %v19202_v18, 5  ;;  %v19203_v35 = vld [vmem:[#allocation21_spill] sm:$0xff] }
 0x464   : > { %v7675_v55 = vpop.f32.mrf.mxu1 }
 0x465   : > { %v7788_v54 = vadd.f32 %v7675_v55, %v19203_v35  ;;  %v18040_v30 = vpop.f32.mrf.mxu0  ;;  %v10752_v17 = vrot.slane %v10750_v14, 4  ;;  %v18051_v18 = vsel %vm14306_vm13, %v11984_v32, %v10750_v14  ;;  %v19206_v35 = vld [vmem:[#allocation41_spill] sm:$0xff]  ;;  %v18068_v32 = vadd.f32 %v17846_v43, %v17951_v37  ;;  %v19207_v14 = vld [vmem:[#allocation36_spill] sm:$0xff] }
 0x466   : > { %v13036_v47 = vpop.f32.mrf.mxu1  ;;  %v18087_v43 = vadd.f32 %v17895_v44, %v7790_v45 }
 0x467   : > { %13323 = vmatmul.mubr.bf16.gmra.mxu1 %v11992_v63  ;;  %v7793_v2 = vadd.f32 %v13036_v47, %v19205_v6  ;;  %v18047_v15 = vpop.f32.mrf.mxu0  ;;  %v18055_v55 = vsel %vm14306_vm13, %v10752_v17, %v10753_v48  ;;  %v18075_v48 = vadd.f32 %v17857_v21, %v17968_v39  ;;  %v18078_v6 = vadd.f32 %v17869_v9, %v7784_v27 }
 0x468   : > { %13326 = vmatprep.mubr.bf16.mxu1 %v11993_v56  ;;  %v7688_v34 = vpop.f32.mrf.mxu1  ;;  %v12000_v63 = vcombine.low %v18051_v18, %v18055_v55  ;;  %v18064_v56 = vadd.f32 %v17836_v20, %v17938_v25  ;;  %v18084_v25 = vadd.f32 %v17882_v58, %v7787_v38  ;;  %v18090_v37 = vadd.f32 %v17907_v8, %v7788_v54  ;;  %v19210_v8 = vld [vmem:[#allocation29_spill] sm:$0xff] }
 0x469   : > { %v7791_v36 = vadd.f32 %v7688_v34, %v19206_v35  ;;  %v18058_v4 = vpop.f32.mrf.mxu0  ;;  %v18081_v34 = vadd.f32 %v17875_v61, %v7789_v57  ;;  %v19208_v35 = vld [vmem:[#allocation26_spill] sm:$0xff]  ;;  %v18096_v9 = vadd.f32 %v17914_v53, %v7793_v2  ;;  %v19209_v58 = vcombine.low %v17964_v31, %v17976_v62  ;;  %v19213_v62 = vld [vmem:[#allocation20_spill] sm:$0xff] }
 0x46a   : > { %v13037_v47 = vpop.f32.mrf.mxu1  ;;  %v19211_v54 = vcombine.low %v17980_v49, %v17990_v40 }
 0x46b   : > { %v7794_v23 = vadd.f32 %v13037_v47, %v19207_v14  ;;  %v18071_v17 = vpop.f32.mrf.mxu0  ;;  %v18099_v61 = vadd.f32 %v17927_v3, %v7791_v36  ;;  %v19212_v3 = vld [vmem:[#allocation52_spill] sm:$0xff]  ;;  %v10743_v36 = vrot.slane %v19213_v62, 5  ;;  %v19219_v62 = vld [vmem:[#allocation59_spill] sm:$0xff] }
 0x46c   : > { %v7691_v20 = vpop.f32.mrf.mxu1  ;;  %v19214_v14 = vld [vmem:[#allocation56_spill] sm:$0xff] }
 0x46d   : > { %v7792_v47 = vadd.f32 %v7691_v20, %v19208_v35  ;;  %v18093_v21 = vpop.f32.mrf.mxu0  ;;  %v18105_v44 = vadd.f32 %v17940_v59, %v7794_v23  ;;  %v19215_v20 = vld [vmem:[#allocation53_spill] sm:$0xff] }
 0x46e   : > { %v13040_v39 = vpop.f32.mrf.mxu1 }
 0x46f   : > { %13327 = vmatmul.mubr.bf16.gmra.mxu1 %v19209_v58  ;;  %v7797_v27 = vadd.f32 %v13040_v39, %v19210_v8  ;;  %v18111_v57 = vpop.f32.mrf.mxu0  ;;  %v18114_v53 = vadd.f32 %v17953_v11, %v7792_v47  ;;  %v10605_v39 = vld [vmem:[#allocation2 + $0xa8] sm:$0xe]  ;;  %v19216_v8 = vcombine.low %v18002_v41, %v18006_v46 }
 0x470   : > { %13330 = vmatprep.mubr.bf16.mxu1 %v19211_v54  ;;  %v7704_v2 = vpop.f32.mrf.mxu1  ;;  %v19217_v54 = vld [vmem:[#allocation48_spill] sm:$0xff] }
 0x471   : > { %v7795_v38 = vadd.f32 %v7704_v2, %v19212_v3  ;;  %v18117_v45 = vpop.f32.mrf.mxu0  ;;  %v18120_v31 = vadd.f32 %v17970_v28, %v7797_v27  ;;  %v10745_v27 = vrot.slane %v10743_v36, 4 }
 0x472   : > { %v13041_v59 = vpop.f32.mrf.mxu1 }
 0x473   : > { %v7798_v23 = vadd.f32 %v13041_v59, %v19214_v14  ;;  %v18124_v49 = vpop.f32.mrf.mxu0  ;;  %v18127_v40 = vadd.f32 %v17984_v19, %v7795_v38  ;;  %v19218_v19 = vcombine.low %v18017_v29, %v18021_v10  ;;  %v10746_v14 = vrot.slane %v19219_v62, 5  ;;  %v10607_v62 = vld [vmem:[#allocation2 + $0xc0] sm:$0xe] }
 0x474   : > { %v7707_v11 = vpop.f32.mrf.mxu1  ;;  %v10757_v10 = vrot.slane %v17811_v16, 5 }
 0x475   : > { %v7796_v35 = vadd.f32 %v7707_v11, %v19215_v20  ;;  %v18130_v47 = vpop.f32.mrf.mxu0  ;;  %v18133_v58 = vadd.f32 %v17997_v12, %v7798_v23  ;;  %v11983_v12 = vrot.slane %v10605_v39, 9  ;;  %v19220_v23 = vld [vmem:[#allocation43_spill] sm:$0xff]  ;;  %v10747_v29 = vsel %vm14306_vm13, %v10745_v27, %v10746_v14 }
 0x476   : > { %v13044_v28 = vpop.f32.mrf.mxu1  ;;  %v19223_v14 = vld [vmem:[#allocation55_spill] sm:$0xff] }
 0x477   : > { %13331 = vmatmul.mubr.bf16.gmra.mxu1 %v19216_v8  ;;  %v7801_v2 = vadd.f32 %v13044_v28, %v19217_v54  ;;  %v18142_v3 = vpop.f32.mrf.mxu0  ;;  %v18145_v38 = vadd.f32 %v18010_v42, %v7796_v35  ;;  %v19221_v28 = vld [vmem:[#allocation25_spill] sm:$0xff]  ;;  %v10744_v54 = vsel %vm14306_vm13, %v11983_v12, %v10743_v36  ;;  %v10608_v36 = vld [vmem:[#allocation2 + $0xcc] sm:$0xe]  ;;  %v10764_v12 = vrot.slane %v17844_v52, 5 }
 0x478   : > { %13334 = vmatprep.mubr.bf16.mxu1 %v19218_v19  ;;  %v7720_v59 = vpop.f32.mrf.mxu1  ;;  %v19222_v19 = vld [vmem:[#allocation37_spill] sm:$0xff] }
 0x479   : > { %v7799_v11 = vadd.f32 %v7720_v59, %v19220_v23  ;;  %v18149_v41 = vpop.f32.mrf.mxu0  ;;  %v18152_v46 = vadd.f32 %v18024_v50, %v7801_v2  ;;  %v11999_v2 = vcombine.low %v10744_v54, %v10747_v29  ;;  %v11986_v54 = vrot.slane %v10608_v36, 9 }
 0x47a   : > { %v13045_v20 = vpop.f32.mrf.mxu1 }
 0x47b   : > { %v7802_v42 = vadd.f32 %v13045_v20, %v19221_v28  ;;  %v18158_v35 = vpop.f32.mrf.mxu0  ;;  %v18161_v39 = vadd.f32 %v18040_v30, %v7799_v11  ;;  %v10759_v30 = vrot.slane %v10757_v10, 4  ;;  %v11985_v28 = vrot.slane %v10607_v62, 9 }
 0x47c   : > { %v7723_v8 = vpop.f32.mrf.mxu1 }
 0x47d   : > { %v7800_v50 = vadd.f32 %v7723_v8, %v19222_v19  ;;  %v18166_v59 = vpop.f32.mrf.mxu0  ;;  %v18169_v27 = vadd.f32 %v18047_v15, %v7802_v42  ;;  %v10760_v15 = vrot.slane %v17817_v60, 5  ;;  %v19224_v19 = vld [vmem:[#allocation61_spill] sm:$0xff] }
 0x47e   : > { %v13048_v16 = vpop.f32.mrf.mxu1 }
 0x47f   : > { %13335 = vmatmul.mubr.bf16.gmra.mxu1 %v11998_v22  ;;  %v7805_v23 = vadd.f32 %v13048_v16, %v19223_v14  ;;  %v13105_v11 = vpop.f32.mrf.mxu0  ;;  %v18177_v20 = vadd.f32 %v18058_v4, %v7800_v50  ;;  %v10761_v22 = vsel %vm14306_vm13, %v10759_v30, %v10760_v15  ;;  %v10766_v4 = vrot.slane %v10764_v12, 4 }
 0x480   : > { %13338 = vmatprep.mubr.bf16.mxu1 %v11999_v2  ;;  %v7736_v29 = vpop.f32.mrf.mxu1  ;;  %v10767_v50 = vrot.slane %v17854_v13, 5  ;;  %v19226_v13 = vld [vmem:[#allocation58_spill] sm:$0xff] }
 0x481   : > { %v7803_v42 = vadd.f32 %v7736_v29, %v17829_v0  ;;  %v8157_v8 = vpop.f32.mrf.mxu0  ;;  %v18182_v51 = vadd.f32 %v18071_v17, %v7805_v23  ;;  %v10758_v0 = vsel %vm14306_vm13, %v11985_v28, %v10757_v10  ;;  %v19225_v17 = vld [vmem:[#allocation27_spill] sm:$0xff] }
 0x482   : > { %v13049_v5 = vpop.f32.mrf.mxu1  ;;  %v12001_v14 = vcombine.low %v10758_v0, %v10761_v22  ;;  %v10768_v10 = vsel %vm14306_vm13, %v10766_v4, %v10767_v50 }
 0x483   : > { %v7806_v52 = vadd.f32 %v13049_v5, %v19224_v19  ;;  %v13172_v2 = vpop.f32.mrf.mxu0  ;;  %v18189_v62 = vadd.f32 %v18093_v21, %v7803_v42  ;;  %v10765_v21 = vsel %vm14306_vm13, %v11986_v54, %v10764_v12  ;;  %v19227_v42 = vld [vmem:[#allocation22_spill] sm:$0xff] }
 0x484   : > { %v7739_v60 = vpop.f32.mrf.mxu1 }
 0x485   : > { %v7804_v16 = vadd.f32 %v7739_v60, %v19225_v17  ;;  %v9294_v23 = vpop.f32.mrf.mxu0  ;;  %v18195_v30 = vadd.f32 %v18111_v57, %v7806_v52 }
 0x487   : > { %v13052_v36 = vpop.f32.mrf.mxu1  ;;  %13339 = vmatmul.mubr.bf16.gmra.mxu1 %v12000_v63  ;;  %v13173_v28 = vpop.f32.mrf.mxu0  ;;  %v18206_v15 = vadd.f32 %v18117_v45, %v7804_v16  ;;  %v12002_v63 = vcombine.low %v10765_v21, %v10768_v10 }
 0x488   : > { %v7809_v29 = vadd.f32 %v13052_v36, %v19226_v13  ;;  %13342 = vmatprep.mubr.bf16.mxu1 %v12001_v14  ;;  %v19228_v14 = vld [vmem:[#allocation64_spill] sm:$0xff] }
 0x489   : > { %v7752_v57 = vpop.f32.mrf.mxu1  ;;  %v18209_v22 = vpop.f32.mrf.mxu0 }
 0x48a   : > { %v7807_v5 = vadd.f32 %v7752_v57, %v19227_v42  ;;  %v18212_v18 = vadd.f32 %v18124_v49, %v7809_v29  ;;  %v19229_v29 = vld [vmem:[#allocation50_spill] sm:$0xff] }
 0x48b   : > { %v13053_v55 = vpop.f32.mrf.mxu1  ;;  %v13176_v12 = vpop.f32.mrf.mxu0 }
 0x48c   : > { %v7810_v19 = vadd.f32 %v13053_v55, %v17873_v1  ;;  %v18216_v33 = vadd.f32 %v18130_v47, %v7807_v5 }
 0x48d   : > { %v7755_v54 = vpop.f32.mrf.mxu1  ;;  %v18219_v52 = vpop.f32.mrf.mxu0 }
 0x48e   : > { %v7808_v45 = vadd.f32 %v7755_v54, %v17879_v7  ;;  %v18222_v4 = vadd.f32 %v18142_v3, %v7810_v19 }
 0x48f   : > { %v13056_v50 = vpop.f32.mrf.mxu1  ;;  %13343 = vmatmul.mubr.bf16.gmra.mxu1 %v12002_v63  ;;  %v13177_v60 = vpop.f32.mrf.mxu0 }
 0x490   : > { %v7813_v49 = vadd.f32 %v13056_v50, %v17891_v24  ;;  %v18226_v0 = vadd.f32 %v18149_v41, %v7808_v45 }
 0x491   : > { %v7768_v1 = vpop.f32.mrf.mxu1  ;;  %v18229_v17 = vpop.f32.mrf.mxu0 }
 0x492   : > { %v7811_v47 = vadd.f32 %v7768_v1, %v17903_v26  ;;  %v18232_v7 = vadd.f32 %v18158_v35, %v7813_v49 }
 0x493   : > { %v13057_v16 = vpop.f32.mrf.mxu1  ;;  %v13180_v36 = vpop.f32.mrf.mxu0 }
 0x494   : > { %v7814_v3 = vadd.f32 %v13057_v16, %v19228_v14  ;;  %v18236_v13 = vadd.f32 %v18166_v59, %v7811_v47 }
 0x495   : > { %v7771_v24 = vpop.f32.mrf.mxu1  ;;  %v18239_v41 = vpop.f32.mrf.mxu0 }
 0x496   : > { %v7812_v21 = vadd.f32 %v7771_v24, %v19229_v29  ;;  %v18241_v10 = vadd.f32 %v13105_v11, %v7814_v3 }
 0x497   : > { %v13124_v26 = vpop.f32.mrf.mxu1  ;;  %v13181_v42 = vpop.f32.mrf.mxu0 }
 0x498   : > { %v8925_v57 = vadd.f32 %v13124_v26, %v18064_v56  ;;  %v18244_v35 = vadd.f32 %v8157_v8, %v7812_v21 }
 0x499   : > { %v8796_v5 = vpop.f32.mrf.mxu1  ;;  %v18247_v63 = vpop.f32.mrf.mxu0 }
 0x49a   : > { %v8923_v55 = vadd.f32 %v8796_v5, %v18068_v32  ;;  %v18249_v59 = vadd.f32 %v13172_v2, %v8925_v57 }
 0x49b   : > { %v13125_v19 = vpop.f32.mrf.mxu1  ;;  %v13184_v45 = vpop.f32.mrf.mxu0 }
 0x49c   : > { %v8926_v54 = vadd.f32 %v13125_v19, %v18075_v48  ;;  %v18252_v50 = vadd.f32 %v9294_v23, %v8923_v55 }
 0x49d   : > { %v8799_v11 = vpop.f32.mrf.mxu1  ;;  %v18257_v56 = vpop.f32.mrf.mxu0 }
 0x49e   : > { %v18255_v49 = vadd.f32 %v8799_v11, %v18078_v6  ;;  %v18259_v8 = vadd.f32 %v13173_v28, %v8926_v54 }
 0x49f   : > { %v13128_v1 = vpop.f32.mrf.mxu1  ;;  %v13185_v47 = vpop.f32.mrf.mxu0 }
 0x4a0   : > { %v8929_v32 = vadd.f32 %v13128_v1, %v18081_v34 }
 0x4a1   : > { %v8812_v2 = vpop.f32.mrf.mxu1  ;;  %v18265_v48 = vpop.f32.mrf.mxu0 }
 0x4a2   : > { %v18263_v16 = vadd.f32 %v8812_v2, %v18084_v25  ;;  %v18267_v23 = vadd.f32 %v13176_v12, %v8929_v32 }
 0x4a3   : > { %v13129_v14 = vpop.f32.mrf.mxu1  ;;  %v13188_v3 = vpop.f32.mrf.mxu0 }
 0x4a4   : > { %v8930_v6 = vadd.f32 %v13129_v14, %v18087_v43 }
 0x4a5   : > { %v8815_v24 = vpop.f32.mrf.mxu1  ;;  %v18273_v29 = vpop.f32.mrf.mxu0 }
 0x4a6   : > { %v18271_v28 = vadd.f32 %v8815_v24, %v18090_v37  ;;  %v18275_v34 = vadd.f32 %v13177_v60, %v8930_v6 }
 0x4a7   : > { %v13132_v21 = vpop.f32.mrf.mxu1  ;;  %v13189_v26 = vpop.f32.mrf.mxu0 }
 0x4a8   : > { %v8933_v25 = vadd.f32 %v13132_v21, %v18096_v9 }
 0x4a9   : > { %v8828_v57 = vpop.f32.mrf.mxu1  ;;  %v18281_v5 = vpop.f32.mrf.mxu0 }
 0x4aa   : > { %v18279_v12 = vadd.f32 %v8828_v57, %v18099_v61  ;;  %v18283_v43 = vadd.f32 %v13180_v36, %v8933_v25 }
 0x4ab   : > { %v13133_v55 = vpop.f32.mrf.mxu1  ;;  %v13192_v19 = vpop.f32.mrf.mxu0 }
 0x4ac   : > { %v8934_v37 = vadd.f32 %v13133_v55, %v18105_v44 }
 0x4ad   : > { %v8831_v54 = vpop.f32.mrf.mxu1  ;;  %v18289_v11 = vpop.f32.mrf.mxu0 }
 0x4ae   : > { %v18287_v60 = vadd.f32 %v8831_v54, %v18114_v53  ;;  %19230 = vst [vmem:[#allocation49_spill] sm:$0xff] %v18289_v11  ;;  %v18291_v9 = vadd.f32 %v13181_v42, %v8934_v37 }
 0x4af   : > { %v13136_v1 = vpop.f32.mrf.mxu1  ;;  %v13193_v32 = vpop.f32.mrf.mxu0 }
 0x4b0   : > { %v8937_v61 = vadd.f32 %v13136_v1, %v18120_v31 }
 0x4b1   : > { %v8844_v2 = vpop.f32.mrf.mxu1  ;;  %v18299_v6 = vpop.f32.mrf.mxu0 }
 0x4b2   : > { %v18295_v36 = vadd.f32 %v8844_v2, %v18127_v40  ;;  %v18297_v14 = vadd.f32 %v13184_v45, %v8937_v61  ;;  %19231 = vst [vmem:[#allocation45_spill] sm:$0xff] %v18299_v6 }
 0x4b3   : > { %v13137_v44 = vpop.f32.mrf.mxu1  ;;  %v13196_v31 = vpop.f32.mrf.mxu0 }
 0x4b4   : > { %v8938_v53 = vadd.f32 %v13137_v44, %v18133_v58 }
 0x4b5   : > { %v8847_v24 = vpop.f32.mrf.mxu1  ;;  %v18313_v54 = vpop.f32.mrf.mxu0 }
 0x4b6   : > { %v18303_v21 = vadd.f32 %v8847_v24, %v18145_v38  ;;  %v18305_v42 = vadd.f32 %v13185_v47, %v8938_v53  ;;  %19232 = vst [vmem:[#allocation40_spill] sm:$0xff] %v18313_v54 }
 0x4b7   : > { %v13140_v25 = vpop.f32.mrf.mxu1  ;;  %v13197_v2 = vpop.f32.mrf.mxu0 }
 0x4b8   : > { %v8941_v57 = vadd.f32 %v13140_v25, %v18152_v46 }
 0x4b9   : > { %v8860_v55 = vpop.f32.mrf.mxu1  ;;  %v18327_v24 = vpop.f32.mrf.mxu0 }
 0x4ba   : > { %v18309_v40 = vadd.f32 %v8860_v55, %v18161_v39  ;;  %v18311_v45 = vadd.f32 %v13188_v3, %v8941_v57  ;;  %19234 = vst [vmem:[#allocation23_spill] sm:$0xff] %v18327_v24 }
 0x4bb   : > { %v13141_v37 = vpop.f32.mrf.mxu1  ;;  %v13200_v57 = vpop.f32.mrf.mxu0 }
 0x4bc   : > { %v8942_v58 = vadd.f32 %v13141_v37, %v18169_v27 }
 0x4bd   : > { %v8863_v1 = vpop.f32.mrf.mxu1 }
 0x4be   : > { %v18317_v38 = vadd.f32 %v8863_v1, %v18177_v20  ;;  %v18319_v47 = vadd.f32 %v13189_v26, %v8942_v58  ;;  %v18341_v58 = vpop.f32.mrf.mxu0 }
 0x4bf   : > { %v13144_v61 = vpop.f32.mrf.mxu1  ;;  %19237 = vst [vmem:[#allocation63_spill] sm:$0xff] %v18341_v58 }
 0x4c0   : > { %v8945_v46 = vadd.f32 %v13144_v61, %v18182_v51 }
 0x4c1   : > { %v8876_v44 = vpop.f32.mrf.mxu1 }
 0x4c2   : > { %v18323_v39 = vadd.f32 %v8876_v44, %v18189_v62  ;;  %v18325_v3 = vadd.f32 %v13192_v19, %v8945_v46  ;;  %v13201_v46 = vpop.f32.mrf.mxu0 }
 0x4c3   : > { %v13145_v53 = vpop.f32.mrf.mxu1 }
 0x4c4   : > { %19233 = vst [vmem:[#allocation38_spill] sm:$0xff] %v18323_v39  ;;  %v8946_v27 = vadd.f32 %v13145_v53, %v18195_v30 }
 0x4c5   : > { %v8879_v25 = vpop.f32.mrf.mxu1 }
 0x4c6   : > { %v18331_v20 = vadd.f32 %v8879_v25, %v18206_v15  ;;  %v18333_v26 = vadd.f32 %v13193_v32, %v8946_v27  ;;  %v18355_v27 = vpop.f32.mrf.mxu0 }
 0x4c7   : > { %v13148_v55 = vpop.f32.mrf.mxu1  ;;  %19240 = vst [vmem:[#allocation35_spill] sm:$0xff] %v18355_v27 }
 0x4c8   : > { %19235 = vst [vmem:[#allocation60_spill] sm:$0xff] %v18331_v20  ;;  %v8949_v51 = vadd.f32 %v13148_v55, %v18212_v18 }
 0x4c9   : > { %v8892_v37 = vpop.f32.mrf.mxu1 }
 0x4ca   : > { %v18337_v62 = vadd.f32 %v8892_v37, %v18216_v33  ;;  %v18339_v19 = vadd.f32 %v13196_v31, %v8949_v51 }
 0x4cb   : > { %v13149_v1 = vpop.f32.mrf.mxu1  ;;  %v18363_v51 = vpop.f32.mrf.mxu0 }
 0x4cc   : > { %19236 = vst [vmem:[#allocation42_spill] sm:$0xff] %v18337_v62  ;;  %v8950_v30 = vadd.f32 %v13149_v1, %v18222_v4 }
 0x4cd   : > { %v8895_v61 = vpop.f32.mrf.mxu1  ;;  %v18371_v1 = vpop.f32.mrf.mxu0 }
 0x4ce   : > { %v18345_v15 = vadd.f32 %v8895_v61, %v18226_v0  ;;  %v18347_v32 = vadd.f32 %v13197_v2, %v8950_v30 }
 0x4cf   : > { %v13152_v44 = vpop.f32.mrf.mxu1  ;;  %v18376_v61 = vpop.f32.mrf.mxu0 }
 0x4d0   : > { %19238 = vst [vmem:[#allocation34_spill] sm:$0xff] %v18345_v15  ;;  %v8953_v18 = vadd.f32 %v13152_v44, %v18232_v7 }
 0x4d1   : > { %v8908_v53 = vpop.f32.mrf.mxu1 }
 0x4d2   : > { %v18351_v33 = vadd.f32 %v8908_v53, %v18236_v13  ;;  %v18353_v31 = vadd.f32 %v13200_v57, %v8953_v18 }
 0x4d3   : > { %v13153_v25 = vpop.f32.mrf.mxu1 }
 0x4d4   : > { %19239 = vst [vmem:[#allocation46_spill] sm:$0xff] %v18351_v33  ;;  %v8954_v4 = vadd.f32 %v13153_v25, %v18241_v10 }
 0x4d5   : > { %v8911_v55 = vpop.f32.mrf.mxu1 }
 0x4d6   : > { %v18359_v0 = vadd.f32 %v8911_v55, %v18244_v35  ;;  %v18361_v2 = vadd.f32 %v13201_v46, %v8954_v4 }
 0x4d7   : > { %v13220_v7 = vpop.f32.mrf.mxu1 }
 0x4d8   : > { %19241 = vst [vmem:[#allocation47_spill] sm:$0xff] %v18359_v0  ;;  %v18366_v37 = vadd.f32 %v13220_v7, %v18249_v59  ;;  %v18381_v59 = vpop.f32.mrf.mxu0 }
 0x4d9   : > { %v9680_v13 = vpop.f32.mrf.mxu1 }
 0x4da   : > { %v18369_v57 = vadd.f32 %v9680_v13, %v18252_v50  ;;  %v18388_v4 = vpop.f32.mrf.mxu0 }
 0x4db   : > { %v13221_v30 = vpop.f32.mrf.mxu1 }
 0x4dc   : > { %v18374_v10 = vadd.f32 %v13221_v30, %v18259_v8  ;;  %v18395_v13 = vpop.f32.mrf.mxu0 }
 0x4dd   : > { %v9683_v35 = vpop.f32.mrf.mxu1 }
 0x4df   : > { %v13224_v46 = vpop.f32.mrf.mxu1 }
 0x4e0   : > { %v18379_v44 = vadd.f32 %v13224_v46, %v18267_v23 }
 0x4e1   : > { %v9696_v18 = vpop.f32.mrf.mxu1 }
 0x4e3   : > { %v13225_v53 = vpop.f32.mrf.mxu1 }
 0x4e4   : > { %v18384_v50 = vadd.f32 %v13225_v53, %v18275_v34  ;;  %v18402_v34 = vpop.f32.mrf.mxu0 }
 0x4e5   : > { %v18386_v25 = vpop.f32.mrf.mxu1 }
 0x4e7   : > { %v13228_v8 = vpop.f32.mrf.mxu1 }
 0x4e8   : > { %v18391_v55 = vadd.f32 %v13228_v8, %v18283_v43  ;;  %v18409_v43 = vpop.f32.mrf.mxu0 }
 0x4e9   : > { %v18393_v7 = vpop.f32.mrf.mxu1 }
 0x4eb   : > { %v13229_v23 = vpop.f32.mrf.mxu1 }
 0x4ec   : > { %v18398_v30 = vadd.f32 %v13229_v23, %v18291_v9  ;;  %v18416_v9 = vpop.f32.mrf.mxu0 }
 0x4ed   : > { %v18400_v46 = vpop.f32.mrf.mxu1 }
 0x4ef   : > { %v13232_v53 = vpop.f32.mrf.mxu1 }
 0x4f0   : > { %v18405_v27 = vadd.f32 %v13232_v53, %v18297_v14  ;;  %v18423_v14 = vpop.f32.mrf.mxu0 }
 0x4f1   : > { %v18407_v0 = vpop.f32.mrf.mxu1 }
 0x4f3   : > { %v13233_v8 = vpop.f32.mrf.mxu1 }
 0x4f4   : > { %v18412_v58 = vadd.f32 %v13233_v8, %v18305_v42  ;;  %v18430_v42 = vpop.f32.mrf.mxu0 }
 0x4f5   : > { %v18414_v33 = vpop.f32.mrf.mxu1 }
 0x4f7   : > { %v13236_v23 = vpop.f32.mrf.mxu1 }
 0x4f8   : > { %v18419_v24 = vadd.f32 %v13236_v23, %v18311_v45  ;;  %v18437_v45 = vpop.f32.mrf.mxu0 }
 0x4f9   : > { %v18421_v15 = vpop.f32.mrf.mxu1 }
 0x4fa   : > { %19242 = vst [vmem:[#allocation65_spill] sm:$0xff] %v18419_v24 }
 0x4fb   : > { %v13237_v53 = vpop.f32.mrf.mxu1 }
 0x4fc   : > { %v18426_v54 = vadd.f32 %v13237_v53, %v18319_v47  ;;  %v18444_v47 = vpop.f32.mrf.mxu0 }
 0x4fd   : > { %v18428_v62 = vpop.f32.mrf.mxu1 }
 0x4fe   : > { %19243 = vst [vmem:[#allocation44_spill] sm:$0xff] %v18426_v54  ;;  %19244 = vst [vmem:[#allocation19_spill] sm:$0xff] %v18428_v62 }
 0x4ff   : > { %v13240_v8 = vpop.f32.mrf.mxu1 }
 0x500   : > { %v18433_v6 = vadd.f32 %v13240_v8, %v18325_v3  ;;  %v18451_v3 = vpop.f32.mrf.mxu0 }
 0x501   : > { %v18435_v20 = vpop.f32.mrf.mxu1 }
 0x502   : > { %19245 = vst [vmem:[#allocation15_spill] sm:$0xff] %v18433_v6  ;;  %19246 = vst [vmem:[#allocation16_spill] sm:$0xff] %v18435_v20 }
 0x503   : > { %v13241_v23 = vpop.f32.mrf.mxu1 }
 0x504   : > { %v18440_v24 = vadd.f32 %v13241_v23, %v18333_v26  ;;  %v18458_v26 = vpop.f32.mrf.mxu0 }
 0x505   : > { %v18442_v11 = vpop.f32.mrf.mxu1 }
 0x506   : > { %19247 = vst [vmem:[#allocation14_spill] sm:$0xff] %v18440_v24  ;;  %19248 = vst [vmem:[#allocation30_spill] sm:$0xff] %v18442_v11 }
 0x507   : > { %v13244_v53 = vpop.f32.mrf.mxu1 }
 0x508   : > { %v18447_v54 = vadd.f32 %v13244_v53, %v18339_v19  ;;  %v18465_v19 = vpop.f32.mrf.mxu0 }
 0x509   : > { %v18449_v39 = vpop.f32.mrf.mxu1 }
 0x50a   : > { %19249 = vst [vmem:[#allocation18_spill] sm:$0xff] %v18447_v54  ;;  %19250 = vst [vmem:[#allocation13_spill] sm:$0xff] %v18449_v39 }
 0x50b   : > { %v13245_v8 = vpop.f32.mrf.mxu1 }
 0x50c   : > { %v18454_v6 = vadd.f32 %v13245_v8, %v18347_v32  ;;  %v9422_v32 = vadd.f32 %v18209_v22, %v18255_v49  ;;  %v18474_v8 = vpop.f32.mrf.mxu0  ;;  %v9426_v49 = vadd.f32 %v18229_v17, %v18271_v28 }
 0x50d   : > { %v18456_v20 = vpop.f32.mrf.mxu1 }
 0x50e   : > { %19251 = vst [vmem:[#allocation17_spill] sm:$0xff] %v18454_v6  ;;  %19252 = vst [vmem:[#allocation39_spill] sm:$0xff] %v18456_v20  ;;  %v9808_v20 = vadd.f32 %v9683_v35, %v9422_v32  ;;  %v18480_v62 = vpop.f32.mrf.mxu0 }
 0x50f   : > { %v13248_v23 = vpop.f32.mrf.mxu1 }
 0x510   : > { %v18461_v24 = vadd.f32 %v13248_v23, %v18353_v31  ;;  %v9425_v31 = vadd.f32 %v18219_v52, %v18263_v16  ;;  %v10562_v22 = vadd.f32 %v18381_v59, %v9808_v20  ;;  %v10564_v16 = vadd.f32 %v18376_v61, %v18374_v10 }
 0x511   : > { %v18463_v11 = vpop.f32.mrf.mxu1 }
 0x512   : > { %19253 = vst [vmem:[#allocation28_spill] sm:$0xff] %v18461_v24  ;;  %19254 = vst [vmem:[#allocation62_spill] sm:$0xff] %v18463_v11  ;;  %v10561_v24 = vadd.f32 %v18371_v1, %v18369_v57  ;;  %v9811_v11 = vadd.f32 %v9696_v18, %v9425_v31  ;;  %v9812_v1 = vadd.f32 %v18386_v25, %v9426_v49  ;;  %v18496_v18 = vpop.f32.mrf.mxu0 }
 0x513   : > { %v13249_v53 = vpop.f32.mrf.mxu1  ;;  %v10567_v31 = vadd.f32 %v18388_v4, %v18379_v44 }
 0x514   : > { %v18468_v54 = vadd.f32 %v13249_v53, %v18361_v2  ;;  %v10563_v53 = vadd.f32 %v18363_v51, %v18366_v37  ;;  %v18515_v32 = vpop.f32.mrf.mxu0 }
 0x515   : > { %v18470_v39 = vpop.f32.mrf.mxu1 }
 0x516   : > { %19255 = vst [vmem:[#allocation31_spill] sm:$0xff] %v18468_v54 }
 0x517   : > { %v13316_v6 = vpop.f32.mrf.mxu1 }
 0x518   : > { %v18489_v52 = vadd.f32 %v13316_v6, %v10563_v53  ;;  %v9429_v6 = vadd.f32 %v18239_v41, %v18279_v12  ;;  %v10566_v53 = vadd.f32 %v18409_v43, %v9812_v1  ;;  %v18535_v43 = vpop.f32.mrf.mxu0 }
 0x519   : > { %v10932_v23 = vpop.f32.mrf.mxu1 }
 0x51a   : > { %v18484_v54 = vadd.f32 %v10932_v23, %v10561_v24  ;;  %v10565_v24 = vadd.f32 %v18395_v13, %v9811_v11  ;;  %v11130_v61 = vmul.f32 %v18489_v52, %v18489_v52  ;;  %v9815_v13 = vadd.f32 %v18393_v7, %v9429_v6 }
 0x51b   : > { %v13317_v2 = vpop.f32.mrf.mxu1  ;;  %v10568_v7 = vadd.f32 %v18402_v34, %v18384_v50 }
 0x51c   : > { %v11128_v20 = vmul.f32 %v18484_v54, %v18484_v54  ;;  %v18501_v37 = vadd.f32 %v13317_v2, %v10564_v16 }
 0x51d   : > { %v10935_v35 = vpop.f32.mrf.mxu1 }
 0x51e   : > { %v18493_v57 = vadd.f32 %v10935_v35, %v10562_v22  ;;  %v11131_v41 = vmul.f32 %v18501_v37, %v18501_v37  ;;  %v9430_v22 = vadd.f32 %v18247_v63, %v18287_v60  ;;  %v10569_v63 = vadd.f32 %v18423_v14, %v9815_v13 }
 0x51f   : > { %v13320_v51 = vpop.f32.mrf.mxu1 }
 0x520   : > { %v11091_v17 = vadd.f32 %v18493_v57, %v18484_v54  ;;  %v11129_v28 = vmul.f32 %v18493_v57, %v18493_v57  ;;  %v18525_v49 = vadd.f32 %v13320_v51, %v10567_v31 }
 0x521   : > { %v10948_v10 = vpop.f32.mrf.mxu1 }
 0x522   : > { %v11092_v11 = vadd.f32 %v11091_v17, %v18489_v52  ;;  %v11160_v59 = vadd.f32 %v11129_v28, %v11128_v20  ;;  %v18512_v25 = vadd.f32 %v10948_v10, %v10565_v24  ;;  %v9816_v20 = vadd.f32 %v18400_v46, %v9430_v22 }
 0x523   : > { %v13321_v23 = vpop.f32.mrf.mxu1  ;;  %v9433_v17 = vadd.f32 %v18257_v56, %v18295_v36  ;;  %v11134_v46 = vmul.f32 %v18525_v49, %v18525_v49 }
 0x524   : > { %v11161_v12 = vadd.f32 %v11160_v59, %v11130_v61  ;;  %v11093_v2 = vadd.f32 %v11092_v11, %v18501_v37  ;;  %v11132_v4 = vmul.f32 %v18512_v25, %v18512_v25  ;;  %v18538_v51 = vadd.f32 %v13321_v23, %v10568_v7  ;;  %v18551_v11 = vpop.f32.mrf.mxu0 }
 0x525   : > { %v10951_v35 = vpop.f32.mrf.mxu1  ;;  %v9819_v14 = vadd.f32 %v18407_v0, %v9433_v17  ;;  %v10571_v59 = vadd.f32 %v18416_v9, %v18391_v55  ;;  %v10570_v23 = vadd.f32 %v18437_v45, %v9816_v20  ;;  %v10572_v0 = vadd.f32 %v18430_v42, %v18398_v30 }
 0x526   : > { %v11094_v44 = vadd.f32 %v11093_v2, %v18512_v25  ;;  %v11162_v16 = vadd.f32 %v11161_v12, %v11131_v41  ;;  %v18532_v24 = vadd.f32 %v10951_v35, %v10566_v53  ;;  %v11135_v56 = vmul.f32 %v18538_v51, %v18538_v51  ;;  %v18571_v45 = vpop.f32.mrf.mxu0 }
 0x527   : > { %v13324_v1 = vpop.f32.mrf.mxu1  ;;  %v9434_v41 = vadd.f32 %v18265_v48, %v18303_v21  ;;  %v10573_v48 = vadd.f32 %v18451_v3, %v9819_v14 }
 0x528   : > { %v11163_v60 = vadd.f32 %v11162_v16, %v11132_v4  ;;  %v11095_v50 = vadd.f32 %v11094_v44, %v18532_v24  ;;  %v11133_v34 = vmul.f32 %v18532_v24, %v18532_v24  ;;  %v18561_v12 = vadd.f32 %v13324_v1, %v10571_v59 }
 0x529   : > { %v10964_v28 = vpop.f32.mrf.mxu1  ;;  %v9820_v7 = vadd.f32 %v18414_v33, %v9434_v41  ;;  %v9437_v4 = vadd.f32 %v18273_v29, %v18309_v40  ;;  %v19258_v41 = vld [vmem:[#allocation49_spill] sm:$0xff] }
 0x52a   : > { %v11096_v6 = vadd.f32 %v11095_v50, %v18525_v49  ;;  %v11164_v10 = vadd.f32 %v11163_v60, %v11133_v34  ;;  %v18548_v61 = vadd.f32 %v10964_v28, %v10569_v63  ;;  %v11138_v33 = vmul.f32 %v18561_v12, %v18561_v12  ;;  %v18587_v60 = vpop.f32.mrf.mxu0 }
 0x52b   : > { %v13325_v13 = vpop.f32.mrf.mxu1  ;;  %v9823_v3 = vadd.f32 %v18421_v15, %v9437_v4  ;;  %v10575_v50 = vadd.f32 %v18444_v47, %v18405_v27  ;;  %v10574_v28 = vadd.f32 %v18465_v19, %v9820_v7  ;;  %v10576_v15 = vadd.f32 %v18458_v26, %v18412_v58 }
 0x52c   : > { %v11165_v36 = vadd.f32 %v11164_v10, %v11134_v46  ;;  %v11097_v31 = vadd.f32 %v11096_v6, %v18538_v51  ;;  %v11136_v9 = vmul.f32 %v18548_v61, %v18548_v61  ;;  %v18574_v44 = vadd.f32 %v13325_v13, %v10572_v0  ;;  %v19256_v13 = vld [vmem:[#allocation19_spill] sm:$0xff]  ;;  %v18607_v19 = vpop.f32.mrf.mxu0 }
 0x52d   : > { %v10967_v2 = vpop.f32.mrf.mxu1  ;;  %v9438_v46 = vadd.f32 %v18281_v5, %v18317_v38  ;;  %v10577_v5 = vadd.f32 %v18480_v62, %v9823_v3  ;;  %v19262_v3 = vld [vmem:[#allocation45_spill] sm:$0xff] }
 0x52e   : > { %v11098_v55 = vadd.f32 %v11097_v31, %v18548_v61  ;;  %v11166_v53 = vadd.f32 %v11165_v36, %v11135_v56  ;;  %v18568_v22 = vadd.f32 %v10967_v2, %v10570_v23  ;;  %v11139_v29 = vmul.f32 %v18574_v44, %v18574_v44  ;;  %v19257_v23 = vld [vmem:[#allocation38_spill] sm:$0xff]  ;;  %v10530_v62 = vpop.f32.mrf.mxu0 }
 0x52f   : > { %v13328_v35 = vpop.f32.mrf.mxu1  ;;  %v9824_v56 = vadd.f32 %v19256_v13, %v9438_v46  ;;  %v9441_v0 = vadd.f32 %v19258_v41, %v19257_v23 }
 0x530   : > { %v11167_v21 = vadd.f32 %v11166_v53, %v11136_v9  ;;  %v11099_v30 = vadd.f32 %v11098_v55, %v18568_v22  ;;  %v11137_v42 = vmul.f32 %v18568_v22, %v18568_v22  ;;  %v18597_v6 = vadd.f32 %v13328_v35, %v10575_v50  ;;  %v19259_v35 = vld [vmem:[#allocation16_spill] sm:$0xff] }
 0x531   : > { %v10980_v16 = vpop.f32.mrf.mxu1 }
 0x532   : > { %v11100_v20 = vadd.f32 %v11099_v30, %v18561_v12  ;;  %v11168_v1 = vadd.f32 %v11167_v21, %v11137_v42  ;;  %v18584_v63 = vadd.f32 %v10980_v16, %v10573_v48  ;;  %v11142_v55 = vmul.f32 %v18597_v6, %v18597_v6  ;;  %v19260_v21 = vld [vmem:[#allocation65_spill] sm:$0xff] }
 0x533   : > { %v13329_v34 = vpop.f32.mrf.mxu1  ;;  %v9827_v48 = vadd.f32 %v19259_v35, %v9441_v0  ;;  %v10579_v30 = vadd.f32 %v18474_v8, %v19260_v21 }
 0x534   : > { %v11169_v40 = vadd.f32 %v11168_v1, %v11138_v33  ;;  %v11101_v17 = vadd.f32 %v11100_v20, %v18574_v44  ;;  %v11140_v47 = vmul.f32 %v18584_v63, %v18584_v63  ;;  %v18610_v31 = vadd.f32 %v13329_v34, %v10576_v15  ;;  %v19261_v1 = vld [vmem:[#allocation60_spill] sm:$0xff] }
 0x535   : > { %v10983_v10 = vpop.f32.mrf.mxu1  ;;  %v10578_v20 = vadd.f32 %v18515_v32, %v9824_v56  ;;  %v9442_v50 = vadd.f32 %v19262_v3, %v19261_v1 }
 0x536   : > { %v11102_v27 = vadd.f32 %v11101_v17, %v18584_v63  ;;  %v11170_v14 = vadd.f32 %v11169_v40, %v11139_v29  ;;  %v18604_v59 = vadd.f32 %v10983_v10, %v10574_v28  ;;  %v11143_v4 = vmul.f32 %v18610_v31, %v18610_v31  ;;  %v19263_v29 = vld [vmem:[#allocation44_spill] sm:$0xff]  ;;  %v13293_v10 = vpop.f32.mrf.mxu0 }
 0x537   : > { %v13332_v36 = vpop.f32.mrf.mxu1  ;;  %v10580_v40 = vadd.f32 %v18496_v18, %v19263_v29 }
 0x538   : > { %v11171_v38 = vadd.f32 %v11170_v14, %v11140_v47  ;;  %v11103_v58 = vadd.f32 %v11102_v27, %v18604_v59  ;;  %v11141_v26 = vmul.f32 %v18604_v59, %v18604_v59  ;;  %v18631_v34 = vadd.f32 %v13332_v36, %v10579_v30  ;;  %v19264_v27 = vld [vmem:[#allocation30_spill] sm:$0xff] }
 0x539   : > { %v10996_v2 = vpop.f32.mrf.mxu1  ;;  %v9828_v32 = vadd.f32 %v19264_v27, %v9442_v50  ;;  %v10581_v14 = vadd.f32 %v18551_v11, %v9827_v48  ;;  %v10533_v11 = vpop.f32.mrf.mxu0  ;;  %v19271_v50 = vld [vmem:[#allocation14_spill] sm:$0xff] }
 0x53a   : > { %v11104_v9 = vadd.f32 %v11103_v58, %v18597_v6  ;;  %v11172_v53 = vadd.f32 %v11171_v38, %v11141_v26  ;;  %v18620_v7 = vadd.f32 %v10996_v2, %v10577_v5  ;;  %v19265_v5 = vld [vmem:[#allocation42_spill] sm:$0xff]  ;;  %v19266_v38 = vld [vmem:[#allocation40_spill] sm:$0xff]  ;;  %v11146_v23 = vmul.f32 %v18631_v34, %v18631_v34 }
 0x53b   : > { %v13333_v42 = vpop.f32.mrf.mxu1  ;;  %v9445_v58 = vadd.f32 %v19266_v38, %v19265_v5  ;;  %v13296_v1 = vpop.f32.mrf.mxu0  ;;  %v10584_v29 = vadd.f32 %v18571_v45, %v19271_v50 }
 0x53c   : > { %v11173_v16 = vadd.f32 %v11172_v53, %v11142_v55  ;;  %v11105_v33 = vadd.f32 %v11104_v9, %v18610_v31  ;;  %v11144_v28 = vmul.f32 %v18620_v7, %v18620_v7  ;;  %v18642_v56 = vadd.f32 %v13333_v42, %v10580_v40  ;;  %v19267_v55 = vld [vmem:[#allocation13_spill] sm:$0xff]  ;;  %v19268_v53 = vld [vmem:[#allocation15_spill] sm:$0xff] }
 0x53d   : > { %v10999_v17 = vpop.f32.mrf.mxu1  ;;  %v9831_v9 = vadd.f32 %v19267_v55, %v9445_v58  ;;  %v10583_v35 = vadd.f32 %v18535_v43, %v19268_v53  ;;  %v10546_v38 = vpop.f32.mrf.mxu0 }
 0x53e   : > { %v11106_v8 = vadd.f32 %v11105_v33, %v18620_v7  ;;  %v11174_v46 = vadd.f32 %v11173_v16, %v11143_v4  ;;  %v18638_v15 = vadd.f32 %v10999_v17, %v10578_v20  ;;  %v11147_v21 = vmul.f32 %v18642_v56, %v18642_v56  ;;  %v19269_v16 = vld [vmem:[#allocation34_spill] sm:$0xff]  ;;  %v19270_v33 = vld [vmem:[#allocation23_spill] sm:$0xff] }
 0x53f   : > { %v13336_v47 = vpop.f32.mrf.mxu1  ;;  %v10582_v4 = vadd.f32 %v18587_v60, %v9828_v32  ;;  %v9446_v20 = vadd.f32 %v19270_v33, %v19269_v16  ;;  %v10585_v32 = vadd.f32 %v10530_v62, %v9831_v9  ;;  %v19276_v9 = vld [vmem:[#allocation18_spill] sm:$0xff]  ;;  %v19278_v16 = vld [vmem:[#allocation35_spill] sm:$0xff] }
 0x540   : > { %v11175_v13 = vadd.f32 %v11174_v46, %v11144_v28  ;;  %v11107_v18 = vadd.f32 %v11106_v8, %v18638_v15  ;;  %v11145_v36 = vmul.f32 %v18638_v15, %v18638_v15  ;;  %v18663_v3 = vadd.f32 %v13336_v47, %v10583_v35  ;;  %v19272_v46 = vld [vmem:[#allocation39_spill] sm:$0xff] }
 0x541   : > { %v11012_v26 = vpop.f32.mrf.mxu1  ;;  %v9832_v60 = vadd.f32 %v19272_v46, %v9446_v20  ;;  %v10587_v53 = vadd.f32 %v18607_v19, %v19276_v9  ;;  %v13297_v20 = vpop.f32.mrf.mxu0 }
 0x542   : > { %v11108_v41 = vadd.f32 %v11107_v18, %v18631_v34  ;;  %v11176_v0 = vadd.f32 %v11175_v13, %v11145_v36  ;;  %v18652_v2 = vadd.f32 %v11012_v26, %v10581_v14  ;;  %v19273_v18 = vld [vmem:[#allocation46_spill] sm:$0xff]  ;;  %v19274_v36 = vld [vmem:[#allocation63_spill] sm:$0xff]  ;;  %v11150_v26 = vmul.f32 %v18663_v3, %v18663_v3 }
 0x543   : > { %v13337_v48 = vpop.f32.mrf.mxu1  ;;  %v9449_v5 = vadd.f32 %v19274_v36, %v19273_v18 }
 0x544   : > { %v11177_v30 = vadd.f32 %v11176_v0, %v11146_v23  ;;  %v11109_v42 = vadd.f32 %v11108_v41, %v18642_v56  ;;  %v11148_v17 = vmul.f32 %v18652_v2, %v18652_v2  ;;  %v18673_v13 = vadd.f32 %v13337_v48, %v10584_v29  ;;  %v19275_v0 = vld [vmem:[#allocation62_spill] sm:$0xff]  ;;  %v19279_v29 = vld [vmem:[#allocation17_spill] sm:$0xff] }
 0x545   : > { %v11015_v40 = vpop.f32.mrf.mxu1  ;;  %v9835_v55 = vadd.f32 %v19275_v0, %v9449_v5 }
 0x546   : > { %v11110_v43 = vadd.f32 %v11109_v42, %v18652_v2  ;;  %v11178_v8 = vadd.f32 %v11177_v30, %v11147_v21  ;;  %v18670_v28 = vadd.f32 %v11015_v40, %v10582_v4  ;;  %v11151_v48 = vmul.f32 %v18673_v13, %v18673_v13  ;;  %v19277_v4 = vld [vmem:[#allocation47_spill] sm:$0xff] }
 0x547   : > { %v13340_v27 = vpop.f32.mrf.mxu1  ;;  %v10586_v42 = vadd.f32 %v10533_v11, %v9832_v60  ;;  %v9450_v33 = vadd.f32 %v19278_v16, %v19277_v4  ;;  %v10588_v40 = vadd.f32 %v13293_v10, %v19279_v29 }
 0x548   : > { %v11179_v14 = vadd.f32 %v11178_v8, %v11148_v17  ;;  %v11111_v47 = vadd.f32 %v11110_v43, %v18670_v28  ;;  %v11149_v45 = vmul.f32 %v18670_v28, %v18670_v28  ;;  %v18693_v50 = vadd.f32 %v13340_v27, %v10587_v53  ;;  %v19281_v53 = vld [vmem:[#allocation31_spill] sm:$0xff] }
 0x549   : > { %v11028_v58 = vpop.f32.mrf.mxu1  ;;  %v9836_v11 = vadd.f32 %v18470_v39, %v9450_v33  ;;  %v19280_v39 = vld [vmem:[#allocation28_spill] sm:$0xff] }
 0x54a   : > { %v11112_v23 = vadd.f32 %v11111_v47, %v18663_v3  ;;  %v11180_v41 = vadd.f32 %v11179_v14, %v11149_v45  ;;  %v18683_v62 = vadd.f32 %v11028_v58, %v10585_v32  ;;  %v10589_v32 = vadd.f32 %v10546_v38, %v9835_v55  ;;  %v10549_v45 = vpop.f32.mrf.mxu0 }
 0x54b   : > { %v13341_v35 = vpop.f32.mrf.mxu1  ;;  %v11154_v36 = vmul.f32 %v18693_v50, %v18693_v50 }
 0x54c   : > { %v11181_v21 = vadd.f32 %v11180_v41, %v11150_v26  ;;  %v11113_v30 = vadd.f32 %v11112_v23, %v18673_v13  ;;  %v11152_v19 = vmul.f32 %v18683_v62, %v18683_v62  ;;  %v18702_v47 = vadd.f32 %v13341_v35, %v10588_v40 }
 0x54d   : > { %v11031_v43 = vpop.f32.mrf.mxu1  ;;  %v10591_v26 = vadd.f32 %v13296_v1, %v19280_v39  ;;  %v10590_v41 = vadd.f32 %v10549_v45, %v9836_v11  ;;  %v10592_v35 = vadd.f32 %v13297_v20, %v19281_v53 }
 0x54e   : > { %v11114_v17 = vadd.f32 %v11113_v30, %v18683_v62  ;;  %v11182_v8 = vadd.f32 %v11181_v21, %v11151_v48  ;;  %v18699_v46 = vadd.f32 %v11031_v43, %v10586_v42  ;;  %v11155_v0 = vmul.f32 %v18702_v47, %v18702_v47 }
 0x54f   : > { %v13344_v60 = vpop.f32.mrf.mxu1 }
 0x550   : > { %v11183_v14 = vadd.f32 %v11182_v8, %v11152_v19  ;;  %v11115_v27 = vadd.f32 %v11114_v17, %v18699_v46  ;;  %v11153_v10 = vmul.f32 %v18699_v46, %v18699_v46  ;;  %v18717_v48 = vadd.f32 %v13344_v60, %v10591_v26 }
 0x551   : > { %v11044_v18 = vpop.f32.mrf.mxu1 }
 0x552   : > { %v11116_v5 = vadd.f32 %v11115_v27, %v18693_v50  ;;  %v11184_v58 = vadd.f32 %v11183_v14, %v11153_v10  ;;  %v18710_v38 = vadd.f32 %v11044_v18, %v10589_v32  ;;  %v11158_v20 = vmul.f32 %v18717_v48, %v18717_v48 }
 0x553   : > { %v13345_v23 = vpop.f32.mrf.mxu1 }
 0x554   : > { %v11185_v55 = vadd.f32 %v11184_v58, %v11154_v36  ;;  %v11117_v9 = vadd.f32 %v11116_v5, %v18702_v47  ;;  %v11156_v42 = vmul.f32 %v18710_v38, %v18710_v38  ;;  %v18724_v33 = vadd.f32 %v13345_v23, %v10592_v35 }
 0x555   : > { %v11047_v21 = vpop.f32.mrf.mxu1 }
 0x556   : > { %v11118_v30 = vadd.f32 %v11117_v9, %v18710_v38  ;;  %v11186_v4 = vadd.f32 %v11185_v55, %v11155_v0  ;;  %v18722_v1 = vadd.f32 %v11047_v21, %v10590_v41  ;;  %v11159_v19 = vmul.f32 %v18724_v33, %v18724_v33 }
 0x558   : > { %v11187_v16 = vadd.f32 %v11186_v4, %v11156_v42  ;;  %v11119_v29 = vadd.f32 %v11118_v30, %v18722_v1  ;;  %v11157_v40 = vmul.f32 %v18722_v1, %v18722_v1 }
 0x55a   : > { %v11120_v43 = vadd.f32 %v11119_v29, %v18717_v48  ;;  %v11188_v17 = vadd.f32 %v11187_v16, %v11157_v40 }
 0x55c   : > { %v11121_v8 = vadd.f32 %v11120_v43, %v18724_v33  ;;  %v11189_v32 = vadd.f32 %v11188_v17, %v11158_v20 }
 0x55e   : > { %v11122_v11 = vrot.slane %v11121_v8, 4  ;;  %v11190_v60 = vadd.f32 %v11189_v32, %v11159_v19 }
 0x560   : > { %v11123_v14 = vadd.f32 %v11122_v11, %v11121_v8  ;;  %v11191_v27 = vrot.slane %v11190_v60, 4 }
 0x562   : > { %v11124_v10 = vrot.slane %v11123_v14, 2  ;;  %v11192_v45 = vadd.f32 %v11191_v27, %v11190_v60 }
 0x564   : > { %v11125_v18 = vadd.f32 %v11124_v10, %v11123_v14  ;;  %v11193_v36 = vrot.slane %v11192_v45, 2 }
 0x566   : > { %v11126_v5 = vrot.slane %v11125_v18, 1  ;;  %v11194_v58 = vadd.f32 %v11193_v36, %v11192_v45 }
 0x568   : > { %v11127_v39 = vadd.f32 %v11126_v5, %v11125_v18  ;;  %v11195_v26 = vrot.slane %v11194_v58, 1 }
 0x56a   : > { %v11196_v23 = vadd.f32 %v11195_v26, %v11194_v58  ;;  %v18735_v41 = vmul.f32 0.00390625, %v11127_v39 }
 0x56c   : > { %v11198_v0 = vmul.f32 0.00390625, %v11196_v23  ;;  %v11199_v55 = vmul.f32 %v18735_v41, %v18735_v41  ;;  %v11231_v9 = vsub.f32 %v18722_v1, %v18735_v41  ;;  %v11211_v35 = vsub.f32 %v18568_v22, %v18735_v41 }
 0x56d   : > { %v11214_v30 = vsub.f32 %v18584_v63, %v18735_v41  ;;  %v11215_v42 = vsub.f32 %v18604_v59, %v18735_v41  ;;  %v11216_v4 = vsub.f32 %v18597_v6, %v18735_v41  ;;  %v11217_v16 = vsub.f32 %v18610_v31, %v18735_v41 }
 0x56e   : > { %v11200_v53 = vsub.f32 %v11198_v0, %v11199_v55  ;;  %v11218_v1 = vsub.f32 %v18620_v7, %v18735_v41  ;;  %v11219_v29 = vsub.f32 %v18638_v15, %v18735_v41  ;;  %v11220_v22 = vsub.f32 %v18631_v34, %v18735_v41 }
 0x56f   : > { %v11221_v63 = vsub.f32 %v18642_v56, %v18735_v41  ;;  %v11222_v6 = vsub.f32 %v18652_v2, %v18735_v41  ;;  %v11223_v59 = vsub.f32 %v18670_v28, %v18735_v41  ;;  %v11224_v31 = vsub.f32 %v18663_v3, %v18735_v41 }
 0x570   : > { %v11201_v21 = vmax.f32 %v11200_v53, 0.0  ;;  %v11225_v7 = vsub.f32 %v18673_v13, %v18735_v41  ;;  %v11226_v34 = vsub.f32 %v18683_v62, %v18735_v41  ;;  %v11227_v15 = vsub.f32 %v18699_v46, %v18735_v41 }
 0x571   : > { %v11228_v56 = vsub.f32 %v18693_v50, %v18735_v41  ;;  %v11229_v2 = vsub.f32 %v18702_v47, %v18735_v41  ;;  %v11230_v28 = vsub.f32 %v18710_v38, %v18735_v41  ;;  %v11232_v3 = vsub.f32 %v18717_v48, %v18735_v41 }
 0x572   : > { %v11234_v40 = vadd.f32 1e-05, %v11201_v21  ;;  %v11233_v13 = vsub.f32 %v18724_v33, %v18735_v41  ;;  %v11202_v62 = vsub.f32 %v18484_v54, %v18735_v41  ;;  %v11203_v46 = vsub.f32 %v18493_v57, %v18735_v41 }
 0x573   : > { %v11204_v50 = vsub.f32 %v18489_v52, %v18735_v41  ;;  %v11205_v47 = vsub.f32 %v18501_v37, %v18735_v41  ;;  %v11206_v38 = vsub.f32 %v18512_v25, %v18735_v41  ;;  %v11207_v48 = vsub.f32 %v18532_v24, %v18735_v41 }
 0x574   : > { %13660 = vrsqrt.f32 %v11234_v40  ;;  %v11208_v33 = vsub.f32 %v18525_v49, %v18735_v41  ;;  %v11209_v57 = vsub.f32 %v18538_v51, %v18735_v41  ;;  %v11210_v52 = vsub.f32 %v18548_v61, %v18735_v41 }
 0x575   : > { %v11212_v20 = vsub.f32 %v18561_v12, %v18735_v41  ;;  %v11213_v37 = vsub.f32 %v18574_v44, %v18735_v41 }
 0x581   : > { %v13661_v54 = vpop.eup %13660 }
 0x582   : > { %v11265_v25 = vmul.f32 %v13661_v54, %v11231_v9  ;;  %v11236_v43 = vmul.f32 %v13661_v54, %v11202_v62  ;;  %v11237_v17 = vmul.f32 %v13661_v54, %v11203_v46  ;;  %v11238_v24 = vmul.f32 %v13661_v54, %v11204_v50 }
 0x583   : > { %v11239_v19 = vmul.f32 %v13661_v54, %v11205_v47  ;;  %v11240_v8 = vmul.f32 %v13661_v54, %v11206_v38  ;;  %v11241_v49 = vmul.f32 %v13661_v54, %v11207_v48  ;;  %v11242_v32 = vmul.f32 %v13661_v54, %v11208_v33 }
 0x584   : > { %v11297_v11 = vmax.f32 %v11265_v25, 0.0  ;;  %v11243_v60 = vmul.f32 %v13661_v54, %v11209_v57  ;;  %v11244_v51 = vmul.f32 %v13661_v54, %v11210_v52  ;;  %v11245_v14 = vmul.f32 %v13661_v54, %v11211_v35 }
 0x585   : > { %v11246_v27 = vmul.f32 %v13661_v54, %v11212_v20  ;;  %v11247_v61 = vmul.f32 %v13661_v54, %v11213_v37  ;;  %v11248_v10 = vmul.f32 %v13661_v54, %v11214_v30  ;;  %v11249_v45 = vmul.f32 %v13661_v54, %v11215_v42 }
 0x586   : > { %11329 = vst [vmem:[%s18804_s20 + $0xe8] sm:$0xff] %v11297_v11  ;;  %v11250_v12 = vmul.f32 %v13661_v54, %v11216_v4  ;;  %v11251_v44 = vmul.f32 %v13661_v54, %v11217_v16  ;;  %v11252_v18 = vmul.f32 %v13661_v54, %v11218_v1  ;;  %v11253_v36 = vmul.f32 %v13661_v54, %v11219_v29 }
 0x587   : > { %v11254_v5 = vmul.f32 %v13661_v54, %v11220_v22  ;;  %v18807_v58 = vmul.f32 %v13661_v54, %v11221_v63  ;;  %v18809_v39 = vmul.f32 %v13661_v54, %v11222_v6  ;;  %v18811_v26 = vmul.f32 %v13661_v54, %v11223_v59 }
 0x588   : > { %v18813_v23 = vmul.f32 %v13661_v54, %v11224_v31  ;;  %v18815_v41 = vmul.f32 %v13661_v54, %v11225_v7  ;;  %v18817_v0 = vmul.f32 %v13661_v54, %v11226_v34  ;;  %v18819_v55 = vmul.f32 %v13661_v54, %v11227_v15 }
 0x589   : > { %v18821_v9 = vmul.f32 %v13661_v54, %v11228_v56  ;;  %v18823_v53 = vmul.f32 %v13661_v54, %v11229_v2  ;;  %v18825_v35 = vmul.f32 %v13661_v54, %v11230_v28  ;;  %v18827_v21 = vmul.f32 %v13661_v54, %v11232_v3 }
 0x58a   : > { %v18829_v30 = vmul.f32 %v13661_v54, %v11233_v13  ;;  %v11268_v42 = vmax.f32 %v11236_v43, 0.0  ;;  %v11269_v4 = vmax.f32 %v11237_v17, 0.0  ;;  %v11270_v16 = vmax.f32 %v11238_v24, 0.0 }
 0x58b   : > { %v11271_v1 = vmax.f32 %v11239_v19, 0.0  ;;  %v11272_v29 = vmax.f32 %v11240_v8, 0.0  ;;  %v11273_v22 = vmax.f32 %v11241_v49, 0.0  ;;  %v11274_v40 = vmax.f32 %v11242_v32, 0.0 }
 0x58c   : > { %v11275_v63 = vmax.f32 %v11243_v60, 0.0  ;;  %v11276_v6 = vmax.f32 %v11244_v51, 0.0  ;;  %v11277_v59 = vmax.f32 %v11245_v14, 0.0  ;;  %v11278_v31 = vmax.f32 %v11246_v27, 0.0  ;;  %11300 = vst [vmem:[%s18804_s20] sm:$0xff] %v11268_v42  ;;  %11301 = vst [vmem:[%s18804_s20 + $0x8] sm:$0xff] %v11269_v4 }
 0x58d   : > { %11302 = vst [vmem:[%s18804_s20 + $0x10] sm:$0xff] %v11270_v16  ;;  %v11279_v7 = vmax.f32 %v11247_v61, 0.0  ;;  %v11280_v34 = vmax.f32 %v11248_v10, 0.0  ;;  %v11281_v15 = vmax.f32 %v11249_v45, 0.0  ;;  %v11282_v56 = vmax.f32 %v11250_v12, 0.0  ;;  %11303 = vst [vmem:[%s18804_s20 + $0x18] sm:$0xff] %v11271_v1 }
 0x58e   : > { %11304 = vst [vmem:[%s18804_s20 + $0x20] sm:$0xff] %v11272_v29  ;;  %11305 = vst [vmem:[%s18804_s20 + $0x28] sm:$0xff] %v11273_v22  ;;  %v11283_v2 = vmax.f32 %v11251_v44, 0.0  ;;  %v11284_v28 = vmax.f32 %v11252_v18, 0.0  ;;  %v11285_v3 = vmax.f32 %v11253_v36, 0.0  ;;  %v11286_v13 = vmax.f32 %v11254_v5, 0.0 }
 0x58f   : > { %11306 = vst [vmem:[%s18804_s20 + $0x30] sm:$0xff] %v11274_v40  ;;  %11307 = vst [vmem:[%s18804_s20 + $0x38] sm:$0xff] %v11275_v63  ;;  %v11287_v62 = vmax.f32 %v18807_v58, 0.0  ;;  %v11288_v46 = vmax.f32 %v18809_v39, 0.0  ;;  %v11289_v50 = vmax.f32 %v18811_v26, 0.0  ;;  %v11290_v47 = vmax.f32 %v18813_v23, 0.0 }
 0x590   : > { %11308 = vst [vmem:[%s18804_s20 + $0x40] sm:$0xff] %v11276_v6  ;;  %11309 = vst [vmem:[%s18804_s20 + $0x48] sm:$0xff] %v11277_v59  ;;  %v11291_v38 = vmax.f32 %v18815_v41, 0.0  ;;  %v11292_v48 = vmax.f32 %v18817_v0, 0.0  ;;  %v11293_v33 = vmax.f32 %v18819_v55, 0.0  ;;  %v11294_v54 = vmax.f32 %v18821_v9, 0.0 }
 0x591   : > { %11310 = vst [vmem:[%s18804_s20 + $0x50] sm:$0xff] %v11278_v31  ;;  %11311 = vst [vmem:[%s18804_s20 + $0x58] sm:$0xff] %v11279_v7  ;;  %v11295_v57 = vmax.f32 %v18823_v53, 0.0  ;;  %v11296_v52 = vmax.f32 %v18825_v35, 0.0  ;;  %v11298_v20 = vmax.f32 %v18827_v21, 0.0  ;;  %v11299_v37 = vmax.f32 %v18829_v30, 0.0 }
 0x592   : > { %11312 = vst [vmem:[%s18804_s20 + $0x60] sm:$0xff] %v11280_v34  ;;  %11313 = vst [vmem:[%s18804_s20 + $0x68] sm:$0xff] %v11281_v15 }
 0x593   : > { %11314 = vst [vmem:[%s18804_s20 + $0x70] sm:$0xff] %v11282_v56  ;;  %11315 = vst [vmem:[%s18804_s20 + $0x78] sm:$0xff] %v11283_v2 }
 0x594   : > { %11316 = vst [vmem:[%s18804_s20 + $0x80] sm:$0xff] %v11284_v28  ;;  %11317 = vst [vmem:[%s18804_s20 + $0x88] sm:$0xff] %v11285_v3 }
 0x595   : > { %11318 = vst [vmem:[%s18804_s20 + $0x90] sm:$0xff] %v11286_v13  ;;  %11319 = vst [vmem:[%s18804_s20 + $0x98] sm:$0xff] %v11287_v62 }
 0x596   : > { %11320 = vst [vmem:[%s18804_s20 + $0xa0] sm:$0xff] %v11288_v46  ;;  %11321 = vst [vmem:[%s18804_s20 + $0xa8] sm:$0xff] %v11289_v50 }
 0x597   : > { %11322 = vst [vmem:[%s18804_s20 + $0xb0] sm:$0xff] %v11290_v47  ;;  %11323 = vst [vmem:[%s18804_s20 + $0xb8] sm:$0xff] %v11291_v38 }
 0x598   : > { %11324 = vst [vmem:[%s18804_s20 + $0xc0] sm:$0xff] %v11292_v48  ;;  %11325 = vst [vmem:[%s18804_s20 + $0xc8] sm:$0xff] %v11293_v33 }
 0x599   : > { %11326 = vst [vmem:[%s18804_s20 + $0xd0] sm:$0xff] %v11294_v54  ;;  %11327 = vst [vmem:[%s18804_s20 + $0xd8] sm:$0xff] %v11295_v57 }
 0x59a   : > { %11328 = vst [vmem:[%s18804_s20 + $0xe0] sm:$0xff] %v11296_v52  ;;  %11330 = vst [vmem:[%s18804_s20 + $0xf0] sm:$0xff] %v11298_v20 }
 0x59b   : > { %11331 = vst [vmem:[%s18804_s20 + $0xf8] sm:$0xff] %v11299_v37 }
 0x59c   : > { %13774 = shalt.err (!%p13771_p3)
}
 0x59d   : > { %s13775_s23 = scalar_lea.hbm %s18863_s29, 4096  ;;  %s13779_s6 = scalar_lea.hbm %s18927_s3, 8192 }
 0x59e   : > { %p13776_p11 = scmp.ne.s32.totalorder %s18863_s29, %s13775_s23  ;;  %p13780_p4 = scmp.lt.s32.totalorder %s18863_s29, %s18927_s3 }
 0x59f   : > { %p13781_p6 = scmp.lt.s32.totalorder %s13779_s6, %s13775_s23 }
 0x5a0   : > { %p13777_p9 = pnand %p13776_p11, %p19282_p2 }
 0x5a1   : > { %p13782_p8 = por %p13781_p6, %p13780_p4 }
 0x5a2   : > { %p13778_p1 = pneg %p13777_p9 }
 0x5a4   : > { %p13783_p5 = pnand %p13782_p8, %p13778_p1 }
 0x5a6   : > { %13786 = shalt.err (!%p13783_p5)
}
 0x5a7   : > { %s13838_s18 = smov 128   ;;  %s13839_s20 = smov 8  }
 0x5a8   : > { %13356 = dma.vmem_to_hbm [thread:$0]  (%p19282_p2), %s18865_s28, 4096, %s18863_s29, %s11333_s30, %s13838_s18, %s13838_s18, %s13839_s20  }
 0x5a9 PF: > { %s11361_s27 = sand.u32 1, %s13817_s12   ;;  %p19283_p7 = scmp.ne.s32.totalorder %s18960_s19, 0 }
 0x5aa   : > { %p19284_p12 = scmp.ge.s32.totalorder %s13829_s15, 2  ;;  %s11362_s16 = scalar_lea.sflag [#allocation5], %s11361_s27 }
 0x5ac   : > { %p13370_p13 = pnand %p19284_p12, %p19283_p7 }
 0x5ae   : > { %p13371_p0 = pneg %p13370_p13 }
 0x5b0   : > { %13812 = dma.done.wait (%p13371_p0), %s11362_s16, 4096  }
 0x5b1   : > { %13814 = vsyncadd (%p13371_p0), %s11362_s16, 4294963200  ;;  %p17_p10 = scmp.ge.s32.totalorder %s13938_s7, 4   ;;  %s19285_s12 = smov %s13821_s13 }
 0x5b2   : > { %s19286_s13 = smov %s13825_s14  ;;  %s19287_s14 = smov %s13954_s11 }
 0x5b3   : > { %s19288_s15 = smov %s13938_s7  ;;  %19 = sbr.rel (!%p17_p10) target bundleno = 6 (0x6), region = 103 }
 0x5b8   :  { %11367 = vsyncpa [#allocation4], 1 }
 0x5b9   :  { %11369 = vsyncpa [#allocation4 + $0x1], 1 }
 0x5ba   :  { %11370 = vsyncpa [#allocation7], 1 }
 0x5bb   :  { %11371 = vsyncpa [#allocation5], 1 }
 0x5bc   :  { %11373 = vsyncpa [#allocation5 + $0x1], 1 }

</bundles_post_ra>
